<compile_context>
chip_gen: v7x
topology: tpu7x:2x2x1
jax: 0.10.0
libtpu: 0.0.40
codegen_flags: <defaults>
</compile_context>

<pallas_src>
import functools
import math

import jax
import jax.numpy as jnp
from jax.experimental import pallas as pl
from jax.experimental.pallas import tpu as pltpu

# Logical sizes implied by the module's __init__ / forward.
IN_DIM = 2560
HIDDEN = 1240      # fc1 out; must equal fc2's in_features (1240) for forward to work
FC2_OUT = 500
FC3_OUT = 30

# Lane-padded sizes (multiples of 128) used inside the kernel for dense MXU tiles.
PAD_HIDDEN = 1280
PAD_FC2 = 512
PAD_FC3 = 128
PAD_OUT = 128      # lane-dense output head; real columns are [:output_size]


def _round_up(x, m):
    return ((x + m - 1) // m) * m


def _cdiv(a, b):
    return -(-a // b)


def _chip_config():
    """Python-level (trace-time) chip detection for tiling / VMEM / dtype choices."""
    kind = ""
    try:
        kind = jax.devices()[0].device_kind.lower()
    except Exception:
        pass
    if "v7" in kind:
        # 2 TensorCores, 64 MiB VMEM/TC, bf16 VPU/EUP.
        return dict(tile_cap=512, vmem=48 * 1024 * 1024, bf16_tanh=True, two_core=True)
    if "v6" in kind:
        # 1 TC, 128 MiB VMEM, bf16 VPU/EUP; big tiles amortize per-step overhead.
        return dict(tile_cap=1024, vmem=96 * 1024 * 1024, bf16_tanh=True, two_core=False)
    if "v5" in kind:
        # MXU-bound already at tile 256; no bf16 EUP/VALU -> keep f32 tanh.
        return dict(tile_cap=256, vmem=48 * 1024 * 1024, bf16_tanh=False, two_core=False)
    # Unknown chip: conservative settings that are valid everywhere.
    return dict(tile_cap=256, vmem=48 * 1024 * 1024, bf16_tanh=False, two_core=False)


def _pick_tile(batch, cfg):
    cap = cfg["tile_cap"]
    tile = min(_round_up(batch, 8), cap)
    # On v7x make sure the grid has >= 2 steps (dimension_semantics=("parallel",)
    # shards the grid across the 2 TensorCores); a single-step grid idles one TC.
    if cfg["two_core"] and batch > 8 and _cdiv(batch, tile) < 2:
        tile = min(_round_up(_cdiv(batch, 2), 8), cap)
    return tile


def mlp_kernel(x_ref, w1_ref, b1_ref, w2_ref, b2_ref, w3_ref, b3_ref,
               w4_ref, b4_ref, o_ref, *, bf16_tanh):
    act_dtype = jnp.bfloat16 if bf16_tanh else jnp.float32
    # Matmuls run bf16 x bf16 on the MXU with f32 accumulation; bias adds in f32.
    x = x_ref[...].astype(jnp.bfloat16)
    h = jnp.dot(x, w1_ref[...], preferred_element_type=jnp.float32) + b1_ref[...]
    h = jnp.tanh(h.astype(act_dtype)).astype(jnp.bfloat16)
    h = jnp.dot(h, w2_ref[...], preferred_element_type=jnp.float32) + b2_ref[...]
    h = jnp.tanh(h.astype(act_dtype)).astype(jnp.bfloat16)
    h = jnp.dot(h, w3_ref[...], preferred_element_type=jnp.float32) + b3_ref[...]
    h = jnp.tanh(h.astype(act_dtype)).astype(jnp.bfloat16)
    out = jnp.dot(h, w4_ref[...], preferred_element_type=jnp.float32) + b4_ref[...]
    o_ref[...] = out.astype(o_ref.dtype)


@functools.partial(
    jax.jit,
    static_argnames=("output_size", "tile", "bf16_tanh", "vmem_limit"))
def _forward_impl(x, w1, b1, w2, b2, w3, b3, w4, b4, *,
                  output_size, tile, bf16_tanh, vmem_limit):
    batch = x.shape[0]
    grid_len = _cdiv(batch, tile)          # partial last block handled by Pallas
    x_bufs = max(1, min(3, grid_len))      # no point multi-buffering a 1-step grid

    # Constant-index weight/bias blocks: single-buffer (they are DMA'd once and
    # stay resident; the default double buffer would only waste VMEM).
    def resident(shape):
        return pl.BlockSpec(shape, lambda i: (0, 0), pipeline_mode=pl.Buffered(1))

    flops = 2 * batch * (IN_DIM * HIDDEN + HIDDEN * FC2_OUT
                         + FC2_OUT * FC3_OUT + FC3_OUT * output_size)
    transcendentals = batch * (HIDDEN + FC2_OUT + FC3_OUT)
    bytes_accessed = (
        x.size * x.dtype.itemsize + batch * PAD_OUT * 4
        + sum(int(v.size) * v.dtype.itemsize
              for v in (w1, w2, w3, w4, b1, b2, b3, b4)))

    out = pl.pallas_call(
        functools.partial(mlp_kernel, bf16_tanh=bf16_tanh),
        out_shape=jax.ShapeDtypeStruct((batch, PAD_OUT), jnp.float32),
        grid=(grid_len,),
        in_specs=[
            # Streamed x tile; extra buffering absorbs HBM DMA jitter on v6e.
            pl.BlockSpec((tile, IN_DIM), lambda i: (i, 0),
                         pipeline_mode=pl.Buffered(x_bufs)),
            resident(w1.shape), resident(b1.shape),
            resident(w2.shape), resident(b2.shape),
            resident(w3.shape), resident(b3.shape),
            resident(w4.shape), resident(b4.shape),
        ],
        # Lane-dense (128-wide) output block -> unmasked stores, contiguous DMA.
        out_specs=pl.BlockSpec((tile, PAD_OUT), lambda i: (i, 0)),
        compiler_params=pltpu.CompilerParams(
            dimension_semantics=("parallel",),   # megacore / 2-TC sharding
            vmem_limit_bytes=vmem_limit,
        ),
        cost_estimate=pl.CostEstimate(
            flops=flops,
            transcendentals=transcendentals,
            bytes_accessed=bytes_accessed),
    )(x, w1, b1, w2, b2, w3, b3, w4, b4)

    return out[:, :output_size]


def cnn_forward(x, padded_params, *, output_size):
    """x: (B, 2560) f32 or bf16.  padded_params: output of prepare_params()."""
    cfg = _chip_config()
    tile = _pick_tile(x.shape[0], cfg)
    p = padded_params
    return _forward_impl(
        x, p["w1"], p["b1"], p["w2"], p["b2"], p["w3"], p["b3"], p["w4"], p["b4"],
        output_size=output_size, tile=tile,
        bf16_tanh=cfg["bf16_tanh"], vmem_limit=cfg["vmem"])


def init_params(key, hidden_size, output_size):
    """PyTorch nn.Linear default init (U[-1/sqrt(in), 1/sqrt(in)]).
    Weights stored transposed as (in, out); biases as (1, out); all f32."""
    def linear(key, fan_in, fan_out):
        kw, kb = jax.random.split(key)
        bound = 1.0 / math.sqrt(fan_in)
        w = jax.random.uniform(kw, (fan_in, fan_out), jnp.float32, -bound, bound)
        b = jax.random.uniform(kb, (1, fan_out), jnp.float32, -bound, bound)
        return w, b

    k1, k2, k3, k4 = jax.random.split(key, 4)
    w1, b1 = linear(k1, IN_DIM, hidden_size)
    w2, b2 = linear(k2, HIDDEN, FC2_OUT)   # fc2 expects 1240 inputs
    w3, b3 = linear(k3, FC2_OUT, FC3_OUT)
    w4, b4 = linear(k4, FC3_OUT, output_size)
    return {"w1": w1, "b1": b1, "w2": w2, "b2": b2,
            "w3": w3, "b3": b3, "w4": w4, "b4": b4}


def prepare_params(params):
    """Zero-pad hidden dims (and the output head) to lane multiples, cast weights
    to bf16.  Zero pads are exact: padded pre-activations are 0, tanh(0)=0, and the
    corresponding downstream weight rows / output lanes are 0, so the logical math
    is unchanged."""
    def pad2(a, rows, cols):
        return jnp.pad(a, ((0, rows - a.shape[0]), (0, cols - a.shape[1])))

    # TODO(synk): on v7x, w1 could be stored fp8 (e4m3) for the dominant fc1
    # matmul; kept bf16 here pending accuracy validation.
    return {
        "w1": pad2(params["w1"], IN_DIM, PAD_HIDDEN).astype(jnp.bfloat16),
        "b1": pad2(params["b1"], 1, PAD_HIDDEN),
        "w2": pad2(params["w2"], PAD_HIDDEN, PAD_FC2).astype(jnp.bfloat16),
        "b2": pad2(params["b2"], 1, PAD_FC2),
        "w3": pad2(params["w3"], PAD_FC2, PAD_FC3).astype(jnp.bfloat16),
        "b3": pad2(params["b3"], 1, PAD_FC3),
        "w4": pad2(params["w4"], PAD_FC3, PAD_OUT).astype(jnp.bfloat16),
        "b4": pad2(params["b4"], 1, PAD_OUT),
    }


def reference_forward(x, params):
    """Pure f32 reference (unpadded weights)."""
    h = jnp.tanh(x @ params["w1"] + params["b1"])
    h = jnp.tanh(h @ params["w2"] + params["b2"])
    h = jnp.tanh(h @ params["w3"] + params["b3"])
    return h @ params["w4"] + params["b4"]


if __name__ == "__main__":
    # The module only forwards correctly when hidden_size == 1240 (fc2 input).
    hidden_size = HIDDEN
    output_size = 4
    batch = 2

    key = jax.random.PRNGKey(0)
    kx, kp = jax.random.split(key)
    x = jax.random.normal(kx, (batch, IN_DIM), jnp.float32)
    params = init_params(kp, hidden_size, output_size)
    padded_params = prepare_params(params)

    out = cnn_forward(x, padded_params, output_size=output_size)
    out = jax.block_until_ready(out)

    ref = reference_forward(x, params)
    assert out.shape == (batch, output_size)
    # bf16 weights (and bf16 tanh on v6e/v7x) vs f32 reference -> small drift.
    assert jnp.allclose(out, ref, atol=3e-2, rtol=3e-2), \
        float(jnp.max(jnp.abs(out - ref)))

    print("KERNEL_OK")
</pallas_src>

<mosaic_0001>
module attributes {stable_mosaic.version = 11 : i64} {
  func.func @mlp_kernel(%arg0: i32, %arg1: memref<8x2560xf32, #tpu.memory_space<vmem>>, %arg2: memref<2560x1280xbf16, #tpu.memory_space<vmem>>, %arg3: memref<1x1280xf32, #tpu.memory_space<vmem>>, %arg4: memref<1280x512xbf16, #tpu.memory_space<vmem>>, %arg5: memref<1x512xf32, #tpu.memory_space<vmem>>, %arg6: memref<512x128xbf16, #tpu.memory_space<vmem>>, %arg7: memref<1x128xf32, #tpu.memory_space<vmem>>, %arg8: memref<128x128xbf16, #tpu.memory_space<vmem>>, %arg9: memref<1x128xf32, #tpu.memory_space<vmem>>, %arg10: memref<8x128xf32, #tpu.memory_space<vmem>>) attributes {dimension_semantics = [#tpu.dimension_semantics<parallel>], iteration_bounds = array<i64: 1>, scalar_prefetch = 0 : i64, scratch_operands = 0 : i64, tpu.core_type = #tpu.core_type<tc>, window_params = [{pipeline_mode = #tpu.pipeline_mode<synchronous>, transform_indices = @transform_0, window_bounds = array<i64: 8, 2560>}, {pipeline_mode = #tpu.pipeline_mode<synchronous>, transform_indices = @transform_1, window_bounds = array<i64: 2560, 1280>}, {pipeline_mode = #tpu.pipeline_mode<synchronous>, transform_indices = @transform_2, window_bounds = array<i64: 1, 1280>}, {pipeline_mode = #tpu.pipeline_mode<synchronous>, transform_indices = @transform_3, window_bounds = array<i64: 1280, 512>}, {pipeline_mode = #tpu.pipeline_mode<synchronous>, transform_indices = @transform_4, window_bounds = array<i64: 1, 512>}, {pipeline_mode = #tpu.pipeline_mode<synchronous>, transform_indices = @transform_5, window_bounds = array<i64: 512, 128>}, {pipeline_mode = #tpu.pipeline_mode<synchronous>, transform_indices = @transform_6, window_bounds = array<i64: 1, 128>}, {pipeline_mode = #tpu.pipeline_mode<synchronous>, transform_indices = @transform_7, window_bounds = array<i64: 128, 128>}, {pipeline_mode = #tpu.pipeline_mode<synchronous>, transform_indices = @transform_8, window_bounds = array<i64: 1, 128>}, {transform_indices = @transform_9, window_bounds = array<i64: 8, 128>}]} {
    %c0 = arith.constant 0 : index
    %c0_0 = arith.constant 0 : index
    %0 = vector.load %arg1[%c0, %c0_0] : memref<8x2560xf32, #tpu.memory_space<vmem>>, vector<8x2560xf32>
    %1 = arith.truncf %0 : vector<8x2560xf32> to vector<8x2560xbf16>
    %c0_1 = arith.constant 0 : index
    %c0_2 = arith.constant 0 : index
    %2 = vector.load %arg2[%c0_1, %c0_2] : memref<2560x1280xbf16, #tpu.memory_space<vmem>>, vector<2560x1280xbf16>
    %cst = arith.constant dense<0.000000e+00> : vector<8x1280xf32>
    %3 = tpu.matmul %1, %2, %cst {dimension_numbers = #tpu.dot_dimension_numbers<[1], [0], [0], [1], [0, 0, 1, 1], [], []>} : vector<8x2560xbf16>, vector<2560x1280xbf16>, vector<8x1280xf32> -> vector<8x1280xf32>
    %c0_3 = arith.constant 0 : index
    %c0_4 = arith.constant 0 : index
    %4 = vector.load %arg3[%c0_3, %c0_4] : memref<1x1280xf32, #tpu.memory_space<vmem>>, vector<1x1280xf32>
    %5 = vector.broadcast %4 : vector<1x1280xf32> to vector<8x1280xf32>
    %6 = arith.addf %3, %5 : vector<8x1280xf32>
    %7 = math.tanh %6 : vector<8x1280xf32>
    %8 = arith.truncf %7 : vector<8x1280xf32> to vector<8x1280xbf16>
    %c0_5 = arith.constant 0 : index
    %c0_6 = arith.constant 0 : index
    %9 = vector.load %arg4[%c0_5, %c0_6] : memref<1280x512xbf16, #tpu.memory_space<vmem>>, vector<1280x512xbf16>
    %cst_7 = arith.constant dense<0.000000e+00> : vector<8x512xf32>
    %10 = tpu.matmul %8, %9, %cst_7 {dimension_numbers = #tpu.dot_dimension_numbers<[1], [0], [0], [1], [0, 0, 1, 1], [], []>} : vector<8x1280xbf16>, vector<1280x512xbf16>, vector<8x512xf32> -> vector<8x512xf32>
    %c0_8 = arith.constant 0 : index
    %c0_9 = arith.constant 0 : index
    %11 = vector.load %arg5[%c0_8, %c0_9] : memref<1x512xf32, #tpu.memory_space<vmem>>, vector<1x512xf32>
    %12 = vector.broadcast %11 : vector<1x512xf32> to vector<8x512xf32>
    %13 = arith.addf %10, %12 : vector<8x512xf32>
    %14 = math.tanh %13 : vector<8x512xf32>
    %15 = arith.truncf %14 : vector<8x512xf32> to vector<8x512xbf16>
    %c0_10 = arith.constant 0 : index
    %c0_11 = arith.constant 0 : index
    %16 = vector.load %arg6[%c0_10, %c0_11] : memref<512x128xbf16, #tpu.memory_space<vmem>>, vector<512x128xbf16>
    %cst_12 = arith.constant dense<0.000000e+00> : vector<8x128xf32>
    %17 = tpu.matmul %15, %16, %cst_12 {dimension_numbers = #tpu.dot_dimension_numbers<[1], [0], [0], [1], [0, 0, 1, 1], [], []>} : vector<8x512xbf16>, vector<512x128xbf16>, vector<8x128xf32> -> vector<8x128xf32>
    %c0_13 = arith.constant 0 : index
    %c0_14 = arith.constant 0 : index
    %18 = vector.load %arg7[%c0_13, %c0_14] : memref<1x128xf32, #tpu.memory_space<vmem>>, vector<1x128xf32>
    %19 = vector.broadcast %18 : vector<1x128xf32> to vector<8x128xf32>
    %20 = arith.addf %17, %19 : vector<8x128xf32>
    %21 = math.tanh %20 : vector<8x128xf32>
    %22 = arith.truncf %21 : vector<8x128xf32> to vector<8x128xbf16>
    %c0_15 = arith.constant 0 : index
    %c0_16 = arith.constant 0 : index
    %23 = vector.load %arg8[%c0_15, %c0_16] : memref<128x128xbf16, #tpu.memory_space<vmem>>, vector<128x128xbf16>
    %cst_17 = arith.constant dense<0.000000e+00> : vector<8x128xf32>
    %24 = tpu.matmul %22, %23, %cst_17 {dimension_numbers = #tpu.dot_dimension_numbers<[1], [0], [0], [1], [0, 0, 1, 1], [], []>} : vector<8x128xbf16>, vector<128x128xbf16>, vector<8x128xf32> -> vector<8x128xf32>
    %c0_18 = arith.constant 0 : index
    %c0_19 = arith.constant 0 : index
    %25 = vector.load %arg9[%c0_18, %c0_19] : memref<1x128xf32, #tpu.memory_space<vmem>>, vector<1x128xf32>
    %26 = vector.broadcast %25 : vector<1x128xf32> to vector<8x128xf32>
    %27 = arith.addf %24, %26 : vector<8x128xf32>
    %c0_20 = arith.constant 0 : index
    %c0_21 = arith.constant 0 : index
    %28 = vector.load %arg10[%c0_20, %c0_21] : memref<8x128xf32, #tpu.memory_space<vmem>>, vector<8x128xf32>
    tpu.vector_store %arg10[%c0_20, %c0_21], %27 {strides = array<i32>} : memref<8x128xf32, #tpu.memory_space<vmem>>, vector<8x128xf32>,
    return
  }
  func.func @transform_0(%arg0: i32) -> (i32, i32) {
    %c0_i32 = arith.constant 0 : i32
    %c0_i32_0 = arith.constant 0 : i32
    return %arg0, %c0_i32 : i32, i32
  }
  func.func @transform_1(%arg0: i32) -> (i32, i32) {
    %c0_i32 = arith.constant 0 : i32
    %c0_i32_0 = arith.constant 0 : i32
    %c0_i32_1 = arith.constant 0 : i32
    return %c0_i32, %c0_i32_0 : i32, i32
  }
  func.func @transform_2(%arg0: i32) -> (i32, i32) {
    %c0_i32 = arith.constant 0 : i32
    %c0_i32_0 = arith.constant 0 : i32
    %c0_i32_1 = arith.constant 0 : i32
    return %c0_i32, %c0_i32_0 : i32, i32
  }
  func.func @transform_3(%arg0: i32) -> (i32, i32) {
    %c0_i32 = arith.constant 0 : i32
    %c0_i32_0 = arith.constant 0 : i32
    %c0_i32_1 = arith.constant 0 : i32
    return %c0_i32, %c0_i32_0 : i32, i32
  }
  func.func @transform_4(%arg0: i32) -> (i32, i32) {
    %c0_i32 = arith.constant 0 : i32
    %c0_i32_0 = arith.constant 0 : i32
    %c0_i32_1 = arith.constant 0 : i32
    return %c0_i32, %c0_i32_0 : i32, i32
  }
  func.func @transform_5(%arg0: i32) -> (i32, i32) {
    %c0_i32 = arith.constant 0 : i32
    %c0_i32_0 = arith.constant 0 : i32
    %c0_i32_1 = arith.constant 0 : i32
    return %c0_i32, %c0_i32_0 : i32, i32
  }
  func.func @transform_6(%arg0: i32) -> (i32, i32) {
    %c0_i32 = arith.constant 0 : i32
    %c0_i32_0 = arith.constant 0 : i32
    %c0_i32_1 = arith.constant 0 : i32
    return %c0_i32, %c0_i32_0 : i32, i32
  }
  func.func @transform_7(%arg0: i32) -> (i32, i32) {
    %c0_i32 = arith.constant 0 : i32
    %c0_i32_0 = arith.constant 0 : i32
    %c0_i32_1 = arith.constant 0 : i32
    return %c0_i32, %c0_i32_0 : i32, i32
  }
  func.func @transform_8(%arg0: i32) -> (i32, i32) {
    %c0_i32 = arith.constant 0 : i32
    %c0_i32_0 = arith.constant 0 : i32
    %c0_i32_1 = arith.constant 0 : i32
    return %c0_i32, %c0_i32_0 : i32, i32
  }
  func.func @transform_9(%arg0: i32) -> (i32, i32) {
    %c0_i32 = arith.constant 0 : i32
    %c0_i32_0 = arith.constant 0 : i32
    return %arg0, %c0_i32 : i32, i32
  }
}

</mosaic_0001>

<bundles_post_ra>
// kernel: _forward_impl.1
= control target key start
LH: loop header
LB: loop body
LE: loop exit
PB: predicated region body
PF: predicated region fallthrough
CT: control target
= control target key end

     0   :  { %14 = vsyncpa [#allocation3], 0  ;;  %s21002_s0 = inlined_call_operand.hbm [shape: f32[2,2560], index: 0, kind: input, shape index: {}]   ;;  %s21003_s1 = inlined_call_operand.hbm [shape: bf16[2560,1280], index: 1, kind: input, shape index: {}]   ;;  %s21004_s2 = inlined_call_operand.hbm [shape: f32[1,1280], index: 2, kind: input, shape index: {}]   ;;  %s21005_s3 = inlined_call_operand.hbm [shape: bf16[1280,512], index: 3, kind: input, shape index: {}]   ;;  %s21006_s4 = inlined_call_operand.hbm [shape: f32[1,512], index: 4, kind: input, shape index: {}]   ;;  %s21007_s5 = inlined_call_operand.hbm [shape: bf16[512,128], index: 5, kind: input, shape index: {}]   ;;  %s21008_s6 = inlined_call_operand.hbm [shape: f32[1,128], index: 6, kind: input, shape index: {}]   ;;  %s21009_s7 = inlined_call_operand.hbm [shape: bf16[128,128], index: 7, kind: input, shape index: {}]   ;;  %s21010_s8 = inlined_call_operand.hbm [shape: f32[1,128], index: 8, kind: input, shape index: {}]   ;;  %s21011_s9 = inlined_call_operand.hbm [shape: f32[2,128], index: 9, kind: output, shape index: {}]  }
   0x1   :  { %15 = vsyncpa [#allocation6], 0 }
   0x2   :  { %16 = vsyncpa [#allocation9], 0 }
   0x3   :  { %17 = vsyncpa [#allocation12], 0 }
   0x4   :  { %18 = vsyncpa [#allocation15], 0 }
   0x5   :  { %19 = vsyncpa [#allocation4], 0 }
   0x6   :  { %24 = vsyncadd [#allocation3], 1920  ;;  %s20465_s30 = smov [#allocation5]   ;;  %s20466_s11 = smov [#allocation8]  }
   0x7   :  { %s37_s10 = sshll.u32 %s20465_s30, 4  ;;  %s59_s12 = sshll.u32 %s20466_s11, 4  ;;  %s38_s10 = int_to_ptr.vmem [resolvable:$true] %s37_s10  ;;  %s20536_s12 = int_to_ptr.vmem [resolvable:$true] %s59_s12 }
   0x8   :  { %s20233_s15 = scalar_lea.hbm %s21003_s1, 204800 }
   0x9   :  { %p20234_p0 = scmp.ne.s32.totalorder %s21003_s1, %s20233_s15  ;;  %p20237_p1 = scmp.lt.u32.totalorder %s20233_s15, %s21003_s1 }
   0xb   :  { %p20239_p2 = pnand %p20237_p1, %p20234_p0 }
   0xd   :  { %20242 = shalt.err (!%p20239_p2)
}
   0xe   :  { %s20243_s20 = scalar_lea.vmem %s38_s10, 204800  ;;  %p20248_p4 = scmp.lt.s32.totalorder %s38_s10, %s38_s10 }
   0xf   :  { %p20244_p3 = scmp.ne.s32.totalorder %s38_s10, %s20243_s20  ;;  %p20249_p5 = scmp.lt.s32.totalorder %s20243_s20, %s20243_s20 }
  0x11   :  { %p20250_p6 = por %p20249_p5, %p20248_p4 }
  0x13   :  { %p20251_p7 = pnand %p20250_p6, %p20244_p3 }
  0x15   :  { %20254 = shalt.err (!%p20251_p7)
}
  0x16   :  { %s20467_s21 = smov 640   ;;  %s20468_s22 = smov 40  }
  0x17   :  { %43 = dma.hbm_to_vmem [thread:$0]  %s21003_s1, 204800, %s38_s10, [#allocation6], %s20467_s21, %s20467_s21, %s20468_s22  }
  0x18   :  { %s20255_s27 = scalar_lea.hbm %s21005_s3, 40960 }
  0x19   :  { %p20256_p8 = scmp.ne.s32.totalorder %s21005_s3, %s20255_s27  ;;  %p20259_p9 = scmp.lt.u32.totalorder %s20255_s27, %s21005_s3 }
  0x1b   :  { %p20261_p10 = pnand %p20259_p9, %p20256_p8 }
  0x1d   :  { %20264 = shalt.err (!%p20261_p10)
}
  0x1e   :  { %s20265_s13 = scalar_lea.vmem %s20536_s12, 40960  ;;  %p20270_p12 = scmp.lt.s32.totalorder %s20536_s12, %s20536_s12 }
  0x1f   :  { %p20266_p11 = scmp.ne.s32.totalorder %s20536_s12, %s20265_s13  ;;  %p20271_p13 = scmp.lt.s32.totalorder %s20265_s13, %s20265_s13 }
  0x21   :  { %p20272_p0 = por %p20271_p13, %p20270_p12 }
  0x23   :  { %p20273_p1 = pnand %p20272_p0, %p20266_p11 }
  0x25   :  { %20276 = shalt.err (!%p20273_p1)
}
  0x26   :  { %s20469_s1 = smov 256   ;;  %s20470_s10 = smov 16  }
  0x27   :  { %65 = dma.hbm_to_vmem [thread:$0]  %s21005_s3, 40960, %s20536_s12, [#allocation9], %s20469_s1, %s20469_s1, %s20470_s10  }
  0x28   :  { %s20471_s16 = smov [#allocation11]   ;;  %s20277_s20 = scalar_lea.hbm %s21007_s5, 4096 }
  0x29   :  { %s81_s17 = sshll.u32 %s20471_s16, 4  ;;  %p20278_p2 = scmp.ne.s32.totalorder %s21007_s5, %s20277_s20  ;;  %s82_s17 = int_to_ptr.vmem [resolvable:$true] %s81_s17 }
  0x2a   :  { %p20281_p3 = scmp.lt.u32.totalorder %s20277_s20, %s21007_s5 }
  0x2c   :  { %p20283_p4 = pnand %p20281_p3, %p20278_p2 }
  0x2e   :  { %20286 = shalt.err (!%p20283_p4)
}
  0x2f   :  { %s20287_s27 = scalar_lea.vmem %s82_s17, 4096  ;;  %p20292_p6 = scmp.lt.s32.totalorder %s82_s17, %s82_s17 }
  0x30   :  { %p20288_p5 = scmp.ne.s32.totalorder %s82_s17, %s20287_s27  ;;  %p20293_p7 = scmp.lt.s32.totalorder %s20287_s27, %s20287_s27 }
  0x32   :  { %p20294_p8 = por %p20293_p7, %p20292_p6 }
  0x34   :  { %p20295_p9 = pnand %p20294_p8, %p20288_p5 }
  0x36   :  { %20298 = shalt.err (!%p20295_p9)
}
  0x37   :  { %s20472_s3 = smov 64   ;;  %s20473_s12 = smov 4  }
  0x38   :  { %87 = dma.hbm_to_vmem [thread:$0]  %s21007_s5, 4096, %s82_s17, [#allocation12], %s20472_s3, %s20472_s3, %s20473_s12  }
  0x39   :  { %s20474_s30 = smov [#allocation14]   ;;  %s20475_s13 = smov [#allocation2]  }
  0x3a   :  { %s103_s11 = sshll.u32 %s20474_s30, 4  ;;  %s25_s1 = sshll.u32 %s20475_s13, 4  ;;  %s104_s11 = int_to_ptr.vmem [resolvable:$true] %s103_s11  ;;  %s26_s1 = int_to_ptr.vmem [resolvable:$true] %s25_s1 }
  0x3b   :  { %s20299_s15 = scalar_lea.hbm %s21009_s7, 1024 }
  0x3c   :  { %p20300_p10 = scmp.ne.s32.totalorder %s21009_s7, %s20299_s15  ;;  %p20303_p11 = scmp.lt.u32.totalorder %s20299_s15, %s21009_s7 }
  0x3e   :  { %p20305_p12 = pnand %p20303_p11, %p20300_p10 }
  0x40   :  { %20308 = shalt.err (!%p20305_p12)
}
  0x41   :  { %s20309_s5 = scalar_lea.vmem %s104_s11, 1024  ;;  %p20314_p0 = scmp.lt.s32.totalorder %s104_s11, %s104_s11 }
  0x42   :  { %p20310_p13 = scmp.ne.s32.totalorder %s104_s11, %s20309_s5  ;;  %p20315_p1 = scmp.lt.s32.totalorder %s20309_s5, %s20309_s5 }
  0x44   :  { %p20316_p2 = por %p20315_p1, %p20314_p0 }
  0x46   :  { %p20317_p3 = pnand %p20316_p2, %p20310_p13 }
  0x48   :  { %20320 = shalt.err (!%p20317_p3)
}
  0x49   :  { %109 = dma.hbm_to_vmem [thread:$0]  %s21009_s7, 1024, %s104_s11, [#allocation15], %s20472_s3, %s20472_s3, %s20473_s12  }
  0x4a   :  { %s20321_s26 = scalar_lea.hbm %s21002_s0, 640 }
  0x4b   :  { %p20322_p4 = scmp.ne.s32.totalorder %s21002_s0, %s20321_s26  ;;  %p20325_p5 = scmp.lt.u32.totalorder %s20321_s26, %s21002_s0 }
  0x4d   :  { %p20327_p6 = pnand %p20325_p5, %p20322_p4 }
  0x4f   :  { %20330 = shalt.err (!%p20327_p6)
}
  0x50   :  { %s20331_s13 = scalar_lea.vmem %s26_s1, 640  ;;  %s20335_s10 = scalar_lea.vmem %s26_s1, 2560 }
  0x51   :  { %p20332_p7 = scmp.ne.s32.totalorder %s26_s1, %s20331_s13  ;;  %p20336_p8 = scmp.lt.s32.totalorder %s26_s1, %s26_s1 }
  0x52   :  { %p20337_p9 = scmp.lt.s32.totalorder %s20335_s10, %s20331_s13 }
  0x54   :  { %p20338_p10 = por %p20337_p9, %p20336_p8 }
  0x56   :  { %p20339_p11 = pnand %p20338_p10, %p20332_p7 }
  0x58   :  { %20342 = shalt.err (!%p20339_p11)
}
  0x59   :  { %31 = dma.hbm_to_vmem [thread:$0]  %s21002_s0, 640, %s26_s1, [#allocation3], %s20467_s21, %s20467_s21, %s20468_s22  }
  0x5a   :  { %s20476_s12 = smov [#allocation7]   ;;  %s20477_s14 = smov [#allocation10]  }
  0x5b   :  { %s50_s11 = sshll.u32 %s20476_s12, 4  ;;  %s72_s15 = sshll.u32 %s20477_s14, 4  ;;  %s51_s11 = int_to_ptr.vmem [resolvable:$true] %s50_s11  ;;  %s73_s15 = int_to_ptr.vmem [resolvable:$true] %s72_s15 }
  0x5c   :  { %s20343_s19 = scalar_lea.hbm %s21004_s2, 160 }
  0x5d   :  { %p20344_p12 = scmp.ne.s32.totalorder %s21004_s2, %s20343_s19  ;;  %p20347_p13 = scmp.lt.u32.totalorder %s20343_s19, %s21004_s2 }
  0x5f   :  { %p20349_p0 = pnand %p20347_p13, %p20344_p12 }
  0x61   :  { %20352 = shalt.err (!%p20349_p0)
}
  0x62   :  { %s20353_s0 = scalar_lea.vmem %s51_s11, 160  ;;  %p20358_p2 = scmp.lt.s32.totalorder %s51_s11, %s51_s11 }
  0x63   :  { %p20354_p1 = scmp.ne.s32.totalorder %s51_s11, %s20353_s0  ;;  %p20359_p3 = scmp.lt.s32.totalorder %s20353_s0, %s20353_s0 }
  0x65   :  { %p20360_p4 = por %p20359_p3, %p20358_p2 }
  0x67   :  { %p20361_p5 = pnand %p20360_p4, %p20354_p1 }
  0x69   :  { %20364 = shalt.err (!%p20361_p5)
}
  0x6a   :  { %53 = dma.hbm_to_vmem [thread:$0]  %s21004_s2, 160, %s51_s11, [#allocation6]  }
  0x6b   :  { %s20365_s25 = scalar_lea.hbm %s21006_s4, 64 }
  0x6c   :  { %p20366_p6 = scmp.ne.s32.totalorder %s21006_s4, %s20365_s25  ;;  %p20369_p7 = scmp.lt.u32.totalorder %s20365_s25, %s21006_s4 }
  0x6e   :  { %p20371_p8 = pnand %p20369_p7, %p20366_p6 }
  0x70   :  { %20374 = shalt.err (!%p20371_p8)
}
  0x71   :  { %s20375_s30 = scalar_lea.vmem %s73_s15, 64  ;;  %p20380_p10 = scmp.lt.s32.totalorder %s73_s15, %s73_s15 }
  0x72   :  { %p20376_p9 = scmp.ne.s32.totalorder %s73_s15, %s20375_s30  ;;  %p20381_p11 = scmp.lt.s32.totalorder %s20375_s30, %s20375_s30 }
  0x74   :  { %p20382_p12 = por %p20381_p11, %p20380_p10 }
  0x76   :  { %p20383_p13 = pnand %p20382_p12, %p20376_p9 }
  0x78   :  { %20386 = shalt.err (!%p20383_p13)
}
  0x79   :  { %75 = dma.hbm_to_vmem [thread:$0]  %s21006_s4, 64, %s73_s15, [#allocation9]  }
  0x7a   :  { %s20478_s10 = smov [#allocation13]   ;;  %s20479_s3 = smov [#allocation16]  }
  0x7b   :  { %s94_s7 = sshll.u32 %s20478_s10, 4  ;;  %s116_s12 = sshll.u32 %s20479_s3, 4  ;;  %s95_s7 = int_to_ptr.vmem [resolvable:$true] %s94_s7  ;;  %s117_s12 = int_to_ptr.vmem [resolvable:$true] %s116_s12 }
  0x7c   :  { %s20387_s16 = scalar_lea.hbm %s21008_s6, 16 }
  0x7d   :  { %p20388_p0 = scmp.ne.s32.totalorder %s21008_s6, %s20387_s16  ;;  %p20391_p1 = scmp.lt.u32.totalorder %s20387_s16, %s21008_s6 }
  0x7f   :  { %p20393_p2 = pnand %p20391_p1, %p20388_p0 }
  0x81   :  { %20396 = shalt.err (!%p20393_p2)
}
  0x82   :  { %s20397_s4 = scalar_lea.vmem %s95_s7, 16  ;;  %s20401_s15 = scalar_lea.vmem %s95_s7, 32 }
  0x83   :  { %p20398_p3 = scmp.ne.s32.totalorder %s95_s7, %s20397_s4  ;;  %p20402_p4 = scmp.lt.s32.totalorder %s95_s7, %s95_s7 }
  0x84   :  { %p20403_p5 = scmp.lt.s32.totalorder %s20401_s15, %s20397_s4 }
  0x86   :  { %p20404_p6 = por %p20403_p5, %p20402_p4 }
  0x88   :  { %p20405_p7 = pnand %p20404_p6, %p20398_p3 }
  0x8a   :  { %20408 = shalt.err (!%p20405_p7)
}
  0x8b   :  { %97 = dma.hbm_to_vmem [thread:$0]  %s21008_s6, 16, %s95_s7, [#allocation12]  }
  0x8c   :  { %s20409_s22 = scalar_lea.hbm %s21010_s8, 16 }
  0x8d   :  { %p20410_p8 = scmp.ne.s32.totalorder %s21010_s8, %s20409_s22  ;;  %p20413_p9 = scmp.lt.u32.totalorder %s20409_s22, %s21010_s8 }
  0x8f   :  { %p20415_p10 = pnand %p20413_p9, %p20410_p8 }
  0x91   :  { %20418 = shalt.err (!%p20415_p10)
}
  0x92   :  { %s20419_s27 = scalar_lea.vmem %s117_s12, 16  ;;  %s20423_s28 = scalar_lea.vmem %s117_s12, 32 }
  0x93   :  { %p20420_p11 = scmp.ne.s32.totalorder %s117_s12, %s20419_s27  ;;  %p20424_p12 = scmp.lt.s32.totalorder %s117_s12, %s117_s12 }
  0x94   :  { %p20425_p13 = scmp.lt.s32.totalorder %s20423_s28, %s20419_s27 }
  0x96   :  { %p20426_p0 = por %p20425_p13, %p20424_p12 }
  0x98   :  { %p20427_p1 = pnand %p20426_p0, %p20420_p11 }
  0x9a   :  { %20430 = shalt.err (!%p20427_p1)
}
  0x9b   :  { %119 = dma.hbm_to_vmem [thread:$0]  %s21010_s8, 16, %s117_s12, [#allocation15]  }
  0x9c   :  { %20453 = dma.done.wait [#allocation3], 2560  }
  0x9d   :  { %20454 = vsyncadd [#allocation3], 4294964736 }
  0x9e   :  { %20455 = dma.done.wait [#allocation6], 204960  }
  0x9f   :  { %20456 = vsyncadd [#allocation6], 4294762336 }
  0xa0   :  { %20457 = dma.done.wait [#allocation9], 41024  }
  0xa1   :  { %20458 = vsyncadd [#allocation9], 4294926272 }
  0xa2   :  { %20459 = dma.done.wait [#allocation12], 4112  }
  0xa3   :  { %20460 = vsyncadd [#allocation12], 4294963184 }
  0xa4   :  { %20461 = dma.done.wait [#allocation15], 1040  }
  0xa5   :  { %20462 = vsyncadd [#allocation15], 4294966256  ;;  %v17252_v0 = vld [vmem:[#allocation5 + $0x4] ss:$40 sps:$4 sm:$0xff]   ;;  %v17256_v2 = vld [vmem:[#allocation5] ss:$40 sps:$4 sm:$0xff]   ;;  %v195_v40 = vlaneseq }
  0xa6   :  { %v17254_v1 = vld [vmem:[#allocation5 + $0xc] ss:$40 sps:$4 sm:$0xff]   ;;  %10062 = vmatprep.subr.bf16.mxu0 %v17252_v0  ;;  %v17257_v3 = vld [vmem:[#allocation5 + $0x8] ss:$40 sps:$4 sm:$0xff]   ;;  %v17260_v5 = vld [vmem:[#allocation5 + $0x5c] ss:$40 sps:$4 sm:$0xff]  }
  0xa7   :  { %10472 = vmatprep.subr.bf16.mxu1 %v17254_v1  ;;  %v17258_v4 = vld [vmem:[#allocation5 + $0x54] ss:$40 sps:$4 sm:$0xff]   ;;  %10063 = vmatpush1.bf16.msra.mxu0 %v17256_v2  ;;  %v17262_v6 = vld [vmem:[#allocation5 + $0x50] ss:$40 sps:$4 sm:$0xff]   ;;  %v17264_v8 = vld [vmem:[#allocation5 + $0xa4] ss:$40 sps:$4 sm:$0xff]  }
  0xa8   :  { %10473 = vmatpush1.bf16.msra.mxu1 %v17257_v3  ;;  %10064 = vmatprep.subr.bf16.mxu0 %v17258_v4  ;;  %v17263_v7 = vld [vmem:[#allocation5 + $0x58] ss:$40 sps:$4 sm:$0xff]   ;;  %v17266_v9 = vld [vmem:[#allocation5 + $0xac] ss:$40 sps:$4 sm:$0xff]   ;;  %v17269_v11 = vld [vmem:[#allocation5 + $0xa8] ss:$40 sps:$4 sm:$0xff]  }
  0xa9   :  { %10474 = vmatprep.subr.bf16.mxu1 %v17260_v5  ;;  %v17268_v10 = vld [vmem:[#allocation5 + $0xa0] ss:$40 sps:$4 sm:$0xff]   ;;  %v17270_v12 = vld [vmem:[#allocation5 + $0xf4] ss:$40 sps:$4 sm:$0xff]   ;;  %v17274_v14 = vld [vmem:[#allocation5 + $0xf0] ss:$40 sps:$4 sm:$0xff]  }
  0xaa   :  { %v17272_v13 = vld [vmem:[#allocation5 + $0xfc] ss:$40 sps:$4 sm:$0xff]   ;;  %v17275_v15 = vld [vmem:[#allocation5 + $0xf8] ss:$40 sps:$4 sm:$0xff]   ;;  %v17278_v17 = vld [vmem:[#allocation5 + $0x14c] ss:$40 sps:$4 sm:$0xff]  }
  0xab   :  { %10065 = vmatpush1.bf16.msra.mxu0 %v17262_v6  ;;  %v17276_v16 = vld [vmem:[#allocation5 + $0x144] ss:$40 sps:$4 sm:$0xff]   ;;  %v17280_v18 = vld [vmem:[#allocation5 + $0x140] ss:$40 sps:$4 sm:$0xff]   ;;  %v17282_v20 = vld [vmem:[#allocation5 + $0x194] ss:$40 sps:$4 sm:$0xff]  }
  0xac   :  { %10475 = vmatpush1.bf16.msra.mxu1 %v17263_v7  ;;  %10066 = vmatprep.subr.bf16.mxu0 %v17264_v8  ;;  %v17281_v19 = vld [vmem:[#allocation5 + $0x148] ss:$40 sps:$4 sm:$0xff]   ;;  %v17284_v21 = vld [vmem:[#allocation5 + $0x19c] ss:$40 sps:$4 sm:$0xff]   ;;  %v17287_v23 = vld [vmem:[#allocation5 + $0x198] ss:$40 sps:$4 sm:$0xff]  }
  0xad   :  { %10476 = vmatprep.subr.bf16.mxu1 %v17266_v9  ;;  %v17286_v22 = vld [vmem:[#allocation5 + $0x190] ss:$40 sps:$4 sm:$0xff]   ;;  %v17288_v24 = vld [vmem:[#allocation5 + $0x1e4] ss:$40 sps:$4 sm:$0xff]   ;;  %v17292_v26 = vld [vmem:[#allocation5 + $0x1e0] ss:$40 sps:$4 sm:$0xff]  }
  0xae   :  { %v17290_v25 = vld [vmem:[#allocation5 + $0x1ec] ss:$40 sps:$4 sm:$0xff]   ;;  %v17293_v27 = vld [vmem:[#allocation5 + $0x1e8] ss:$40 sps:$4 sm:$0xff]   ;;  %v17296_v29 = vld [vmem:[#allocation5 + $0x23c] ss:$40 sps:$4 sm:$0xff]  }
  0xaf   :  { %10067 = vmatpush1.bf16.msra.mxu0 %v17268_v10  ;;  %v17294_v28 = vld [vmem:[#allocation5 + $0x234] ss:$40 sps:$4 sm:$0xff]   ;;  %v17298_v30 = vld [vmem:[#allocation5 + $0x230] ss:$40 sps:$4 sm:$0xff]   ;;  %v17300_v32 = vld [vmem:[#allocation5 + $0x284] ss:$40 sps:$4 sm:$0xff]  }
  0xb0   :  { %10477 = vmatpush1.bf16.msra.mxu1 %v17269_v11  ;;  %10068 = vmatprep.subr.bf16.mxu0 %v17270_v12  ;;  %v17299_v31 = vld [vmem:[#allocation5 + $0x238] ss:$40 sps:$4 sm:$0xff]   ;;  %v17302_v33 = vld [vmem:[#allocation5 + $0x28c] ss:$40 sps:$4 sm:$0xff]   ;;  %v17305_v35 = vld [vmem:[#allocation5 + $0x288] ss:$40 sps:$4 sm:$0xff]  }
  0xb1   :  { %10478 = vmatprep.subr.bf16.mxu1 %v17272_v13  ;;  %v17304_v34 = vld [vmem:[#allocation5 + $0x280] ss:$40 sps:$4 sm:$0xff]   ;;  %v17306_v36 = vld [vmem:[#allocation5 + $0x2d4] ss:$40 sps:$4 sm:$0xff]   ;;  %v20480_v38 = vmov 1983009808  }
  0xb2   :  { %v17308_v37 = vld [vmem:[#allocation5 + $0x2dc] ss:$40 sps:$4 sm:$0xff]   ;;  %v193_v39 = vunpack.c.l.s4 %v20480_v38  ;;  %v17310_v41 = vld [vmem:[#allocation5 + $0x2d0] ss:$40 sps:$4 sm:$0xff]   ;;  %v17314_v44 = vld [vmem:[#allocation5 + $0x32c] ss:$40 sps:$4 sm:$0xff]  }
  0xb3   :  { %10069 = vmatpush1.bf16.msra.mxu0 %v17274_v14  ;;  %v17311_v42 = vld [vmem:[#allocation5 + $0x2d8] ss:$40 sps:$4 sm:$0xff]   ;;  %v17312_v43 = vld [vmem:[#allocation5 + $0x324] ss:$40 sps:$4 sm:$0xff]   ;;  %v20657_v46 = vshrl.u32 %v195_v40, 7  ;;  %vm20482_vm0 = vmmov 0  }
  0xb4   :  { %10479 = vmatpush1.bf16.msra.mxu1 %v17275_v15  ;;  %10070 = vmatprep.subr.bf16.mxu0 %v17276_v16  ;;  %v194_v45 = vunpack.c.0.s8 %v193_v39  ;;  %v17316_v47 = vld [vmem:[#allocation5 + $0x320] ss:$40 sps:$4 sm:$0xff]   ;;  %v17318_v49 = vld [vmem:[#allocation5 + $0x374] ss:$40 sps:$4 sm:$0xff]   ;;  %v17322_v51 = vld [vmem:[#allocation5 + $0x370] ss:$40 sps:$4 sm:$0xff]  }
  0xb5   :  { %10480 = vmatprep.subr.bf16.mxu1 %v17278_v17  ;;  %v17317_v48 = vld [vmem:[#allocation5 + $0x328] ss:$40 sps:$4 sm:$0xff]   ;;  %v17320_v50 = vld [vmem:[#allocation5 + $0x37c] ss:$40 sps:$4 sm:$0xff]   ;;  %v17323_v52 = vld [vmem:[#allocation5 + $0x378] ss:$40 sps:$4 sm:$0xff]  }
  0xb6   :  { %v20660_v53 = vsub.s32 %v194_v45, %v20657_v46  ;;  %v17348_v54 = vld [vmem:[#allocation2] ss:$40 sps:$4 sm:$0xff]   ;;  %v17350_v55 = vld [vmem:[#allocation2 + $0x50] ss:$40 sps:$4 sm:$0xff]   ;;  %v17324_v56 = vld [vmem:[#allocation5 + $0x3c4] ss:$40 sps:$4 sm:$0xff]  }
  0xb7   :  { %10071 = vmatpush1.bf16.msra.mxu0 %v17280_v18  ;;  %v17326_v57 = vld [vmem:[#allocation5 + $0x3cc] ss:$40 sps:$4 sm:$0xff]   ;;  %v17328_v60 = vld [vmem:[#allocation5 + $0x3c0] ss:$40 sps:$4 sm:$0xff]   ;;  %v17332_v0 = vld [vmem:[#allocation5 + $0x41c] ss:$40 sps:$4 sm:$0xff]  }
  0xb8   :  { %10481 = vmatpush1.bf16.msra.mxu1 %v17281_v19  ;;  %10072 = vmatprep.subr.bf16.mxu0 %v17282_v20  ;;  %v198_v58 = vrot.slane %v17348_v54, %v20660_v53  ;;  %v212_v59 = vrot.slane %v17350_v55, %v20660_v53  ;;  %v17329_v61 = vld [vmem:[#allocation5 + $0x3c8] ss:$40 sps:$4 sm:$0xff]   ;;  %v17330_v63 = vld [vmem:[#allocation5 + $0x414] ss:$40 sps:$4 sm:$0xff]   ;;  %v17335_v3 = vld [vmem:[#allocation5 + $0x418] ss:$40 sps:$4 sm:$0xff]  }
  0xb9   :  { %10482 = vmatprep.subr.bf16.mxu1 %v17284_v21  ;;  %v17334_v2 = vld [vmem:[#allocation5 + $0x410] ss:$40 sps:$4 sm:$0xff]   ;;  %v17336_v4 = vld [vmem:[#allocation5 + $0x464] ss:$40 sps:$4 sm:$0xff]   ;;  %v17340_v6 = vld [vmem:[#allocation5 + $0x460] ss:$40 sps:$4 sm:$0xff]  }
  0xba   :  { %v221_v62 = vcombine.high %v198_v58, %v212_v59  ;;  %v17338_v5 = vld [vmem:[#allocation5 + $0x46c] ss:$40 sps:$4 sm:$0xff]   ;;  %v17341_v7 = vld [vmem:[#allocation5 + $0x468] ss:$40 sps:$4 sm:$0xff]   ;;  %v17344_v9 = vld [vmem:[#allocation5 + $0x4bc] ss:$40 sps:$4 sm:$0xff]   ;;  %v220_v10 = vcombine.low %v198_v58, %v212_v59 }
  0xbb   :  { %10073 = vmatpush1.bf16.msra.mxu0 %v17286_v22  ;;  %v17342_v8 = vld [vmem:[#allocation5 + $0x4b4] ss:$40 sps:$4 sm:$0xff]   ;;  %v17346_v11 = vld [vmem:[#allocation5 + $0x4b0] ss:$40 sps:$4 sm:$0xff]   ;;  %v17354_v13 = vld [vmem:[#allocation5 + $0x504] ss:$40 sps:$4 sm:$0xff]  }
  0xbc   :  { %10483 = vmatpush1.bf16.msra.mxu1 %v17287_v23  ;;  %10074 = vmatprep.subr.bf16.mxu0 %v17288_v24  ;;  %v20664_v1 = vpack.c.bf16 %v221_v62, %v221_v62  ;;  %v17347_v12 = vld [vmem:[#allocation5 + $0x4b8] ss:$40 sps:$4 sm:$0xff]   ;;  %v17357_v14 = vld [vmem:[#allocation5 + $0x50c] ss:$40 sps:$4 sm:$0xff]   ;;  %v20668_v15 = vpack.c.bf16 %v220_v10, %v220_v10  ;;  %v17355_v17 = vld [vmem:[#allocation5 + $0x508] ss:$40 sps:$4 sm:$0xff]  }
  0xbd   :  { %10484 = vmatprep.subr.bf16.mxu1 %v17290_v25  ;;  %v17352_v16 = vld [vmem:[#allocation5 + $0x500] ss:$40 sps:$4 sm:$0xff]   ;;  %v17360_v18 = vld [vmem:[#allocation5 + $0x554] ss:$40 sps:$4 sm:$0xff]   ;;  %v17358_v20 = vld [vmem:[#allocation5 + $0x550] ss:$40 sps:$4 sm:$0xff]  }
  0xbe   :  { %10094 = vmatprep.mubr.bf16.mxu0 %v20664_v1  ;;  %10504 = vmatprep.mubr.bf16.mxu1 %v20664_v1  ;;  %v17363_v19 = vld [vmem:[#allocation5 + $0x55c] ss:$40 sps:$4 sm:$0xff]   ;;  %v17361_v21 = vld [vmem:[#allocation5 + $0x558] ss:$40 sps:$4 sm:$0xff]   ;;  %v17369_v23 = vld [vmem:[#allocation5 + $0x5ac] ss:$40 sps:$4 sm:$0xff]  }
  0xbf   :  { %10075 = vmatpush1.bf16.msra.mxu0 %v17292_v26  ;;  %v17366_v22 = vld [vmem:[#allocation5 + $0x5a4] ss:$40 sps:$4 sm:$0xff]   ;;  %v17364_v24 = vld [vmem:[#allocation5 + $0x5a0] ss:$40 sps:$4 sm:$0xff]   ;;  %v17372_v26 = vld [vmem:[#allocation5 + $0x5f4] ss:$40 sps:$4 sm:$0xff]  }
  0xc0   :  { %10485 = vmatpush1.bf16.msra.mxu1 %v17293_v27  ;;  %10076 = vmatprep.subr.bf16.mxu0 %v17294_v28  ;;  %v17367_v25 = vld [vmem:[#allocation5 + $0x5a8] ss:$40 sps:$4 sm:$0xff]   ;;  %v17375_v27 = vld [vmem:[#allocation5 + $0x5fc] ss:$40 sps:$4 sm:$0xff]   ;;  %v17393_v39 = vld [vmem:[#allocation5 + $0x6ec] ss:$40 sps:$4 sm:$0xff]  }
  0xc1   :  { %10486 = vmatprep.subr.bf16.mxu1 %v17296_v29  ;;  %v17370_v28 = vld [vmem:[#allocation5 + $0x5f0] ss:$40 sps:$4 sm:$0xff]   ;;  %v17390_v38 = vld [vmem:[#allocation5 + $0x6e4] ss:$40 sps:$4 sm:$0xff]   ;;  %v17388_v40 = vld [vmem:[#allocation5 + $0x6e0] ss:$40 sps:$4 sm:$0xff]  }
  0xc2   :  { %v17373_v29 = vld [vmem:[#allocation5 + $0x5f8] ss:$40 sps:$4 sm:$0xff]   ;;  %v17399_v45 = vld [vmem:[#allocation5 + $0x73c] ss:$40 sps:$4 sm:$0xff]   ;;  %v17405_v54 = vld [vmem:[#allocation5 + $0x78c] ss:$40 sps:$4 sm:$0xff]  }
  0xc3   :  { %10077 = vmatpush1.bf16.msra.mxu0 %v17298_v30  ;;  %v17378_v30 = vld [vmem:[#allocation5 + $0x644] ss:$40 sps:$4 sm:$0xff]   ;;  %v17408_v58 = vld [vmem:[#allocation5 + $0x7d4] ss:$40 sps:$4 sm:$0xff]   ;;  %v17427_v10 = vld [vmem:[#allocation5 + $0x8c8] ss:$40 sps:$4 sm:$0xff]  }
  0xc4   :  { %10487 = vmatpush1.bf16.msra.mxu1 %v17299_v31  ;;  %10078 = vmatprep.subr.bf16.mxu0 %v17300_v32  ;;  %v17381_v31 = vld [vmem:[#allocation5 + $0x64c] ss:$40 sps:$4 sm:$0xff]   ;;  %v17376_v32 = vld [vmem:[#allocation5 + $0x640] ss:$40 sps:$4 sm:$0xff]   ;;  %v17411_v59 = vld [vmem:[#allocation5 + $0x7dc] ss:$40 sps:$4 sm:$0xff]  }
  0xc5   :  { %10488 = vmatprep.subr.bf16.mxu1 %v17302_v33  ;;  %v17379_v33 = vld [vmem:[#allocation5 + $0x648] ss:$40 sps:$4 sm:$0xff]   ;;  %v17414_v62 = vld [vmem:[#allocation5 + $0x824] ss:$40 sps:$4 sm:$0xff]  }
  0xc7   :  { %10079 = vmatpush1.bf16.msra.mxu0 %v17304_v34  ;;  %v17384_v34 = vld [vmem:[#allocation5 + $0x694] ss:$40 sps:$4 sm:$0xff]  }
  0xc8   :  { %10489 = vmatpush1.bf16.msra.mxu1 %v17305_v35  ;;  %10080 = vmatprep.subr.bf16.mxu0 %v17306_v36  ;;  %v17387_v35 = vld [vmem:[#allocation5 + $0x69c] ss:$40 sps:$4 sm:$0xff]   ;;  %v17382_v36 = vld [vmem:[#allocation5 + $0x690] ss:$40 sps:$4 sm:$0xff]  }
  0xc9   :  { %10490 = vmatprep.subr.bf16.mxu1 %v17308_v37  ;;  %v17385_v37 = vld [vmem:[#allocation5 + $0x698] ss:$40 sps:$4 sm:$0xff]  }
  0xcb   :  { %10081 = vmatpush1.bf16.msra.mxu0 %v17310_v41  ;;  %v17391_v41 = vld [vmem:[#allocation5 + $0x6e8] ss:$40 sps:$4 sm:$0xff]  }
  0xcc   :  { %10491 = vmatpush1.bf16.msra.mxu1 %v17311_v42  ;;  %10082 = vmatprep.subr.bf16.mxu0 %v17312_v43  ;;  %v17448_v42 = vld [vmem:[#allocation2 + $0x4] ss:$40 sps:$4 sm:$0xff]   ;;  %v17449_v43 = vld [vmem:[#allocation2 + $0x54] ss:$40 sps:$4 sm:$0xff]  }
  0xcd   :  { %10492 = vmatprep.subr.bf16.mxu1 %v17314_v44  ;;  %v17396_v44 = vld [vmem:[#allocation5 + $0x734] ss:$40 sps:$4 sm:$0xff]  }
  0xcf   :  { %10083 = vmatpush1.bf16.msra.mxu0 %v17316_v47  ;;  %v20673_v47 = vrot.slane %v17448_v42, %v20660_v53 }
  0xd0   :  { %10493 = vmatpush1.bf16.msra.mxu1 %v17317_v48  ;;  %10084 = vmatprep.subr.bf16.mxu0 %v17318_v49  ;;  %v20676_v48 = vrot.slane %v17449_v43, %v20660_v53  ;;  %v17394_v49 = vld [vmem:[#allocation5 + $0x730] ss:$40 sps:$4 sm:$0xff]   ;;  %v17470_v43 = vld [vmem:[#allocation5 + $0xaf4] ss:$40 sps:$4 sm:$0xff]  }
  0xd1   :  { %10494 = vmatprep.subr.bf16.mxu1 %v17320_v50  ;;  %v17397_v50 = vld [vmem:[#allocation5 + $0x738] ss:$40 sps:$4 sm:$0xff]  }
  0xd3   :  { %10085 = vmatpush1.bf16.msra.mxu0 %v17322_v51  ;;  %v223_v51 = vcombine.high %v20673_v47, %v20676_v48 }
  0xd4   :  { %10495 = vmatpush1.bf16.msra.mxu1 %v17323_v52  ;;  %10086 = vmatprep.subr.bf16.mxu0 %v17324_v56  ;;  %v17402_v52 = vld [vmem:[#allocation5 + $0x784] ss:$40 sps:$4 sm:$0xff]   ;;  %v17400_v56 = vld [vmem:[#allocation5 + $0x780] ss:$40 sps:$4 sm:$0xff]  }
  0xd5   :  { %10496 = vmatprep.subr.bf16.mxu1 %v17326_v57  ;;  %v20680_v55 = vpack.c.bf16 %v223_v51, %v223_v51  ;;  %v17403_v57 = vld [vmem:[#allocation5 + $0x788] ss:$40 sps:$4 sm:$0xff]  }
  0xd6   :  { %v17474_v51 = vld [vmem:[#allocation5 + $0xb40] ss:$40 sps:$4 sm:$0xff]  }
  0xd7   :  { %10087 = vmatpush1.bf16.msra.mxu0 %v17328_v60  ;;  %v17406_v60 = vld [vmem:[#allocation5 + $0x7d0] ss:$40 sps:$4 sm:$0xff]  }
  0xd8   :  { %10497 = vmatpush1.bf16.msra.mxu1 %v17329_v61  ;;  %10088 = vmatprep.subr.bf16.mxu0 %v17330_v63  ;;  %v17409_v61 = vld [vmem:[#allocation5 + $0x7d8] ss:$40 sps:$4 sm:$0xff]   ;;  %v17417_v63 = vld [vmem:[#allocation5 + $0x82c] ss:$40 sps:$4 sm:$0xff]  }
  0xd9   :  { %10498 = vmatprep.subr.bf16.mxu1 %v17332_v0  ;;  %v17412_v0 = vld [vmem:[#allocation5 + $0x820] ss:$40 sps:$4 sm:$0xff]  }
  0xdb   :  { %10089 = vmatpush1.bf16.msra.mxu0 %v17334_v2  ;;  %v17415_v2 = vld [vmem:[#allocation5 + $0x828] ss:$40 sps:$4 sm:$0xff]  }
  0xdc   :  { %10499 = vmatpush1.bf16.msra.mxu1 %v17335_v3  ;;  %10090 = vmatprep.subr.bf16.mxu0 %v17336_v4  ;;  %v17420_v3 = vld [vmem:[#allocation5 + $0x874] ss:$40 sps:$4 sm:$0xff]  }
  0xdd   :  { %10500 = vmatprep.subr.bf16.mxu1 %v17338_v5  ;;  %v17423_v4 = vld [vmem:[#allocation5 + $0x87c] ss:$40 sps:$4 sm:$0xff]   ;;  %v17418_v5 = vld [vmem:[#allocation5 + $0x870] ss:$40 sps:$4 sm:$0xff]  }
  0xdf   :  { %10091 = vmatpush1.bf16.msra.mxu0 %v17340_v6  ;;  %v17421_v6 = vld [vmem:[#allocation5 + $0x878] ss:$40 sps:$4 sm:$0xff]  }
  0xe0   :  { %10501 = vmatpush1.bf16.msra.mxu1 %v17341_v7  ;;  %10092 = vmatprep.subr.bf16.mxu0 %v17342_v8  ;;  %v17426_v7 = vld [vmem:[#allocation5 + $0x8c4] ss:$40 sps:$4 sm:$0xff]  }
  0xe1   :  { %10502 = vmatprep.subr.bf16.mxu1 %v17344_v9  ;;  %v17429_v8 = vld [vmem:[#allocation5 + $0x8cc] ss:$40 sps:$4 sm:$0xff]   ;;  %v17424_v9 = vld [vmem:[#allocation5 + $0x8c0] ss:$40 sps:$4 sm:$0xff]  }
  0xe3   :  { %10093 = vmatpush1.bf16.msra.mxu0 %v17346_v11  ;;  %v17432_v11 = vld [vmem:[#allocation5 + $0x914] ss:$40 sps:$4 sm:$0xff]  }
  0xe4   :  { %10503 = vmatpush1.bf16.msra.mxu1 %v17347_v12  ;;  %10103 = vmatprep.subr.bf16.mxu0 %v17354_v13  ;;  %v17435_v12 = vld [vmem:[#allocation5 + $0x91c] ss:$40 sps:$4 sm:$0xff]   ;;  %v17430_v13 = vld [vmem:[#allocation5 + $0x910] ss:$40 sps:$4 sm:$0xff]  }
  0xe5   :  { %10513 = vmatprep.subr.bf16.mxu1 %v17357_v14  ;;  %v17433_v14 = vld [vmem:[#allocation5 + $0x918] ss:$40 sps:$4 sm:$0xff]  }
  0xe6   :  { %10095 = vmatmul.mubr.bf16.vlgmr.msra.gmra.mrb[0].mxu0 %v20668_v15 }
  0xe7   :  { %10505 = vmatmul.mubr.bf16.vlgmr.msra.gmra.mrb[0].mxu1 %v20668_v15  ;;  %10104 = vmatpush1.bf16.msra.mxu0 %v17352_v16  ;;  %v17438_v16 = vld [vmem:[#allocation5 + $0x964] ss:$40 sps:$4 sm:$0xff]  }
  0xe8   :  { %10514 = vmatpush1.bf16.msra.mxu1 %v17355_v17  ;;  %10105 = vmatprep.subr.bf16.mxu0 %v17360_v18  ;;  %v17441_v17 = vld [vmem:[#allocation5 + $0x96c] ss:$40 sps:$4 sm:$0xff]   ;;  %v17436_v18 = vld [vmem:[#allocation5 + $0x960] ss:$40 sps:$4 sm:$0xff]  }
  0xe9   :  { %10515 = vmatprep.subr.bf16.mxu1 %v17363_v19  ;;  %10135 = vmatprep.mubr.bf16.mxu0 %v20680_v55  ;;  %v17439_v19 = vld [vmem:[#allocation5 + $0x968] ss:$40 sps:$4 sm:$0xff]  }
  0xea   :  { %10545 = vmatprep.mubr.bf16.mxu1 %v20680_v55 }
  0xeb   :  { %10106 = vmatpush1.bf16.msra.mxu0 %v17358_v20  ;;  %v17444_v20 = vld [vmem:[#allocation5 + $0x9b4] ss:$40 sps:$4 sm:$0xff]  }
  0xec   :  { %10516 = vmatpush1.bf16.msra.mxu1 %v17361_v21  ;;  %10107 = vmatprep.subr.bf16.mxu0 %v17366_v22  ;;  %v17447_v21 = vld [vmem:[#allocation5 + $0x9bc] ss:$40 sps:$4 sm:$0xff]   ;;  %v17442_v22 = vld [vmem:[#allocation5 + $0x9b0] ss:$40 sps:$4 sm:$0xff]  }
  0xed   :  { %10517 = vmatprep.subr.bf16.mxu1 %v17369_v23  ;;  %v17445_v23 = vld [vmem:[#allocation5 + $0x9b8] ss:$40 sps:$4 sm:$0xff]  }
  0xef   :  { %10108 = vmatpush1.bf16.msra.mxu0 %v17364_v24  ;;  %v222_v24 = vcombine.low %v20673_v47, %v20676_v48  ;;  %v17468_v47 = vld [vmem:[#allocation5 + $0xaf0] ss:$40 sps:$4 sm:$0xff]  }
  0xf0   :  { %10518 = vmatpush1.bf16.msra.mxu1 %v17367_v25  ;;  %10109 = vmatprep.subr.bf16.mxu0 %v17372_v26  ;;  %v17452_v25 = vld [vmem:[#allocation5 + $0xa04] ss:$40 sps:$4 sm:$0xff]   ;;  %v17471_v48 = vld [vmem:[#allocation5 + $0xaf8] ss:$40 sps:$4 sm:$0xff]  }
  0xf1   :  { %10519 = vmatprep.subr.bf16.mxu1 %v17375_v27  ;;  %v17455_v26 = vld [vmem:[#allocation5 + $0xa0c] ss:$40 sps:$4 sm:$0xff]   ;;  %v17450_v27 = vld [vmem:[#allocation5 + $0xa00] ss:$40 sps:$4 sm:$0xff]  }
  0xf3   :  { %10110 = vmatpush1.bf16.msra.mxu0 %v17370_v28  ;;  %v17453_v28 = vld [vmem:[#allocation5 + $0xa08] ss:$40 sps:$4 sm:$0xff]  }
  0xf4   :  { %10520 = vmatpush1.bf16.msra.mxu1 %v17373_v29  ;;  %10111 = vmatprep.subr.bf16.mxu0 %v17378_v30  ;;  %v20686_v29 = vpack.c.bf16 %v222_v24, %v222_v24  ;;  %v17458_v30 = vld [vmem:[#allocation5 + $0xa54] ss:$40 sps:$4 sm:$0xff]   ;;  %v17525_v24 = vld [vmem:[#allocation5 + $0xdc8] ss:$40 sps:$4 sm:$0xff]  }
  0xf5   :  { %10521 = vmatprep.subr.bf16.mxu1 %v17381_v31  ;;  %v17461_v31 = vld [vmem:[#allocation5 + $0xa5c] ss:$40 sps:$4 sm:$0xff]  }
  0xf7   :  { %10112 = vmatpush1.bf16.msra.mxu0 %v17376_v32  ;;  %v17456_v32 = vld [vmem:[#allocation5 + $0xa50] ss:$40 sps:$4 sm:$0xff]  }
  0xf8   :  { %10522 = vmatpush1.bf16.msra.mxu1 %v17379_v33  ;;  %10113 = vmatprep.subr.bf16.mxu0 %v17384_v34  ;;  %v17459_v33 = vld [vmem:[#allocation5 + $0xa58] ss:$40 sps:$4 sm:$0xff]   ;;  %v17546_v34 = vld [vmem:[#allocation2 + $0x8] ss:$40 sps:$4 sm:$0xff]  }
  0xf9   :  { %10523 = vmatprep.subr.bf16.mxu1 %v17387_v35  ;;  %v17548_v35 = vld [vmem:[#allocation2 + $0x58] ss:$40 sps:$4 sm:$0xff]  }
  0xfb   :  { %10114 = vmatpush1.bf16.msra.mxu0 %v17382_v36  ;;  %v17464_v36 = vld [vmem:[#allocation5 + $0xaa4] ss:$40 sps:$4 sm:$0xff]  }
  0xfc   :  { %10524 = vmatpush1.bf16.msra.mxu1 %v17385_v37  ;;  %10115 = vmatprep.subr.bf16.mxu0 %v17390_v38  ;;  %v17467_v37 = vld [vmem:[#allocation5 + $0xaac] ss:$40 sps:$4 sm:$0xff]   ;;  %v20691_v38 = vrot.slane %v17546_v34, %v20660_v53  ;;  %v17534_v34 = vld [vmem:[#allocation5 + $0xe60] ss:$40 sps:$4 sm:$0xff]  }
  0xfd   :  { %10525 = vmatprep.subr.bf16.mxu1 %v17393_v39  ;;  %v20694_v39 = vrot.slane %v17548_v35, %v20660_v53  ;;  %v17537_v35 = vld [vmem:[#allocation5 + $0xe68] ss:$40 sps:$4 sm:$0xff]  }
  0xff   :  { %10116 = vmatpush1.bf16.msra.mxu0 %v17388_v40  ;;  %v17462_v40 = vld [vmem:[#allocation5 + $0xaa0] ss:$40 sps:$4 sm:$0xff]   ;;  %v257_v42 = vcombine.high %v20691_v38, %v20694_v39 }
 0x100   :  { %10526 = vmatpush1.bf16.msra.mxu1 %v17391_v41  ;;  %10117 = vmatprep.subr.bf16.mxu0 %v17396_v44  ;;  %v17465_v41 = vld [vmem:[#allocation5 + $0xaa8] ss:$40 sps:$4 sm:$0xff]   ;;  %v17473_v44 = vld [vmem:[#allocation5 + $0xafc] ss:$40 sps:$4 sm:$0xff]  }
 0x101   :  { %10527 = vmatprep.subr.bf16.mxu1 %v17399_v45  ;;  %v20698_v45 = vpack.c.bf16 %v257_v42, %v257_v42  ;;  %v17540_v42 = vld [vmem:[#allocation5 + $0xeb0] ss:$40 sps:$4 sm:$0xff]  }
 0x103   :  { %10118 = vmatpush1.bf16.msra.mxu0 %v17394_v49  ;;  %v17476_v49 = vld [vmem:[#allocation5 + $0xb44] ss:$40 sps:$4 sm:$0xff]  }
 0x104   :  { %10528 = vmatpush1.bf16.msra.mxu1 %v17397_v50  ;;  %10119 = vmatprep.subr.bf16.mxu0 %v17402_v52  ;;  %v17479_v50 = vld [vmem:[#allocation5 + $0xb4c] ss:$40 sps:$4 sm:$0xff]   ;;  %v17477_v52 = vld [vmem:[#allocation5 + $0xb48] ss:$40 sps:$4 sm:$0xff]  }
 0x105   :  { %10529 = vmatprep.subr.bf16.mxu1 %v17405_v54  ;;  %v17482_v54 = vld [vmem:[#allocation5 + $0xb94] ss:$40 sps:$4 sm:$0xff]  }
 0x107   :  { %10120 = vmatpush1.bf16.msra.mxu0 %v17400_v56  ;;  %v17485_v56 = vld [vmem:[#allocation5 + $0xb9c] ss:$40 sps:$4 sm:$0xff]  }
 0x108   :  { %10530 = vmatpush1.bf16.msra.mxu1 %v17403_v57  ;;  %10121 = vmatprep.subr.bf16.mxu0 %v17408_v58  ;;  %v17480_v57 = vld [vmem:[#allocation5 + $0xb90] ss:$40 sps:$4 sm:$0xff]  }
 0x109   :  { %10531 = vmatprep.subr.bf16.mxu1 %v17411_v59  ;;  %v17483_v58 = vld [vmem:[#allocation5 + $0xb98] ss:$40 sps:$4 sm:$0xff]   ;;  %v17488_v59 = vld [vmem:[#allocation5 + $0xbe4] ss:$40 sps:$4 sm:$0xff]  }
 0x10b   :  { %10122 = vmatpush1.bf16.msra.mxu0 %v17406_v60  ;;  %v17491_v60 = vld [vmem:[#allocation5 + $0xbec] ss:$40 sps:$4 sm:$0xff]  }
 0x10c   :  { %10532 = vmatpush1.bf16.msra.mxu1 %v17409_v61  ;;  %10123 = vmatprep.subr.bf16.mxu0 %v17414_v62  ;;  %v17486_v61 = vld [vmem:[#allocation5 + $0xbe0] ss:$40 sps:$4 sm:$0xff]  }
 0x10d   :  { %10533 = vmatprep.subr.bf16.mxu1 %v17417_v63  ;;  %v17489_v62 = vld [vmem:[#allocation5 + $0xbe8] ss:$40 sps:$4 sm:$0xff]   ;;  %v17494_v63 = vld [vmem:[#allocation5 + $0xc34] ss:$40 sps:$4 sm:$0xff]  }
 0x10f   :  { %10124 = vmatpush1.bf16.msra.mxu0 %v17412_v0  ;;  %v17497_v0 = vld [vmem:[#allocation5 + $0xc3c] ss:$40 sps:$4 sm:$0xff]  }
 0x110   :  { %10534 = vmatpush1.bf16.msra.mxu1 %v17415_v2  ;;  %10125 = vmatprep.subr.bf16.mxu0 %v17420_v3  ;;  %v17492_v2 = vld [vmem:[#allocation5 + $0xc30] ss:$40 sps:$4 sm:$0xff]  }
 0x111   :  { %10535 = vmatprep.subr.bf16.mxu1 %v17423_v4  ;;  %v17495_v3 = vld [vmem:[#allocation5 + $0xc38] ss:$40 sps:$4 sm:$0xff]   ;;  %v17500_v4 = vld [vmem:[#allocation5 + $0xc84] ss:$40 sps:$4 sm:$0xff]  }
 0x113   :  { %10126 = vmatpush1.bf16.msra.mxu0 %v17418_v5  ;;  %v17503_v5 = vld [vmem:[#allocation5 + $0xc8c] ss:$40 sps:$4 sm:$0xff]  }
 0x114   :  { %10536 = vmatpush1.bf16.msra.mxu1 %v17421_v6  ;;  %10127 = vmatprep.subr.bf16.mxu0 %v17426_v7  ;;  %v17498_v6 = vld [vmem:[#allocation5 + $0xc80] ss:$40 sps:$4 sm:$0xff]  }
 0x115   :  { %10537 = vmatprep.subr.bf16.mxu1 %v17429_v8  ;;  %v17501_v7 = vld [vmem:[#allocation5 + $0xc88] ss:$40 sps:$4 sm:$0xff]   ;;  %v17506_v8 = vld [vmem:[#allocation5 + $0xcd4] ss:$40 sps:$4 sm:$0xff]  }
 0x117   :  { %10128 = vmatpush1.bf16.msra.mxu0 %v17424_v9  ;;  %v17509_v9 = vld [vmem:[#allocation5 + $0xcdc] ss:$40 sps:$4 sm:$0xff]  }
 0x118   :  { %10538 = vmatpush1.bf16.msra.mxu1 %v17427_v10  ;;  %10129 = vmatprep.subr.bf16.mxu0 %v17432_v11  ;;  %v17504_v10 = vld [vmem:[#allocation5 + $0xcd0] ss:$40 sps:$4 sm:$0xff]  }
 0x119   :  { %10539 = vmatprep.subr.bf16.mxu1 %v17435_v12  ;;  %v17507_v11 = vld [vmem:[#allocation5 + $0xcd8] ss:$40 sps:$4 sm:$0xff]   ;;  %v17512_v12 = vld [vmem:[#allocation5 + $0xd24] ss:$40 sps:$4 sm:$0xff]  }
 0x11b   :  { %10130 = vmatpush1.bf16.msra.mxu0 %v17430_v13  ;;  %v17515_v13 = vld [vmem:[#allocation5 + $0xd2c] ss:$40 sps:$4 sm:$0xff]  }
 0x11c   :  { %10540 = vmatpush1.bf16.msra.mxu1 %v17433_v14  ;;  %10131 = vmatprep.subr.bf16.mxu0 %v17438_v16  ;;  %v17510_v14 = vld [vmem:[#allocation5 + $0xd20] ss:$40 sps:$4 sm:$0xff]  }
 0x11d   :  { %10541 = vmatprep.subr.bf16.mxu1 %v17441_v17  ;;  %v17513_v16 = vld [vmem:[#allocation5 + $0xd28] ss:$40 sps:$4 sm:$0xff]   ;;  %v17518_v17 = vld [vmem:[#allocation5 + $0xd74] ss:$40 sps:$4 sm:$0xff]  }
 0x11f   :  { %10132 = vmatpush1.bf16.msra.mxu0 %v17436_v18  ;;  %v17521_v18 = vld [vmem:[#allocation5 + $0xd7c] ss:$40 sps:$4 sm:$0xff]  }
 0x120   :  { %10542 = vmatpush1.bf16.msra.mxu1 %v17439_v19  ;;  %10133 = vmatprep.subr.bf16.mxu0 %v17444_v20  ;;  %v17516_v19 = vld [vmem:[#allocation5 + $0xd70] ss:$40 sps:$4 sm:$0xff]  }
 0x121   :  { %10543 = vmatprep.subr.bf16.mxu1 %v17447_v21  ;;  %v17519_v20 = vld [vmem:[#allocation5 + $0xd78] ss:$40 sps:$4 sm:$0xff]   ;;  %v17524_v21 = vld [vmem:[#allocation5 + $0xdc4] ss:$40 sps:$4 sm:$0xff]  }
 0x123   :  { %10134 = vmatpush1.bf16.msra.mxu0 %v17442_v22  ;;  %v17527_v22 = vld [vmem:[#allocation5 + $0xdcc] ss:$40 sps:$4 sm:$0xff]  }
 0x124   :  { %10544 = vmatpush1.bf16.msra.mxu1 %v17445_v23  ;;  %10144 = vmatprep.subr.bf16.mxu0 %v17452_v25  ;;  %v17522_v23 = vld [vmem:[#allocation5 + $0xdc0] ss:$40 sps:$4 sm:$0xff]   ;;  %v17530_v25 = vld [vmem:[#allocation5 + $0xe14] ss:$40 sps:$4 sm:$0xff]  }
 0x125   :  { %10554 = vmatprep.subr.bf16.mxu1 %v17455_v26  ;;  %v17533_v26 = vld [vmem:[#allocation5 + $0xe1c] ss:$40 sps:$4 sm:$0xff]  }
 0x126   :  { %10136 = vmatmul.mubr.bf16.vlgmr.msra.gmra.mrb[0].mxu0 %v20686_v29 }
 0x127   :  { %10546 = vmatmul.mubr.bf16.vlgmr.msra.gmra.mrb[0].mxu1 %v20686_v29  ;;  %10145 = vmatpush1.bf16.msra.mxu0 %v17450_v27  ;;  %v17528_v27 = vld [vmem:[#allocation5 + $0xe10] ss:$40 sps:$4 sm:$0xff]  }
 0x128   :  { %10555 = vmatpush1.bf16.msra.mxu1 %v17453_v28  ;;  %10146 = vmatprep.subr.bf16.mxu0 %v17458_v30  ;;  %v17531_v28 = vld [vmem:[#allocation5 + $0xe18] ss:$40 sps:$4 sm:$0xff]   ;;  %v17536_v30 = vld [vmem:[#allocation5 + $0xe64] ss:$40 sps:$4 sm:$0xff]  }
 0x129   :  { %10556 = vmatprep.subr.bf16.mxu1 %v17461_v31  ;;  %10176 = vmatprep.mubr.bf16.mxu0 %v20698_v45  ;;  %v17539_v31 = vld [vmem:[#allocation5 + $0xe6c] ss:$40 sps:$4 sm:$0xff]  }
 0x12a   :  { %10586 = vmatprep.mubr.bf16.mxu1 %v20698_v45 }
 0x12b   :  { %10147 = vmatpush1.bf16.msra.mxu0 %v17456_v32  ;;  %v17646_v32 = vld [vmem:[#allocation2 + $0xc] ss:$40 sps:$4 sm:$0xff]  }
 0x12c   :  { %10557 = vmatpush1.bf16.msra.mxu1 %v17459_v33  ;;  %10148 = vmatprep.subr.bf16.mxu0 %v17464_v36  ;;  %v17647_v33 = vld [vmem:[#allocation2 + $0x5c] ss:$40 sps:$4 sm:$0xff]  }
 0x12d   :  { %10558 = vmatprep.subr.bf16.mxu1 %v17467_v37  ;;  %v17542_v36 = vld [vmem:[#allocation5 + $0xeb4] ss:$40 sps:$4 sm:$0xff]  }
 0x12e   :  { %v17545_v37 = vld [vmem:[#allocation5 + $0xebc] ss:$40 sps:$4 sm:$0xff]  }
 0x12f   :  { %10149 = vmatpush1.bf16.msra.mxu0 %v17462_v40  ;;  %v20703_v40 = vrot.slane %v17646_v32, %v20660_v53  ;;  %v17613_v32 = vld [vmem:[#allocation5 + $0x1228] ss:$40 sps:$4 sm:$0xff]  }
 0x130   :  { %10559 = vmatpush1.bf16.msra.mxu1 %v17465_v41  ;;  %10150 = vmatprep.subr.bf16.mxu0 %v17470_v43  ;;  %v20706_v41 = vrot.slane %v17647_v33, %v20660_v53  ;;  %v17543_v43 = vld [vmem:[#allocation5 + $0xeb8] ss:$40 sps:$4 sm:$0xff]   ;;  %v17618_v33 = vld [vmem:[#allocation5 + $0x1274] ss:$40 sps:$4 sm:$0xff]  }
 0x131   :  { %10560 = vmatprep.subr.bf16.mxu1 %v17473_v44  ;;  %v256_v44 = vcombine.low %v20691_v38, %v20694_v39  ;;  %v17556_v39 = vld [vmem:[#allocation5 + $0xf50] ss:$40 sps:$4 sm:$0xff]  }
 0x133   :  { %10151 = vmatpush1.bf16.msra.mxu0 %v17468_v47  ;;  %v17552_v47 = vld [vmem:[#allocation5 + $0xf04] ss:$40 sps:$4 sm:$0xff]  }
 0x134   :  { %10561 = vmatpush1.bf16.msra.mxu1 %v17471_v48  ;;  %10152 = vmatprep.subr.bf16.mxu0 %v17476_v49  ;;  %v17555_v48 = vld [vmem:[#allocation5 + $0xf0c] ss:$40 sps:$4 sm:$0xff]   ;;  %v259_v49 = vcombine.high %v20703_v40, %v20706_v41 }
 0x135   :  { %10562 = vmatprep.subr.bf16.mxu1 %v17479_v50  ;;  %v17550_v50 = vld [vmem:[#allocation5 + $0xf00] ss:$40 sps:$4 sm:$0xff]  }
 0x136   :  { %v20714_v38 = vpack.c.bf16 %v259_v49, %v259_v49  ;;  %v17628_v49 = vld [vmem:[#allocation5 + $0x1310] ss:$40 sps:$4 sm:$0xff]  }
 0x137   :  { %10153 = vmatpush1.bf16.msra.mxu0 %v17474_v51  ;;  %v17553_v51 = vld [vmem:[#allocation5 + $0xf08] ss:$40 sps:$4 sm:$0xff]  }
 0x138   :  { %10563 = vmatpush1.bf16.msra.mxu1 %v17477_v52  ;;  %10154 = vmatprep.subr.bf16.mxu0 %v17482_v54  ;;  %v20712_v52 = vpack.c.bf16 %v256_v44, %v256_v44  ;;  %v17558_v54 = vld [vmem:[#allocation5 + $0xf54] ss:$40 sps:$4 sm:$0xff]   ;;  %v17625_v44 = vld [vmem:[#allocation5 + $0x12c8] ss:$40 sps:$4 sm:$0xff]  }
 0x139   :  { %10564 = vmatprep.subr.bf16.mxu1 %v17485_v56  ;;  %v17561_v56 = vld [vmem:[#allocation5 + $0xf5c] ss:$40 sps:$4 sm:$0xff]  }
 0x13b   :  { %10155 = vmatpush1.bf16.msra.mxu0 %v17480_v57  ;;  %v17559_v57 = vld [vmem:[#allocation5 + $0xf58] ss:$40 sps:$4 sm:$0xff]  }
 0x13c   :  { %10565 = vmatpush1.bf16.msra.mxu1 %v17483_v58  ;;  %10156 = vmatprep.subr.bf16.mxu0 %v17488_v59  ;;  %v17564_v58 = vld [vmem:[#allocation5 + $0xfa4] ss:$40 sps:$4 sm:$0xff]  }
 0x13d   :  { %10566 = vmatprep.subr.bf16.mxu1 %v17491_v60  ;;  %v17567_v59 = vld [vmem:[#allocation5 + $0xfac] ss:$40 sps:$4 sm:$0xff]   ;;  %v17562_v60 = vld [vmem:[#allocation5 + $0xfa0] ss:$40 sps:$4 sm:$0xff]  }
 0x13f   :  { %10157 = vmatpush1.bf16.msra.mxu0 %v17486_v61  ;;  %v17565_v61 = vld [vmem:[#allocation5 + $0xfa8] ss:$40 sps:$4 sm:$0xff]  }
 0x140   :  { %10567 = vmatpush1.bf16.msra.mxu1 %v17489_v62  ;;  %10158 = vmatprep.subr.bf16.mxu0 %v17494_v63  ;;  %v17570_v62 = vld [vmem:[#allocation5 + $0xff4] ss:$40 sps:$4 sm:$0xff]  }
 0x141   :  { %10568 = vmatprep.subr.bf16.mxu1 %v17497_v0  ;;  %v17573_v63 = vld [vmem:[#allocation5 + $0xffc] ss:$40 sps:$4 sm:$0xff]   ;;  %v17568_v0 = vld [vmem:[#allocation5 + $0xff0] ss:$40 sps:$4 sm:$0xff]  }
 0x143   :  { %10159 = vmatpush1.bf16.msra.mxu0 %v17492_v2  ;;  %v17571_v2 = vld [vmem:[#allocation5 + $0xff8] ss:$40 sps:$4 sm:$0xff]  }
 0x144   :  { %10569 = vmatpush1.bf16.msra.mxu1 %v17495_v3  ;;  %10160 = vmatprep.subr.bf16.mxu0 %v17500_v4  ;;  %v17576_v3 = vld [vmem:[#allocation5 + $0x1044] ss:$40 sps:$4 sm:$0xff]  }
 0x145   :  { %10570 = vmatprep.subr.bf16.mxu1 %v17503_v5  ;;  %v17579_v4 = vld [vmem:[#allocation5 + $0x104c] ss:$40 sps:$4 sm:$0xff]   ;;  %v17574_v5 = vld [vmem:[#allocation5 + $0x1040] ss:$40 sps:$4 sm:$0xff]  }
 0x147   :  { %10161 = vmatpush1.bf16.msra.mxu0 %v17498_v6  ;;  %v17577_v6 = vld [vmem:[#allocation5 + $0x1048] ss:$40 sps:$4 sm:$0xff]  }
 0x148   :  { %10571 = vmatpush1.bf16.msra.mxu1 %v17501_v7  ;;  %10162 = vmatprep.subr.bf16.mxu0 %v17506_v8  ;;  %v17582_v7 = vld [vmem:[#allocation5 + $0x1094] ss:$40 sps:$4 sm:$0xff]  }
 0x149   :  { %10572 = vmatprep.subr.bf16.mxu1 %v17509_v9  ;;  %v17585_v8 = vld [vmem:[#allocation5 + $0x109c] ss:$40 sps:$4 sm:$0xff]   ;;  %v17580_v9 = vld [vmem:[#allocation5 + $0x1090] ss:$40 sps:$4 sm:$0xff]  }
 0x14b   :  { %10163 = vmatpush1.bf16.msra.mxu0 %v17504_v10  ;;  %v17583_v10 = vld [vmem:[#allocation5 + $0x1098] ss:$40 sps:$4 sm:$0xff]  }
 0x14c   :  { %10573 = vmatpush1.bf16.msra.mxu1 %v17507_v11  ;;  %10164 = vmatprep.subr.bf16.mxu0 %v17512_v12  ;;  %v17588_v11 = vld [vmem:[#allocation5 + $0x10e4] ss:$40 sps:$4 sm:$0xff]  }
 0x14d   :  { %10574 = vmatprep.subr.bf16.mxu1 %v17515_v13  ;;  %v17591_v12 = vld [vmem:[#allocation5 + $0x10ec] ss:$40 sps:$4 sm:$0xff]   ;;  %v17586_v13 = vld [vmem:[#allocation5 + $0x10e0] ss:$40 sps:$4 sm:$0xff]  }
 0x14f   :  { %10165 = vmatpush1.bf16.msra.mxu0 %v17510_v14  ;;  %v17589_v14 = vld [vmem:[#allocation5 + $0x10e8] ss:$40 sps:$4 sm:$0xff]  }
 0x150   :  { %10575 = vmatpush1.bf16.msra.mxu1 %v17513_v16  ;;  %10166 = vmatprep.subr.bf16.mxu0 %v17518_v17  ;;  %v17594_v16 = vld [vmem:[#allocation5 + $0x1134] ss:$40 sps:$4 sm:$0xff]  }
 0x151   :  { %10576 = vmatprep.subr.bf16.mxu1 %v17521_v18  ;;  %v17597_v17 = vld [vmem:[#allocation5 + $0x113c] ss:$40 sps:$4 sm:$0xff]   ;;  %v17592_v18 = vld [vmem:[#allocation5 + $0x1130] ss:$40 sps:$4 sm:$0xff]  }
 0x153   :  { %10167 = vmatpush1.bf16.msra.mxu0 %v17516_v19  ;;  %v17595_v19 = vld [vmem:[#allocation5 + $0x1138] ss:$40 sps:$4 sm:$0xff]  }
 0x154   :  { %10577 = vmatpush1.bf16.msra.mxu1 %v17519_v20  ;;  %10168 = vmatprep.subr.bf16.mxu0 %v17524_v21  ;;  %v17600_v20 = vld [vmem:[#allocation5 + $0x1184] ss:$40 sps:$4 sm:$0xff]  }
 0x155   :  { %10578 = vmatprep.subr.bf16.mxu1 %v17527_v22  ;;  %v17603_v21 = vld [vmem:[#allocation5 + $0x118c] ss:$40 sps:$4 sm:$0xff]   ;;  %v17598_v22 = vld [vmem:[#allocation5 + $0x1180] ss:$40 sps:$4 sm:$0xff]  }
 0x157   :  { %10169 = vmatpush1.bf16.msra.mxu0 %v17522_v23  ;;  %v17601_v23 = vld [vmem:[#allocation5 + $0x1188] ss:$40 sps:$4 sm:$0xff]  }
 0x158   :  { %10579 = vmatpush1.bf16.msra.mxu1 %v17525_v24  ;;  %10170 = vmatprep.subr.bf16.mxu0 %v17530_v25  ;;  %v17606_v24 = vld [vmem:[#allocation5 + $0x11d4] ss:$40 sps:$4 sm:$0xff]  }
 0x159   :  { %10580 = vmatprep.subr.bf16.mxu1 %v17533_v26  ;;  %v17609_v25 = vld [vmem:[#allocation5 + $0x11dc] ss:$40 sps:$4 sm:$0xff]   ;;  %v17604_v26 = vld [vmem:[#allocation5 + $0x11d0] ss:$40 sps:$4 sm:$0xff]  }
 0x15b   :  { %10171 = vmatpush1.bf16.msra.mxu0 %v17528_v27  ;;  %v17607_v27 = vld [vmem:[#allocation5 + $0x11d8] ss:$40 sps:$4 sm:$0xff]  }
 0x15c   :  { %10581 = vmatpush1.bf16.msra.mxu1 %v17531_v28  ;;  %10172 = vmatprep.subr.bf16.mxu0 %v17536_v30  ;;  %v17612_v28 = vld [vmem:[#allocation5 + $0x1224] ss:$40 sps:$4 sm:$0xff]  }
 0x15d   :  { %10582 = vmatprep.subr.bf16.mxu1 %v17539_v31  ;;  %v17615_v30 = vld [vmem:[#allocation5 + $0x122c] ss:$40 sps:$4 sm:$0xff]   ;;  %v17610_v31 = vld [vmem:[#allocation5 + $0x1220] ss:$40 sps:$4 sm:$0xff]  }
 0x15f   :  { %10173 = vmatpush1.bf16.msra.mxu0 %v17534_v34  ;;  %v17621_v34 = vld [vmem:[#allocation5 + $0x127c] ss:$40 sps:$4 sm:$0xff]  }
 0x160   :  { %10583 = vmatpush1.bf16.msra.mxu1 %v17537_v35  ;;  %10174 = vmatprep.subr.bf16.mxu0 %v17542_v36  ;;  %v17616_v35 = vld [vmem:[#allocation5 + $0x1270] ss:$40 sps:$4 sm:$0xff]  }
 0x161   :  { %10584 = vmatprep.subr.bf16.mxu1 %v17545_v37  ;;  %v17619_v36 = vld [vmem:[#allocation5 + $0x1278] ss:$40 sps:$4 sm:$0xff]   ;;  %v17624_v37 = vld [vmem:[#allocation5 + $0x12c4] ss:$40 sps:$4 sm:$0xff]  }
 0x163   :  { %10175 = vmatpush1.bf16.msra.mxu0 %v17540_v42  ;;  %v17627_v42 = vld [vmem:[#allocation5 + $0x12cc] ss:$40 sps:$4 sm:$0xff]  }
 0x164   :  { %10585 = vmatpush1.bf16.msra.mxu1 %v17543_v43  ;;  %10185 = vmatprep.subr.bf16.mxu0 %v17552_v47  ;;  %v17622_v43 = vld [vmem:[#allocation5 + $0x12c0] ss:$40 sps:$4 sm:$0xff]   ;;  %v17630_v47 = vld [vmem:[#allocation5 + $0x1314] ss:$40 sps:$4 sm:$0xff]  }
 0x165   :  { %10595 = vmatprep.subr.bf16.mxu1 %v17555_v48  ;;  %v17633_v48 = vld [vmem:[#allocation5 + $0x131c] ss:$40 sps:$4 sm:$0xff]  }
 0x166   :  { %10177 = vmatmul.mubr.bf16.vlgmr.msra.gmra.mrb[0].mxu0 %v20712_v52 }
 0x167   :  { %10587 = vmatmul.mubr.bf16.vlgmr.msra.gmra.mrb[0].mxu1 %v20712_v52  ;;  %10186 = vmatpush1.bf16.msra.mxu0 %v17550_v50  ;;  %v17631_v50 = vld [vmem:[#allocation5 + $0x1318] ss:$40 sps:$4 sm:$0xff]  }
 0x168   :  { %10596 = vmatpush1.bf16.msra.mxu1 %v17553_v51  ;;  %10187 = vmatprep.subr.bf16.mxu0 %v17558_v54  ;;  %v17636_v51 = vld [vmem:[#allocation5 + $0x1364] ss:$40 sps:$4 sm:$0xff]  }
 0x169   :  { %10597 = vmatprep.subr.bf16.mxu1 %v17561_v56  ;;  %10217 = vmatprep.mubr.bf16.mxu0 %v20714_v38  ;;  %v17639_v54 = vld [vmem:[#allocation5 + $0x136c] ss:$40 sps:$4 sm:$0xff]   ;;  %v17744_v56 = vld [vmem:[#allocation2 + $0x10] ss:$40 sps:$4 sm:$0xff]  }
 0x16a   :  { %10627 = vmatprep.mubr.bf16.mxu1 %v20714_v38 }
 0x16b   :  { %10188 = vmatpush1.bf16.msra.mxu0 %v17556_v39  ;;  %v17746_v39 = vld [vmem:[#allocation2 + $0x60] ss:$40 sps:$4 sm:$0xff]  }
 0x16c   :  { %10598 = vmatpush1.bf16.msra.mxu1 %v17559_v57  ;;  %10189 = vmatprep.subr.bf16.mxu0 %v17564_v58  ;;  %v17634_v57 = vld [vmem:[#allocation5 + $0x1360] ss:$40 sps:$4 sm:$0xff]  }
 0x16d   :  { %10599 = vmatprep.subr.bf16.mxu1 %v17567_v59  ;;  %v17637_v58 = vld [vmem:[#allocation5 + $0x1368] ss:$40 sps:$4 sm:$0xff]   ;;  %v17642_v59 = vld [vmem:[#allocation5 + $0x13b4] ss:$40 sps:$4 sm:$0xff]  }
 0x16f   :  { %10190 = vmatpush1.bf16.msra.mxu0 %v17562_v60  ;;  %v17645_v60 = vld [vmem:[#allocation5 + $0x13bc] ss:$40 sps:$4 sm:$0xff]  }
 0x170   :  { %10600 = vmatpush1.bf16.msra.mxu1 %v17565_v61  ;;  %10191 = vmatprep.subr.bf16.mxu0 %v17570_v62  ;;  %v20721_v61 = vrot.slane %v17744_v56, %v20660_v53  ;;  %v20724_v62 = vrot.slane %v17746_v39, %v20660_v53  ;;  %v17713_v56 = vld [vmem:[#allocation5 + $0x172c] ss:$40 sps:$4 sm:$0xff]   ;;  %v17708_v39 = vld [vmem:[#allocation5 + $0x1720] ss:$40 sps:$4 sm:$0xff]  }
 0x171   :  { %10601 = vmatprep.subr.bf16.mxu1 %v17573_v63  ;;  %v258_v63 = vcombine.low %v20703_v40, %v20706_v41  ;;  %v17656_v40 = vld [vmem:[#allocation5 + $0x1454] ss:$40 sps:$4 sm:$0xff]  }
 0x172   :  { %v17659_v41 = vld [vmem:[#allocation5 + $0x145c] ss:$40 sps:$4 sm:$0xff]  }
 0x173   :  { %10192 = vmatpush1.bf16.msra.mxu0 %v17568_v0  ;;  %v17640_v0 = vld [vmem:[#allocation5 + $0x13b0] ss:$40 sps:$4 sm:$0xff]  }
 0x174   :  { %10602 = vmatpush1.bf16.msra.mxu1 %v17571_v2  ;;  %10193 = vmatprep.subr.bf16.mxu0 %v17576_v3  ;;  %v17643_v2 = vld [vmem:[#allocation5 + $0x13b8] ss:$40 sps:$4 sm:$0xff]   ;;  %v17650_v3 = vld [vmem:[#allocation5 + $0x1404] ss:$40 sps:$4 sm:$0xff]  }
 0x175   :  { %10603 = vmatprep.subr.bf16.mxu1 %v17579_v4  ;;  %v17653_v4 = vld [vmem:[#allocation5 + $0x140c] ss:$40 sps:$4 sm:$0xff]  }
 0x177   :  { %10194 = vmatpush1.bf16.msra.mxu0 %v17574_v5  ;;  %v293_v5 = vcombine.high %v20721_v61, %v20724_v62 }
 0x178   :  { %10604 = vmatpush1.bf16.msra.mxu1 %v17577_v6  ;;  %10195 = vmatprep.subr.bf16.mxu0 %v17582_v7  ;;  %v20730_v6 = vpack.c.bf16 %v258_v63, %v258_v63  ;;  %v17648_v7 = vld [vmem:[#allocation5 + $0x1400] ss:$40 sps:$4 sm:$0xff]  }
 0x179   :  { %10605 = vmatprep.subr.bf16.mxu1 %v17585_v8  ;;  %v17651_v8 = vld [vmem:[#allocation5 + $0x1408] ss:$40 sps:$4 sm:$0xff]   ;;  %v17717_v63 = vld [vmem:[#allocation5 + $0x1778] ss:$40 sps:$4 sm:$0xff]  }
 0x17b   :  { %10196 = vmatpush1.bf16.msra.mxu0 %v17580_v9  ;;  %v20732_v9 = vpack.c.bf16 %v293_v5, %v293_v5  ;;  %v17728_v5 = vld [vmem:[#allocation5 + $0x1814] ss:$40 sps:$4 sm:$0xff]  }
 0x17c   :  { %10606 = vmatpush1.bf16.msra.mxu1 %v17583_v10  ;;  %10197 = vmatprep.subr.bf16.mxu0 %v17588_v11  ;;  %v17654_v10 = vld [vmem:[#allocation5 + $0x1450] ss:$40 sps:$4 sm:$0xff]  }
 0x17d   :  { %10607 = vmatprep.subr.bf16.mxu1 %v17591_v12  ;;  %v17657_v11 = vld [vmem:[#allocation5 + $0x1458] ss:$40 sps:$4 sm:$0xff]   ;;  %v17662_v12 = vld [vmem:[#allocation5 + $0x14a4] ss:$40 sps:$4 sm:$0xff]  }
 0x17f   :  { %10198 = vmatpush1.bf16.msra.mxu0 %v17586_v13  ;;  %v17665_v13 = vld [vmem:[#allocation5 + $0x14ac] ss:$40 sps:$4 sm:$0xff]  }
 0x180   :  { %10608 = vmatpush1.bf16.msra.mxu1 %v17589_v14  ;;  %10199 = vmatprep.subr.bf16.mxu0 %v17594_v16  ;;  %v17660_v14 = vld [vmem:[#allocation5 + $0x14a0] ss:$40 sps:$4 sm:$0xff]  }
 0x181   :  { %10609 = vmatprep.subr.bf16.mxu1 %v17597_v17  ;;  %v17663_v16 = vld [vmem:[#allocation5 + $0x14a8] ss:$40 sps:$4 sm:$0xff]   ;;  %v17668_v17 = vld [vmem:[#allocation5 + $0x14f4] ss:$40 sps:$4 sm:$0xff]  }
 0x183   :  { %10200 = vmatpush1.bf16.msra.mxu0 %v17592_v18  ;;  %v17671_v18 = vld [vmem:[#allocation5 + $0x14fc] ss:$40 sps:$4 sm:$0xff]  }
 0x184   :  { %10610 = vmatpush1.bf16.msra.mxu1 %v17595_v19  ;;  %10201 = vmatprep.subr.bf16.mxu0 %v17600_v20  ;;  %v17666_v19 = vld [vmem:[#allocation5 + $0x14f0] ss:$40 sps:$4 sm:$0xff]  }
 0x185   :  { %10611 = vmatprep.subr.bf16.mxu1 %v17603_v21  ;;  %v17669_v20 = vld [vmem:[#allocation5 + $0x14f8] ss:$40 sps:$4 sm:$0xff]   ;;  %v17674_v21 = vld [vmem:[#allocation5 + $0x1544] ss:$40 sps:$4 sm:$0xff]  }
 0x187   :  { %10202 = vmatpush1.bf16.msra.mxu0 %v17598_v22  ;;  %v17677_v22 = vld [vmem:[#allocation5 + $0x154c] ss:$40 sps:$4 sm:$0xff]  }
 0x188   :  { %10612 = vmatpush1.bf16.msra.mxu1 %v17601_v23  ;;  %10203 = vmatprep.subr.bf16.mxu0 %v17606_v24  ;;  %v17672_v23 = vld [vmem:[#allocation5 + $0x1540] ss:$40 sps:$4 sm:$0xff]  }
 0x189   :  { %10613 = vmatprep.subr.bf16.mxu1 %v17609_v25  ;;  %v17675_v24 = vld [vmem:[#allocation5 + $0x1548] ss:$40 sps:$4 sm:$0xff]   ;;  %v17680_v25 = vld [vmem:[#allocation5 + $0x1594] ss:$40 sps:$4 sm:$0xff]  }
 0x18b   :  { %10204 = vmatpush1.bf16.msra.mxu0 %v17604_v26  ;;  %v17683_v26 = vld [vmem:[#allocation5 + $0x159c] ss:$40 sps:$4 sm:$0xff]  }
 0x18c   :  { %10614 = vmatpush1.bf16.msra.mxu1 %v17607_v27  ;;  %10205 = vmatprep.subr.bf16.mxu0 %v17612_v28  ;;  %v17678_v27 = vld [vmem:[#allocation5 + $0x1590] ss:$40 sps:$4 sm:$0xff]  }
 0x18d   :  { %10615 = vmatprep.subr.bf16.mxu1 %v17615_v30  ;;  %v17681_v28 = vld [vmem:[#allocation5 + $0x1598] ss:$40 sps:$4 sm:$0xff]   ;;  %v17686_v30 = vld [vmem:[#allocation5 + $0x15e4] ss:$40 sps:$4 sm:$0xff]  }
 0x18f   :  { %10206 = vmatpush1.bf16.msra.mxu0 %v17610_v31  ;;  %v17689_v31 = vld [vmem:[#allocation5 + $0x15ec] ss:$40 sps:$4 sm:$0xff]  }
 0x190   :  { %10616 = vmatpush1.bf16.msra.mxu1 %v17613_v32  ;;  %10207 = vmatprep.subr.bf16.mxu0 %v17618_v33  ;;  %v17684_v32 = vld [vmem:[#allocation5 + $0x15e0] ss:$40 sps:$4 sm:$0xff]  }
 0x191   :  { %10617 = vmatprep.subr.bf16.mxu1 %v17621_v34  ;;  %v17687_v33 = vld [vmem:[#allocation5 + $0x15e8] ss:$40 sps:$4 sm:$0xff]   ;;  %v17692_v34 = vld [vmem:[#allocation5 + $0x1634] ss:$40 sps:$4 sm:$0xff]  }
 0x193   :  { %10208 = vmatpush1.bf16.msra.mxu0 %v17616_v35  ;;  %v17695_v35 = vld [vmem:[#allocation5 + $0x163c] ss:$40 sps:$4 sm:$0xff]  }
 0x194   :  { %10618 = vmatpush1.bf16.msra.mxu1 %v17619_v36  ;;  %10209 = vmatprep.subr.bf16.mxu0 %v17624_v37  ;;  %v17690_v36 = vld [vmem:[#allocation5 + $0x1630] ss:$40 sps:$4 sm:$0xff]  }
 0x195   :  { %10619 = vmatprep.subr.bf16.mxu1 %v17627_v42  ;;  %v17693_v37 = vld [vmem:[#allocation5 + $0x1638] ss:$40 sps:$4 sm:$0xff]   ;;  %v17698_v42 = vld [vmem:[#allocation5 + $0x1684] ss:$40 sps:$4 sm:$0xff]  }
 0x197   :  { %10210 = vmatpush1.bf16.msra.mxu0 %v17622_v43  ;;  %v17701_v43 = vld [vmem:[#allocation5 + $0x168c] ss:$40 sps:$4 sm:$0xff]  }
 0x198   :  { %10620 = vmatpush1.bf16.msra.mxu1 %v17625_v44  ;;  %10211 = vmatprep.subr.bf16.mxu0 %v17630_v47  ;;  %v17696_v44 = vld [vmem:[#allocation5 + $0x1680] ss:$40 sps:$4 sm:$0xff]  }
 0x199   :  { %10621 = vmatprep.subr.bf16.mxu1 %v17633_v48  ;;  %v17699_v47 = vld [vmem:[#allocation5 + $0x1688] ss:$40 sps:$4 sm:$0xff]   ;;  %v17704_v48 = vld [vmem:[#allocation5 + $0x16d4] ss:$40 sps:$4 sm:$0xff]  }
 0x19b   :  { %10212 = vmatpush1.bf16.msra.mxu0 %v17628_v49  ;;  %v17707_v49 = vld [vmem:[#allocation5 + $0x16dc] ss:$40 sps:$4 sm:$0xff]  }
 0x19c   :  { %10622 = vmatpush1.bf16.msra.mxu1 %v17631_v50  ;;  %10213 = vmatprep.subr.bf16.mxu0 %v17636_v51  ;;  %v17702_v50 = vld [vmem:[#allocation5 + $0x16d0] ss:$40 sps:$4 sm:$0xff]  }
 0x19d   :  { %10623 = vmatprep.subr.bf16.mxu1 %v17639_v54  ;;  %v17705_v51 = vld [vmem:[#allocation5 + $0x16d8] ss:$40 sps:$4 sm:$0xff]   ;;  %v17710_v54 = vld [vmem:[#allocation5 + $0x1724] ss:$40 sps:$4 sm:$0xff]  }
 0x19f   :  { %10214 = vmatpush1.bf16.msra.mxu0 %v17634_v57  ;;  %v17711_v57 = vld [vmem:[#allocation5 + $0x1728] ss:$40 sps:$4 sm:$0xff]  }
 0x1a0   :  { %10624 = vmatpush1.bf16.msra.mxu1 %v17637_v58  ;;  %10215 = vmatprep.subr.bf16.mxu0 %v17642_v59  ;;  %v17716_v58 = vld [vmem:[#allocation5 + $0x1774] ss:$40 sps:$4 sm:$0xff]  }
 0x1a1   :  { %10625 = vmatprep.subr.bf16.mxu1 %v17645_v60  ;;  %v17719_v59 = vld [vmem:[#allocation5 + $0x177c] ss:$40 sps:$4 sm:$0xff]   ;;  %v17714_v60 = vld [vmem:[#allocation5 + $0x1770] ss:$40 sps:$4 sm:$0xff]  }
 0x1a3   :  { %10216 = vmatpush1.bf16.msra.mxu0 %v17640_v0  ;;  %v17722_v0 = vld [vmem:[#allocation5 + $0x17c4] ss:$40 sps:$4 sm:$0xff]  }
 0x1a4   :  { %10626 = vmatpush1.bf16.msra.mxu1 %v17643_v2  ;;  %10226 = vmatprep.subr.bf16.mxu0 %v17650_v3  ;;  %v17725_v2 = vld [vmem:[#allocation5 + $0x17cc] ss:$40 sps:$4 sm:$0xff]   ;;  %v17720_v3 = vld [vmem:[#allocation5 + $0x17c0] ss:$40 sps:$4 sm:$0xff]  }
 0x1a5   :  { %10636 = vmatprep.subr.bf16.mxu1 %v17653_v4  ;;  %v17723_v4 = vld [vmem:[#allocation5 + $0x17c8] ss:$40 sps:$4 sm:$0xff]  }
 0x1a6   :  { %10218 = vmatmul.mubr.bf16.vlgmr.msra.gmra.mrb[0].mxu0 %v20730_v6 }
 0x1a7   :  { %10628 = vmatmul.mubr.bf16.vlgmr.msra.gmra.mrb[0].mxu1 %v20730_v6  ;;  %10227 = vmatpush1.bf16.msra.mxu0 %v17648_v7  ;;  %v17731_v7 = vld [vmem:[#allocation5 + $0x181c] ss:$40 sps:$4 sm:$0xff]  }
 0x1a8   :  { %10637 = vmatpush1.bf16.msra.mxu1 %v17651_v8  ;;  %10228 = vmatprep.subr.bf16.mxu0 %v17656_v40  ;;  %v17726_v8 = vld [vmem:[#allocation5 + $0x1810] ss:$40 sps:$4 sm:$0xff]  }
 0x1a9   :  { %10638 = vmatprep.subr.bf16.mxu1 %v17659_v41  ;;  %10258 = vmatprep.mubr.bf16.mxu0 %v20732_v9  ;;  %v17729_v40 = vld [vmem:[#allocation5 + $0x1818] ss:$40 sps:$4 sm:$0xff]   ;;  %v17734_v41 = vld [vmem:[#allocation5 + $0x1864] ss:$40 sps:$4 sm:$0xff]  }
 0x1aa   :  { %10668 = vmatprep.mubr.bf16.mxu1 %v20732_v9 }
 0x1ab   :  { %10229 = vmatpush1.bf16.msra.mxu0 %v17654_v10  ;;  %v17737_v10 = vld [vmem:[#allocation5 + $0x186c] ss:$40 sps:$4 sm:$0xff]  }
 0x1ac   :  { %10639 = vmatpush1.bf16.msra.mxu1 %v17657_v11  ;;  %10230 = vmatprep.subr.bf16.mxu0 %v17662_v12  ;;  %v17844_v11 = vld [vmem:[#allocation2 + $0x14] ss:$40 sps:$4 sm:$0xff]   ;;  %v17845_v12 = vld [vmem:[#allocation2 + $0x64] ss:$40 sps:$4 sm:$0xff]  }
 0x1ad   :  { %10640 = vmatprep.subr.bf16.mxu1 %v17665_v13  ;;  %v17732_v13 = vld [vmem:[#allocation5 + $0x1860] ss:$40 sps:$4 sm:$0xff]  }
 0x1af   :  { %10231 = vmatpush1.bf16.msra.mxu0 %v17660_v14  ;;  %v17735_v14 = vld [vmem:[#allocation5 + $0x1868] ss:$40 sps:$4 sm:$0xff]  }
 0x1b0   :  { %10641 = vmatpush1.bf16.msra.mxu1 %v17663_v16  ;;  %10232 = vmatprep.subr.bf16.mxu0 %v17668_v17  ;;  %v17740_v16 = vld [vmem:[#allocation5 + $0x18b4] ss:$40 sps:$4 sm:$0xff]  }
 0x1b1   :  { %10642 = vmatprep.subr.bf16.mxu1 %v17671_v18  ;;  %v17743_v17 = vld [vmem:[#allocation5 + $0x18bc] ss:$40 sps:$4 sm:$0xff]   ;;  %v20739_v18 = vrot.slane %v17844_v11, %v20660_v53  ;;  %v17805_v11 = vld [vmem:[#allocation5 + $0x1bd8] ss:$40 sps:$4 sm:$0xff]  }
 0x1b3   :  { %10233 = vmatpush1.bf16.msra.mxu0 %v17666_v19  ;;  %v20742_v19 = vrot.slane %v17845_v12, %v20660_v53  ;;  %v17810_v12 = vld [vmem:[#allocation5 + $0x1c24] ss:$40 sps:$4 sm:$0xff]  }
 0x1b4   :  { %10643 = vmatpush1.bf16.msra.mxu1 %v17669_v20  ;;  %10234 = vmatprep.subr.bf16.mxu0 %v17674_v21  ;;  %v292_v20 = vcombine.low %v20721_v61, %v20724_v62  ;;  %v17738_v21 = vld [vmem:[#allocation5 + $0x18b0] ss:$40 sps:$4 sm:$0xff]   ;;  %v17756_v61 = vld [vmem:[#allocation5 + $0x1954] ss:$40 sps:$4 sm:$0xff]  }
 0x1b5   :  { %10644 = vmatprep.subr.bf16.mxu1 %v17677_v22  ;;  %v17741_v22 = vld [vmem:[#allocation5 + $0x18b8] ss:$40 sps:$4 sm:$0xff]   ;;  %v17759_v62 = vld [vmem:[#allocation5 + $0x195c] ss:$40 sps:$4 sm:$0xff]  }
 0x1b7   :  { %10235 = vmatpush1.bf16.msra.mxu0 %v17672_v23  ;;  %v17750_v23 = vld [vmem:[#allocation5 + $0x1904] ss:$40 sps:$4 sm:$0xff]  }
 0x1b8   :  { %10645 = vmatpush1.bf16.msra.mxu1 %v17675_v24  ;;  %10236 = vmatprep.subr.bf16.mxu0 %v17680_v25  ;;  %v17753_v24 = vld [vmem:[#allocation5 + $0x190c] ss:$40 sps:$4 sm:$0xff]   ;;  %v295_v25 = vcombine.high %v20739_v18, %v20742_v19 }
 0x1b9   :  { %10646 = vmatprep.subr.bf16.mxu1 %v17683_v26  ;;  %v20748_v26 = vpack.c.bf16 %v292_v20, %v292_v20  ;;  %v17819_v20 = vld [vmem:[#allocation5 + $0x1c7c] ss:$40 sps:$4 sm:$0xff]  }
 0x1bb   :  { %10237 = vmatpush1.bf16.msra.mxu0 %v17678_v27  ;;  %v17748_v27 = vld [vmem:[#allocation5 + $0x1900] ss:$40 sps:$4 sm:$0xff]  }
 0x1bc   :  { %10647 = vmatpush1.bf16.msra.mxu1 %v17681_v28  ;;  %10238 = vmatprep.subr.bf16.mxu0 %v17686_v30  ;;  %v17751_v28 = vld [vmem:[#allocation5 + $0x1908] ss:$40 sps:$4 sm:$0xff]   ;;  %v20750_v30 = vpack.c.bf16 %v295_v25, %v295_v25 }
 0x1bd   :  { %10648 = vmatprep.subr.bf16.mxu1 %v17689_v31  ;;  %v17754_v31 = vld [vmem:[#allocation5 + $0x1950] ss:$40 sps:$4 sm:$0xff]   ;;  %v17820_v25 = vld [vmem:[#allocation5 + $0x1cc0] ss:$40 sps:$4 sm:$0xff]  }
 0x1bf   :  { %10239 = vmatpush1.bf16.msra.mxu0 %v17684_v32  ;;  %v17757_v32 = vld [vmem:[#allocation5 + $0x1958] ss:$40 sps:$4 sm:$0xff]  }
 0x1c0   :  { %10649 = vmatpush1.bf16.msra.mxu1 %v17687_v33  ;;  %10240 = vmatprep.subr.bf16.mxu0 %v17692_v34  ;;  %v17762_v33 = vld [vmem:[#allocation5 + $0x19a4] ss:$40 sps:$4 sm:$0xff]  }
 0x1c1   :  { %10650 = vmatprep.subr.bf16.mxu1 %v17695_v35  ;;  %v17765_v34 = vld [vmem:[#allocation5 + $0x19ac] ss:$40 sps:$4 sm:$0xff]   ;;  %v17760_v35 = vld [vmem:[#allocation5 + $0x19a0] ss:$40 sps:$4 sm:$0xff]  }
 0x1c3   :  { %10241 = vmatpush1.bf16.msra.mxu0 %v17690_v36  ;;  %v17763_v36 = vld [vmem:[#allocation5 + $0x19a8] ss:$40 sps:$4 sm:$0xff]  }
 0x1c4   :  { %10651 = vmatpush1.bf16.msra.mxu1 %v17693_v37  ;;  %10242 = vmatprep.subr.bf16.mxu0 %v17698_v42  ;;  %v17768_v37 = vld [vmem:[#allocation5 + $0x19f4] ss:$40 sps:$4 sm:$0xff]  }
 0x1c5   :  { %10652 = vmatprep.subr.bf16.mxu1 %v17701_v43  ;;  %v17771_v42 = vld [vmem:[#allocation5 + $0x19fc] ss:$40 sps:$4 sm:$0xff]   ;;  %v17766_v43 = vld [vmem:[#allocation5 + $0x19f0] ss:$40 sps:$4 sm:$0xff]  }
 0x1c7   :  { %10243 = vmatpush1.bf16.msra.mxu0 %v17696_v44  ;;  %v17769_v44 = vld [vmem:[#allocation5 + $0x19f8] ss:$40 sps:$4 sm:$0xff]  }
 0x1c8   :  { %10653 = vmatpush1.bf16.msra.mxu1 %v17699_v47  ;;  %10244 = vmatprep.subr.bf16.mxu0 %v17704_v48  ;;  %v17774_v47 = vld [vmem:[#allocation5 + $0x1a44] ss:$40 sps:$4 sm:$0xff]  }
 0x1c9   :  { %10654 = vmatprep.subr.bf16.mxu1 %v17707_v49  ;;  %v17777_v48 = vld [vmem:[#allocation5 + $0x1a4c] ss:$40 sps:$4 sm:$0xff]   ;;  %v17772_v49 = vld [vmem:[#allocation5 + $0x1a40] ss:$40 sps:$4 sm:$0xff]  }
 0x1cb   :  { %10245 = vmatpush1.bf16.msra.mxu0 %v17702_v50  ;;  %v17775_v50 = vld [vmem:[#allocation5 + $0x1a48] ss:$40 sps:$4 sm:$0xff]  }
 0x1cc   :  { %10655 = vmatpush1.bf16.msra.mxu1 %v17705_v51  ;;  %10246 = vmatprep.subr.bf16.mxu0 %v17710_v54  ;;  %v17780_v51 = vld [vmem:[#allocation5 + $0x1a94] ss:$40 sps:$4 sm:$0xff]  }
 0x1cd   :  { %10656 = vmatprep.subr.bf16.mxu1 %v17713_v56  ;;  %v17783_v54 = vld [vmem:[#allocation5 + $0x1a9c] ss:$40 sps:$4 sm:$0xff]   ;;  %v17778_v56 = vld [vmem:[#allocation5 + $0x1a90] ss:$40 sps:$4 sm:$0xff]  }
 0x1cf   :  { %10247 = vmatpush1.bf16.msra.mxu0 %v17708_v39  ;;  %v17781_v39 = vld [vmem:[#allocation5 + $0x1a98] ss:$40 sps:$4 sm:$0xff]  }
 0x1d0   :  { %10657 = vmatpush1.bf16.msra.mxu1 %v17711_v57  ;;  %10248 = vmatprep.subr.bf16.mxu0 %v17716_v58  ;;  %v17786_v57 = vld [vmem:[#allocation5 + $0x1ae4] ss:$40 sps:$4 sm:$0xff]  }
 0x1d1   :  { %10658 = vmatprep.subr.bf16.mxu1 %v17719_v59  ;;  %v17789_v58 = vld [vmem:[#allocation5 + $0x1aec] ss:$40 sps:$4 sm:$0xff]   ;;  %v17784_v59 = vld [vmem:[#allocation5 + $0x1ae0] ss:$40 sps:$4 sm:$0xff]  }
 0x1d3   :  { %10249 = vmatpush1.bf16.msra.mxu0 %v17714_v60  ;;  %v17787_v60 = vld [vmem:[#allocation5 + $0x1ae8] ss:$40 sps:$4 sm:$0xff]  }
 0x1d4   :  { %10659 = vmatpush1.bf16.msra.mxu1 %v17717_v63  ;;  %10250 = vmatprep.subr.bf16.mxu0 %v17722_v0  ;;  %v17792_v63 = vld [vmem:[#allocation5 + $0x1b34] ss:$40 sps:$4 sm:$0xff]  }
 0x1d5   :  { %10660 = vmatprep.subr.bf16.mxu1 %v17725_v2  ;;  %v17795_v0 = vld [vmem:[#allocation5 + $0x1b3c] ss:$40 sps:$4 sm:$0xff]   ;;  %v17790_v2 = vld [vmem:[#allocation5 + $0x1b30] ss:$40 sps:$4 sm:$0xff]  }
 0x1d7   :  { %10251 = vmatpush1.bf16.msra.mxu0 %v17720_v3  ;;  %v17793_v3 = vld [vmem:[#allocation5 + $0x1b38] ss:$40 sps:$4 sm:$0xff]  }
 0x1d8   :  { %10661 = vmatpush1.bf16.msra.mxu1 %v17723_v4  ;;  %10252 = vmatprep.subr.bf16.mxu0 %v17728_v5  ;;  %v17798_v4 = vld [vmem:[#allocation5 + $0x1b84] ss:$40 sps:$4 sm:$0xff]  }
 0x1d9   :  { %10662 = vmatprep.subr.bf16.mxu1 %v17731_v7  ;;  %v17801_v5 = vld [vmem:[#allocation5 + $0x1b8c] ss:$40 sps:$4 sm:$0xff]   ;;  %v17796_v7 = vld [vmem:[#allocation5 + $0x1b80] ss:$40 sps:$4 sm:$0xff]  }
 0x1db   :  { %10253 = vmatpush1.bf16.msra.mxu0 %v17726_v8  ;;  %v17799_v8 = vld [vmem:[#allocation5 + $0x1b88] ss:$40 sps:$4 sm:$0xff]  }
 0x1dc   :  { %10663 = vmatpush1.bf16.msra.mxu1 %v17729_v40  ;;  %10254 = vmatprep.subr.bf16.mxu0 %v17734_v41  ;;  %v17804_v40 = vld [vmem:[#allocation5 + $0x1bd4] ss:$40 sps:$4 sm:$0xff]  }
 0x1dd   :  { %10664 = vmatprep.subr.bf16.mxu1 %v17737_v10  ;;  %v17807_v41 = vld [vmem:[#allocation5 + $0x1bdc] ss:$40 sps:$4 sm:$0xff]   ;;  %v17802_v10 = vld [vmem:[#allocation5 + $0x1bd0] ss:$40 sps:$4 sm:$0xff]  }
 0x1df   :  { %10255 = vmatpush1.bf16.msra.mxu0 %v17732_v13  ;;  %v17813_v13 = vld [vmem:[#allocation5 + $0x1c2c] ss:$40 sps:$4 sm:$0xff]  }
 0x1e0   :  { %10665 = vmatpush1.bf16.msra.mxu1 %v17735_v14  ;;  %10256 = vmatprep.subr.bf16.mxu0 %v17740_v16  ;;  %v17808_v14 = vld [vmem:[#allocation5 + $0x1c20] ss:$40 sps:$4 sm:$0xff]  }
 0x1e1   :  { %10666 = vmatprep.subr.bf16.mxu1 %v17743_v17  ;;  %v17811_v16 = vld [vmem:[#allocation5 + $0x1c28] ss:$40 sps:$4 sm:$0xff]   ;;  %v17816_v17 = vld [vmem:[#allocation5 + $0x1c74] ss:$40 sps:$4 sm:$0xff]  }
 0x1e3   :  { %10257 = vmatpush1.bf16.msra.mxu0 %v17738_v21  ;;  %v17814_v21 = vld [vmem:[#allocation5 + $0x1c70] ss:$40 sps:$4 sm:$0xff]  }
 0x1e4   :  { %10667 = vmatpush1.bf16.msra.mxu1 %v17741_v22  ;;  %10267 = vmatprep.subr.bf16.mxu0 %v17750_v23  ;;  %v17817_v22 = vld [vmem:[#allocation5 + $0x1c78] ss:$40 sps:$4 sm:$0xff]   ;;  %v17822_v23 = vld [vmem:[#allocation5 + $0x1cc4] ss:$40 sps:$4 sm:$0xff]  }
 0x1e5   :  { %10677 = vmatprep.subr.bf16.mxu1 %v17753_v24  ;;  %v17825_v24 = vld [vmem:[#allocation5 + $0x1ccc] ss:$40 sps:$4 sm:$0xff]  }
 0x1e6   :  { %10259 = vmatmul.mubr.bf16.vlgmr.msra.gmra.mrb[0].mxu0 %v20748_v26 }
 0x1e7   :  { %10669 = vmatmul.mubr.bf16.vlgmr.msra.gmra.mrb[0].mxu1 %v20748_v26  ;;  %10268 = vmatpush1.bf16.msra.mxu0 %v17748_v27  ;;  %v17823_v27 = vld [vmem:[#allocation5 + $0x1cc8] ss:$40 sps:$4 sm:$0xff]  }
 0x1e8   :  { %10678 = vmatpush1.bf16.msra.mxu1 %v17751_v28  ;;  %10269 = vmatprep.subr.bf16.mxu0 %v17756_v61  ;;  %v17828_v28 = vld [vmem:[#allocation5 + $0x1d14] ss:$40 sps:$4 sm:$0xff]  }
 0x1e9   :  { %10679 = vmatprep.subr.bf16.mxu1 %v17759_v62  ;;  %10299 = vmatprep.mubr.bf16.mxu0 %v20750_v30  ;;  %v17831_v61 = vld [vmem:[#allocation5 + $0x1d1c] ss:$40 sps:$4 sm:$0xff]   ;;  %v17826_v62 = vld [vmem:[#allocation5 + $0x1d10] ss:$40 sps:$4 sm:$0xff]  }
 0x1ea   :  { %10709 = vmatprep.mubr.bf16.mxu1 %v20750_v30 }
 0x1eb   :  { %10270 = vmatpush1.bf16.msra.mxu0 %v17754_v31  ;;  %v17829_v31 = vld [vmem:[#allocation5 + $0x1d18] ss:$40 sps:$4 sm:$0xff]  }
 0x1ec   :  { %10680 = vmatpush1.bf16.msra.mxu1 %v17757_v32  ;;  %10271 = vmatprep.subr.bf16.mxu0 %v17762_v33  ;;  %v17834_v32 = vld [vmem:[#allocation5 + $0x1d64] ss:$40 sps:$4 sm:$0xff]  }
 0x1ed   :  { %10681 = vmatprep.subr.bf16.mxu1 %v17765_v34  ;;  %v17837_v33 = vld [vmem:[#allocation5 + $0x1d6c] ss:$40 sps:$4 sm:$0xff]   ;;  %v17942_v34 = vld [vmem:[#allocation2 + $0x18] ss:$40 sps:$4 sm:$0xff]  }
 0x1ef   :  { %10272 = vmatpush1.bf16.msra.mxu0 %v17760_v35  ;;  %v17944_v35 = vld [vmem:[#allocation2 + $0x68] ss:$40 sps:$4 sm:$0xff]  }
 0x1f0   :  { %10682 = vmatpush1.bf16.msra.mxu1 %v17763_v36  ;;  %10273 = vmatprep.subr.bf16.mxu0 %v17768_v37  ;;  %v17832_v36 = vld [vmem:[#allocation5 + $0x1d60] ss:$40 sps:$4 sm:$0xff]  }
 0x1f1   :  { %10683 = vmatprep.subr.bf16.mxu1 %v17771_v42  ;;  %v17835_v37 = vld [vmem:[#allocation5 + $0x1d68] ss:$40 sps:$4 sm:$0xff]   ;;  %v17840_v42 = vld [vmem:[#allocation5 + $0x1db4] ss:$40 sps:$4 sm:$0xff]  }
 0x1f3   :  { %10274 = vmatpush1.bf16.msra.mxu0 %v17766_v43  ;;  %v17843_v43 = vld [vmem:[#allocation5 + $0x1dbc] ss:$40 sps:$4 sm:$0xff]  }
 0x1f4   :  { %10684 = vmatpush1.bf16.msra.mxu1 %v17769_v44  ;;  %10275 = vmatprep.subr.bf16.mxu0 %v17774_v47  ;;  %v20757_v44 = vrot.slane %v17942_v34, %v20660_v53  ;;  %v20760_v47 = vrot.slane %v17944_v35, %v20660_v53  ;;  %v17905_v34 = vld [vmem:[#allocation5 + $0x20dc] ss:$40 sps:$4 sm:$0xff]   ;;  %v17900_v35 = vld [vmem:[#allocation5 + $0x20d0] ss:$40 sps:$4 sm:$0xff]  }
 0x1f5   :  { %10685 = vmatprep.subr.bf16.mxu1 %v17777_v48  ;;  %v294_v48 = vcombine.low %v20739_v18, %v20742_v19  ;;  %v17854_v18 = vld [vmem:[#allocation5 + $0x1e54] ss:$40 sps:$4 sm:$0xff]  }
 0x1f6   :  { %v17857_v19 = vld [vmem:[#allocation5 + $0x1e5c] ss:$40 sps:$4 sm:$0xff]  }
 0x1f7   :  { %10276 = vmatpush1.bf16.msra.mxu0 %v17772_v49  ;;  %v17838_v49 = vld [vmem:[#allocation5 + $0x1db0] ss:$40 sps:$4 sm:$0xff]  }
 0x1f8   :  { %10686 = vmatpush1.bf16.msra.mxu1 %v17775_v50  ;;  %10277 = vmatprep.subr.bf16.mxu0 %v17780_v51  ;;  %v17841_v50 = vld [vmem:[#allocation5 + $0x1db8] ss:$40 sps:$4 sm:$0xff]   ;;  %v17848_v51 = vld [vmem:[#allocation5 + $0x1e04] ss:$40 sps:$4 sm:$0xff]  }
 0x1f9   :  { %10687 = vmatprep.subr.bf16.mxu1 %v17783_v54  ;;  %v17851_v54 = vld [vmem:[#allocation5 + $0x1e0c] ss:$40 sps:$4 sm:$0xff]  }
 0x1fb   :  { %10278 = vmatpush1.bf16.msra.mxu0 %v17778_v56  ;;  %v329_v56 = vcombine.high %v20757_v44, %v20760_v47 }
 0x1fc   :  { %10688 = vmatpush1.bf16.msra.mxu1 %v17781_v39  ;;  %10279 = vmatprep.subr.bf16.mxu0 %v17786_v57  ;;  %v20766_v39 = vpack.c.bf16 %v294_v48, %v294_v48  ;;  %v17846_v57 = vld [vmem:[#allocation5 + $0x1e00] ss:$40 sps:$4 sm:$0xff]  }
 0x1fd   :  { %10689 = vmatprep.subr.bf16.mxu1 %v17789_v58  ;;  %v17849_v58 = vld [vmem:[#allocation5 + $0x1e08] ss:$40 sps:$4 sm:$0xff]  }
 0x1fe   :  { %v17909_v48 = vld [vmem:[#allocation5 + $0x2128] ss:$40 sps:$4 sm:$0xff]  }
 0x1ff   :  { %10280 = vmatpush1.bf16.msra.mxu0 %v17784_v59  ;;  %v20768_v59 = vpack.c.bf16 %v329_v56, %v329_v56  ;;  %v17920_v56 = vld [vmem:[#allocation5 + $0x21c4] ss:$40 sps:$4 sm:$0xff]  }
 0x200   :  { %10690 = vmatpush1.bf16.msra.mxu1 %v17787_v60  ;;  %10281 = vmatprep.subr.bf16.mxu0 %v17792_v63  ;;  %v17852_v60 = vld [vmem:[#allocation5 + $0x1e50] ss:$40 sps:$4 sm:$0xff]  }
 0x201   :  { %10691 = vmatprep.subr.bf16.mxu1 %v17795_v0  ;;  %v17855_v63 = vld [vmem:[#allocation5 + $0x1e58] ss:$40 sps:$4 sm:$0xff]   ;;  %v17860_v0 = vld [vmem:[#allocation5 + $0x1ea4] ss:$40 sps:$4 sm:$0xff]  }
 0x203   :  { %10282 = vmatpush1.bf16.msra.mxu0 %v17790_v2  ;;  %v17863_v2 = vld [vmem:[#allocation5 + $0x1eac] ss:$40 sps:$4 sm:$0xff]  }
 0x204   :  { %10692 = vmatpush1.bf16.msra.mxu1 %v17793_v3  ;;  %10283 = vmatprep.subr.bf16.mxu0 %v17798_v4  ;;  %v17858_v3 = vld [vmem:[#allocation5 + $0x1ea0] ss:$40 sps:$4 sm:$0xff]  }
 0x205   :  { %10693 = vmatprep.subr.bf16.mxu1 %v17801_v5  ;;  %v17861_v4 = vld [vmem:[#allocation5 + $0x1ea8] ss:$40 sps:$4 sm:$0xff]   ;;  %v17866_v5 = vld [vmem:[#allocation5 + $0x1ef4] ss:$40 sps:$4 sm:$0xff]  }
 0x207   :  { %10284 = vmatpush1.bf16.msra.mxu0 %v17796_v7  ;;  %v17869_v7 = vld [vmem:[#allocation5 + $0x1efc] ss:$40 sps:$4 sm:$0xff]  }
 0x208   :  { %10694 = vmatpush1.bf16.msra.mxu1 %v17799_v8  ;;  %10285 = vmatprep.subr.bf16.mxu0 %v17804_v40  ;;  %v17864_v8 = vld [vmem:[#allocation5 + $0x1ef0] ss:$40 sps:$4 sm:$0xff]  }
 0x209   :  { %10695 = vmatprep.subr.bf16.mxu1 %v17807_v41  ;;  %v17867_v40 = vld [vmem:[#allocation5 + $0x1ef8] ss:$40 sps:$4 sm:$0xff]   ;;  %v17872_v41 = vld [vmem:[#allocation5 + $0x1f44] ss:$40 sps:$4 sm:$0xff]  }
 0x20b   :  { %10286 = vmatpush1.bf16.msra.mxu0 %v17802_v10  ;;  %v17875_v10 = vld [vmem:[#allocation5 + $0x1f4c] ss:$40 sps:$4 sm:$0xff]  }
 0x20c   :  { %10696 = vmatpush1.bf16.msra.mxu1 %v17805_v11  ;;  %10287 = vmatprep.subr.bf16.mxu0 %v17810_v12  ;;  %v17870_v11 = vld [vmem:[#allocation5 + $0x1f40] ss:$40 sps:$4 sm:$0xff]  }
 0x20d   :  { %10697 = vmatprep.subr.bf16.mxu1 %v17813_v13  ;;  %v17873_v12 = vld [vmem:[#allocation5 + $0x1f48] ss:$40 sps:$4 sm:$0xff]   ;;  %v17878_v13 = vld [vmem:[#allocation5 + $0x1f94] ss:$40 sps:$4 sm:$0xff]  }
 0x20f   :  { %10288 = vmatpush1.bf16.msra.mxu0 %v17808_v14  ;;  %v17881_v14 = vld [vmem:[#allocation5 + $0x1f9c] ss:$40 sps:$4 sm:$0xff]  }
 0x210   :  { %10698 = vmatpush1.bf16.msra.mxu1 %v17811_v16  ;;  %10289 = vmatprep.subr.bf16.mxu0 %v17816_v17  ;;  %v17876_v16 = vld [vmem:[#allocation5 + $0x1f90] ss:$40 sps:$4 sm:$0xff]  }
 0x211   :  { %10699 = vmatprep.subr.bf16.mxu1 %v17819_v20  ;;  %v17879_v17 = vld [vmem:[#allocation5 + $0x1f98] ss:$40 sps:$4 sm:$0xff]   ;;  %v17884_v20 = vld [vmem:[#allocation5 + $0x1fe4] ss:$40 sps:$4 sm:$0xff]  }
 0x213   :  { %10290 = vmatpush1.bf16.msra.mxu0 %v17814_v21  ;;  %v17887_v21 = vld [vmem:[#allocation5 + $0x1fec] ss:$40 sps:$4 sm:$0xff]  }
 0x214   :  { %10700 = vmatpush1.bf16.msra.mxu1 %v17817_v22  ;;  %10291 = vmatprep.subr.bf16.mxu0 %v17822_v23  ;;  %v17882_v22 = vld [vmem:[#allocation5 + $0x1fe0] ss:$40 sps:$4 sm:$0xff]  }
 0x215   :  { %10701 = vmatprep.subr.bf16.mxu1 %v17825_v24  ;;  %v17885_v23 = vld [vmem:[#allocation5 + $0x1fe8] ss:$40 sps:$4 sm:$0xff]   ;;  %v17890_v24 = vld [vmem:[#allocation5 + $0x2034] ss:$40 sps:$4 sm:$0xff]  }
 0x217   :  { %10292 = vmatpush1.bf16.msra.mxu0 %v17820_v25  ;;  %v17893_v25 = vld [vmem:[#allocation5 + $0x203c] ss:$40 sps:$4 sm:$0xff]  }
 0x218   :  { %10702 = vmatpush1.bf16.msra.mxu1 %v17823_v27  ;;  %10293 = vmatprep.subr.bf16.mxu0 %v17828_v28  ;;  %v17888_v27 = vld [vmem:[#allocation5 + $0x2030] ss:$40 sps:$4 sm:$0xff]  }
 0x219   :  { %10703 = vmatprep.subr.bf16.mxu1 %v17831_v61  ;;  %v17891_v28 = vld [vmem:[#allocation5 + $0x2038] ss:$40 sps:$4 sm:$0xff]   ;;  %v17896_v61 = vld [vmem:[#allocation5 + $0x2084] ss:$40 sps:$4 sm:$0xff]  }
 0x21b   :  { %10294 = vmatpush1.bf16.msra.mxu0 %v17826_v62  ;;  %v17899_v62 = vld [vmem:[#allocation5 + $0x208c] ss:$40 sps:$4 sm:$0xff]  }
 0x21c   :  { %10704 = vmatpush1.bf16.msra.mxu1 %v17829_v31  ;;  %10295 = vmatprep.subr.bf16.mxu0 %v17834_v32  ;;  %v17894_v31 = vld [vmem:[#allocation5 + $0x2080] ss:$40 sps:$4 sm:$0xff]  }
 0x21d   :  { %10705 = vmatprep.subr.bf16.mxu1 %v17837_v33  ;;  %v17897_v32 = vld [vmem:[#allocation5 + $0x2088] ss:$40 sps:$4 sm:$0xff]   ;;  %v17902_v33 = vld [vmem:[#allocation5 + $0x20d4] ss:$40 sps:$4 sm:$0xff]  }
 0x21f   :  { %10296 = vmatpush1.bf16.msra.mxu0 %v17832_v36  ;;  %v17903_v36 = vld [vmem:[#allocation5 + $0x20d8] ss:$40 sps:$4 sm:$0xff]  }
 0x220   :  { %10706 = vmatpush1.bf16.msra.mxu1 %v17835_v37  ;;  %10297 = vmatprep.subr.bf16.mxu0 %v17840_v42  ;;  %v17908_v37 = vld [vmem:[#allocation5 + $0x2124] ss:$40 sps:$4 sm:$0xff]  }
 0x221   :  { %10707 = vmatprep.subr.bf16.mxu1 %v17843_v43  ;;  %v17911_v42 = vld [vmem:[#allocation5 + $0x212c] ss:$40 sps:$4 sm:$0xff]   ;;  %v17906_v43 = vld [vmem:[#allocation5 + $0x2120] ss:$40 sps:$4 sm:$0xff]  }
 0x223   :  { %10298 = vmatpush1.bf16.msra.mxu0 %v17838_v49  ;;  %v17914_v49 = vld [vmem:[#allocation5 + $0x2174] ss:$40 sps:$4 sm:$0xff]  }
 0x224   :  { %10708 = vmatpush1.bf16.msra.mxu1 %v17841_v50  ;;  %10308 = vmatprep.subr.bf16.mxu0 %v17848_v51  ;;  %v17917_v50 = vld [vmem:[#allocation5 + $0x217c] ss:$40 sps:$4 sm:$0xff]   ;;  %v17912_v51 = vld [vmem:[#allocation5 + $0x2170] ss:$40 sps:$4 sm:$0xff]  }
 0x225   :  { %10718 = vmatprep.subr.bf16.mxu1 %v17851_v54  ;;  %v17915_v54 = vld [vmem:[#allocation5 + $0x2178] ss:$40 sps:$4 sm:$0xff]  }
 0x226   :  { %10300 = vmatmul.mubr.bf16.vlgmr.msra.gmra.mrb[0].mxu0 %v20766_v39 }
 0x227   :  { %10710 = vmatmul.mubr.bf16.vlgmr.msra.gmra.mrb[0].mxu1 %v20766_v39  ;;  %10309 = vmatpush1.bf16.msra.mxu0 %v17846_v57  ;;  %v17923_v57 = vld [vmem:[#allocation5 + $0x21cc] ss:$40 sps:$4 sm:$0xff]  }
 0x228   :  { %10719 = vmatpush1.bf16.msra.mxu1 %v17849_v58  ;;  %10310 = vmatprep.subr.bf16.mxu0 %v17854_v18  ;;  %v17918_v58 = vld [vmem:[#allocation5 + $0x21c0] ss:$40 sps:$4 sm:$0xff]  }
 0x229   :  { %10720 = vmatprep.subr.bf16.mxu1 %v17857_v19  ;;  %10340 = vmatprep.mubr.bf16.mxu0 %v20768_v59  ;;  %v17921_v18 = vld [vmem:[#allocation5 + $0x21c8] ss:$40 sps:$4 sm:$0xff]   ;;  %v17926_v19 = vld [vmem:[#allocation5 + $0x2214] ss:$40 sps:$4 sm:$0xff]  }
 0x22a   :  { %10750 = vmatprep.mubr.bf16.mxu1 %v20768_v59 }
 0x22b   :  { %10311 = vmatpush1.bf16.msra.mxu0 %v17852_v60  ;;  %v17929_v60 = vld [vmem:[#allocation5 + $0x221c] ss:$40 sps:$4 sm:$0xff]  }
 0x22c   :  { %10721 = vmatpush1.bf16.msra.mxu1 %v17855_v63  ;;  %10312 = vmatprep.subr.bf16.mxu0 %v17860_v0  ;;  %v17924_v63 = vld [vmem:[#allocation5 + $0x2210] ss:$40 sps:$4 sm:$0xff]  }
 0x22d   :  { %10722 = vmatprep.subr.bf16.mxu1 %v17863_v2  ;;  %v17927_v0 = vld [vmem:[#allocation5 + $0x2218] ss:$40 sps:$4 sm:$0xff]   ;;  %v17932_v2 = vld [vmem:[#allocation5 + $0x2264] ss:$40 sps:$4 sm:$0xff]  }
 0x22f   :  { %10313 = vmatpush1.bf16.msra.mxu0 %v17858_v3  ;;  %v17935_v3 = vld [vmem:[#allocation5 + $0x226c] ss:$40 sps:$4 sm:$0xff]  }
 0x230   :  { %10723 = vmatpush1.bf16.msra.mxu1 %v17861_v4  ;;  %10314 = vmatprep.subr.bf16.mxu0 %v17866_v5  ;;  %v18042_v4 = vld [vmem:[#allocation2 + $0x1c] ss:$40 sps:$4 sm:$0xff]   ;;  %v18043_v5 = vld [vmem:[#allocation2 + $0x6c] ss:$40 sps:$4 sm:$0xff]  }
 0x231   :  { %10724 = vmatprep.subr.bf16.mxu1 %v17869_v7  ;;  %v17930_v7 = vld [vmem:[#allocation5 + $0x2260] ss:$40 sps:$4 sm:$0xff]  }
 0x233   :  { %10315 = vmatpush1.bf16.msra.mxu0 %v17864_v8  ;;  %v17933_v8 = vld [vmem:[#allocation5 + $0x2268] ss:$40 sps:$4 sm:$0xff]  }
 0x234   :  { %10725 = vmatpush1.bf16.msra.mxu1 %v17867_v40  ;;  %10316 = vmatprep.subr.bf16.mxu0 %v17872_v41  ;;  %v17938_v40 = vld [vmem:[#allocation5 + $0x22b4] ss:$40 sps:$4 sm:$0xff]  }
 0x235   :  { %10726 = vmatprep.subr.bf16.mxu1 %v17875_v10  ;;  %v17941_v41 = vld [vmem:[#allocation5 + $0x22bc] ss:$40 sps:$4 sm:$0xff]   ;;  %v20775_v10 = vrot.slane %v18042_v4, %v20660_v53  ;;  %v17997_v4 = vld [vmem:[#allocation5 + $0x2588] ss:$40 sps:$4 sm:$0xff]  }
 0x237   :  { %10317 = vmatpush1.bf16.msra.mxu0 %v17870_v11  ;;  %v20778_v11 = vrot.slane %v18043_v5, %v20660_v53  ;;  %v18002_v5 = vld [vmem:[#allocation5 + $0x25d4] ss:$40 sps:$4 sm:$0xff]  }
 0x238   :  { %10727 = vmatpush1.bf16.msra.mxu1 %v17873_v12  ;;  %10318 = vmatprep.subr.bf16.mxu0 %v17878_v13  ;;  %v328_v12 = vcombine.low %v20757_v44, %v20760_v47  ;;  %v17936_v13 = vld [vmem:[#allocation5 + $0x22b0] ss:$40 sps:$4 sm:$0xff]   ;;  %v17954_v44 = vld [vmem:[#allocation5 + $0x2354] ss:$40 sps:$4 sm:$0xff]  }
 0x239   :  { %10728 = vmatprep.subr.bf16.mxu1 %v17881_v14  ;;  %v17939_v14 = vld [vmem:[#allocation5 + $0x22b8] ss:$40 sps:$4 sm:$0xff]   ;;  %v17957_v47 = vld [vmem:[#allocation5 + $0x235c] ss:$40 sps:$4 sm:$0xff]  }
 0x23b   :  { %10319 = vmatpush1.bf16.msra.mxu0 %v17876_v16  ;;  %v17948_v16 = vld [vmem:[#allocation5 + $0x2304] ss:$40 sps:$4 sm:$0xff]  }
 0x23c   :  { %10729 = vmatpush1.bf16.msra.mxu1 %v17879_v17  ;;  %10320 = vmatprep.subr.bf16.mxu0 %v17884_v20  ;;  %v17951_v17 = vld [vmem:[#allocation5 + $0x230c] ss:$40 sps:$4 sm:$0xff]   ;;  %v331_v20 = vcombine.high %v20775_v10, %v20778_v11 }
 0x23d   :  { %10730 = vmatprep.subr.bf16.mxu1 %v17887_v21  ;;  %v20784_v21 = vpack.c.bf16 %v328_v12, %v328_v12  ;;  %v18011_v12 = vld [vmem:[#allocation5 + $0x262c] ss:$40 sps:$4 sm:$0xff]  }
 0x23f   :  { %10321 = vmatpush1.bf16.msra.mxu0 %v17882_v22  ;;  %v17946_v22 = vld [vmem:[#allocation5 + $0x2300] ss:$40 sps:$4 sm:$0xff]  }
 0x240   :  { %10731 = vmatpush1.bf16.msra.mxu1 %v17885_v23  ;;  %10322 = vmatprep.subr.bf16.mxu0 %v17890_v24  ;;  %v17949_v23 = vld [vmem:[#allocation5 + $0x2308] ss:$40 sps:$4 sm:$0xff]   ;;  %v20786_v24 = vpack.c.bf16 %v331_v20, %v331_v20 }
 0x241   :  { %10732 = vmatprep.subr.bf16.mxu1 %v17893_v25  ;;  %v17952_v25 = vld [vmem:[#allocation5 + $0x2350] ss:$40 sps:$4 sm:$0xff]  }
 0x242   :  { %v18012_v20 = vld [vmem:[#allocation5 + $0x2670] ss:$40 sps:$4 sm:$0xff]  }
 0x243   :  { %10323 = vmatpush1.bf16.msra.mxu0 %v17888_v27  ;;  %v17955_v27 = vld [vmem:[#allocation5 + $0x2358] ss:$40 sps:$4 sm:$0xff]  }
 0x244   :  { %10733 = vmatpush1.bf16.msra.mxu1 %v17891_v28  ;;  %10324 = vmatprep.subr.bf16.mxu0 %v17896_v61  ;;  %v17960_v28 = vld [vmem:[#allocation5 + $0x23a4] ss:$40 sps:$4 sm:$0xff]  }
 0x245   :  { %10734 = vmatprep.subr.bf16.mxu1 %v17899_v62  ;;  %v17963_v61 = vld [vmem:[#allocation5 + $0x23ac] ss:$40 sps:$4 sm:$0xff]   ;;  %v17958_v62 = vld [vmem:[#allocation5 + $0x23a0] ss:$40 sps:$4 sm:$0xff]  }
 0x247   :  { %10325 = vmatpush1.bf16.msra.mxu0 %v17894_v31  ;;  %v17961_v31 = vld [vmem:[#allocation5 + $0x23a8] ss:$40 sps:$4 sm:$0xff]  }
 0x248   :  { %10735 = vmatpush1.bf16.msra.mxu1 %v17897_v32  ;;  %10326 = vmatprep.subr.bf16.mxu0 %v17902_v33  ;;  %v17966_v32 = vld [vmem:[#allocation5 + $0x23f4] ss:$40 sps:$4 sm:$0xff]  }
 0x249   :  { %10736 = vmatprep.subr.bf16.mxu1 %v17905_v34  ;;  %v17969_v33 = vld [vmem:[#allocation5 + $0x23fc] ss:$40 sps:$4 sm:$0xff]   ;;  %v17964_v34 = vld [vmem:[#allocation5 + $0x23f0] ss:$40 sps:$4 sm:$0xff]  }
 0x24b   :  { %10327 = vmatpush1.bf16.msra.mxu0 %v17900_v35  ;;  %v17967_v35 = vld [vmem:[#allocation5 + $0x23f8] ss:$40 sps:$4 sm:$0xff]  }
 0x24c   :  { %10737 = vmatpush1.bf16.msra.mxu1 %v17903_v36  ;;  %10328 = vmatprep.subr.bf16.mxu0 %v17908_v37  ;;  %v17972_v36 = vld [vmem:[#allocation5 + $0x2444] ss:$40 sps:$4 sm:$0xff]  }
 0x24d   :  { %10738 = vmatprep.subr.bf16.mxu1 %v17911_v42  ;;  %v17975_v37 = vld [vmem:[#allocation5 + $0x244c] ss:$40 sps:$4 sm:$0xff]   ;;  %v17970_v42 = vld [vmem:[#allocation5 + $0x2440] ss:$40 sps:$4 sm:$0xff]  }
 0x24f   :  { %10329 = vmatpush1.bf16.msra.mxu0 %v17906_v43  ;;  %v17973_v43 = vld [vmem:[#allocation5 + $0x2448] ss:$40 sps:$4 sm:$0xff]  }
 0x250   :  { %10739 = vmatpush1.bf16.msra.mxu1 %v17909_v48  ;;  %10330 = vmatprep.subr.bf16.mxu0 %v17914_v49  ;;  %v17978_v48 = vld [vmem:[#allocation5 + $0x2494] ss:$40 sps:$4 sm:$0xff]  }
 0x251   :  { %10740 = vmatprep.subr.bf16.mxu1 %v17917_v50  ;;  %v17981_v49 = vld [vmem:[#allocation5 + $0x249c] ss:$40 sps:$4 sm:$0xff]   ;;  %v17976_v50 = vld [vmem:[#allocation5 + $0x2490] ss:$40 sps:$4 sm:$0xff]  }
 0x253   :  { %10331 = vmatpush1.bf16.msra.mxu0 %v17912_v51  ;;  %v17979_v51 = vld [vmem:[#allocation5 + $0x2498] ss:$40 sps:$4 sm:$0xff]  }
 0x254   :  { %10741 = vmatpush1.bf16.msra.mxu1 %v17915_v54  ;;  %10332 = vmatprep.subr.bf16.mxu0 %v17920_v56  ;;  %v17984_v54 = vld [vmem:[#allocation5 + $0x24e4] ss:$40 sps:$4 sm:$0xff]  }
 0x255   :  { %10742 = vmatprep.subr.bf16.mxu1 %v17923_v57  ;;  %v17987_v56 = vld [vmem:[#allocation5 + $0x24ec] ss:$40 sps:$4 sm:$0xff]   ;;  %v17982_v57 = vld [vmem:[#allocation5 + $0x24e0] ss:$40 sps:$4 sm:$0xff]  }
 0x257   :  { %10333 = vmatpush1.bf16.msra.mxu0 %v17918_v58  ;;  %v17985_v58 = vld [vmem:[#allocation5 + $0x24e8] ss:$40 sps:$4 sm:$0xff]  }
 0x258   :  { %10743 = vmatpush1.bf16.msra.mxu1 %v17921_v18  ;;  %10334 = vmatprep.subr.bf16.mxu0 %v17926_v19  ;;  %v17990_v18 = vld [vmem:[#allocation5 + $0x2534] ss:$40 sps:$4 sm:$0xff]  }
 0x259   :  { %10744 = vmatprep.subr.bf16.mxu1 %v17929_v60  ;;  %v17993_v19 = vld [vmem:[#allocation5 + $0x253c] ss:$40 sps:$4 sm:$0xff]   ;;  %v17988_v60 = vld [vmem:[#allocation5 + $0x2530] ss:$40 sps:$4 sm:$0xff]  }
 0x25b   :  { %10335 = vmatpush1.bf16.msra.mxu0 %v17924_v63  ;;  %v17991_v63 = vld [vmem:[#allocation5 + $0x2538] ss:$40 sps:$4 sm:$0xff]  }
 0x25c   :  { %10745 = vmatpush1.bf16.msra.mxu1 %v17927_v0  ;;  %10336 = vmatprep.subr.bf16.mxu0 %v17932_v2  ;;  %v17996_v0 = vld [vmem:[#allocation5 + $0x2584] ss:$40 sps:$4 sm:$0xff]  }
 0x25d   :  { %10746 = vmatprep.subr.bf16.mxu1 %v17935_v3  ;;  %v17999_v2 = vld [vmem:[#allocation5 + $0x258c] ss:$40 sps:$4 sm:$0xff]   ;;  %v17994_v3 = vld [vmem:[#allocation5 + $0x2580] ss:$40 sps:$4 sm:$0xff]  }
 0x25f   :  { %10337 = vmatpush1.bf16.msra.mxu0 %v17930_v7  ;;  %v18005_v7 = vld [vmem:[#allocation5 + $0x25dc] ss:$40 sps:$4 sm:$0xff]  }
 0x260   :  { %10747 = vmatpush1.bf16.msra.mxu1 %v17933_v8  ;;  %10338 = vmatprep.subr.bf16.mxu0 %v17938_v40  ;;  %v18000_v8 = vld [vmem:[#allocation5 + $0x25d0] ss:$40 sps:$4 sm:$0xff]  }
 0x261   :  { %10748 = vmatprep.subr.bf16.mxu1 %v17941_v41  ;;  %v18003_v40 = vld [vmem:[#allocation5 + $0x25d8] ss:$40 sps:$4 sm:$0xff]   ;;  %v18008_v41 = vld [vmem:[#allocation5 + $0x2624] ss:$40 sps:$4 sm:$0xff]  }
 0x263   :  { %10339 = vmatpush1.bf16.msra.mxu0 %v17936_v13  ;;  %v18006_v13 = vld [vmem:[#allocation5 + $0x2620] ss:$40 sps:$4 sm:$0xff]  }
 0x264   :  { %10749 = vmatpush1.bf16.msra.mxu1 %v17939_v14  ;;  %10349 = vmatprep.subr.bf16.mxu0 %v17948_v16  ;;  %v18009_v14 = vld [vmem:[#allocation5 + $0x2628] ss:$40 sps:$4 sm:$0xff]   ;;  %v18014_v16 = vld [vmem:[#allocation5 + $0x2674] ss:$40 sps:$4 sm:$0xff]  }
 0x265   :  { %10759 = vmatprep.subr.bf16.mxu1 %v17951_v17  ;;  %v18017_v17 = vld [vmem:[#allocation5 + $0x267c] ss:$40 sps:$4 sm:$0xff]  }
 0x266   :  { %10341 = vmatmul.mubr.bf16.vlgmr.msra.gmra.mrb[0].mxu0 %v20784_v21 }
 0x267   :  { %10751 = vmatmul.mubr.bf16.vlgmr.msra.gmra.mrb[0].mxu1 %v20784_v21  ;;  %10350 = vmatpush1.bf16.msra.mxu0 %v17946_v22  ;;  %v18015_v22 = vld [vmem:[#allocation5 + $0x2678] ss:$40 sps:$4 sm:$0xff]  }
 0x268   :  { %10760 = vmatpush1.bf16.msra.mxu1 %v17949_v23  ;;  %10351 = vmatprep.subr.bf16.mxu0 %v17954_v44  ;;  %v18020_v23 = vld [vmem:[#allocation5 + $0x26c4] ss:$40 sps:$4 sm:$0xff]  }
 0x269   :  { %10761 = vmatprep.subr.bf16.mxu1 %v17957_v47  ;;  %10381 = vmatprep.mubr.bf16.mxu0 %v20786_v24  ;;  %v18023_v44 = vld [vmem:[#allocation5 + $0x26cc] ss:$40 sps:$4 sm:$0xff]   ;;  %v18018_v47 = vld [vmem:[#allocation5 + $0x26c0] ss:$40 sps:$4 sm:$0xff]  }
 0x26a   :  { %10791 = vmatprep.mubr.bf16.mxu1 %v20786_v24 }
 0x26b   :  { %10352 = vmatpush1.bf16.msra.mxu0 %v17952_v25  ;;  %v18021_v25 = vld [vmem:[#allocation5 + $0x26c8] ss:$40 sps:$4 sm:$0xff]  }
 0x26c   :  { %10762 = vmatpush1.bf16.msra.mxu1 %v17955_v27  ;;  %10353 = vmatprep.subr.bf16.mxu0 %v17960_v28  ;;  %v18026_v27 = vld [vmem:[#allocation5 + $0x2714] ss:$40 sps:$4 sm:$0xff]  }
 0x26d   :  { %10763 = vmatprep.subr.bf16.mxu1 %v17963_v61  ;;  %v18029_v28 = vld [vmem:[#allocation5 + $0x271c] ss:$40 sps:$4 sm:$0xff]   ;;  %v18024_v61 = vld [vmem:[#allocation5 + $0x2710] ss:$40 sps:$4 sm:$0xff]  }
 0x26f   :  { %10354 = vmatpush1.bf16.msra.mxu0 %v17958_v62  ;;  %v18027_v62 = vld [vmem:[#allocation5 + $0x2718] ss:$40 sps:$4 sm:$0xff]  }
 0x270   :  { %10764 = vmatpush1.bf16.msra.mxu1 %v17961_v31  ;;  %10355 = vmatprep.subr.bf16.mxu0 %v17966_v32  ;;  %v18032_v31 = vld [vmem:[#allocation5 + $0x2764] ss:$40 sps:$4 sm:$0xff]  }
 0x271   :  { %10765 = vmatprep.subr.bf16.mxu1 %v17969_v33  ;;  %v18035_v32 = vld [vmem:[#allocation5 + $0x276c] ss:$40 sps:$4 sm:$0xff]   ;;  %v18140_v33 = vld [vmem:[#allocation2 + $0x20] ss:$40 sps:$4 sm:$0xff]  }
 0x273   :  { %10356 = vmatpush1.bf16.msra.mxu0 %v17964_v34  ;;  %v18142_v34 = vld [vmem:[#allocation2 + $0x70] ss:$40 sps:$4 sm:$0xff]  }
 0x274   :  { %10766 = vmatpush1.bf16.msra.mxu1 %v17967_v35  ;;  %10357 = vmatprep.subr.bf16.mxu0 %v17972_v36  ;;  %v18030_v35 = vld [vmem:[#allocation5 + $0x2760] ss:$40 sps:$4 sm:$0xff]  }
 0x275   :  { %10767 = vmatprep.subr.bf16.mxu1 %v17975_v37  ;;  %v18033_v36 = vld [vmem:[#allocation5 + $0x2768] ss:$40 sps:$4 sm:$0xff]   ;;  %v18038_v37 = vld [vmem:[#allocation5 + $0x27b4] ss:$40 sps:$4 sm:$0xff]  }
 0x277   :  { %10358 = vmatpush1.bf16.msra.mxu0 %v17970_v42  ;;  %v18041_v42 = vld [vmem:[#allocation5 + $0x27bc] ss:$40 sps:$4 sm:$0xff]  }
 0x278   :  { %10768 = vmatpush1.bf16.msra.mxu1 %v17973_v43  ;;  %10359 = vmatprep.subr.bf16.mxu0 %v17978_v48  ;;  %v20793_v43 = vrot.slane %v18140_v33, %v20660_v53  ;;  %v20796_v48 = vrot.slane %v18142_v34, %v20660_v53  ;;  %v18097_v33 = vld [vmem:[#allocation5 + $0x2a8c] ss:$40 sps:$4 sm:$0xff]   ;;  %v18092_v34 = vld [vmem:[#allocation5 + $0x2a80] ss:$40 sps:$4 sm:$0xff]  }
 0x279   :  { %10769 = vmatprep.subr.bf16.mxu1 %v17981_v49  ;;  %v330_v49 = vcombine.low %v20775_v10, %v20778_v11  ;;  %v18052_v10 = vld [vmem:[#allocation5 + $0x2854] ss:$40 sps:$4 sm:$0xff]  }
 0x27a   :  { %v18055_v11 = vld [vmem:[#allocation5 + $0x285c] ss:$40 sps:$4 sm:$0xff]  }
 0x27b   :  { %10360 = vmatpush1.bf16.msra.mxu0 %v17976_v50  ;;  %v18036_v50 = vld [vmem:[#allocation5 + $0x27b0] ss:$40 sps:$4 sm:$0xff]  }
 0x27c   :  { %10770 = vmatpush1.bf16.msra.mxu1 %v17979_v51  ;;  %10361 = vmatprep.subr.bf16.mxu0 %v17984_v54  ;;  %v18039_v51 = vld [vmem:[#allocation5 + $0x27b8] ss:$40 sps:$4 sm:$0xff]   ;;  %v18046_v54 = vld [vmem:[#allocation5 + $0x2804] ss:$40 sps:$4 sm:$0xff]  }
 0x27d   :  { %10771 = vmatprep.subr.bf16.mxu1 %v17987_v56  ;;  %v18049_v56 = vld [vmem:[#allocation5 + $0x280c] ss:$40 sps:$4 sm:$0xff]  }
 0x27f   :  { %10362 = vmatpush1.bf16.msra.mxu0 %v17982_v57  ;;  %v18044_v57 = vld [vmem:[#allocation5 + $0x2800] ss:$40 sps:$4 sm:$0xff]  }
 0x280   :  { %10772 = vmatpush1.bf16.msra.mxu1 %v17985_v58  ;;  %10363 = vmatprep.subr.bf16.mxu0 %v17990_v18  ;;  %v18047_v58 = vld [vmem:[#allocation5 + $0x2808] ss:$40 sps:$4 sm:$0xff]   ;;  %v365_v18 = vcombine.high %v20793_v43, %v20796_v48 }
 0x281   :  { %10773 = vmatprep.subr.bf16.mxu1 %v17993_v19  ;;  %v20802_v19 = vpack.c.bf16 %v330_v49, %v330_v49  ;;  %v18101_v49 = vld [vmem:[#allocation5 + $0x2ad8] ss:$40 sps:$4 sm:$0xff]  }
 0x283   :  { %10364 = vmatpush1.bf16.msra.mxu0 %v17988_v60  ;;  %v20804_v60 = vpack.c.bf16 %v365_v18, %v365_v18  ;;  %v18110_v18 = vld [vmem:[#allocation5 + $0x2b70] ss:$40 sps:$4 sm:$0xff]  }
 0x284   :  { %10774 = vmatpush1.bf16.msra.mxu1 %v17991_v63  ;;  %10365 = vmatprep.subr.bf16.mxu0 %v17996_v0  ;;  %v18050_v63 = vld [vmem:[#allocation5 + $0x2850] ss:$40 sps:$4 sm:$0xff]  }
 0x285   :  { %10775 = vmatprep.subr.bf16.mxu1 %v17999_v2  ;;  %v18053_v0 = vld [vmem:[#allocation5 + $0x2858] ss:$40 sps:$4 sm:$0xff]   ;;  %v18058_v2 = vld [vmem:[#allocation5 + $0x28a4] ss:$40 sps:$4 sm:$0xff]  }
 0x287   :  { %10366 = vmatpush1.bf16.msra.mxu0 %v17994_v3  ;;  %v18061_v3 = vld [vmem:[#allocation5 + $0x28ac] ss:$40 sps:$4 sm:$0xff]  }
 0x288   :  { %10776 = vmatpush1.bf16.msra.mxu1 %v17997_v4  ;;  %10367 = vmatprep.subr.bf16.mxu0 %v18002_v5  ;;  %v18056_v4 = vld [vmem:[#allocation5 + $0x28a0] ss:$40 sps:$4 sm:$0xff]  }
 0x289   :  { %10777 = vmatprep.subr.bf16.mxu1 %v18005_v7  ;;  %v18059_v5 = vld [vmem:[#allocation5 + $0x28a8] ss:$40 sps:$4 sm:$0xff]   ;;  %v18064_v7 = vld [vmem:[#allocation5 + $0x28f4] ss:$40 sps:$4 sm:$0xff]  }
 0x28b   :  { %10368 = vmatpush1.bf16.msra.mxu0 %v18000_v8  ;;  %v18067_v8 = vld [vmem:[#allocation5 + $0x28fc] ss:$40 sps:$4 sm:$0xff]  }
 0x28c   :  { %10778 = vmatpush1.bf16.msra.mxu1 %v18003_v40  ;;  %10369 = vmatprep.subr.bf16.mxu0 %v18008_v41  ;;  %v18062_v40 = vld [vmem:[#allocation5 + $0x28f0] ss:$40 sps:$4 sm:$0xff]  }
 0x28d   :  { %10779 = vmatprep.subr.bf16.mxu1 %v18011_v12  ;;  %v18065_v41 = vld [vmem:[#allocation5 + $0x28f8] ss:$40 sps:$4 sm:$0xff]   ;;  %v18070_v12 = vld [vmem:[#allocation5 + $0x2944] ss:$40 sps:$4 sm:$0xff]  }
 0x28f   :  { %10370 = vmatpush1.bf16.msra.mxu0 %v18006_v13  ;;  %v18073_v13 = vld [vmem:[#allocation5 + $0x294c] ss:$40 sps:$4 sm:$0xff]  }
 0x290   :  { %10780 = vmatpush1.bf16.msra.mxu1 %v18009_v14  ;;  %10371 = vmatprep.subr.bf16.mxu0 %v18014_v16  ;;  %v18068_v14 = vld [vmem:[#allocation5 + $0x2940] ss:$40 sps:$4 sm:$0xff]  }
 0x291   :  { %10781 = vmatprep.subr.bf16.mxu1 %v18017_v17  ;;  %v18071_v16 = vld [vmem:[#allocation5 + $0x2948] ss:$40 sps:$4 sm:$0xff]   ;;  %v18076_v17 = vld [vmem:[#allocation5 + $0x2994] ss:$40 sps:$4 sm:$0xff]  }
 0x293   :  { %10372 = vmatpush1.bf16.msra.mxu0 %v18012_v20  ;;  %v18079_v20 = vld [vmem:[#allocation5 + $0x299c] ss:$40 sps:$4 sm:$0xff]  }
 0x294   :  { %10782 = vmatpush1.bf16.msra.mxu1 %v18015_v22  ;;  %10373 = vmatprep.subr.bf16.mxu0 %v18020_v23  ;;  %v18074_v22 = vld [vmem:[#allocation5 + $0x2990] ss:$40 sps:$4 sm:$0xff]  }
 0x295   :  { %10783 = vmatprep.subr.bf16.mxu1 %v18023_v44  ;;  %v18077_v23 = vld [vmem:[#allocation5 + $0x2998] ss:$40 sps:$4 sm:$0xff]   ;;  %v18082_v44 = vld [vmem:[#allocation5 + $0x29e4] ss:$40 sps:$4 sm:$0xff]  }
 0x297   :  { %10374 = vmatpush1.bf16.msra.mxu0 %v18018_v47  ;;  %v18085_v47 = vld [vmem:[#allocation5 + $0x29ec] ss:$40 sps:$4 sm:$0xff]  }
 0x298   :  { %10784 = vmatpush1.bf16.msra.mxu1 %v18021_v25  ;;  %10375 = vmatprep.subr.bf16.mxu0 %v18026_v27  ;;  %v18080_v25 = vld [vmem:[#allocation5 + $0x29e0] ss:$40 sps:$4 sm:$0xff]  }
 0x299   :  { %10785 = vmatprep.subr.bf16.mxu1 %v18029_v28  ;;  %v18083_v27 = vld [vmem:[#allocation5 + $0x29e8] ss:$40 sps:$4 sm:$0xff]   ;;  %v18088_v28 = vld [vmem:[#allocation5 + $0x2a34] ss:$40 sps:$4 sm:$0xff]  }
 0x29b   :  { %10376 = vmatpush1.bf16.msra.mxu0 %v18024_v61  ;;  %v18091_v61 = vld [vmem:[#allocation5 + $0x2a3c] ss:$40 sps:$4 sm:$0xff]  }
 0x29c   :  { %10786 = vmatpush1.bf16.msra.mxu1 %v18027_v62  ;;  %10377 = vmatprep.subr.bf16.mxu0 %v18032_v31  ;;  %v18086_v62 = vld [vmem:[#allocation5 + $0x2a30] ss:$40 sps:$4 sm:$0xff]  }
 0x29d   :  { %10787 = vmatprep.subr.bf16.mxu1 %v18035_v32  ;;  %v18089_v31 = vld [vmem:[#allocation5 + $0x2a38] ss:$40 sps:$4 sm:$0xff]   ;;  %v18094_v32 = vld [vmem:[#allocation5 + $0x2a84] ss:$40 sps:$4 sm:$0xff]  }
 0x29f   :  { %10378 = vmatpush1.bf16.msra.mxu0 %v18030_v35  ;;  %v18095_v35 = vld [vmem:[#allocation5 + $0x2a88] ss:$40 sps:$4 sm:$0xff]  }
 0x2a0   :  { %10788 = vmatpush1.bf16.msra.mxu1 %v18033_v36  ;;  %10379 = vmatprep.subr.bf16.mxu0 %v18038_v37  ;;  %v18100_v36 = vld [vmem:[#allocation5 + $0x2ad4] ss:$40 sps:$4 sm:$0xff]  }
 0x2a1   :  { %10789 = vmatprep.subr.bf16.mxu1 %v18041_v42  ;;  %v18103_v37 = vld [vmem:[#allocation5 + $0x2adc] ss:$40 sps:$4 sm:$0xff]   ;;  %v18098_v42 = vld [vmem:[#allocation5 + $0x2ad0] ss:$40 sps:$4 sm:$0xff]  }
 0x2a3   :  { %10380 = vmatpush1.bf16.msra.mxu0 %v18036_v50  ;;  %v18106_v50 = vld [vmem:[#allocation5 + $0x2b24] ss:$40 sps:$4 sm:$0xff]  }
 0x2a4   :  { %10790 = vmatpush1.bf16.msra.mxu1 %v18039_v51  ;;  %10390 = vmatprep.subr.bf16.mxu0 %v18046_v54  ;;  %v18109_v51 = vld [vmem:[#allocation5 + $0x2b2c] ss:$40 sps:$4 sm:$0xff]   ;;  %v18104_v54 = vld [vmem:[#allocation5 + $0x2b20] ss:$40 sps:$4 sm:$0xff]  }
 0x2a5   :  { %10800 = vmatprep.subr.bf16.mxu1 %v18049_v56  ;;  %v18107_v56 = vld [vmem:[#allocation5 + $0x2b28] ss:$40 sps:$4 sm:$0xff]  }
 0x2a6   :  { %10382 = vmatmul.mubr.bf16.vlgmr.msra.gmra.mrb[0].mxu0 %v20802_v19 }
 0x2a7   :  { %10792 = vmatmul.mubr.bf16.vlgmr.msra.gmra.mrb[0].mxu1 %v20802_v19  ;;  %10391 = vmatpush1.bf16.msra.mxu0 %v18044_v57  ;;  %v18112_v57 = vld [vmem:[#allocation5 + $0x2b74] ss:$40 sps:$4 sm:$0xff]  }
 0x2a8   :  { %10801 = vmatpush1.bf16.msra.mxu1 %v18047_v58  ;;  %10392 = vmatprep.subr.bf16.mxu0 %v18052_v10  ;;  %v18115_v58 = vld [vmem:[#allocation5 + $0x2b7c] ss:$40 sps:$4 sm:$0xff]   ;;  %v18113_v10 = vld [vmem:[#allocation5 + $0x2b78] ss:$40 sps:$4 sm:$0xff]  }
 0x2a9   :  { %10802 = vmatprep.subr.bf16.mxu1 %v18055_v11  ;;  %10422 = vmatprep.mubr.bf16.mxu0 %v20804_v60  ;;  %v18118_v11 = vld [vmem:[#allocation5 + $0x2bc4] ss:$40 sps:$4 sm:$0xff]  }
 0x2aa   :  { %10832 = vmatprep.mubr.bf16.mxu1 %v20804_v60 }
 0x2ab   :  { %10393 = vmatpush1.bf16.msra.mxu0 %v18050_v63  ;;  %v18121_v63 = vld [vmem:[#allocation5 + $0x2bcc] ss:$40 sps:$4 sm:$0xff]  }
 0x2ac   :  { %10803 = vmatpush1.bf16.msra.mxu1 %v18053_v0  ;;  %10394 = vmatprep.subr.bf16.mxu0 %v18058_v2  ;;  %v18116_v0 = vld [vmem:[#allocation5 + $0x2bc0] ss:$40 sps:$4 sm:$0xff]  }
 0x2ad   :  { %10804 = vmatprep.subr.bf16.mxu1 %v18061_v3  ;;  %v18119_v2 = vld [vmem:[#allocation5 + $0x2bc8] ss:$40 sps:$4 sm:$0xff]   ;;  %v18124_v3 = vld [vmem:[#allocation5 + $0x2c14] ss:$40 sps:$4 sm:$0xff]  }
 0x2af   :  { %10395 = vmatpush1.bf16.msra.mxu0 %v18056_v4  ;;  %v18127_v4 = vld [vmem:[#allocation5 + $0x2c1c] ss:$40 sps:$4 sm:$0xff]  }
 0x2b0   :  { %10805 = vmatpush1.bf16.msra.mxu1 %v18059_v5  ;;  %10396 = vmatprep.subr.bf16.mxu0 %v18064_v7  ;;  %v18122_v5 = vld [vmem:[#allocation5 + $0x2c10] ss:$40 sps:$4 sm:$0xff]  }
 0x2b1   :  { %10806 = vmatprep.subr.bf16.mxu1 %v18067_v8  ;;  %v18125_v7 = vld [vmem:[#allocation5 + $0x2c18] ss:$40 sps:$4 sm:$0xff]   ;;  %v18130_v8 = vld [vmem:[#allocation5 + $0x2c64] ss:$40 sps:$4 sm:$0xff]  }
 0x2b3   :  { %10397 = vmatpush1.bf16.msra.mxu0 %v18062_v40  ;;  %v18133_v40 = vld [vmem:[#allocation5 + $0x2c6c] ss:$40 sps:$4 sm:$0xff]  }
 0x2b4   :  { %10807 = vmatpush1.bf16.msra.mxu1 %v18065_v41  ;;  %10398 = vmatprep.subr.bf16.mxu0 %v18070_v12  ;;  %v18240_v41 = vld [vmem:[#allocation2 + $0x24] ss:$40 sps:$4 sm:$0xff]   ;;  %v18241_v12 = vld [vmem:[#allocation2 + $0x74] ss:$40 sps:$4 sm:$0xff]  }
 0x2b5   :  { %10808 = vmatprep.subr.bf16.mxu1 %v18073_v13  ;;  %v18128_v13 = vld [vmem:[#allocation5 + $0x2c60] ss:$40 sps:$4 sm:$0xff]  }
 0x2b7   :  { %10399 = vmatpush1.bf16.msra.mxu0 %v18068_v14  ;;  %v18131_v14 = vld [vmem:[#allocation5 + $0x2c68] ss:$40 sps:$4 sm:$0xff]  }
 0x2b8   :  { %10809 = vmatpush1.bf16.msra.mxu1 %v18071_v16  ;;  %10400 = vmatprep.subr.bf16.mxu0 %v18076_v17  ;;  %v18136_v16 = vld [vmem:[#allocation5 + $0x2cb4] ss:$40 sps:$4 sm:$0xff]  }
 0x2b9   :  { %10810 = vmatprep.subr.bf16.mxu1 %v18079_v20  ;;  %v18139_v17 = vld [vmem:[#allocation5 + $0x2cbc] ss:$40 sps:$4 sm:$0xff]   ;;  %v20811_v20 = vrot.slane %v18240_v41, %v20660_v53 }
 0x2ba   :  { %v18194_v41 = vld [vmem:[#allocation5 + $0x2f84] ss:$40 sps:$4 sm:$0xff]  }
 0x2bb   :  { %10401 = vmatpush1.bf16.msra.mxu0 %v18074_v22  ;;  %v20814_v22 = vrot.slane %v18241_v12, %v20660_v53  ;;  %v18144_v53 = vld [vmem:[#allocation5 + $0x2d00] ss:$40 sps:$4 sm:$0xff]   ;;  %v18197_v12 = vld [vmem:[#allocation5 + $0x2f8c] ss:$40 sps:$4 sm:$0xff]  }
 0x2bc   :  { %10811 = vmatpush1.bf16.msra.mxu1 %v18077_v23  ;;  %10402 = vmatprep.subr.bf16.mxu0 %v18082_v44  ;;  %v364_v23 = vcombine.low %v20793_v43, %v20796_v48  ;;  %v18134_v44 = vld [vmem:[#allocation5 + $0x2cb0] ss:$40 sps:$4 sm:$0xff]   ;;  %v18152_v43 = vld [vmem:[#allocation5 + $0x2d54] ss:$40 sps:$4 sm:$0xff]  }
 0x2bd   :  { %10812 = vmatprep.subr.bf16.mxu1 %v18085_v47  ;;  %v18137_v47 = vld [vmem:[#allocation5 + $0x2cb8] ss:$40 sps:$4 sm:$0xff]   ;;  %v18155_v48 = vld [vmem:[#allocation5 + $0x2d5c] ss:$40 sps:$4 sm:$0xff]  }
 0x2bf   :  { %10403 = vmatpush1.bf16.msra.mxu0 %v18080_v25  ;;  %v18146_v25 = vld [vmem:[#allocation5 + $0x2d04] ss:$40 sps:$4 sm:$0xff]  }
 0x2c0   :  { %10813 = vmatpush1.bf16.msra.mxu1 %v18083_v27  ;;  %10404 = vmatprep.subr.bf16.mxu0 %v18088_v28  ;;  %v18149_v27 = vld [vmem:[#allocation5 + $0x2d0c] ss:$40 sps:$4 sm:$0xff]   ;;  %v367_v28 = vcombine.high %v20811_v20, %v20814_v22 }
 0x2c1   :  { %10814 = vmatprep.subr.bf16.mxu1 %v18091_v61  ;;  %v20820_v61 = vpack.c.bf16 %v364_v23, %v364_v23  ;;  %v18198_v23 = vld [vmem:[#allocation5 + $0x2fd0] ss:$40 sps:$4 sm:$0xff]  }
 0x2c3   :  { %10405 = vmatpush1.bf16.msra.mxu0 %v18086_v62  ;;  %v18147_v62 = vld [vmem:[#allocation5 + $0x2d08] ss:$40 sps:$4 sm:$0xff]  }
 0x2c4   :  { %10815 = vmatpush1.bf16.msra.mxu1 %v18089_v31  ;;  %10406 = vmatprep.subr.bf16.mxu0 %v18094_v32  ;;  %v20822_v31 = vpack.c.bf16 %v367_v28, %v367_v28  ;;  %v18150_v32 = vld [vmem:[#allocation5 + $0x2d50] ss:$40 sps:$4 sm:$0xff]  }
 0x2c5   :  { %10816 = vmatprep.subr.bf16.mxu1 %v18097_v33  ;;  %v18153_v33 = vld [vmem:[#allocation5 + $0x2d58] ss:$40 sps:$4 sm:$0xff]   ;;  %v18207_v28 = vld [vmem:[#allocation5 + $0x3028] ss:$40 sps:$4 sm:$0xff]  }
 0x2c7   :  { %10407 = vmatpush1.bf16.msra.mxu0 %v18092_v34  ;;  %v18158_v34 = vld [vmem:[#allocation5 + $0x2da4] ss:$40 sps:$4 sm:$0xff]  }
 0x2c8   :  { %10817 = vmatpush1.bf16.msra.mxu1 %v18095_v35  ;;  %10408 = vmatprep.subr.bf16.mxu0 %v18100_v36  ;;  %v18161_v35 = vld [vmem:[#allocation5 + $0x2dac] ss:$40 sps:$4 sm:$0xff]   ;;  %v18156_v36 = vld [vmem:[#allocation5 + $0x2da0] ss:$40 sps:$4 sm:$0xff]  }
 0x2c9   :  { %10818 = vmatprep.subr.bf16.mxu1 %v18103_v37  ;;  %v18159_v37 = vld [vmem:[#allocation5 + $0x2da8] ss:$40 sps:$4 sm:$0xff]  }
 0x2cb   :  { %10409 = vmatpush1.bf16.msra.mxu0 %v18098_v42  ;;  %v18164_v42 = vld [vmem:[#allocation5 + $0x2df4] ss:$40 sps:$4 sm:$0xff]  }
 0x2cc   :  { %10819 = vmatpush1.bf16.msra.mxu1 %v18101_v49  ;;  %10410 = vmatprep.subr.bf16.mxu0 %v18106_v50  ;;  %v18167_v49 = vld [vmem:[#allocation5 + $0x2dfc] ss:$40 sps:$4 sm:$0xff]   ;;  %v18162_v50 = vld [vmem:[#allocation5 + $0x2df0] ss:$40 sps:$4 sm:$0xff]  }
 0x2cd   :  { %10820 = vmatprep.subr.bf16.mxu1 %v18109_v51  ;;  %v18165_v51 = vld [vmem:[#allocation5 + $0x2df8] ss:$40 sps:$4 sm:$0xff]  }
 0x2cf   :  { %10411 = vmatpush1.bf16.msra.mxu0 %v18104_v54  ;;  %v18170_v54 = vld [vmem:[#allocation5 + $0x2e44] ss:$40 sps:$4 sm:$0xff]  }
 0x2d0   :  { %10821 = vmatpush1.bf16.msra.mxu1 %v18107_v56  ;;  %10412 = vmatprep.subr.bf16.mxu0 %v18112_v57  ;;  %v18173_v56 = vld [vmem:[#allocation5 + $0x2e4c] ss:$40 sps:$4 sm:$0xff]   ;;  %v18168_v57 = vld [vmem:[#allocation5 + $0x2e40] ss:$40 sps:$4 sm:$0xff]  }
 0x2d1   :  { %10822 = vmatprep.subr.bf16.mxu1 %v18115_v58  ;;  %v18171_v58 = vld [vmem:[#allocation5 + $0x2e48] ss:$40 sps:$4 sm:$0xff]  }
 0x2d3   :  { %10413 = vmatpush1.bf16.msra.mxu0 %v18110_v18  ;;  %v18176_v18 = vld [vmem:[#allocation5 + $0x2e94] ss:$40 sps:$4 sm:$0xff]  }
 0x2d4   :  { %10823 = vmatpush1.bf16.msra.mxu1 %v18113_v10  ;;  %10414 = vmatprep.subr.bf16.mxu0 %v18118_v11  ;;  %v18179_v10 = vld [vmem:[#allocation5 + $0x2e9c] ss:$40 sps:$4 sm:$0xff]   ;;  %v18174_v11 = vld [vmem:[#allocation5 + $0x2e90] ss:$40 sps:$4 sm:$0xff]  }
 0x2d5   :  { %10824 = vmatprep.subr.bf16.mxu1 %v18121_v63  ;;  %v18177_v63 = vld [vmem:[#allocation5 + $0x2e98] ss:$40 sps:$4 sm:$0xff]  }
 0x2d7   :  { %10415 = vmatpush1.bf16.msra.mxu0 %v18116_v0  ;;  %v18182_v0 = vld [vmem:[#allocation5 + $0x2ee4] ss:$40 sps:$4 sm:$0xff]  }
 0x2d8   :  { %10825 = vmatpush1.bf16.msra.mxu1 %v18119_v2  ;;  %10416 = vmatprep.subr.bf16.mxu0 %v18124_v3  ;;  %v18185_v2 = vld [vmem:[#allocation5 + $0x2eec] ss:$40 sps:$4 sm:$0xff]   ;;  %v18180_v3 = vld [vmem:[#allocation5 + $0x2ee0] ss:$40 sps:$4 sm:$0xff]  }
 0x2d9   :  { %10826 = vmatprep.subr.bf16.mxu1 %v18127_v4  ;;  %v18183_v4 = vld [vmem:[#allocation5 + $0x2ee8] ss:$40 sps:$4 sm:$0xff]  }
 0x2db   :  { %10417 = vmatpush1.bf16.msra.mxu0 %v18122_v5  ;;  %v18188_v5 = vld [vmem:[#allocation5 + $0x2f34] ss:$40 sps:$4 sm:$0xff]  }
 0x2dc   :  { %10827 = vmatpush1.bf16.msra.mxu1 %v18125_v7  ;;  %10418 = vmatprep.subr.bf16.mxu0 %v18130_v8  ;;  %v18191_v7 = vld [vmem:[#allocation5 + $0x2f3c] ss:$40 sps:$4 sm:$0xff]   ;;  %v18186_v8 = vld [vmem:[#allocation5 + $0x2f30] ss:$40 sps:$4 sm:$0xff]  }
 0x2dd   :  { %10828 = vmatprep.subr.bf16.mxu1 %v18133_v40  ;;  %v18189_v40 = vld [vmem:[#allocation5 + $0x2f38] ss:$40 sps:$4 sm:$0xff]  }
 0x2df   :  { %10419 = vmatpush1.bf16.msra.mxu0 %v18128_v13  ;;  %v18192_v13 = vld [vmem:[#allocation5 + $0x2f80] ss:$40 sps:$4 sm:$0xff]  }
 0x2e0   :  { %10829 = vmatpush1.bf16.msra.mxu1 %v18131_v14  ;;  %10420 = vmatprep.subr.bf16.mxu0 %v18136_v16  ;;  %v18195_v14 = vld [vmem:[#allocation5 + $0x2f88] ss:$40 sps:$4 sm:$0xff]   ;;  %v18200_v16 = vld [vmem:[#allocation5 + $0x2fd4] ss:$40 sps:$4 sm:$0xff]  }
 0x2e1   :  { %10830 = vmatprep.subr.bf16.mxu1 %v18139_v17  ;;  %v18203_v17 = vld [vmem:[#allocation5 + $0x2fdc] ss:$40 sps:$4 sm:$0xff]  }
 0x2e3   :  { %10421 = vmatpush1.bf16.msra.mxu0 %v18134_v44  ;;  %v18201_v44 = vld [vmem:[#allocation5 + $0x2fd8] ss:$40 sps:$4 sm:$0xff]  }
 0x2e4   :  { %10831 = vmatpush1.bf16.msra.mxu1 %v18137_v47  ;;  %10431 = vmatprep.subr.bf16.mxu0 %v18146_v25  ;;  %v18206_v47 = vld [vmem:[#allocation5 + $0x3024] ss:$40 sps:$4 sm:$0xff]  }
 0x2e5   :  { %10841 = vmatprep.subr.bf16.mxu1 %v18149_v27  ;;  %v18209_v25 = vld [vmem:[#allocation5 + $0x302c] ss:$40 sps:$4 sm:$0xff]   ;;  %v18204_v27 = vld [vmem:[#allocation5 + $0x3020] ss:$40 sps:$4 sm:$0xff]  }
 0x2e6   :  { %10423 = vmatmul.mubr.bf16.vlgmr.msra.gmra.mrb[0].mxu0 %v20820_v61 }
 0x2e7   :  { %10833 = vmatmul.mubr.bf16.vlgmr.msra.gmra.mrb[0].mxu1 %v20820_v61  ;;  %10432 = vmatpush1.bf16.msra.mxu0 %v18144_v53  ;;  %v18212_v53 = vld [vmem:[#allocation5 + $0x3074] ss:$40 sps:$4 sm:$0xff]  }
 0x2e8   :  { %10842 = vmatpush1.bf16.msra.mxu1 %v18147_v62  ;;  %10433 = vmatprep.subr.bf16.mxu0 %v18152_v43  ;;  %v18215_v62 = vld [vmem:[#allocation5 + $0x307c] ss:$40 sps:$4 sm:$0xff]   ;;  %v18210_v43 = vld [vmem:[#allocation5 + $0x3070] ss:$40 sps:$4 sm:$0xff]  }
 0x2e9   :  { %10843 = vmatprep.subr.bf16.mxu1 %v18155_v48  ;;  %10463 = vmatprep.mubr.bf16.mxu0 %v20822_v31  ;;  %v18213_v48 = vld [vmem:[#allocation5 + $0x3078] ss:$40 sps:$4 sm:$0xff]  }
 0x2ea   :  { %10873 = vmatprep.mubr.bf16.mxu1 %v20822_v31 }
 0x2eb   :  { %10434 = vmatpush1.bf16.msra.mxu0 %v18150_v32  ;;  %v18218_v32 = vld [vmem:[#allocation5 + $0x30c4] ss:$40 sps:$4 sm:$0xff]  }
 0x2ec   :  { %10844 = vmatpush1.bf16.msra.mxu1 %v18153_v33  ;;  %10435 = vmatprep.subr.bf16.mxu0 %v18158_v34  ;;  %v18221_v33 = vld [vmem:[#allocation5 + $0x30cc] ss:$40 sps:$4 sm:$0xff]   ;;  %v18216_v34 = vld [vmem:[#allocation5 + $0x30c0] ss:$40 sps:$4 sm:$0xff]  }
 0x2ed   :  { %10845 = vmatprep.subr.bf16.mxu1 %v18161_v35  ;;  %v18219_v35 = vld [vmem:[#allocation5 + $0x30c8] ss:$40 sps:$4 sm:$0xff]  }
 0x2ef   :  { %10436 = vmatpush1.bf16.msra.mxu0 %v18156_v36  ;;  %v18224_v36 = vld [vmem:[#allocation5 + $0x3114] ss:$40 sps:$4 sm:$0xff]  }
 0x2f0   :  { %10846 = vmatpush1.bf16.msra.mxu1 %v18159_v37  ;;  %10437 = vmatprep.subr.bf16.mxu0 %v18164_v42  ;;  %v18227_v37 = vld [vmem:[#allocation5 + $0x311c] ss:$40 sps:$4 sm:$0xff]   ;;  %v18222_v42 = vld [vmem:[#allocation5 + $0x3110] ss:$40 sps:$4 sm:$0xff]  }
 0x2f1   :  { %10847 = vmatprep.subr.bf16.mxu1 %v18167_v49  ;;  %v18225_v49 = vld [vmem:[#allocation5 + $0x3118] ss:$40 sps:$4 sm:$0xff]  }
 0x2f3   :  { %10438 = vmatpush1.bf16.msra.mxu0 %v18162_v50  ;;  %v18230_v50 = vld [vmem:[#allocation5 + $0x3164] ss:$40 sps:$4 sm:$0xff]  }
 0x2f4   :  { %10848 = vmatpush1.bf16.msra.mxu1 %v18165_v51  ;;  %10439 = vmatprep.subr.bf16.mxu0 %v18170_v54  ;;  %v18233_v51 = vld [vmem:[#allocation5 + $0x316c] ss:$40 sps:$4 sm:$0xff]   ;;  %v18228_v54 = vld [vmem:[#allocation5 + $0x3160] ss:$40 sps:$4 sm:$0xff]  }
 0x2f5   :  { %10849 = vmatprep.subr.bf16.mxu1 %v18173_v56  ;;  %v18231_v56 = vld [vmem:[#allocation5 + $0x3168] ss:$40 sps:$4 sm:$0xff]  }
 0x2f7   :  { %10440 = vmatpush1.bf16.msra.mxu0 %v18168_v57  ;;  %v18236_v57 = vld [vmem:[#allocation5 + $0x31b4] ss:$40 sps:$4 sm:$0xff]  }
 0x2f8   :  { %10850 = vmatpush1.bf16.msra.mxu1 %v18171_v58  ;;  %10441 = vmatprep.subr.bf16.mxu0 %v18176_v18  ;;  %v18239_v58 = vld [vmem:[#allocation5 + $0x31bc] ss:$40 sps:$4 sm:$0xff]   ;;  %v366_v18 = vcombine.low %v20811_v20, %v20814_v22  ;;  %v18248_v20 = vld [vmem:[#allocation5 + $0x60] ss:$40 sps:$4 sm:$0xff]  }
 0x2f9   :  { %10851 = vmatprep.subr.bf16.mxu1 %v18179_v10  ;;  %v18234_v10 = vld [vmem:[#allocation5 + $0x31b0] ss:$40 sps:$4 sm:$0xff]  }
 0x2fa   :  { %v18251_v22 = vld [vmem:[#allocation5 + $0x68] ss:$40 sps:$4 sm:$0xff]  }
 0x2fb   :  { %10442 = vmatpush1.bf16.msra.mxu0 %v18174_v11  ;;  %v18237_v11 = vld [vmem:[#allocation5 + $0x31b8] ss:$40 sps:$4 sm:$0xff]  }
 0x2fc   :  { %10852 = vmatpush1.bf16.msra.mxu1 %v18177_v63  ;;  %10443 = vmatprep.subr.bf16.mxu0 %v18182_v0  ;;  %v18244_v63 = vld [vmem:[#allocation5 + $0x14] ss:$40 sps:$4 sm:$0xff]  }
 0x2fd   :  { %10853 = vmatprep.subr.bf16.mxu1 %v18185_v2  ;;  %v18247_v0 = vld [vmem:[#allocation5 + $0x1c] ss:$40 sps:$4 sm:$0xff]   ;;  %v20830_v2 = vpack.c.bf16 %v366_v18, %v366_v18 }
 0x2fe   :  { %v18304_v18 = vld [vmem:[#allocation5 + $0x334] ss:$40 sps:$4 sm:$0xff]  }
 0x2ff   :  { %10444 = vmatpush1.bf16.msra.mxu0 %v18180_v3  ;;  %v18242_v3 = vld [vmem:[#allocation5 + $0x10] ss:$40 sps:$4 sm:$0xff]  }
 0x300   :  { %10854 = vmatpush1.bf16.msra.mxu1 %v18183_v4  ;;  %10445 = vmatprep.subr.bf16.mxu0 %v18188_v5  ;;  %v18245_v4 = vld [vmem:[#allocation5 + $0x18] ss:$40 sps:$4 sm:$0xff]   ;;  %v18250_v5 = vld [vmem:[#allocation5 + $0x64] ss:$40 sps:$4 sm:$0xff]  }
 0x301   :  { %10855 = vmatprep.subr.bf16.mxu1 %v18191_v7  ;;  %v18253_v7 = vld [vmem:[#allocation5 + $0x6c] ss:$40 sps:$4 sm:$0xff]  }
 0x303   :  { %10446 = vmatpush1.bf16.msra.mxu0 %v18186_v8  ;;  %v18256_v8 = vld [vmem:[#allocation5 + $0xb4] ss:$40 sps:$4 sm:$0xff]  }
 0x304   :  { %10856 = vmatpush1.bf16.msra.mxu1 %v18189_v40  ;;  %10447 = vmatprep.subr.bf16.mxu0 %v18194_v41  ;;  %v18259_v40 = vld [vmem:[#allocation5 + $0xbc] ss:$40 sps:$4 sm:$0xff]   ;;  %v18254_v41 = vld [vmem:[#allocation5 + $0xb0] ss:$40 sps:$4 sm:$0xff]  }
 0x305   :  { %10857 = vmatprep.subr.bf16.mxu1 %v18197_v12  ;;  %v18257_v12 = vld [vmem:[#allocation5 + $0xb8] ss:$40 sps:$4 sm:$0xff]  }
 0x307   :  { %10448 = vmatpush1.bf16.msra.mxu0 %v18192_v13  ;;  %v18262_v13 = vld [vmem:[#allocation5 + $0x104] ss:$40 sps:$4 sm:$0xff]  }
 0x308   :  { %10858 = vmatpush1.bf16.msra.mxu1 %v18195_v14  ;;  %10449 = vmatprep.subr.bf16.mxu0 %v18200_v16  ;;  %v18265_v14 = vld [vmem:[#allocation5 + $0x10c] ss:$40 sps:$4 sm:$0xff]   ;;  %v18260_v16 = vld [vmem:[#allocation5 + $0x100] ss:$40 sps:$4 sm:$0xff]  }
 0x309   :  { %10859 = vmatprep.subr.bf16.mxu1 %v18203_v17  ;;  %v18263_v17 = vld [vmem:[#allocation5 + $0x108] ss:$40 sps:$4 sm:$0xff]  }
 0x30b   :  { %10450 = vmatpush1.bf16.msra.mxu0 %v18198_v23  ;;  %v18268_v23 = vld [vmem:[#allocation5 + $0x154] ss:$40 sps:$4 sm:$0xff]  }
 0x30c   :  { %10860 = vmatpush1.bf16.msra.mxu1 %v18201_v44  ;;  %10451 = vmatprep.subr.bf16.mxu0 %v18206_v47  ;;  %v18271_v44 = vld [vmem:[#allocation5 + $0x15c] ss:$40 sps:$4 sm:$0xff]   ;;  %v18266_v47 = vld [vmem:[#allocation5 + $0x150] ss:$40 sps:$4 sm:$0xff]  }
 0x30d   :  { %10861 = vmatprep.subr.bf16.mxu1 %v18209_v25  ;;  %v18269_v25 = vld [vmem:[#allocation5 + $0x158] ss:$40 sps:$4 sm:$0xff]  }
 0x30f   :  { %10452 = vmatpush1.bf16.msra.mxu0 %v18204_v27  ;;  %v18274_v27 = vld [vmem:[#allocation5 + $0x1a4] ss:$40 sps:$4 sm:$0xff]  }
 0x310   :  { %10862 = vmatpush1.bf16.msra.mxu1 %v18207_v28  ;;  %10453 = vmatprep.subr.bf16.mxu0 %v18212_v53  ;;  %v18277_v28 = vld [vmem:[#allocation5 + $0x1ac] ss:$40 sps:$4 sm:$0xff]   ;;  %v18272_v53 = vld [vmem:[#allocation5 + $0x1a0] ss:$40 sps:$4 sm:$0xff]  }
 0x311   :  { %10863 = vmatprep.subr.bf16.mxu1 %v18215_v62  ;;  %v18275_v62 = vld [vmem:[#allocation5 + $0x1a8] ss:$40 sps:$4 sm:$0xff]  }
 0x313   :  { %10454 = vmatpush1.bf16.msra.mxu0 %v18210_v43  ;;  %v18280_v43 = vld [vmem:[#allocation5 + $0x1f4] ss:$40 sps:$4 sm:$0xff]  }
 0x314   :  { %10864 = vmatpush1.bf16.msra.mxu1 %v18213_v48  ;;  %10455 = vmatprep.subr.bf16.mxu0 %v18218_v32  ;;  %v18283_v48 = vld [vmem:[#allocation5 + $0x1fc] ss:$40 sps:$4 sm:$0xff]   ;;  %v18278_v32 = vld [vmem:[#allocation5 + $0x1f0] ss:$40 sps:$4 sm:$0xff]  }
 0x315   :  { %10865 = vmatprep.subr.bf16.mxu1 %v18221_v33  ;;  %v18281_v33 = vld [vmem:[#allocation5 + $0x1f8] ss:$40 sps:$4 sm:$0xff]  }
 0x317   :  { %10456 = vmatpush1.bf16.msra.mxu0 %v18216_v34  ;;  %v18286_v34 = vld [vmem:[#allocation5 + $0x244] ss:$40 sps:$4 sm:$0xff]  }
 0x318   :  { %10866 = vmatpush1.bf16.msra.mxu1 %v18219_v35  ;;  %10457 = vmatprep.subr.bf16.mxu0 %v18224_v36  ;;  %v18289_v35 = vld [vmem:[#allocation5 + $0x24c] ss:$40 sps:$4 sm:$0xff]   ;;  %v18284_v36 = vld [vmem:[#allocation5 + $0x240] ss:$40 sps:$4 sm:$0xff]  }
 0x319   :  { %10867 = vmatprep.subr.bf16.mxu1 %v18227_v37  ;;  %v18287_v37 = vld [vmem:[#allocation5 + $0x248] ss:$40 sps:$4 sm:$0xff]  }
 0x31b   :  { %10458 = vmatpush1.bf16.msra.mxu0 %v18222_v42  ;;  %v18292_v42 = vld [vmem:[#allocation5 + $0x294] ss:$40 sps:$4 sm:$0xff]  }
 0x31c   :  { %10868 = vmatpush1.bf16.msra.mxu1 %v18225_v49  ;;  %10459 = vmatprep.subr.bf16.mxu0 %v18230_v50  ;;  %v18295_v49 = vld [vmem:[#allocation5 + $0x29c] ss:$40 sps:$4 sm:$0xff]   ;;  %v18290_v50 = vld [vmem:[#allocation5 + $0x290] ss:$40 sps:$4 sm:$0xff]  }
 0x31d   :  { %10869 = vmatprep.subr.bf16.mxu1 %v18233_v51  ;;  %v18293_v51 = vld [vmem:[#allocation5 + $0x298] ss:$40 sps:$4 sm:$0xff]  }
 0x31f   :  { %10460 = vmatpush1.bf16.msra.mxu0 %v18228_v54  ;;  %v18298_v54 = vld [vmem:[#allocation5 + $0x2e4] ss:$40 sps:$4 sm:$0xff]  }
 0x320   :  { %10870 = vmatpush1.bf16.msra.mxu1 %v18231_v56  ;;  %10461 = vmatprep.subr.bf16.mxu0 %v18236_v57  ;;  %v18301_v56 = vld [vmem:[#allocation5 + $0x2ec] ss:$40 sps:$4 sm:$0xff]   ;;  %v18296_v57 = vld [vmem:[#allocation5 + $0x2e0] ss:$40 sps:$4 sm:$0xff]  }
 0x321   :  { %10871 = vmatprep.subr.bf16.mxu1 %v18239_v58  ;;  %v18299_v58 = vld [vmem:[#allocation5 + $0x2e8] ss:$40 sps:$4 sm:$0xff]  }
 0x323   :  { %10462 = vmatpush1.bf16.msra.mxu0 %v18234_v10  ;;  %v18307_v10 = vld [vmem:[#allocation5 + $0x33c] ss:$40 sps:$4 sm:$0xff]  }
 0x324   :  { %10872 = vmatpush1.bf16.msra.mxu1 %v18237_v11  ;;  %10882 = vmatprep.subr.bf16.mxu0 %v18244_v63  ;;  %v18302_v11 = vld [vmem:[#allocation5 + $0x330] ss:$40 sps:$4 sm:$0xff]  }
 0x325   :  { %11292 = vmatprep.subr.bf16.mxu1 %v18247_v0  ;;  %v18305_v63 = vld [vmem:[#allocation5 + $0x338] ss:$40 sps:$4 sm:$0xff]   ;;  %v18310_v0 = vld [vmem:[#allocation5 + $0x384] ss:$40 sps:$4 sm:$0xff]  }
 0x326   :  { %10464 = vmatmul.mubr.bf16.vlgmr.msra.gmra.mrb[0].mxu0 %v20830_v2 }
 0x327   :  { %10874 = vmatmul.mubr.bf16.vlgmr.msra.gmra.mrb[0].mxu1 %v20830_v2  ;;  %10883 = vmatpush1.bf16.msra.mxu0 %v18242_v3  ;;  %v18313_v3 = vld [vmem:[#allocation5 + $0x38c] ss:$40 sps:$4 sm:$0xff]  }
 0x328   :  { %11293 = vmatpush1.bf16.msra.mxu1 %v18245_v4  ;;  %10884 = vmatprep.subr.bf16.mxu0 %v18250_v5  ;;  %v18308_v4 = vld [vmem:[#allocation5 + $0x380] ss:$40 sps:$4 sm:$0xff]  }
 0x329   :  { %11294 = vmatprep.subr.bf16.mxu1 %v18253_v7  ;;  %10914 = vmatprep.mubr.bf16.mxu0 %v20664_v1  ;;  %v18311_v5 = vld [vmem:[#allocation5 + $0x388] ss:$40 sps:$4 sm:$0xff]   ;;  %v18316_v7 = vld [vmem:[#allocation5 + $0x3d4] ss:$40 sps:$4 sm:$0xff]  }
 0x32a   :  { %11324 = vmatprep.mubr.bf16.mxu1 %v20664_v1 }
 0x32b   :  { %10885 = vmatpush1.bf16.msra.mxu0 %v18248_v20  ;;  %v18319_v20 = vld [vmem:[#allocation5 + $0x3dc] ss:$40 sps:$4 sm:$0xff]  }
 0x32c   :  { %11295 = vmatpush1.bf16.msra.mxu1 %v18251_v22  ;;  %10886 = vmatprep.subr.bf16.mxu0 %v18256_v8  ;;  %v18314_v22 = vld [vmem:[#allocation5 + $0x3d0] ss:$40 sps:$4 sm:$0xff]  }
 0x32d   :  { %11296 = vmatprep.subr.bf16.mxu1 %v18259_v40  ;;  %v18317_v8 = vld [vmem:[#allocation5 + $0x3d8] ss:$40 sps:$4 sm:$0xff]   ;;  %v18322_v40 = vld [vmem:[#allocation5 + $0x424] ss:$40 sps:$4 sm:$0xff]  }
 0x32f   :  { %10887 = vmatpush1.bf16.msra.mxu0 %v18254_v41  ;;  %v18325_v41 = vld [vmem:[#allocation5 + $0x42c] ss:$40 sps:$4 sm:$0xff]  }
 0x330   :  { %11297 = vmatpush1.bf16.msra.mxu1 %v18257_v12  ;;  %10888 = vmatprep.subr.bf16.mxu0 %v18262_v13  ;;  %v18320_v12 = vld [vmem:[#allocation5 + $0x420] ss:$40 sps:$4 sm:$0xff]  }
 0x331   :  { %11298 = vmatprep.subr.bf16.mxu1 %v18265_v14  ;;  %v18323_v13 = vld [vmem:[#allocation5 + $0x428] ss:$40 sps:$4 sm:$0xff]   ;;  %v18328_v14 = vld [vmem:[#allocation5 + $0x474] ss:$40 sps:$4 sm:$0xff]  }
 0x333   :  { %10889 = vmatpush1.bf16.msra.mxu0 %v18260_v16  ;;  %v18331_v16 = vld [vmem:[#allocation5 + $0x47c] ss:$40 sps:$4 sm:$0xff]  }
 0x334   :  { %11299 = vmatpush1.bf16.msra.mxu1 %v18263_v17  ;;  %10890 = vmatprep.subr.bf16.mxu0 %v18268_v23  ;;  %v18326_v17 = vld [vmem:[#allocation5 + $0x470] ss:$40 sps:$4 sm:$0xff]  }
 0x335   :  { %11300 = vmatprep.subr.bf16.mxu1 %v18271_v44  ;;  %v18329_v23 = vld [vmem:[#allocation5 + $0x478] ss:$40 sps:$4 sm:$0xff]   ;;  %v18334_v44 = vld [vmem:[#allocation5 + $0x4c4] ss:$40 sps:$4 sm:$0xff]  }
 0x337   :  { %10891 = vmatpush1.bf16.msra.mxu0 %v18266_v47  ;;  %v18337_v47 = vld [vmem:[#allocation5 + $0x4cc] ss:$40 sps:$4 sm:$0xff]  }
 0x338   :  { %11301 = vmatpush1.bf16.msra.mxu1 %v18269_v25  ;;  %10892 = vmatprep.subr.bf16.mxu0 %v18274_v27  ;;  %v18332_v25 = vld [vmem:[#allocation5 + $0x4c0] ss:$40 sps:$4 sm:$0xff]  }
 0x339   :  { %11302 = vmatprep.subr.bf16.mxu1 %v18277_v28  ;;  %v18335_v27 = vld [vmem:[#allocation5 + $0x4c8] ss:$40 sps:$4 sm:$0xff]   ;;  %v18340_v28 = vld [vmem:[#allocation5 + $0x514] ss:$40 sps:$4 sm:$0xff]  }
 0x33b   :  { %10893 = vmatpush1.bf16.msra.mxu0 %v18272_v53  ;;  %v18343_v53 = vld [vmem:[#allocation5 + $0x51c] ss:$40 sps:$4 sm:$0xff]  }
 0x33c   :  { %11303 = vmatpush1.bf16.msra.mxu1 %v18275_v62  ;;  %10894 = vmatprep.subr.bf16.mxu0 %v18280_v43  ;;  %v18338_v62 = vld [vmem:[#allocation5 + $0x510] ss:$40 sps:$4 sm:$0xff]  }
 0x33d   :  { %11304 = vmatprep.subr.bf16.mxu1 %v18283_v48  ;;  %v18341_v43 = vld [vmem:[#allocation5 + $0x518] ss:$40 sps:$4 sm:$0xff]   ;;  %v18346_v48 = vld [vmem:[#allocation5 + $0x564] ss:$40 sps:$4 sm:$0xff]  }
 0x33f   :  { %10895 = vmatpush1.bf16.msra.mxu0 %v18278_v32  ;;  %v18349_v32 = vld [vmem:[#allocation5 + $0x56c] ss:$40 sps:$4 sm:$0xff]  }
 0x340   :  { %11305 = vmatpush1.bf16.msra.mxu1 %v18281_v33  ;;  %10896 = vmatprep.subr.bf16.mxu0 %v18286_v34  ;;  %v18344_v33 = vld [vmem:[#allocation5 + $0x560] ss:$40 sps:$4 sm:$0xff]  }
 0x341   :  { %11306 = vmatprep.subr.bf16.mxu1 %v18289_v35  ;;  %v18347_v34 = vld [vmem:[#allocation5 + $0x568] ss:$40 sps:$4 sm:$0xff]   ;;  %v18352_v35 = vld [vmem:[#allocation5 + $0x5b4] ss:$40 sps:$4 sm:$0xff]  }
 0x343   :  { %10897 = vmatpush1.bf16.msra.mxu0 %v18284_v36  ;;  %v18355_v36 = vld [vmem:[#allocation5 + $0x5bc] ss:$40 sps:$4 sm:$0xff]  }
 0x344   :  { %11307 = vmatpush1.bf16.msra.mxu1 %v18287_v37  ;;  %10898 = vmatprep.subr.bf16.mxu0 %v18292_v42  ;;  %v18350_v37 = vld [vmem:[#allocation5 + $0x5b0] ss:$40 sps:$4 sm:$0xff]  }
 0x345   :  { %11308 = vmatprep.subr.bf16.mxu1 %v18295_v49  ;;  %v18353_v42 = vld [vmem:[#allocation5 + $0x5b8] ss:$40 sps:$4 sm:$0xff]   ;;  %v18358_v49 = vld [vmem:[#allocation5 + $0x604] ss:$40 sps:$4 sm:$0xff]  }
 0x347   :  { %10899 = vmatpush1.bf16.msra.mxu0 %v18290_v50  ;;  %v18361_v50 = vld [vmem:[#allocation5 + $0x60c] ss:$40 sps:$4 sm:$0xff]  }
 0x348   :  { %11309 = vmatpush1.bf16.msra.mxu1 %v18293_v51  ;;  %10900 = vmatprep.subr.bf16.mxu0 %v18298_v54  ;;  %v18356_v51 = vld [vmem:[#allocation5 + $0x600] ss:$40 sps:$4 sm:$0xff]  }
 0x349   :  { %11310 = vmatprep.subr.bf16.mxu1 %v18301_v56  ;;  %v18359_v54 = vld [vmem:[#allocation5 + $0x608] ss:$40 sps:$4 sm:$0xff]   ;;  %v18364_v56 = vld [vmem:[#allocation5 + $0x654] ss:$40 sps:$4 sm:$0xff]  }
 0x34b   :  { %10901 = vmatpush1.bf16.msra.mxu0 %v18296_v57  ;;  %v18367_v57 = vld [vmem:[#allocation5 + $0x65c] ss:$40 sps:$4 sm:$0xff]  }
 0x34c   :  { %11311 = vmatpush1.bf16.msra.mxu1 %v18299_v58  ;;  %10902 = vmatprep.subr.bf16.mxu0 %v18304_v18  ;;  %v18362_v58 = vld [vmem:[#allocation5 + $0x650] ss:$40 sps:$4 sm:$0xff]  }
 0x34d   :  { %11312 = vmatprep.subr.bf16.mxu1 %v18307_v10  ;;  %v18365_v18 = vld [vmem:[#allocation5 + $0x658] ss:$40 sps:$4 sm:$0xff]   ;;  %v18370_v10 = vld [vmem:[#allocation5 + $0x6a4] ss:$40 sps:$4 sm:$0xff]  }
 0x34f   :  { %10903 = vmatpush1.bf16.msra.mxu0 %v18302_v11  ;;  %v18373_v11 = vld [vmem:[#allocation5 + $0x6ac] ss:$40 sps:$4 sm:$0xff]  }
 0x350   :  { %11313 = vmatpush1.bf16.msra.mxu1 %v18305_v63  ;;  %10904 = vmatprep.subr.bf16.mxu0 %v18310_v0  ;;  %v18368_v63 = vld [vmem:[#allocation5 + $0x6a0] ss:$40 sps:$4 sm:$0xff]  }
 0x351   :  { %11314 = vmatprep.subr.bf16.mxu1 %v18313_v3  ;;  %v18371_v0 = vld [vmem:[#allocation5 + $0x6a8] ss:$40 sps:$4 sm:$0xff]   ;;  %v18376_v3 = vld [vmem:[#allocation5 + $0x6f4] ss:$40 sps:$4 sm:$0xff]  }
 0x353   :  { %10905 = vmatpush1.bf16.msra.mxu0 %v18308_v4  ;;  %v18379_v4 = vld [vmem:[#allocation5 + $0x6fc] ss:$40 sps:$4 sm:$0xff]  }
 0x354   :  { %11315 = vmatpush1.bf16.msra.mxu1 %v18311_v5  ;;  %10906 = vmatprep.subr.bf16.mxu0 %v18316_v7  ;;  %v18374_v5 = vld [vmem:[#allocation5 + $0x6f0] ss:$40 sps:$4 sm:$0xff]  }
 0x355   :  { %11316 = vmatprep.subr.bf16.mxu1 %v18319_v20  ;;  %v18377_v7 = vld [vmem:[#allocation5 + $0x6f8] ss:$40 sps:$4 sm:$0xff]   ;;  %v18382_v20 = vld [vmem:[#allocation5 + $0x744] ss:$40 sps:$4 sm:$0xff]  }
 0x357   :  { %10907 = vmatpush1.bf16.msra.mxu0 %v18314_v22  ;;  %v18385_v22 = vld [vmem:[#allocation5 + $0x74c] ss:$40 sps:$4 sm:$0xff]  }
 0x358   :  { %11317 = vmatpush1.bf16.msra.mxu1 %v18317_v8  ;;  %10908 = vmatprep.subr.bf16.mxu0 %v18322_v40  ;;  %v18380_v8 = vld [vmem:[#allocation5 + $0x740] ss:$40 sps:$4 sm:$0xff]  }
 0x359   :  { %11318 = vmatprep.subr.bf16.mxu1 %v18325_v41  ;;  %v18383_v40 = vld [vmem:[#allocation5 + $0x748] ss:$40 sps:$4 sm:$0xff]   ;;  %v18388_v41 = vld [vmem:[#allocation5 + $0x794] ss:$40 sps:$4 sm:$0xff]  }
 0x35b   :  { %10909 = vmatpush1.bf16.msra.mxu0 %v18320_v12  ;;  %v18391_v12 = vld [vmem:[#allocation5 + $0x79c] ss:$40 sps:$4 sm:$0xff]  }
 0x35c   :  { %11319 = vmatpush1.bf16.msra.mxu1 %v18323_v13  ;;  %10910 = vmatprep.subr.bf16.mxu0 %v18328_v14  ;;  %v18386_v13 = vld [vmem:[#allocation5 + $0x790] ss:$40 sps:$4 sm:$0xff]  }
 0x35d   :  { %11320 = vmatprep.subr.bf16.mxu1 %v18331_v16  ;;  %v18389_v14 = vld [vmem:[#allocation5 + $0x798] ss:$40 sps:$4 sm:$0xff]   ;;  %v18394_v16 = vld [vmem:[#allocation5 + $0x7e4] ss:$40 sps:$4 sm:$0xff]  }
 0x35f   :  { %10911 = vmatpush1.bf16.msra.mxu0 %v18326_v17  ;;  %v18397_v17 = vld [vmem:[#allocation5 + $0x7ec] ss:$40 sps:$4 sm:$0xff]  }
 0x360   :  { %11321 = vmatpush1.bf16.msra.mxu1 %v18329_v23  ;;  %10912 = vmatprep.subr.bf16.mxu0 %v18334_v44  ;;  %v18392_v23 = vld [vmem:[#allocation5 + $0x7e0] ss:$40 sps:$4 sm:$0xff]  }
 0x361   :  { %11322 = vmatprep.subr.bf16.mxu1 %v18337_v47  ;;  %v18395_v44 = vld [vmem:[#allocation5 + $0x7e8] ss:$40 sps:$4 sm:$0xff]   ;;  %v18400_v47 = vld [vmem:[#allocation5 + $0x834] ss:$40 sps:$4 sm:$0xff]  }
 0x363   :  { %10913 = vmatpush1.bf16.msra.mxu0 %v18332_v25  ;;  %v18403_v25 = vld [vmem:[#allocation5 + $0x83c] ss:$40 sps:$4 sm:$0xff]  }
 0x364   :  { %11323 = vmatpush1.bf16.msra.mxu1 %v18335_v27  ;;  %10923 = vmatprep.subr.bf16.mxu0 %v18340_v28  ;;  %v18398_v27 = vld [vmem:[#allocation5 + $0x830] ss:$40 sps:$4 sm:$0xff]  }
 0x365   :  { %11333 = vmatprep.subr.bf16.mxu1 %v18343_v53  ;;  %v18401_v28 = vld [vmem:[#allocation5 + $0x838] ss:$40 sps:$4 sm:$0xff]   ;;  %v18406_v53 = vld [vmem:[#allocation5 + $0x884] ss:$40 sps:$4 sm:$0xff]  }
 0x366   :  { %10915 = vmatmul.mubr.bf16.vlgmr.msra.gmra.mrb[4].mxu0 %v20668_v15 }
 0x367   :  { %11325 = vmatmul.mubr.bf16.vlgmr.msra.gmra.mrb[4].mxu1 %v20668_v15  ;;  %10924 = vmatpush1.bf16.msra.mxu0 %v18338_v62  ;;  %v18409_v62 = vld [vmem:[#allocation5 + $0x88c] ss:$40 sps:$4 sm:$0xff]  }
 0x368   :  { %11334 = vmatpush1.bf16.msra.mxu1 %v18341_v43  ;;  %10925 = vmatprep.subr.bf16.mxu0 %v18346_v48  ;;  %v18404_v43 = vld [vmem:[#allocation5 + $0x880] ss:$40 sps:$4 sm:$0xff]  }
 0x369   :  { %11335 = vmatprep.subr.bf16.mxu1 %v18349_v32  ;;  %10955 = vmatprep.mubr.bf16.mxu0 %v20680_v55  ;;  %v18407_v48 = vld [vmem:[#allocation5 + $0x888] ss:$40 sps:$4 sm:$0xff]   ;;  %v18412_v32 = vld [vmem:[#allocation5 + $0x8d4] ss:$40 sps:$4 sm:$0xff]  }
 0x36a   :  { %11365 = vmatprep.mubr.bf16.mxu1 %v20680_v55 }
 0x36b   :  { %10926 = vmatpush1.bf16.msra.mxu0 %v18344_v33  ;;  %v18415_v33 = vld [vmem:[#allocation5 + $0x8dc] ss:$40 sps:$4 sm:$0xff]  }
 0x36c   :  { %11336 = vmatpush1.bf16.msra.mxu1 %v18347_v34  ;;  %10927 = vmatprep.subr.bf16.mxu0 %v18352_v35  ;;  %v18410_v34 = vld [vmem:[#allocation5 + $0x8d0] ss:$40 sps:$4 sm:$0xff]  }
 0x36d   :  { %11337 = vmatprep.subr.bf16.mxu1 %v18355_v36  ;;  %v18413_v35 = vld [vmem:[#allocation5 + $0x8d8] ss:$40 sps:$4 sm:$0xff]   ;;  %v18418_v36 = vld [vmem:[#allocation5 + $0x924] ss:$40 sps:$4 sm:$0xff]  }
 0x36f   :  { %10928 = vmatpush1.bf16.msra.mxu0 %v18350_v37  ;;  %v18421_v37 = vld [vmem:[#allocation5 + $0x92c] ss:$40 sps:$4 sm:$0xff]  }
 0x370   :  { %11338 = vmatpush1.bf16.msra.mxu1 %v18353_v42  ;;  %10929 = vmatprep.subr.bf16.mxu0 %v18358_v49  ;;  %v18416_v42 = vld [vmem:[#allocation5 + $0x920] ss:$40 sps:$4 sm:$0xff]  }
 0x371   :  { %11339 = vmatprep.subr.bf16.mxu1 %v18361_v50  ;;  %v18419_v49 = vld [vmem:[#allocation5 + $0x928] ss:$40 sps:$4 sm:$0xff]   ;;  %v18424_v50 = vld [vmem:[#allocation5 + $0x974] ss:$40 sps:$4 sm:$0xff]  }
 0x373   :  { %10930 = vmatpush1.bf16.msra.mxu0 %v18356_v51  ;;  %v18427_v51 = vld [vmem:[#allocation5 + $0x97c] ss:$40 sps:$4 sm:$0xff]  }
 0x374   :  { %11340 = vmatpush1.bf16.msra.mxu1 %v18359_v54  ;;  %10931 = vmatprep.subr.bf16.mxu0 %v18364_v56  ;;  %v18422_v54 = vld [vmem:[#allocation5 + $0x970] ss:$40 sps:$4 sm:$0xff]  }
 0x375   :  { %11341 = vmatprep.subr.bf16.mxu1 %v18367_v57  ;;  %v18425_v56 = vld [vmem:[#allocation5 + $0x978] ss:$40 sps:$4 sm:$0xff]   ;;  %v18430_v57 = vld [vmem:[#allocation5 + $0x9c4] ss:$40 sps:$4 sm:$0xff]  }
 0x377   :  { %10932 = vmatpush1.bf16.msra.mxu0 %v18362_v58  ;;  %v18433_v58 = vld [vmem:[#allocation5 + $0x9cc] ss:$40 sps:$4 sm:$0xff]  }
 0x378   :  { %11342 = vmatpush1.bf16.msra.mxu1 %v18365_v18  ;;  %10933 = vmatprep.subr.bf16.mxu0 %v18370_v10  ;;  %v18428_v18 = vld [vmem:[#allocation5 + $0x9c0] ss:$40 sps:$4 sm:$0xff]  }
 0x379   :  { %11343 = vmatprep.subr.bf16.mxu1 %v18373_v11  ;;  %v18431_v10 = vld [vmem:[#allocation5 + $0x9c8] ss:$40 sps:$4 sm:$0xff]   ;;  %v18436_v11 = vld [vmem:[#allocation5 + $0xa14] ss:$40 sps:$4 sm:$0xff]  }
 0x37b   :  { %10934 = vmatpush1.bf16.msra.mxu0 %v18368_v63  ;;  %v18439_v63 = vld [vmem:[#allocation5 + $0xa1c] ss:$40 sps:$4 sm:$0xff]  }
 0x37c   :  { %11344 = vmatpush1.bf16.msra.mxu1 %v18371_v0  ;;  %10935 = vmatprep.subr.bf16.mxu0 %v18376_v3  ;;  %v18434_v0 = vld [vmem:[#allocation5 + $0xa10] ss:$40 sps:$4 sm:$0xff]  }
 0x37d   :  { %11345 = vmatprep.subr.bf16.mxu1 %v18379_v4  ;;  %v18437_v3 = vld [vmem:[#allocation5 + $0xa18] ss:$40 sps:$4 sm:$0xff]   ;;  %v18442_v4 = vld [vmem:[#allocation5 + $0xa64] ss:$40 sps:$4 sm:$0xff]  }
 0x37f   :  { %10936 = vmatpush1.bf16.msra.mxu0 %v18374_v5  ;;  %v18445_v5 = vld [vmem:[#allocation5 + $0xa6c] ss:$40 sps:$4 sm:$0xff]  }
 0x380   :  { %11346 = vmatpush1.bf16.msra.mxu1 %v18377_v7  ;;  %10937 = vmatprep.subr.bf16.mxu0 %v18382_v20  ;;  %v18440_v7 = vld [vmem:[#allocation5 + $0xa60] ss:$40 sps:$4 sm:$0xff]  }
 0x381   :  { %11347 = vmatprep.subr.bf16.mxu1 %v18385_v22  ;;  %v18443_v20 = vld [vmem:[#allocation5 + $0xa68] ss:$40 sps:$4 sm:$0xff]   ;;  %v18448_v22 = vld [vmem:[#allocation5 + $0xab4] ss:$40 sps:$4 sm:$0xff]  }
 0x383   :  { %10938 = vmatpush1.bf16.msra.mxu0 %v18380_v8  ;;  %v18451_v8 = vld [vmem:[#allocation5 + $0xabc] ss:$40 sps:$4 sm:$0xff]  }
 0x384   :  { %11348 = vmatpush1.bf16.msra.mxu1 %v18383_v40  ;;  %10939 = vmatprep.subr.bf16.mxu0 %v18388_v41  ;;  %v18446_v40 = vld [vmem:[#allocation5 + $0xab0] ss:$40 sps:$4 sm:$0xff]  }
 0x385   :  { %11349 = vmatprep.subr.bf16.mxu1 %v18391_v12  ;;  %v18449_v41 = vld [vmem:[#allocation5 + $0xab8] ss:$40 sps:$4 sm:$0xff]   ;;  %v18454_v12 = vld [vmem:[#allocation5 + $0xb04] ss:$40 sps:$4 sm:$0xff]  }
 0x387   :  { %10940 = vmatpush1.bf16.msra.mxu0 %v18386_v13  ;;  %v18457_v13 = vld [vmem:[#allocation5 + $0xb0c] ss:$40 sps:$4 sm:$0xff]  }
 0x388   :  { %11350 = vmatpush1.bf16.msra.mxu1 %v18389_v14  ;;  %10941 = vmatprep.subr.bf16.mxu0 %v18394_v16  ;;  %v18452_v14 = vld [vmem:[#allocation5 + $0xb00] ss:$40 sps:$4 sm:$0xff]  }
 0x389   :  { %11351 = vmatprep.subr.bf16.mxu1 %v18397_v17  ;;  %v18455_v16 = vld [vmem:[#allocation5 + $0xb08] ss:$40 sps:$4 sm:$0xff]   ;;  %v18460_v17 = vld [vmem:[#allocation5 + $0xb54] ss:$40 sps:$4 sm:$0xff]  }
 0x38b   :  { %10942 = vmatpush1.bf16.msra.mxu0 %v18392_v23  ;;  %v18463_v23 = vld [vmem:[#allocation5 + $0xb5c] ss:$40 sps:$4 sm:$0xff]  }
 0x38c   :  { %11352 = vmatpush1.bf16.msra.mxu1 %v18395_v44  ;;  %10943 = vmatprep.subr.bf16.mxu0 %v18400_v47  ;;  %v18458_v44 = vld [vmem:[#allocation5 + $0xb50] ss:$40 sps:$4 sm:$0xff]  }
 0x38d   :  { %11353 = vmatprep.subr.bf16.mxu1 %v18403_v25  ;;  %v18461_v47 = vld [vmem:[#allocation5 + $0xb58] ss:$40 sps:$4 sm:$0xff]   ;;  %v18466_v25 = vld [vmem:[#allocation5 + $0xba4] ss:$40 sps:$4 sm:$0xff]  }
 0x38f   :  { %10944 = vmatpush1.bf16.msra.mxu0 %v18398_v27  ;;  %v18469_v27 = vld [vmem:[#allocation5 + $0xbac] ss:$40 sps:$4 sm:$0xff]  }
 0x390   :  { %11354 = vmatpush1.bf16.msra.mxu1 %v18401_v28  ;;  %10945 = vmatprep.subr.bf16.mxu0 %v18406_v53  ;;  %v18464_v28 = vld [vmem:[#allocation5 + $0xba0] ss:$40 sps:$4 sm:$0xff]  }
 0x391   :  { %11355 = vmatprep.subr.bf16.mxu1 %v18409_v62  ;;  %v18467_v53 = vld [vmem:[#allocation5 + $0xba8] ss:$40 sps:$4 sm:$0xff]   ;;  %v18472_v62 = vld [vmem:[#allocation5 + $0xbf4] ss:$40 sps:$4 sm:$0xff]  }
 0x393   :  { %10946 = vmatpush1.bf16.msra.mxu0 %v18404_v43  ;;  %v18475_v43 = vld [vmem:[#allocation5 + $0xbfc] ss:$40 sps:$4 sm:$0xff]  }
 0x394   :  { %11356 = vmatpush1.bf16.msra.mxu1 %v18407_v48  ;;  %10947 = vmatprep.subr.bf16.mxu0 %v18412_v32  ;;  %v18470_v48 = vld [vmem:[#allocation5 + $0xbf0] ss:$40 sps:$4 sm:$0xff]  }
 0x395   :  { %11357 = vmatprep.subr.bf16.mxu1 %v18415_v33  ;;  %v18473_v32 = vld [vmem:[#allocation5 + $0xbf8] ss:$40 sps:$4 sm:$0xff]   ;;  %v18478_v33 = vld [vmem:[#allocation5 + $0xc44] ss:$40 sps:$4 sm:$0xff]  }
 0x397   :  { %10948 = vmatpush1.bf16.msra.mxu0 %v18410_v34  ;;  %v18481_v34 = vld [vmem:[#allocation5 + $0xc4c] ss:$40 sps:$4 sm:$0xff]  }
 0x398   :  { %11358 = vmatpush1.bf16.msra.mxu1 %v18413_v35  ;;  %10949 = vmatprep.subr.bf16.mxu0 %v18418_v36  ;;  %v18476_v35 = vld [vmem:[#allocation5 + $0xc40] ss:$40 sps:$4 sm:$0xff]  }
 0x399   :  { %11359 = vmatprep.subr.bf16.mxu1 %v18421_v37  ;;  %v18479_v36 = vld [vmem:[#allocation5 + $0xc48] ss:$40 sps:$4 sm:$0xff]   ;;  %v18484_v37 = vld [vmem:[#allocation5 + $0xc94] ss:$40 sps:$4 sm:$0xff]  }
 0x39b   :  { %10950 = vmatpush1.bf16.msra.mxu0 %v18416_v42  ;;  %v18487_v42 = vld [vmem:[#allocation5 + $0xc9c] ss:$40 sps:$4 sm:$0xff]  }
 0x39c   :  { %11360 = vmatpush1.bf16.msra.mxu1 %v18419_v49  ;;  %10951 = vmatprep.subr.bf16.mxu0 %v18424_v50  ;;  %v18482_v49 = vld [vmem:[#allocation5 + $0xc90] ss:$40 sps:$4 sm:$0xff]  }
 0x39d   :  { %11361 = vmatprep.subr.bf16.mxu1 %v18427_v51  ;;  %v18485_v50 = vld [vmem:[#allocation5 + $0xc98] ss:$40 sps:$4 sm:$0xff]   ;;  %v18490_v51 = vld [vmem:[#allocation5 + $0xce4] ss:$40 sps:$4 sm:$0xff]  }
 0x39f   :  { %10952 = vmatpush1.bf16.msra.mxu0 %v18422_v54  ;;  %v18493_v54 = vld [vmem:[#allocation5 + $0xcec] ss:$40 sps:$4 sm:$0xff]  }
 0x3a0   :  { %11362 = vmatpush1.bf16.msra.mxu1 %v18425_v56  ;;  %10953 = vmatprep.subr.bf16.mxu0 %v18430_v57  ;;  %v18488_v56 = vld [vmem:[#allocation5 + $0xce0] ss:$40 sps:$4 sm:$0xff]  }
 0x3a1   :  { %11363 = vmatprep.subr.bf16.mxu1 %v18433_v58  ;;  %v18491_v57 = vld [vmem:[#allocation5 + $0xce8] ss:$40 sps:$4 sm:$0xff]   ;;  %v18496_v58 = vld [vmem:[#allocation5 + $0xd34] ss:$40 sps:$4 sm:$0xff]  }
 0x3a3   :  { %10954 = vmatpush1.bf16.msra.mxu0 %v18428_v18  ;;  %v18499_v18 = vld [vmem:[#allocation5 + $0xd3c] ss:$40 sps:$4 sm:$0xff]  }
 0x3a4   :  { %11364 = vmatpush1.bf16.msra.mxu1 %v18431_v10  ;;  %10964 = vmatprep.subr.bf16.mxu0 %v18436_v11  ;;  %v18494_v10 = vld [vmem:[#allocation5 + $0xd30] ss:$40 sps:$4 sm:$0xff]  }
 0x3a5   :  { %11374 = vmatprep.subr.bf16.mxu1 %v18439_v63  ;;  %v18497_v11 = vld [vmem:[#allocation5 + $0xd38] ss:$40 sps:$4 sm:$0xff]   ;;  %v18502_v63 = vld [vmem:[#allocation5 + $0xd84] ss:$40 sps:$4 sm:$0xff]  }
 0x3a6   :  { %10956 = vmatmul.mubr.bf16.vlgmr.msra.gmra.mrb[4].mxu0 %v20686_v29 }
 0x3a7   :  { %11366 = vmatmul.mubr.bf16.vlgmr.msra.gmra.mrb[4].mxu1 %v20686_v29  ;;  %10965 = vmatpush1.bf16.msra.mxu0 %v18434_v0  ;;  %v18505_v0 = vld [vmem:[#allocation5 + $0xd8c] ss:$40 sps:$4 sm:$0xff]  }
 0x3a8   :  { %11375 = vmatpush1.bf16.msra.mxu1 %v18437_v3  ;;  %10966 = vmatprep.subr.bf16.mxu0 %v18442_v4  ;;  %v18500_v3 = vld [vmem:[#allocation5 + $0xd80] ss:$40 sps:$4 sm:$0xff]  }
 0x3a9   :  { %11376 = vmatprep.subr.bf16.mxu1 %v18445_v5  ;;  %10996 = vmatprep.mubr.bf16.mxu0 %v20698_v45  ;;  %v18503_v4 = vld [vmem:[#allocation5 + $0xd88] ss:$40 sps:$4 sm:$0xff]   ;;  %v18508_v5 = vld [vmem:[#allocation5 + $0xdd4] ss:$40 sps:$4 sm:$0xff]  }
 0x3aa   :  { %11406 = vmatprep.mubr.bf16.mxu1 %v20698_v45 }
 0x3ab   :  { %10967 = vmatpush1.bf16.msra.mxu0 %v18440_v7  ;;  %v18511_v7 = vld [vmem:[#allocation5 + $0xddc] ss:$40 sps:$4 sm:$0xff]  }
 0x3ac   :  { %11377 = vmatpush1.bf16.msra.mxu1 %v18443_v20  ;;  %10968 = vmatprep.subr.bf16.mxu0 %v18448_v22  ;;  %v18506_v20 = vld [vmem:[#allocation5 + $0xdd0] ss:$40 sps:$4 sm:$0xff]  }
 0x3ad   :  { %11378 = vmatprep.subr.bf16.mxu1 %v18451_v8  ;;  %v18509_v22 = vld [vmem:[#allocation5 + $0xdd8] ss:$40 sps:$4 sm:$0xff]   ;;  %v18514_v8 = vld [vmem:[#allocation5 + $0xe24] ss:$40 sps:$4 sm:$0xff]  }
 0x3af   :  { %10969 = vmatpush1.bf16.msra.mxu0 %v18446_v40  ;;  %v18517_v40 = vld [vmem:[#allocation5 + $0xe2c] ss:$40 sps:$4 sm:$0xff]  }
 0x3b0   :  { %11379 = vmatpush1.bf16.msra.mxu1 %v18449_v41  ;;  %10970 = vmatprep.subr.bf16.mxu0 %v18454_v12  ;;  %v18512_v41 = vld [vmem:[#allocation5 + $0xe20] ss:$40 sps:$4 sm:$0xff]  }
 0x3b1   :  { %11380 = vmatprep.subr.bf16.mxu1 %v18457_v13  ;;  %v18515_v12 = vld [vmem:[#allocation5 + $0xe28] ss:$40 sps:$4 sm:$0xff]   ;;  %v18520_v13 = vld [vmem:[#allocation5 + $0xe74] ss:$40 sps:$4 sm:$0xff]  }
 0x3b3   :  { %10971 = vmatpush1.bf16.msra.mxu0 %v18452_v14  ;;  %v18523_v14 = vld [vmem:[#allocation5 + $0xe7c] ss:$40 sps:$4 sm:$0xff]  }
 0x3b4   :  { %11381 = vmatpush1.bf16.msra.mxu1 %v18455_v16  ;;  %10972 = vmatprep.subr.bf16.mxu0 %v18460_v17  ;;  %v18518_v16 = vld [vmem:[#allocation5 + $0xe70] ss:$40 sps:$4 sm:$0xff]  }
 0x3b5   :  { %11382 = vmatprep.subr.bf16.mxu1 %v18463_v23  ;;  %v18521_v17 = vld [vmem:[#allocation5 + $0xe78] ss:$40 sps:$4 sm:$0xff]   ;;  %v18526_v23 = vld [vmem:[#allocation5 + $0xec4] ss:$40 sps:$4 sm:$0xff]  }
 0x3b7   :  { %10973 = vmatpush1.bf16.msra.mxu0 %v18458_v44  ;;  %v18529_v44 = vld [vmem:[#allocation5 + $0xecc] ss:$40 sps:$4 sm:$0xff]  }
 0x3b8   :  { %11383 = vmatpush1.bf16.msra.mxu1 %v18461_v47  ;;  %10974 = vmatprep.subr.bf16.mxu0 %v18466_v25  ;;  %v18524_v47 = vld [vmem:[#allocation5 + $0xec0] ss:$40 sps:$4 sm:$0xff]  }
 0x3b9   :  { %11384 = vmatprep.subr.bf16.mxu1 %v18469_v27  ;;  %v18527_v25 = vld [vmem:[#allocation5 + $0xec8] ss:$40 sps:$4 sm:$0xff]   ;;  %v18532_v27 = vld [vmem:[#allocation5 + $0xf14] ss:$40 sps:$4 sm:$0xff]  }
 0x3bb   :  { %10975 = vmatpush1.bf16.msra.mxu0 %v18464_v28  ;;  %v18535_v28 = vld [vmem:[#allocation5 + $0xf1c] ss:$40 sps:$4 sm:$0xff]  }
 0x3bc   :  { %11385 = vmatpush1.bf16.msra.mxu1 %v18467_v53  ;;  %10976 = vmatprep.subr.bf16.mxu0 %v18472_v62  ;;  %v18530_v53 = vld [vmem:[#allocation5 + $0xf10] ss:$40 sps:$4 sm:$0xff]  }
 0x3bd   :  { %11386 = vmatprep.subr.bf16.mxu1 %v18475_v43  ;;  %v18533_v62 = vld [vmem:[#allocation5 + $0xf18] ss:$40 sps:$4 sm:$0xff]   ;;  %v18538_v43 = vld [vmem:[#allocation5 + $0xf64] ss:$40 sps:$4 sm:$0xff]  }
 0x3bf   :  { %10977 = vmatpush1.bf16.msra.mxu0 %v18470_v48  ;;  %v18541_v48 = vld [vmem:[#allocation5 + $0xf6c] ss:$40 sps:$4 sm:$0xff]  }
 0x3c0   :  { %11387 = vmatpush1.bf16.msra.mxu1 %v18473_v32  ;;  %10978 = vmatprep.subr.bf16.mxu0 %v18478_v33  ;;  %v18536_v32 = vld [vmem:[#allocation5 + $0xf60] ss:$40 sps:$4 sm:$0xff]  }
 0x3c1   :  { %11388 = vmatprep.subr.bf16.mxu1 %v18481_v34  ;;  %v18539_v33 = vld [vmem:[#allocation5 + $0xf68] ss:$40 sps:$4 sm:$0xff]   ;;  %v18544_v34 = vld [vmem:[#allocation5 + $0xfb4] ss:$40 sps:$4 sm:$0xff]  }
 0x3c3   :  { %10979 = vmatpush1.bf16.msra.mxu0 %v18476_v35  ;;  %v18547_v35 = vld [vmem:[#allocation5 + $0xfbc] ss:$40 sps:$4 sm:$0xff]  }
 0x3c4   :  { %11389 = vmatpush1.bf16.msra.mxu1 %v18479_v36  ;;  %10980 = vmatprep.subr.bf16.mxu0 %v18484_v37  ;;  %v18542_v36 = vld [vmem:[#allocation5 + $0xfb0] ss:$40 sps:$4 sm:$0xff]  }
 0x3c5   :  { %11390 = vmatprep.subr.bf16.mxu1 %v18487_v42  ;;  %v18545_v37 = vld [vmem:[#allocation5 + $0xfb8] ss:$40 sps:$4 sm:$0xff]   ;;  %v18550_v42 = vld [vmem:[#allocation5 + $0x1004] ss:$40 sps:$4 sm:$0xff]  }
 0x3c7   :  { %10981 = vmatpush1.bf16.msra.mxu0 %v18482_v49  ;;  %v18553_v49 = vld [vmem:[#allocation5 + $0x100c] ss:$40 sps:$4 sm:$0xff]  }
 0x3c8   :  { %11391 = vmatpush1.bf16.msra.mxu1 %v18485_v50  ;;  %10982 = vmatprep.subr.bf16.mxu0 %v18490_v51  ;;  %v18548_v50 = vld [vmem:[#allocation5 + $0x1000] ss:$40 sps:$4 sm:$0xff]  }
 0x3c9   :  { %11392 = vmatprep.subr.bf16.mxu1 %v18493_v54  ;;  %v18551_v51 = vld [vmem:[#allocation5 + $0x1008] ss:$40 sps:$4 sm:$0xff]   ;;  %v18556_v54 = vld [vmem:[#allocation5 + $0x1054] ss:$40 sps:$4 sm:$0xff]  }
 0x3cb   :  { %10983 = vmatpush1.bf16.msra.mxu0 %v18488_v56  ;;  %v18559_v56 = vld [vmem:[#allocation5 + $0x105c] ss:$40 sps:$4 sm:$0xff]  }
 0x3cc   :  { %11393 = vmatpush1.bf16.msra.mxu1 %v18491_v57  ;;  %10984 = vmatprep.subr.bf16.mxu0 %v18496_v58  ;;  %v18554_v57 = vld [vmem:[#allocation5 + $0x1050] ss:$40 sps:$4 sm:$0xff]  }
 0x3cd   :  { %11394 = vmatprep.subr.bf16.mxu1 %v18499_v18  ;;  %v18557_v58 = vld [vmem:[#allocation5 + $0x1058] ss:$40 sps:$4 sm:$0xff]   ;;  %v18562_v18 = vld [vmem:[#allocation5 + $0x10a4] ss:$40 sps:$4 sm:$0xff]  }
 0x3cf   :  { %10985 = vmatpush1.bf16.msra.mxu0 %v18494_v10  ;;  %v18565_v10 = vld [vmem:[#allocation5 + $0x10ac] ss:$40 sps:$4 sm:$0xff]  }
 0x3d0   :  { %11395 = vmatpush1.bf16.msra.mxu1 %v18497_v11  ;;  %10986 = vmatprep.subr.bf16.mxu0 %v18502_v63  ;;  %v18560_v11 = vld [vmem:[#allocation5 + $0x10a0] ss:$40 sps:$4 sm:$0xff]  }
 0x3d1   :  { %11396 = vmatprep.subr.bf16.mxu1 %v18505_v0  ;;  %v18563_v63 = vld [vmem:[#allocation5 + $0x10a8] ss:$40 sps:$4 sm:$0xff]   ;;  %v18568_v0 = vld [vmem:[#allocation5 + $0x10f4] ss:$40 sps:$4 sm:$0xff]  }
 0x3d3   :  { %10987 = vmatpush1.bf16.msra.mxu0 %v18500_v3  ;;  %v18571_v3 = vld [vmem:[#allocation5 + $0x10fc] ss:$40 sps:$4 sm:$0xff]  }
 0x3d4   :  { %11397 = vmatpush1.bf16.msra.mxu1 %v18503_v4  ;;  %10988 = vmatprep.subr.bf16.mxu0 %v18508_v5 }
 0x3d5   :  { %11398 = vmatprep.subr.bf16.mxu1 %v18511_v7 }
 0x3d7   :  { %10989 = vmatpush1.bf16.msra.mxu0 %v18506_v20 }
 0x3d8   :  { %11399 = vmatpush1.bf16.msra.mxu1 %v18509_v22  ;;  %10990 = vmatprep.subr.bf16.mxu0 %v18514_v8 }
 0x3d9   :  { %11400 = vmatprep.subr.bf16.mxu1 %v18517_v40  ;;  %v18566_v40 = vld [vmem:[#allocation5 + $0x10f0] ss:$40 sps:$4 sm:$0xff]  }
 0x3db   :  { %10991 = vmatpush1.bf16.msra.mxu0 %v18512_v41  ;;  %v18569_v41 = vld [vmem:[#allocation5 + $0x10f8] ss:$40 sps:$4 sm:$0xff]  }
 0x3dc   :  { %11401 = vmatpush1.bf16.msra.mxu1 %v18515_v12  ;;  %10992 = vmatprep.subr.bf16.mxu0 %v18520_v13 }
 0x3dd   :  { %11402 = vmatprep.subr.bf16.mxu1 %v18523_v14  ;;  %v18574_v14 = vld [vmem:[#allocation5 + $0x1144] ss:$40 sps:$4 sm:$0xff]  }
 0x3df   :  { %10993 = vmatpush1.bf16.msra.mxu0 %v18518_v16  ;;  %v18577_v16 = vld [vmem:[#allocation5 + $0x114c] ss:$40 sps:$4 sm:$0xff]  }
 0x3e0   :  { %11403 = vmatpush1.bf16.msra.mxu1 %v18521_v17  ;;  %10994 = vmatprep.subr.bf16.mxu0 %v18526_v23  ;;  %v18572_v17 = vld [vmem:[#allocation5 + $0x1140] ss:$40 sps:$4 sm:$0xff]  }
 0x3e1   :  { %11404 = vmatprep.subr.bf16.mxu1 %v18529_v44  ;;  %v18575_v23 = vld [vmem:[#allocation5 + $0x1148] ss:$40 sps:$4 sm:$0xff]   ;;  %v18580_v44 = vld [vmem:[#allocation5 + $0x1194] ss:$40 sps:$4 sm:$0xff]  }
 0x3e3   :  { %10995 = vmatpush1.bf16.msra.mxu0 %v18524_v47  ;;  %v18583_v47 = vld [vmem:[#allocation5 + $0x119c] ss:$40 sps:$4 sm:$0xff]  }
 0x3e4   :  { %11405 = vmatpush1.bf16.msra.mxu1 %v18527_v25  ;;  %11005 = vmatprep.subr.bf16.mxu0 %v18532_v27  ;;  %v18578_v25 = vld [vmem:[#allocation5 + $0x1190] ss:$40 sps:$4 sm:$0xff]  }
 0x3e5   :  { %11415 = vmatprep.subr.bf16.mxu1 %v18535_v28  ;;  %v18581_v27 = vld [vmem:[#allocation5 + $0x1198] ss:$40 sps:$4 sm:$0xff]   ;;  %v18586_v28 = vld [vmem:[#allocation5 + $0x11e4] ss:$40 sps:$4 sm:$0xff]  }
 0x3e6   :  { %10997 = vmatmul.mubr.bf16.vlgmr.msra.gmra.mrb[4].mxu0 %v20712_v52 }
 0x3e7   :  { %11407 = vmatmul.mubr.bf16.vlgmr.msra.gmra.mrb[4].mxu1 %v20712_v52  ;;  %11006 = vmatpush1.bf16.msra.mxu0 %v18530_v53  ;;  %v18589_v53 = vld [vmem:[#allocation5 + $0x11ec] ss:$40 sps:$4 sm:$0xff]  }
 0x3e8   :  { %11416 = vmatpush1.bf16.msra.mxu1 %v18533_v62  ;;  %11007 = vmatprep.subr.bf16.mxu0 %v18538_v43  ;;  %v18584_v62 = vld [vmem:[#allocation5 + $0x11e0] ss:$40 sps:$4 sm:$0xff]  }
 0x3e9   :  { %11417 = vmatprep.subr.bf16.mxu1 %v18541_v48  ;;  %11037 = vmatprep.mubr.bf16.mxu0 %v20714_v38  ;;  %v18587_v43 = vld [vmem:[#allocation5 + $0x11e8] ss:$40 sps:$4 sm:$0xff]   ;;  %v18592_v48 = vld [vmem:[#allocation5 + $0x1234] ss:$40 sps:$4 sm:$0xff]  }
 0x3ea   :  { %11447 = vmatprep.mubr.bf16.mxu1 %v20714_v38 }
 0x3eb   :  { %11008 = vmatpush1.bf16.msra.mxu0 %v18536_v32  ;;  %v18595_v32 = vld [vmem:[#allocation5 + $0x123c] ss:$40 sps:$4 sm:$0xff]  }
 0x3ec   :  { %11418 = vmatpush1.bf16.msra.mxu1 %v18539_v33  ;;  %11009 = vmatprep.subr.bf16.mxu0 %v18544_v34  ;;  %v18590_v33 = vld [vmem:[#allocation5 + $0x1230] ss:$40 sps:$4 sm:$0xff]  }
 0x3ed   :  { %11419 = vmatprep.subr.bf16.mxu1 %v18547_v35  ;;  %v18593_v34 = vld [vmem:[#allocation5 + $0x1238] ss:$40 sps:$4 sm:$0xff]   ;;  %v18598_v35 = vld [vmem:[#allocation5 + $0x1284] ss:$40 sps:$4 sm:$0xff]  }
 0x3ef   :  { %11010 = vmatpush1.bf16.msra.mxu0 %v18542_v36  ;;  %v18601_v36 = vld [vmem:[#allocation5 + $0x128c] ss:$40 sps:$4 sm:$0xff]  }
 0x3f0   :  { %11420 = vmatpush1.bf16.msra.mxu1 %v18545_v37  ;;  %11011 = vmatprep.subr.bf16.mxu0 %v18550_v42  ;;  %v18596_v37 = vld [vmem:[#allocation5 + $0x1280] ss:$40 sps:$4 sm:$0xff]  }
 0x3f1   :  { %11421 = vmatprep.subr.bf16.mxu1 %v18553_v49  ;;  %v18599_v42 = vld [vmem:[#allocation5 + $0x1288] ss:$40 sps:$4 sm:$0xff]   ;;  %v18604_v49 = vld [vmem:[#allocation5 + $0x12d4] ss:$40 sps:$4 sm:$0xff]  }
 0x3f3   :  { %11012 = vmatpush1.bf16.msra.mxu0 %v18548_v50  ;;  %v18607_v50 = vld [vmem:[#allocation5 + $0x12dc] ss:$40 sps:$4 sm:$0xff]  }
 0x3f4   :  { %11422 = vmatpush1.bf16.msra.mxu1 %v18551_v51  ;;  %11013 = vmatprep.subr.bf16.mxu0 %v18556_v54  ;;  %v18602_v51 = vld [vmem:[#allocation5 + $0x12d0] ss:$40 sps:$4 sm:$0xff]  }
 0x3f5   :  { %11423 = vmatprep.subr.bf16.mxu1 %v18559_v56  ;;  %v18605_v54 = vld [vmem:[#allocation5 + $0x12d8] ss:$40 sps:$4 sm:$0xff]   ;;  %v18610_v56 = vld [vmem:[#allocation5 + $0x1324] ss:$40 sps:$4 sm:$0xff]  }
 0x3f7   :  { %11014 = vmatpush1.bf16.msra.mxu0 %v18554_v57  ;;  %v18613_v57 = vld [vmem:[#allocation5 + $0x132c] ss:$40 sps:$4 sm:$0xff]  }
 0x3f8   :  { %11424 = vmatpush1.bf16.msra.mxu1 %v18557_v58  ;;  %11015 = vmatprep.subr.bf16.mxu0 %v18562_v18  ;;  %v18608_v58 = vld [vmem:[#allocation5 + $0x1320] ss:$40 sps:$4 sm:$0xff]  }
 0x3f9   :  { %11425 = vmatprep.subr.bf16.mxu1 %v18565_v10  ;;  %v20848_v4 = vpop.f32.mrb[0].mxu0  ;;  %v18611_v18 = vld [vmem:[#allocation5 + $0x1328] ss:$40 sps:$4 sm:$0xff]   ;;  %v18616_v10 = vld [vmem:[#allocation5 + $0x1374] ss:$40 sps:$4 sm:$0xff]  }
 0x3fa   :  { %v20850_v5 = vpop.f32.mrb[0].mxu1  ;;  %v20852_v7 = vpop.f32.mrb[1].mxu0 }
 0x3fb   :  { %v20854_v20 = vpop.f32.mrb[1].mxu1  ;;  %v10469_v22 = vpop.f32.mrb[2].mxu0  ;;  %11016 = vmatpush1.bf16.msra.mxu0 %v18560_v11  ;;  %v18619_v11 = vld [vmem:[#allocation5 + $0x137c] ss:$40 sps:$4 sm:$0xff]  }
 0x3fc   :  { %v10879_v8 = vpop.f32.mrb[2].mxu1  ;;  %11426 = vmatpush1.bf16.msra.mxu1 %v18563_v63  ;;  %v10470_v12 = vpop.f32.mrb[3].mxu0  ;;  %11017 = vmatprep.subr.bf16.mxu0 %v18568_v0  ;;  %v18614_v63 = vld [vmem:[#allocation5 + $0x1370] ss:$40 sps:$4 sm:$0xff]   ;;  %v18625_v22 = vld [vmem:[#allocation5 + $0x13cc] ss:$40 sps:$4 sm:$0xff]  }
 0x3fd   :  { %v10880_v13 = vpop.f32.mrb[3].mxu1  ;;  %11427 = vmatprep.subr.bf16.mxu1 %v18571_v3  ;;  %v18617_v0 = vld [vmem:[#allocation5 + $0x1378] ss:$40 sps:$4 sm:$0xff]   ;;  %v18622_v3 = vld [vmem:[#allocation5 + $0x13c4] ss:$40 sps:$4 sm:$0xff]  }
 0x3fe   :  { %v18620_v8 = vld [vmem:[#allocation5 + $0x13c0] ss:$40 sps:$4 sm:$0xff]   ;;  %v18631_v12 = vld [vmem:[#allocation5 + $0x141c] ss:$40 sps:$4 sm:$0xff]   ;;  %v18626_v13 = vld [vmem:[#allocation5 + $0x1410] ss:$40 sps:$4 sm:$0xff]  }
 0x3ff   :  { %11018 = vmatpush1.bf16.msra.mxu0 %v18566_v40  ;;  %v18623_v40 = vld [vmem:[#allocation5 + $0x13c8] ss:$40 sps:$4 sm:$0xff]  }
 0x400   :  { %11428 = vmatpush1.bf16.msra.mxu1 %v18569_v41  ;;  %11019 = vmatprep.subr.bf16.mxu0 %v18574_v14  ;;  %v18628_v41 = vld [vmem:[#allocation5 + $0x1414] ss:$40 sps:$4 sm:$0xff]   ;;  %v18629_v14 = vld [vmem:[#allocation5 + $0x1418] ss:$40 sps:$4 sm:$0xff]  }
 0x401   :  { %11429 = vmatprep.subr.bf16.mxu1 %v18577_v16  ;;  %v18634_v16 = vld [vmem:[#allocation5 + $0x1464] ss:$40 sps:$4 sm:$0xff]  }
 0x403   :  { %11020 = vmatpush1.bf16.msra.mxu0 %v18572_v17  ;;  %v18637_v17 = vld [vmem:[#allocation5 + $0x146c] ss:$40 sps:$4 sm:$0xff]  }
 0x404   :  { %11430 = vmatpush1.bf16.msra.mxu1 %v18575_v23  ;;  %11021 = vmatprep.subr.bf16.mxu0 %v18580_v44  ;;  %v18632_v23 = vld [vmem:[#allocation5 + $0x1460] ss:$40 sps:$4 sm:$0xff]  }
 0x405   :  { %11431 = vmatprep.subr.bf16.mxu1 %v18583_v47  ;;  %v18635_v44 = vld [vmem:[#allocation5 + $0x1468] ss:$40 sps:$4 sm:$0xff]   ;;  %v18640_v47 = vld [vmem:[#allocation5 + $0x14b4] ss:$40 sps:$4 sm:$0xff]  }
 0x407   :  { %11022 = vmatpush1.bf16.msra.mxu0 %v18578_v25  ;;  %v18643_v25 = vld [vmem:[#allocation5 + $0x14bc] ss:$40 sps:$4 sm:$0xff]  }
 0x408   :  { %11432 = vmatpush1.bf16.msra.mxu1 %v18581_v27  ;;  %11023 = vmatprep.subr.bf16.mxu0 %v18586_v28  ;;  %v18638_v27 = vld [vmem:[#allocation5 + $0x14b0] ss:$40 sps:$4 sm:$0xff]  }
 0x409   :  { %11433 = vmatprep.subr.bf16.mxu1 %v18589_v53  ;;  %v18641_v28 = vld [vmem:[#allocation5 + $0x14b8] ss:$40 sps:$4 sm:$0xff]   ;;  %v18646_v53 = vld [vmem:[#allocation5 + $0x1504] ss:$40 sps:$4 sm:$0xff]  }
 0x40b   :  { %11024 = vmatpush1.bf16.msra.mxu0 %v18584_v62  ;;  %v18649_v62 = vld [vmem:[#allocation5 + $0x150c] ss:$40 sps:$4 sm:$0xff]  }
 0x40c   :  { %11434 = vmatpush1.bf16.msra.mxu1 %v18587_v43  ;;  %11025 = vmatprep.subr.bf16.mxu0 %v18592_v48  ;;  %v18644_v43 = vld [vmem:[#allocation5 + $0x1500] ss:$40 sps:$4 sm:$0xff]  }
 0x40d   :  { %11435 = vmatprep.subr.bf16.mxu1 %v18595_v32  ;;  %v18647_v48 = vld [vmem:[#allocation5 + $0x1508] ss:$40 sps:$4 sm:$0xff]   ;;  %v18652_v32 = vld [vmem:[#allocation5 + $0x1554] ss:$40 sps:$4 sm:$0xff]  }
 0x40f   :  { %11026 = vmatpush1.bf16.msra.mxu0 %v18590_v33  ;;  %v18655_v33 = vld [vmem:[#allocation5 + $0x155c] ss:$40 sps:$4 sm:$0xff]  }
 0x410   :  { %11436 = vmatpush1.bf16.msra.mxu1 %v18593_v34  ;;  %11027 = vmatprep.subr.bf16.mxu0 %v18598_v35  ;;  %v18650_v34 = vld [vmem:[#allocation5 + $0x1550] ss:$40 sps:$4 sm:$0xff]  }
 0x411   :  { %11437 = vmatprep.subr.bf16.mxu1 %v18601_v36  ;;  %v18653_v35 = vld [vmem:[#allocation5 + $0x1558] ss:$40 sps:$4 sm:$0xff]   ;;  %v18658_v36 = vld [vmem:[#allocation5 + $0x15a4] ss:$40 sps:$4 sm:$0xff]  }
 0x413   :  { %11028 = vmatpush1.bf16.msra.mxu0 %v18596_v37  ;;  %v18661_v37 = vld [vmem:[#allocation5 + $0x15ac] ss:$40 sps:$4 sm:$0xff]  }
 0x414   :  { %11438 = vmatpush1.bf16.msra.mxu1 %v18599_v42  ;;  %11029 = vmatprep.subr.bf16.mxu0 %v18604_v49  ;;  %v18656_v42 = vld [vmem:[#allocation5 + $0x15a0] ss:$40 sps:$4 sm:$0xff]  }
 0x415   :  { %11439 = vmatprep.subr.bf16.mxu1 %v18607_v50  ;;  %v18659_v49 = vld [vmem:[#allocation5 + $0x15a8] ss:$40 sps:$4 sm:$0xff]   ;;  %v18664_v50 = vld [vmem:[#allocation5 + $0x15f4] ss:$40 sps:$4 sm:$0xff]  }
 0x417   :  { %11030 = vmatpush1.bf16.msra.mxu0 %v18602_v51  ;;  %v18667_v51 = vld [vmem:[#allocation5 + $0x15fc] ss:$40 sps:$4 sm:$0xff]  }
 0x418   :  { %11440 = vmatpush1.bf16.msra.mxu1 %v18605_v54  ;;  %11031 = vmatprep.subr.bf16.mxu0 %v18610_v56  ;;  %v18662_v54 = vld [vmem:[#allocation5 + $0x15f0] ss:$40 sps:$4 sm:$0xff]  }
 0x419   :  { %11441 = vmatprep.subr.bf16.mxu1 %v18613_v57  ;;  %v18665_v56 = vld [vmem:[#allocation5 + $0x15f8] ss:$40 sps:$4 sm:$0xff]   ;;  %v18670_v57 = vld [vmem:[#allocation5 + $0x1644] ss:$40 sps:$4 sm:$0xff]  }
 0x41b   :  { %11032 = vmatpush1.bf16.msra.mxu0 %v18608_v58  ;;  %v18673_v58 = vld [vmem:[#allocation5 + $0x164c] ss:$40 sps:$4 sm:$0xff]  }
 0x41c   :  { %11442 = vmatpush1.bf16.msra.mxu1 %v18611_v18  ;;  %11033 = vmatprep.subr.bf16.mxu0 %v18616_v10  ;;  %v18668_v18 = vld [vmem:[#allocation5 + $0x1640] ss:$40 sps:$4 sm:$0xff]  }
 0x41d   :  { %11443 = vmatprep.subr.bf16.mxu1 %v18619_v11  ;;  %v18671_v10 = vld [vmem:[#allocation5 + $0x1648] ss:$40 sps:$4 sm:$0xff]   ;;  %v18676_v11 = vld [vmem:[#allocation5 + $0x1694] ss:$40 sps:$4 sm:$0xff]  }
 0x41f   :  { %11034 = vmatpush1.bf16.msra.mxu0 %v18614_v63  ;;  %v18679_v63 = vld [vmem:[#allocation5 + $0x169c] ss:$40 sps:$4 sm:$0xff]  }
 0x420   :  { %11444 = vmatpush1.bf16.msra.mxu1 %v18617_v0  ;;  %11035 = vmatprep.subr.bf16.mxu0 %v18622_v3  ;;  %v18674_v0 = vld [vmem:[#allocation5 + $0x1690] ss:$40 sps:$4 sm:$0xff]  }
 0x421   :  { %11445 = vmatprep.subr.bf16.mxu1 %v18625_v22  ;;  %v18677_v3 = vld [vmem:[#allocation5 + $0x1698] ss:$40 sps:$4 sm:$0xff]   ;;  %v18682_v22 = vld [vmem:[#allocation5 + $0x16e4] ss:$40 sps:$4 sm:$0xff]  }
 0x423   :  { %11036 = vmatpush1.bf16.msra.mxu0 %v18620_v8  ;;  %v18685_v8 = vld [vmem:[#allocation5 + $0x16ec] ss:$40 sps:$4 sm:$0xff]  }
 0x424   :  { %11446 = vmatpush1.bf16.msra.mxu1 %v18623_v40  ;;  %11046 = vmatprep.subr.bf16.mxu0 %v18628_v41  ;;  %v18680_v40 = vld [vmem:[#allocation5 + $0x16e0] ss:$40 sps:$4 sm:$0xff]  }
 0x425   :  { %11456 = vmatprep.subr.bf16.mxu1 %v18631_v12  ;;  %v18683_v41 = vld [vmem:[#allocation5 + $0x16e8] ss:$40 sps:$4 sm:$0xff]   ;;  %v18688_v12 = vld [vmem:[#allocation5 + $0x1734] ss:$40 sps:$4 sm:$0xff]  }
 0x426   :  { %11038 = vmatmul.mubr.bf16.vlgmr.msra.gmra.mrb[4].mxu0 %v20730_v6 }
 0x427   :  { %11448 = vmatmul.mubr.bf16.vlgmr.msra.gmra.mrb[4].mxu1 %v20730_v6  ;;  %11047 = vmatpush1.bf16.msra.mxu0 %v18626_v13  ;;  %v18691_v13 = vld [vmem:[#allocation5 + $0x173c] ss:$40 sps:$4 sm:$0xff]  }
 0x428   :  { %11457 = vmatpush1.bf16.msra.mxu1 %v18629_v14  ;;  %11048 = vmatprep.subr.bf16.mxu0 %v18634_v16  ;;  %v18686_v14 = vld [vmem:[#allocation5 + $0x1730] ss:$40 sps:$4 sm:$0xff]  }
 0x429   :  { %11458 = vmatprep.subr.bf16.mxu1 %v18637_v17  ;;  %11078 = vmatprep.mubr.bf16.mxu0 %v20732_v9  ;;  %v18689_v16 = vld [vmem:[#allocation5 + $0x1738] ss:$40 sps:$4 sm:$0xff]   ;;  %v18694_v17 = vld [vmem:[#allocation5 + $0x1784] ss:$40 sps:$4 sm:$0xff]  }
 0x42a   :  { %11488 = vmatprep.mubr.bf16.mxu1 %v20732_v9 }
 0x42b   :  { %11049 = vmatpush1.bf16.msra.mxu0 %v18632_v23  ;;  %v18697_v23 = vld [vmem:[#allocation5 + $0x178c] ss:$40 sps:$4 sm:$0xff]  }
 0x42c   :  { %11459 = vmatpush1.bf16.msra.mxu1 %v18635_v44  ;;  %11050 = vmatprep.subr.bf16.mxu0 %v18640_v47  ;;  %v18692_v44 = vld [vmem:[#allocation5 + $0x1780] ss:$40 sps:$4 sm:$0xff]  }
 0x42d   :  { %11460 = vmatprep.subr.bf16.mxu1 %v18643_v25  ;;  %v18695_v47 = vld [vmem:[#allocation5 + $0x1788] ss:$40 sps:$4 sm:$0xff]   ;;  %v18700_v25 = vld [vmem:[#allocation5 + $0x17d4] ss:$40 sps:$4 sm:$0xff]  }
 0x42f   :  { %11051 = vmatpush1.bf16.msra.mxu0 %v18638_v27  ;;  %v18703_v27 = vld [vmem:[#allocation5 + $0x17dc] ss:$40 sps:$4 sm:$0xff]  }
 0x430   :  { %11461 = vmatpush1.bf16.msra.mxu1 %v18641_v28  ;;  %11052 = vmatprep.subr.bf16.mxu0 %v18646_v53  ;;  %v18698_v28 = vld [vmem:[#allocation5 + $0x17d0] ss:$40 sps:$4 sm:$0xff]  }
 0x431   :  { %11462 = vmatprep.subr.bf16.mxu1 %v18649_v62  ;;  %v18701_v53 = vld [vmem:[#allocation5 + $0x17d8] ss:$40 sps:$4 sm:$0xff]   ;;  %v18706_v62 = vld [vmem:[#allocation5 + $0x1824] ss:$40 sps:$4 sm:$0xff]  }
 0x433   :  { %11053 = vmatpush1.bf16.msra.mxu0 %v18644_v43  ;;  %v18709_v43 = vld [vmem:[#allocation5 + $0x182c] ss:$40 sps:$4 sm:$0xff]  }
 0x434   :  { %11463 = vmatpush1.bf16.msra.mxu1 %v18647_v48  ;;  %11054 = vmatprep.subr.bf16.mxu0 %v18652_v32  ;;  %v18704_v48 = vld [vmem:[#allocation5 + $0x1820] ss:$40 sps:$4 sm:$0xff]  }
 0x435   :  { %11464 = vmatprep.subr.bf16.mxu1 %v18655_v33  ;;  %v18707_v32 = vld [vmem:[#allocation5 + $0x1828] ss:$40 sps:$4 sm:$0xff]   ;;  %v18712_v33 = vld [vmem:[#allocation5 + $0x1874] ss:$40 sps:$4 sm:$0xff]  }
 0x437   :  { %11055 = vmatpush1.bf16.msra.mxu0 %v18650_v34  ;;  %v18715_v34 = vld [vmem:[#allocation5 + $0x187c] ss:$40 sps:$4 sm:$0xff]  }
 0x438   :  { %11465 = vmatpush1.bf16.msra.mxu1 %v18653_v35  ;;  %11056 = vmatprep.subr.bf16.mxu0 %v18658_v36  ;;  %v18710_v35 = vld [vmem:[#allocation5 + $0x1870] ss:$40 sps:$4 sm:$0xff]  }
 0x439   :  { %11466 = vmatprep.subr.bf16.mxu1 %v18661_v37  ;;  %v18713_v36 = vld [vmem:[#allocation5 + $0x1878] ss:$40 sps:$4 sm:$0xff]   ;;  %v18718_v37 = vld [vmem:[#allocation5 + $0x18c4] ss:$40 sps:$4 sm:$0xff]  }
 0x43b   :  { %11057 = vmatpush1.bf16.msra.mxu0 %v18656_v42  ;;  %v18721_v42 = vld [vmem:[#allocation5 + $0x18cc] ss:$40 sps:$4 sm:$0xff]  }
 0x43c   :  { %11467 = vmatpush1.bf16.msra.mxu1 %v18659_v49  ;;  %11058 = vmatprep.subr.bf16.mxu0 %v18664_v50  ;;  %v18716_v49 = vld [vmem:[#allocation5 + $0x18c0] ss:$40 sps:$4 sm:$0xff]  }
 0x43d   :  { %11468 = vmatprep.subr.bf16.mxu1 %v18667_v51  ;;  %v18719_v50 = vld [vmem:[#allocation5 + $0x18c8] ss:$40 sps:$4 sm:$0xff]   ;;  %v18724_v51 = vld [vmem:[#allocation5 + $0x1914] ss:$40 sps:$4 sm:$0xff]  }
 0x43f   :  { %11059 = vmatpush1.bf16.msra.mxu0 %v18662_v54  ;;  %v18727_v54 = vld [vmem:[#allocation5 + $0x191c] ss:$40 sps:$4 sm:$0xff]  }
 0x440   :  { %11469 = vmatpush1.bf16.msra.mxu1 %v18665_v56  ;;  %11060 = vmatprep.subr.bf16.mxu0 %v18670_v57  ;;  %v18722_v56 = vld [vmem:[#allocation5 + $0x1910] ss:$40 sps:$4 sm:$0xff]  }
 0x441   :  { %11470 = vmatprep.subr.bf16.mxu1 %v18673_v58  ;;  %v18725_v57 = vld [vmem:[#allocation5 + $0x1918] ss:$40 sps:$4 sm:$0xff]   ;;  %v18730_v58 = vld [vmem:[#allocation5 + $0x1964] ss:$40 sps:$4 sm:$0xff]  }
 0x443   :  { %11061 = vmatpush1.bf16.msra.mxu0 %v18668_v18  ;;  %v18733_v18 = vld [vmem:[#allocation5 + $0x196c] ss:$40 sps:$4 sm:$0xff]  }
 0x444   :  { %11471 = vmatpush1.bf16.msra.mxu1 %v18671_v10  ;;  %11062 = vmatprep.subr.bf16.mxu0 %v18676_v11  ;;  %v18728_v10 = vld [vmem:[#allocation5 + $0x1960] ss:$40 sps:$4 sm:$0xff]  }
 0x445   :  { %11472 = vmatprep.subr.bf16.mxu1 %v18679_v63  ;;  %v18731_v11 = vld [vmem:[#allocation5 + $0x1968] ss:$40 sps:$4 sm:$0xff]   ;;  %v18736_v63 = vld [vmem:[#allocation5 + $0x19b4] ss:$40 sps:$4 sm:$0xff]  }
 0x447   :  { %11063 = vmatpush1.bf16.msra.mxu0 %v18674_v0  ;;  %v18739_v0 = vld [vmem:[#allocation5 + $0x19bc] ss:$40 sps:$4 sm:$0xff]  }
 0x448   :  { %11473 = vmatpush1.bf16.msra.mxu1 %v18677_v3  ;;  %11064 = vmatprep.subr.bf16.mxu0 %v18682_v22  ;;  %v18734_v3 = vld [vmem:[#allocation5 + $0x19b0] ss:$40 sps:$4 sm:$0xff]  }
 0x449   :  { %11474 = vmatprep.subr.bf16.mxu1 %v18685_v8  ;;  %v18737_v22 = vld [vmem:[#allocation5 + $0x19b8] ss:$40 sps:$4 sm:$0xff]   ;;  %v18742_v8 = vld [vmem:[#allocation5 + $0x1a04] ss:$40 sps:$4 sm:$0xff]  }
 0x44b   :  { %11065 = vmatpush1.bf16.msra.mxu0 %v18680_v40  ;;  %v18745_v40 = vld [vmem:[#allocation5 + $0x1a0c] ss:$40 sps:$4 sm:$0xff]  }
 0x44c   :  { %11475 = vmatpush1.bf16.msra.mxu1 %v18683_v41  ;;  %11066 = vmatprep.subr.bf16.mxu0 %v18688_v12  ;;  %v18740_v41 = vld [vmem:[#allocation5 + $0x1a00] ss:$40 sps:$4 sm:$0xff]  }
 0x44d   :  { %11476 = vmatprep.subr.bf16.mxu1 %v18691_v13  ;;  %v18743_v12 = vld [vmem:[#allocation5 + $0x1a08] ss:$40 sps:$4 sm:$0xff]   ;;  %v18748_v13 = vld [vmem:[#allocation5 + $0x1a54] ss:$40 sps:$4 sm:$0xff]  }
 0x44f   :  { %11067 = vmatpush1.bf16.msra.mxu0 %v18686_v14  ;;  %v18751_v14 = vld [vmem:[#allocation5 + $0x1a5c] ss:$40 sps:$4 sm:$0xff]  }
 0x450   :  { %11477 = vmatpush1.bf16.msra.mxu1 %v18689_v16  ;;  %11068 = vmatprep.subr.bf16.mxu0 %v18694_v17  ;;  %v18746_v16 = vld [vmem:[#allocation5 + $0x1a50] ss:$40 sps:$4 sm:$0xff]  }
 0x451   :  { %11478 = vmatprep.subr.bf16.mxu1 %v18697_v23  ;;  %v18749_v17 = vld [vmem:[#allocation5 + $0x1a58] ss:$40 sps:$4 sm:$0xff]   ;;  %v18754_v23 = vld [vmem:[#allocation5 + $0x1aa4] ss:$40 sps:$4 sm:$0xff]  }
 0x453   :  { %11069 = vmatpush1.bf16.msra.mxu0 %v18692_v44  ;;  %v18757_v44 = vld [vmem:[#allocation5 + $0x1aac] ss:$40 sps:$4 sm:$0xff]  }
 0x454   :  { %11479 = vmatpush1.bf16.msra.mxu1 %v18695_v47  ;;  %11070 = vmatprep.subr.bf16.mxu0 %v18700_v25  ;;  %v18752_v47 = vld [vmem:[#allocation5 + $0x1aa0] ss:$40 sps:$4 sm:$0xff]  }
 0x455   :  { %11480 = vmatprep.subr.bf16.mxu1 %v18703_v27  ;;  %v18755_v25 = vld [vmem:[#allocation5 + $0x1aa8] ss:$40 sps:$4 sm:$0xff]   ;;  %v18760_v27 = vld [vmem:[#allocation5 + $0x1af4] ss:$40 sps:$4 sm:$0xff]  }
 0x457   :  { %11071 = vmatpush1.bf16.msra.mxu0 %v18698_v28  ;;  %v18763_v28 = vld [vmem:[#allocation5 + $0x1afc] ss:$40 sps:$4 sm:$0xff]  }
 0x458   :  { %11481 = vmatpush1.bf16.msra.mxu1 %v18701_v53  ;;  %11072 = vmatprep.subr.bf16.mxu0 %v18706_v62  ;;  %v18758_v53 = vld [vmem:[#allocation5 + $0x1af0] ss:$40 sps:$4 sm:$0xff]  }
 0x459   :  { %11482 = vmatprep.subr.bf16.mxu1 %v18709_v43  ;;  %v18761_v62 = vld [vmem:[#allocation5 + $0x1af8] ss:$40 sps:$4 sm:$0xff]   ;;  %v18766_v43 = vld [vmem:[#allocation5 + $0x1b44] ss:$40 sps:$4 sm:$0xff]  }
 0x45b   :  { %11073 = vmatpush1.bf16.msra.mxu0 %v18704_v48  ;;  %v18769_v48 = vld [vmem:[#allocation5 + $0x1b4c] ss:$40 sps:$4 sm:$0xff]  }
 0x45c   :  { %11483 = vmatpush1.bf16.msra.mxu1 %v18707_v32  ;;  %11074 = vmatprep.subr.bf16.mxu0 %v18712_v33  ;;  %v18764_v32 = vld [vmem:[#allocation5 + $0x1b40] ss:$40 sps:$4 sm:$0xff]  }
 0x45d   :  { %11484 = vmatprep.subr.bf16.mxu1 %v18715_v34  ;;  %v18767_v33 = vld [vmem:[#allocation5 + $0x1b48] ss:$40 sps:$4 sm:$0xff]   ;;  %v18772_v34 = vld [vmem:[#allocation5 + $0x1b94] ss:$40 sps:$4 sm:$0xff]  }
 0x45f   :  { %11075 = vmatpush1.bf16.msra.mxu0 %v18710_v35  ;;  %v18775_v35 = vld [vmem:[#allocation5 + $0x1b9c] ss:$40 sps:$4 sm:$0xff]  }
 0x460   :  { %11485 = vmatpush1.bf16.msra.mxu1 %v18713_v36  ;;  %11076 = vmatprep.subr.bf16.mxu0 %v18718_v37  ;;  %v18770_v36 = vld [vmem:[#allocation5 + $0x1b90] ss:$40 sps:$4 sm:$0xff]  }
 0x461   :  { %11486 = vmatprep.subr.bf16.mxu1 %v18721_v42  ;;  %v18773_v37 = vld [vmem:[#allocation5 + $0x1b98] ss:$40 sps:$4 sm:$0xff]   ;;  %v18778_v42 = vld [vmem:[#allocation5 + $0x1be4] ss:$40 sps:$4 sm:$0xff]  }
 0x463   :  { %11077 = vmatpush1.bf16.msra.mxu0 %v18716_v49  ;;  %v18781_v49 = vld [vmem:[#allocation5 + $0x1bec] ss:$40 sps:$4 sm:$0xff]  }
 0x464   :  { %11487 = vmatpush1.bf16.msra.mxu1 %v18719_v50  ;;  %11087 = vmatprep.subr.bf16.mxu0 %v18724_v51  ;;  %v18776_v50 = vld [vmem:[#allocation5 + $0x1be0] ss:$40 sps:$4 sm:$0xff]  }
 0x465   :  { %11497 = vmatprep.subr.bf16.mxu1 %v18727_v54  ;;  %v18779_v51 = vld [vmem:[#allocation5 + $0x1be8] ss:$40 sps:$4 sm:$0xff]   ;;  %v18784_v54 = vld [vmem:[#allocation5 + $0x1c34] ss:$40 sps:$4 sm:$0xff]  }
 0x466   :  { %11079 = vmatmul.mubr.bf16.vlgmr.msra.gmra.mrb[4].mxu0 %v20748_v26 }
 0x467   :  { %11489 = vmatmul.mubr.bf16.vlgmr.msra.gmra.mrb[4].mxu1 %v20748_v26  ;;  %11088 = vmatpush1.bf16.msra.mxu0 %v18722_v56  ;;  %v18787_v56 = vld [vmem:[#allocation5 + $0x1c3c] ss:$40 sps:$4 sm:$0xff]  }
 0x468   :  { %11498 = vmatpush1.bf16.msra.mxu1 %v18725_v57  ;;  %11089 = vmatprep.subr.bf16.mxu0 %v18730_v58  ;;  %v18782_v57 = vld [vmem:[#allocation5 + $0x1c30] ss:$40 sps:$4 sm:$0xff]  }
 0x469   :  { %11499 = vmatprep.subr.bf16.mxu1 %v18733_v18  ;;  %11119 = vmatprep.mubr.bf16.mxu0 %v20750_v30  ;;  %v18785_v58 = vld [vmem:[#allocation5 + $0x1c38] ss:$40 sps:$4 sm:$0xff]   ;;  %v18790_v18 = vld [vmem:[#allocation5 + $0x1c84] ss:$40 sps:$4 sm:$0xff]  }
 0x46a   :  { %11529 = vmatprep.mubr.bf16.mxu1 %v20750_v30 }
 0x46b   :  { %11090 = vmatpush1.bf16.msra.mxu0 %v18728_v10  ;;  %v18793_v10 = vld [vmem:[#allocation5 + $0x1c8c] ss:$40 sps:$4 sm:$0xff]  }
 0x46c   :  { %11500 = vmatpush1.bf16.msra.mxu1 %v18731_v11  ;;  %11091 = vmatprep.subr.bf16.mxu0 %v18736_v63  ;;  %v18788_v11 = vld [vmem:[#allocation5 + $0x1c80] ss:$40 sps:$4 sm:$0xff]  }
 0x46d   :  { %11501 = vmatprep.subr.bf16.mxu1 %v18739_v0  ;;  %v18791_v63 = vld [vmem:[#allocation5 + $0x1c88] ss:$40 sps:$4 sm:$0xff]   ;;  %v18796_v0 = vld [vmem:[#allocation5 + $0x1cd4] ss:$40 sps:$4 sm:$0xff]  }
 0x46f   :  { %11092 = vmatpush1.bf16.msra.mxu0 %v18734_v3  ;;  %v18799_v3 = vld [vmem:[#allocation5 + $0x1cdc] ss:$40 sps:$4 sm:$0xff]  }
 0x470   :  { %11502 = vmatpush1.bf16.msra.mxu1 %v18737_v22  ;;  %11093 = vmatprep.subr.bf16.mxu0 %v18742_v8  ;;  %v18794_v22 = vld [vmem:[#allocation5 + $0x1cd0] ss:$40 sps:$4 sm:$0xff]  }
 0x471   :  { %11503 = vmatprep.subr.bf16.mxu1 %v18745_v40  ;;  %v18797_v8 = vld [vmem:[#allocation5 + $0x1cd8] ss:$40 sps:$4 sm:$0xff]   ;;  %v18802_v40 = vld [vmem:[#allocation5 + $0x1d24] ss:$40 sps:$4 sm:$0xff]  }
 0x473   :  { %11094 = vmatpush1.bf16.msra.mxu0 %v18740_v41  ;;  %v18805_v41 = vld [vmem:[#allocation5 + $0x1d2c] ss:$40 sps:$4 sm:$0xff]  }
 0x474   :  { %11504 = vmatpush1.bf16.msra.mxu1 %v18743_v12  ;;  %11095 = vmatprep.subr.bf16.mxu0 %v18748_v13  ;;  %v18800_v12 = vld [vmem:[#allocation5 + $0x1d20] ss:$40 sps:$4 sm:$0xff]  }
 0x475   :  { %11505 = vmatprep.subr.bf16.mxu1 %v18751_v14  ;;  %v18803_v13 = vld [vmem:[#allocation5 + $0x1d28] ss:$40 sps:$4 sm:$0xff]   ;;  %v18808_v14 = vld [vmem:[#allocation5 + $0x1d74] ss:$40 sps:$4 sm:$0xff]  }
 0x477   :  { %11096 = vmatpush1.bf16.msra.mxu0 %v18746_v16  ;;  %v18811_v16 = vld [vmem:[#allocation5 + $0x1d7c] ss:$40 sps:$4 sm:$0xff]  }
 0x478   :  { %11506 = vmatpush1.bf16.msra.mxu1 %v18749_v17  ;;  %11097 = vmatprep.subr.bf16.mxu0 %v18754_v23  ;;  %v18806_v17 = vld [vmem:[#allocation5 + $0x1d70] ss:$40 sps:$4 sm:$0xff]  }
 0x479   :  { %11507 = vmatprep.subr.bf16.mxu1 %v18757_v44  ;;  %v18809_v23 = vld [vmem:[#allocation5 + $0x1d78] ss:$40 sps:$4 sm:$0xff]   ;;  %v18814_v44 = vld [vmem:[#allocation5 + $0x1dc4] ss:$40 sps:$4 sm:$0xff]  }
 0x47b   :  { %11098 = vmatpush1.bf16.msra.mxu0 %v18752_v47  ;;  %v18817_v47 = vld [vmem:[#allocation5 + $0x1dcc] ss:$40 sps:$4 sm:$0xff]  }
 0x47c   :  { %11508 = vmatpush1.bf16.msra.mxu1 %v18755_v25  ;;  %11099 = vmatprep.subr.bf16.mxu0 %v18760_v27  ;;  %v18812_v25 = vld [vmem:[#allocation5 + $0x1dc0] ss:$40 sps:$4 sm:$0xff]  }
 0x47d   :  { %11509 = vmatprep.subr.bf16.mxu1 %v18763_v28  ;;  %v18815_v27 = vld [vmem:[#allocation5 + $0x1dc8] ss:$40 sps:$4 sm:$0xff]   ;;  %v18820_v28 = vld [vmem:[#allocation5 + $0x1e14] ss:$40 sps:$4 sm:$0xff]  }
 0x47f   :  { %11100 = vmatpush1.bf16.msra.mxu0 %v18758_v53  ;;  %v18823_v53 = vld [vmem:[#allocation5 + $0x1e1c] ss:$40 sps:$4 sm:$0xff]  }
 0x480   :  { %11510 = vmatpush1.bf16.msra.mxu1 %v18761_v62  ;;  %11101 = vmatprep.subr.bf16.mxu0 %v18766_v43  ;;  %v18818_v62 = vld [vmem:[#allocation5 + $0x1e10] ss:$40 sps:$4 sm:$0xff]  }
 0x481   :  { %11511 = vmatprep.subr.bf16.mxu1 %v18769_v48  ;;  %v18821_v43 = vld [vmem:[#allocation5 + $0x1e18] ss:$40 sps:$4 sm:$0xff]   ;;  %v18826_v48 = vld [vmem:[#allocation5 + $0x1e64] ss:$40 sps:$4 sm:$0xff]  }
 0x483   :  { %11102 = vmatpush1.bf16.msra.mxu0 %v18764_v32  ;;  %v18829_v32 = vld [vmem:[#allocation5 + $0x1e6c] ss:$40 sps:$4 sm:$0xff]  }
 0x484   :  { %11512 = vmatpush1.bf16.msra.mxu1 %v18767_v33  ;;  %11103 = vmatprep.subr.bf16.mxu0 %v18772_v34  ;;  %v18824_v33 = vld [vmem:[#allocation5 + $0x1e60] ss:$40 sps:$4 sm:$0xff]  }
 0x485   :  { %11513 = vmatprep.subr.bf16.mxu1 %v18775_v35  ;;  %v18827_v34 = vld [vmem:[#allocation5 + $0x1e68] ss:$40 sps:$4 sm:$0xff]   ;;  %v18832_v35 = vld [vmem:[#allocation5 + $0x1eb4] ss:$40 sps:$4 sm:$0xff]  }
 0x487   :  { %11104 = vmatpush1.bf16.msra.mxu0 %v18770_v36  ;;  %v18835_v36 = vld [vmem:[#allocation5 + $0x1ebc] ss:$40 sps:$4 sm:$0xff]  }
 0x488   :  { %11514 = vmatpush1.bf16.msra.mxu1 %v18773_v37  ;;  %11105 = vmatprep.subr.bf16.mxu0 %v18778_v42  ;;  %v18830_v37 = vld [vmem:[#allocation5 + $0x1eb0] ss:$40 sps:$4 sm:$0xff]  }
 0x489   :  { %11515 = vmatprep.subr.bf16.mxu1 %v18781_v49  ;;  %v18833_v42 = vld [vmem:[#allocation5 + $0x1eb8] ss:$40 sps:$4 sm:$0xff]   ;;  %v18838_v49 = vld [vmem:[#allocation5 + $0x1f04] ss:$40 sps:$4 sm:$0xff]  }
 0x48b   :  { %11106 = vmatpush1.bf16.msra.mxu0 %v18776_v50  ;;  %v18841_v50 = vld [vmem:[#allocation5 + $0x1f0c] ss:$40 sps:$4 sm:$0xff]  }
 0x48c   :  { %11516 = vmatpush1.bf16.msra.mxu1 %v18779_v51  ;;  %11107 = vmatprep.subr.bf16.mxu0 %v18784_v54  ;;  %v18836_v51 = vld [vmem:[#allocation5 + $0x1f00] ss:$40 sps:$4 sm:$0xff]  }
 0x48d   :  { %11517 = vmatprep.subr.bf16.mxu1 %v18787_v56  ;;  %v18839_v54 = vld [vmem:[#allocation5 + $0x1f08] ss:$40 sps:$4 sm:$0xff]   ;;  %v18844_v56 = vld [vmem:[#allocation5 + $0x1f54] ss:$40 sps:$4 sm:$0xff]  }
 0x48f   :  { %11108 = vmatpush1.bf16.msra.mxu0 %v18782_v57  ;;  %v18847_v57 = vld [vmem:[#allocation5 + $0x1f5c] ss:$40 sps:$4 sm:$0xff]  }
 0x490   :  { %11518 = vmatpush1.bf16.msra.mxu1 %v18785_v58  ;;  %11109 = vmatprep.subr.bf16.mxu0 %v18790_v18  ;;  %v18842_v58 = vld [vmem:[#allocation5 + $0x1f50] ss:$40 sps:$4 sm:$0xff]  }
 0x491   :  { %11519 = vmatprep.subr.bf16.mxu1 %v18793_v10  ;;  %v18845_v18 = vld [vmem:[#allocation5 + $0x1f58] ss:$40 sps:$4 sm:$0xff]   ;;  %v18850_v10 = vld [vmem:[#allocation5 + $0x1fa4] ss:$40 sps:$4 sm:$0xff]  }
 0x493   :  { %11110 = vmatpush1.bf16.msra.mxu0 %v18788_v11  ;;  %v18853_v11 = vld [vmem:[#allocation5 + $0x1fac] ss:$40 sps:$4 sm:$0xff]  }
 0x494   :  { %11520 = vmatpush1.bf16.msra.mxu1 %v18791_v63  ;;  %11111 = vmatprep.subr.bf16.mxu0 %v18796_v0  ;;  %v18848_v63 = vld [vmem:[#allocation5 + $0x1fa0] ss:$40 sps:$4 sm:$0xff]  }
 0x495   :  { %11521 = vmatprep.subr.bf16.mxu1 %v18799_v3  ;;  %v18851_v0 = vld [vmem:[#allocation5 + $0x1fa8] ss:$40 sps:$4 sm:$0xff]   ;;  %v18856_v3 = vld [vmem:[#allocation5 + $0x1ff4] ss:$40 sps:$4 sm:$0xff]  }
 0x497   :  { %11112 = vmatpush1.bf16.msra.mxu0 %v18794_v22  ;;  %v18859_v22 = vld [vmem:[#allocation5 + $0x1ffc] ss:$40 sps:$4 sm:$0xff]  }
 0x498   :  { %11522 = vmatpush1.bf16.msra.mxu1 %v18797_v8  ;;  %11113 = vmatprep.subr.bf16.mxu0 %v18802_v40  ;;  %v18854_v8 = vld [vmem:[#allocation5 + $0x1ff0] ss:$40 sps:$4 sm:$0xff]  }
 0x499   :  { %11523 = vmatprep.subr.bf16.mxu1 %v18805_v41  ;;  %v18857_v40 = vld [vmem:[#allocation5 + $0x1ff8] ss:$40 sps:$4 sm:$0xff]   ;;  %v18862_v41 = vld [vmem:[#allocation5 + $0x2044] ss:$40 sps:$4 sm:$0xff]  }
 0x49b   :  { %11114 = vmatpush1.bf16.msra.mxu0 %v18800_v12  ;;  %v18865_v12 = vld [vmem:[#allocation5 + $0x204c] ss:$40 sps:$4 sm:$0xff]  }
 0x49c   :  { %11524 = vmatpush1.bf16.msra.mxu1 %v18803_v13  ;;  %11115 = vmatprep.subr.bf16.mxu0 %v18808_v14  ;;  %v18860_v13 = vld [vmem:[#allocation5 + $0x2040] ss:$40 sps:$4 sm:$0xff]  }
 0x49d   :  { %11525 = vmatprep.subr.bf16.mxu1 %v18811_v16  ;;  %v18863_v14 = vld [vmem:[#allocation5 + $0x2048] ss:$40 sps:$4 sm:$0xff]   ;;  %v18868_v16 = vld [vmem:[#allocation5 + $0x2094] ss:$40 sps:$4 sm:$0xff]  }
 0x49f   :  { %11116 = vmatpush1.bf16.msra.mxu0 %v18806_v17  ;;  %v18871_v17 = vld [vmem:[#allocation5 + $0x209c] ss:$40 sps:$4 sm:$0xff]  }
 0x4a0   :  { %11526 = vmatpush1.bf16.msra.mxu1 %v18809_v23  ;;  %11117 = vmatprep.subr.bf16.mxu0 %v18814_v44  ;;  %v18866_v23 = vld [vmem:[#allocation5 + $0x2090] ss:$40 sps:$4 sm:$0xff]  }
 0x4a1   :  { %11527 = vmatprep.subr.bf16.mxu1 %v18817_v47  ;;  %v18869_v44 = vld [vmem:[#allocation5 + $0x2098] ss:$40 sps:$4 sm:$0xff]   ;;  %v18874_v47 = vld [vmem:[#allocation5 + $0x20e4] ss:$40 sps:$4 sm:$0xff]  }
 0x4a3   :  { %11118 = vmatpush1.bf16.msra.mxu0 %v18812_v25  ;;  %v18877_v25 = vld [vmem:[#allocation5 + $0x20ec] ss:$40 sps:$4 sm:$0xff]  }
 0x4a4   :  { %11528 = vmatpush1.bf16.msra.mxu1 %v18815_v27  ;;  %11128 = vmatprep.subr.bf16.mxu0 %v18820_v28  ;;  %v18872_v27 = vld [vmem:[#allocation5 + $0x20e0] ss:$40 sps:$4 sm:$0xff]  }
 0x4a5   :  { %11538 = vmatprep.subr.bf16.mxu1 %v18823_v53  ;;  %v18875_v28 = vld [vmem:[#allocation5 + $0x20e8] ss:$40 sps:$4 sm:$0xff]   ;;  %v18880_v53 = vld [vmem:[#allocation5 + $0x2134] ss:$40 sps:$4 sm:$0xff]  }
 0x4a6   :  { %11120 = vmatmul.mubr.bf16.vlgmr.msra.gmra.mrb[4].mxu0 %v20766_v39 }
 0x4a7   :  { %11530 = vmatmul.mubr.bf16.vlgmr.msra.gmra.mrb[4].mxu1 %v20766_v39  ;;  %11129 = vmatpush1.bf16.msra.mxu0 %v18818_v62  ;;  %v18883_v62 = vld [vmem:[#allocation5 + $0x213c] ss:$40 sps:$4 sm:$0xff]  }
 0x4a8   :  { %11539 = vmatpush1.bf16.msra.mxu1 %v18821_v43  ;;  %11130 = vmatprep.subr.bf16.mxu0 %v18826_v48  ;;  %v18878_v43 = vld [vmem:[#allocation5 + $0x2130] ss:$40 sps:$4 sm:$0xff]  }
 0x4a9   :  { %11540 = vmatprep.subr.bf16.mxu1 %v18829_v32  ;;  %11160 = vmatprep.mubr.bf16.mxu0 %v20768_v59  ;;  %v18881_v48 = vld [vmem:[#allocation5 + $0x2138] ss:$40 sps:$4 sm:$0xff]   ;;  %v18886_v32 = vld [vmem:[#allocation5 + $0x2184] ss:$40 sps:$4 sm:$0xff]  }
 0x4aa   :  { %11570 = vmatprep.mubr.bf16.mxu1 %v20768_v59 }
 0x4ab   :  { %11131 = vmatpush1.bf16.msra.mxu0 %v18824_v33  ;;  %v18889_v33 = vld [vmem:[#allocation5 + $0x218c] ss:$40 sps:$4 sm:$0xff]  }
 0x4ac   :  { %11541 = vmatpush1.bf16.msra.mxu1 %v18827_v34  ;;  %11132 = vmatprep.subr.bf16.mxu0 %v18832_v35  ;;  %v18884_v34 = vld [vmem:[#allocation5 + $0x2180] ss:$40 sps:$4 sm:$0xff]  }
 0x4ad   :  { %11542 = vmatprep.subr.bf16.mxu1 %v18835_v36  ;;  %v18887_v35 = vld [vmem:[#allocation5 + $0x2188] ss:$40 sps:$4 sm:$0xff]   ;;  %v18892_v36 = vld [vmem:[#allocation5 + $0x21d4] ss:$40 sps:$4 sm:$0xff]  }
 0x4af   :  { %11133 = vmatpush1.bf16.msra.mxu0 %v18830_v37  ;;  %v18895_v37 = vld [vmem:[#allocation5 + $0x21dc] ss:$40 sps:$4 sm:$0xff]  }
 0x4b0   :  { %11543 = vmatpush1.bf16.msra.mxu1 %v18833_v42  ;;  %11134 = vmatprep.subr.bf16.mxu0 %v18838_v49  ;;  %v18890_v42 = vld [vmem:[#allocation5 + $0x21d0] ss:$40 sps:$4 sm:$0xff]  }
 0x4b1   :  { %11544 = vmatprep.subr.bf16.mxu1 %v18841_v50  ;;  %v18893_v49 = vld [vmem:[#allocation5 + $0x21d8] ss:$40 sps:$4 sm:$0xff]   ;;  %v18898_v50 = vld [vmem:[#allocation5 + $0x2224] ss:$40 sps:$4 sm:$0xff]  }
 0x4b3   :  { %11135 = vmatpush1.bf16.msra.mxu0 %v18836_v51  ;;  %v18901_v51 = vld [vmem:[#allocation5 + $0x222c] ss:$40 sps:$4 sm:$0xff]  }
 0x4b4   :  { %11545 = vmatpush1.bf16.msra.mxu1 %v18839_v54  ;;  %11136 = vmatprep.subr.bf16.mxu0 %v18844_v56  ;;  %v18896_v54 = vld [vmem:[#allocation5 + $0x2220] ss:$40 sps:$4 sm:$0xff]  }
 0x4b5   :  { %11546 = vmatprep.subr.bf16.mxu1 %v18847_v57  ;;  %v18899_v56 = vld [vmem:[#allocation5 + $0x2228] ss:$40 sps:$4 sm:$0xff]   ;;  %v18904_v57 = vld [vmem:[#allocation5 + $0x2274] ss:$40 sps:$4 sm:$0xff]  }
 0x4b7   :  { %11137 = vmatpush1.bf16.msra.mxu0 %v18842_v58  ;;  %v18907_v58 = vld [vmem:[#allocation5 + $0x227c] ss:$40 sps:$4 sm:$0xff]  }
 0x4b8   :  { %11547 = vmatpush1.bf16.msra.mxu1 %v18845_v18  ;;  %11138 = vmatprep.subr.bf16.mxu0 %v18850_v10  ;;  %v18902_v18 = vld [vmem:[#allocation5 + $0x2270] ss:$40 sps:$4 sm:$0xff]  }
 0x4b9   :  { %11548 = vmatprep.subr.bf16.mxu1 %v18853_v11  ;;  %v18905_v10 = vld [vmem:[#allocation5 + $0x2278] ss:$40 sps:$4 sm:$0xff]   ;;  %v18910_v11 = vld [vmem:[#allocation5 + $0x22c4] ss:$40 sps:$4 sm:$0xff]  }
 0x4bb   :  { %11139 = vmatpush1.bf16.msra.mxu0 %v18848_v63  ;;  %v18913_v63 = vld [vmem:[#allocation5 + $0x22cc] ss:$40 sps:$4 sm:$0xff]  }
 0x4bc   :  { %11549 = vmatpush1.bf16.msra.mxu1 %v18851_v0  ;;  %11140 = vmatprep.subr.bf16.mxu0 %v18856_v3  ;;  %v18908_v0 = vld [vmem:[#allocation5 + $0x22c0] ss:$40 sps:$4 sm:$0xff]  }
 0x4bd   :  { %11550 = vmatprep.subr.bf16.mxu1 %v18859_v22  ;;  %v18911_v3 = vld [vmem:[#allocation5 + $0x22c8] ss:$40 sps:$4 sm:$0xff]   ;;  %v18916_v22 = vld [vmem:[#allocation5 + $0x2314] ss:$40 sps:$4 sm:$0xff]  }
 0x4bf   :  { %11141 = vmatpush1.bf16.msra.mxu0 %v18854_v8  ;;  %v18919_v8 = vld [vmem:[#allocation5 + $0x231c] ss:$40 sps:$4 sm:$0xff]  }
 0x4c0   :  { %11551 = vmatpush1.bf16.msra.mxu1 %v18857_v40  ;;  %11142 = vmatprep.subr.bf16.mxu0 %v18862_v41  ;;  %v18914_v40 = vld [vmem:[#allocation5 + $0x2310] ss:$40 sps:$4 sm:$0xff]  }
 0x4c1   :  { %11552 = vmatprep.subr.bf16.mxu1 %v18865_v12  ;;  %v18917_v41 = vld [vmem:[#allocation5 + $0x2318] ss:$40 sps:$4 sm:$0xff]   ;;  %v18922_v12 = vld [vmem:[#allocation5 + $0x2364] ss:$40 sps:$4 sm:$0xff]  }
 0x4c3   :  { %11143 = vmatpush1.bf16.msra.mxu0 %v18860_v13  ;;  %v18925_v13 = vld [vmem:[#allocation5 + $0x236c] ss:$40 sps:$4 sm:$0xff]  }
 0x4c4   :  { %11553 = vmatpush1.bf16.msra.mxu1 %v18863_v14  ;;  %11144 = vmatprep.subr.bf16.mxu0 %v18868_v16  ;;  %v18920_v14 = vld [vmem:[#allocation5 + $0x2360] ss:$40 sps:$4 sm:$0xff]  }
 0x4c5   :  { %11554 = vmatprep.subr.bf16.mxu1 %v18871_v17  ;;  %v18923_v16 = vld [vmem:[#allocation5 + $0x2368] ss:$40 sps:$4 sm:$0xff]   ;;  %v18928_v17 = vld [vmem:[#allocation5 + $0x23b4] ss:$40 sps:$4 sm:$0xff]  }
 0x4c7   :  { %11145 = vmatpush1.bf16.msra.mxu0 %v18866_v23  ;;  %v18931_v23 = vld [vmem:[#allocation5 + $0x23bc] ss:$40 sps:$4 sm:$0xff]  }
 0x4c8   :  { %11555 = vmatpush1.bf16.msra.mxu1 %v18869_v44  ;;  %11146 = vmatprep.subr.bf16.mxu0 %v18874_v47  ;;  %v18926_v44 = vld [vmem:[#allocation5 + $0x23b0] ss:$40 sps:$4 sm:$0xff]  }
 0x4c9   :  { %11556 = vmatprep.subr.bf16.mxu1 %v18877_v25  ;;  %v18929_v47 = vld [vmem:[#allocation5 + $0x23b8] ss:$40 sps:$4 sm:$0xff]   ;;  %v18934_v25 = vld [vmem:[#allocation5 + $0x2404] ss:$40 sps:$4 sm:$0xff]  }
 0x4cb   :  { %11147 = vmatpush1.bf16.msra.mxu0 %v18872_v27  ;;  %v18937_v27 = vld [vmem:[#allocation5 + $0x240c] ss:$40 sps:$4 sm:$0xff]  }
 0x4cc   :  { %11557 = vmatpush1.bf16.msra.mxu1 %v18875_v28  ;;  %11148 = vmatprep.subr.bf16.mxu0 %v18880_v53  ;;  %v18932_v28 = vld [vmem:[#allocation5 + $0x2400] ss:$40 sps:$4 sm:$0xff]  }
 0x4cd   :  { %11558 = vmatprep.subr.bf16.mxu1 %v18883_v62  ;;  %v18935_v53 = vld [vmem:[#allocation5 + $0x2408] ss:$40 sps:$4 sm:$0xff]   ;;  %v18940_v62 = vld [vmem:[#allocation5 + $0x2454] ss:$40 sps:$4 sm:$0xff]  }
 0x4cf   :  { %11149 = vmatpush1.bf16.msra.mxu0 %v18878_v43  ;;  %v18943_v43 = vld [vmem:[#allocation5 + $0x245c] ss:$40 sps:$4 sm:$0xff]  }
 0x4d0   :  { %11559 = vmatpush1.bf16.msra.mxu1 %v18881_v48  ;;  %11150 = vmatprep.subr.bf16.mxu0 %v18886_v32  ;;  %v18938_v48 = vld [vmem:[#allocation5 + $0x2450] ss:$40 sps:$4 sm:$0xff]  }
 0x4d1   :  { %11560 = vmatprep.subr.bf16.mxu1 %v18889_v33  ;;  %v18941_v32 = vld [vmem:[#allocation5 + $0x2458] ss:$40 sps:$4 sm:$0xff]   ;;  %v18946_v33 = vld [vmem:[#allocation5 + $0x24a4] ss:$40 sps:$4 sm:$0xff]  }
 0x4d3   :  { %11151 = vmatpush1.bf16.msra.mxu0 %v18884_v34  ;;  %v18949_v34 = vld [vmem:[#allocation5 + $0x24ac] ss:$40 sps:$4 sm:$0xff]  }
 0x4d4   :  { %11561 = vmatpush1.bf16.msra.mxu1 %v18887_v35  ;;  %11152 = vmatprep.subr.bf16.mxu0 %v18892_v36  ;;  %v18944_v35 = vld [vmem:[#allocation5 + $0x24a0] ss:$40 sps:$4 sm:$0xff]  }
 0x4d5   :  { %11562 = vmatprep.subr.bf16.mxu1 %v18895_v37  ;;  %v18947_v36 = vld [vmem:[#allocation5 + $0x24a8] ss:$40 sps:$4 sm:$0xff]   ;;  %v18952_v37 = vld [vmem:[#allocation5 + $0x24f4] ss:$40 sps:$4 sm:$0xff]  }
 0x4d7   :  { %11153 = vmatpush1.bf16.msra.mxu0 %v18890_v42  ;;  %v18955_v42 = vld [vmem:[#allocation5 + $0x24fc] ss:$40 sps:$4 sm:$0xff]  }
 0x4d8   :  { %11563 = vmatpush1.bf16.msra.mxu1 %v18893_v49  ;;  %11154 = vmatprep.subr.bf16.mxu0 %v18898_v50  ;;  %v18950_v49 = vld [vmem:[#allocation5 + $0x24f0] ss:$40 sps:$4 sm:$0xff]  }
 0x4d9   :  { %11564 = vmatprep.subr.bf16.mxu1 %v18901_v51  ;;  %v18953_v50 = vld [vmem:[#allocation5 + $0x24f8] ss:$40 sps:$4 sm:$0xff]   ;;  %v18958_v51 = vld [vmem:[#allocation5 + $0x2544] ss:$40 sps:$4 sm:$0xff]  }
 0x4db   :  { %11155 = vmatpush1.bf16.msra.mxu0 %v18896_v54  ;;  %v18961_v54 = vld [vmem:[#allocation5 + $0x254c] ss:$40 sps:$4 sm:$0xff]  }
 0x4dc   :  { %11565 = vmatpush1.bf16.msra.mxu1 %v18899_v56  ;;  %11156 = vmatprep.subr.bf16.mxu0 %v18904_v57  ;;  %v18956_v56 = vld [vmem:[#allocation5 + $0x2540] ss:$40 sps:$4 sm:$0xff]  }
 0x4dd   :  { %11566 = vmatprep.subr.bf16.mxu1 %v18907_v58  ;;  %v18959_v57 = vld [vmem:[#allocation5 + $0x2548] ss:$40 sps:$4 sm:$0xff]   ;;  %v18964_v58 = vld [vmem:[#allocation5 + $0x2594] ss:$40 sps:$4 sm:$0xff]  }
 0x4df   :  { %11157 = vmatpush1.bf16.msra.mxu0 %v18902_v18  ;;  %v18967_v18 = vld [vmem:[#allocation5 + $0x259c] ss:$40 sps:$4 sm:$0xff]  }
 0x4e0   :  { %11567 = vmatpush1.bf16.msra.mxu1 %v18905_v10  ;;  %11158 = vmatprep.subr.bf16.mxu0 %v18910_v11  ;;  %v18962_v10 = vld [vmem:[#allocation5 + $0x2590] ss:$40 sps:$4 sm:$0xff]  }
 0x4e1   :  { %11568 = vmatprep.subr.bf16.mxu1 %v18913_v63  ;;  %v18965_v11 = vld [vmem:[#allocation5 + $0x2598] ss:$40 sps:$4 sm:$0xff]   ;;  %v18970_v63 = vld [vmem:[#allocation5 + $0x25e4] ss:$40 sps:$4 sm:$0xff]  }
 0x4e3   :  { %11159 = vmatpush1.bf16.msra.mxu0 %v18908_v0  ;;  %v18973_v0 = vld [vmem:[#allocation5 + $0x25ec] ss:$40 sps:$4 sm:$0xff]  }
 0x4e4   :  { %11569 = vmatpush1.bf16.msra.mxu1 %v18911_v3  ;;  %11169 = vmatprep.subr.bf16.mxu0 %v18916_v22  ;;  %v18968_v3 = vld [vmem:[#allocation5 + $0x25e0] ss:$40 sps:$4 sm:$0xff]  }
 0x4e5   :  { %11579 = vmatprep.subr.bf16.mxu1 %v18919_v8  ;;  %v18971_v22 = vld [vmem:[#allocation5 + $0x25e8] ss:$40 sps:$4 sm:$0xff]   ;;  %v18976_v8 = vld [vmem:[#allocation5 + $0x2634] ss:$40 sps:$4 sm:$0xff]  }
 0x4e6   :  { %11161 = vmatmul.mubr.bf16.vlgmr.msra.gmra.mrb[4].mxu0 %v20784_v21 }
 0x4e7   :  { %11571 = vmatmul.mubr.bf16.vlgmr.msra.gmra.mrb[4].mxu1 %v20784_v21  ;;  %11170 = vmatpush1.bf16.msra.mxu0 %v18914_v40  ;;  %v18979_v40 = vld [vmem:[#allocation5 + $0x263c] ss:$40 sps:$4 sm:$0xff]  }
 0x4e8   :  { %11580 = vmatpush1.bf16.msra.mxu1 %v18917_v41  ;;  %11171 = vmatprep.subr.bf16.mxu0 %v18922_v12  ;;  %v18974_v41 = vld [vmem:[#allocation5 + $0x2630] ss:$40 sps:$4 sm:$0xff]  }
 0x4e9   :  { %11581 = vmatprep.subr.bf16.mxu1 %v18925_v13  ;;  %11201 = vmatprep.mubr.bf16.mxu0 %v20786_v24  ;;  %v18977_v12 = vld [vmem:[#allocation5 + $0x2638] ss:$40 sps:$4 sm:$0xff]   ;;  %v18982_v13 = vld [vmem:[#allocation5 + $0x2684] ss:$40 sps:$4 sm:$0xff]  }
 0x4ea   :  { %11611 = vmatprep.mubr.bf16.mxu1 %v20786_v24 }
 0x4eb   :  { %11172 = vmatpush1.bf16.msra.mxu0 %v18920_v14  ;;  %v18985_v14 = vld [vmem:[#allocation5 + $0x268c] ss:$40 sps:$4 sm:$0xff]  }
 0x4ec   :  { %11582 = vmatpush1.bf16.msra.mxu1 %v18923_v16  ;;  %11173 = vmatprep.subr.bf16.mxu0 %v18928_v17  ;;  %v18980_v16 = vld [vmem:[#allocation5 + $0x2680] ss:$40 sps:$4 sm:$0xff]  }
 0x4ed   :  { %11583 = vmatprep.subr.bf16.mxu1 %v18931_v23  ;;  %v18983_v17 = vld [vmem:[#allocation5 + $0x2688] ss:$40 sps:$4 sm:$0xff]   ;;  %v18988_v23 = vld [vmem:[#allocation5 + $0x26d4] ss:$40 sps:$4 sm:$0xff]  }
 0x4ef   :  { %11174 = vmatpush1.bf16.msra.mxu0 %v18926_v44  ;;  %v18991_v44 = vld [vmem:[#allocation5 + $0x26dc] ss:$40 sps:$4 sm:$0xff]  }
 0x4f0   :  { %11584 = vmatpush1.bf16.msra.mxu1 %v18929_v47  ;;  %11175 = vmatprep.subr.bf16.mxu0 %v18934_v25  ;;  %v18986_v47 = vld [vmem:[#allocation5 + $0x26d0] ss:$40 sps:$4 sm:$0xff]  }
 0x4f1   :  { %11585 = vmatprep.subr.bf16.mxu1 %v18937_v27  ;;  %v18989_v25 = vld [vmem:[#allocation5 + $0x26d8] ss:$40 sps:$4 sm:$0xff]   ;;  %v18994_v27 = vld [vmem:[#allocation5 + $0x2724] ss:$40 sps:$4 sm:$0xff]  }
 0x4f3   :  { %11176 = vmatpush1.bf16.msra.mxu0 %v18932_v28  ;;  %v18997_v28 = vld [vmem:[#allocation5 + $0x272c] ss:$40 sps:$4 sm:$0xff]  }
 0x4f4   :  { %11586 = vmatpush1.bf16.msra.mxu1 %v18935_v53  ;;  %11177 = vmatprep.subr.bf16.mxu0 %v18940_v62  ;;  %v18992_v53 = vld [vmem:[#allocation5 + $0x2720] ss:$40 sps:$4 sm:$0xff]  }
 0x4f5   :  { %11587 = vmatprep.subr.bf16.mxu1 %v18943_v43  ;;  %v18995_v62 = vld [vmem:[#allocation5 + $0x2728] ss:$40 sps:$4 sm:$0xff]   ;;  %v19000_v43 = vld [vmem:[#allocation5 + $0x2774] ss:$40 sps:$4 sm:$0xff]  }
 0x4f7   :  { %11178 = vmatpush1.bf16.msra.mxu0 %v18938_v48  ;;  %v19003_v48 = vld [vmem:[#allocation5 + $0x277c] ss:$40 sps:$4 sm:$0xff]  }
 0x4f8   :  { %11588 = vmatpush1.bf16.msra.mxu1 %v18941_v32  ;;  %11179 = vmatprep.subr.bf16.mxu0 %v18946_v33  ;;  %v18998_v32 = vld [vmem:[#allocation5 + $0x2770] ss:$40 sps:$4 sm:$0xff]  }
 0x4f9   :  { %11589 = vmatprep.subr.bf16.mxu1 %v18949_v34  ;;  %v19001_v33 = vld [vmem:[#allocation5 + $0x2778] ss:$40 sps:$4 sm:$0xff]   ;;  %v19006_v34 = vld [vmem:[#allocation5 + $0x27c4] ss:$40 sps:$4 sm:$0xff]  }
 0x4fb   :  { %11180 = vmatpush1.bf16.msra.mxu0 %v18944_v35  ;;  %v19009_v35 = vld [vmem:[#allocation5 + $0x27cc] ss:$40 sps:$4 sm:$0xff]  }
 0x4fc   :  { %11590 = vmatpush1.bf16.msra.mxu1 %v18947_v36  ;;  %11181 = vmatprep.subr.bf16.mxu0 %v18952_v37  ;;  %v19004_v36 = vld [vmem:[#allocation5 + $0x27c0] ss:$40 sps:$4 sm:$0xff]  }
 0x4fd   :  { %11591 = vmatprep.subr.bf16.mxu1 %v18955_v42  ;;  %v19007_v37 = vld [vmem:[#allocation5 + $0x27c8] ss:$40 sps:$4 sm:$0xff]   ;;  %v19012_v42 = vld [vmem:[#allocation5 + $0x2814] ss:$40 sps:$4 sm:$0xff]  }
 0x4ff   :  { %11182 = vmatpush1.bf16.msra.mxu0 %v18950_v49  ;;  %v19015_v49 = vld [vmem:[#allocation5 + $0x281c] ss:$40 sps:$4 sm:$0xff]  }
 0x500   :  { %11592 = vmatpush1.bf16.msra.mxu1 %v18953_v50  ;;  %11183 = vmatprep.subr.bf16.mxu0 %v18958_v51  ;;  %v19010_v50 = vld [vmem:[#allocation5 + $0x2810] ss:$40 sps:$4 sm:$0xff]  }
 0x501   :  { %11593 = vmatprep.subr.bf16.mxu1 %v18961_v54  ;;  %v19013_v51 = vld [vmem:[#allocation5 + $0x2818] ss:$40 sps:$4 sm:$0xff]   ;;  %v19018_v54 = vld [vmem:[#allocation5 + $0x2864] ss:$40 sps:$4 sm:$0xff]  }
 0x503   :  { %11184 = vmatpush1.bf16.msra.mxu0 %v18956_v56  ;;  %v19021_v56 = vld [vmem:[#allocation5 + $0x286c] ss:$40 sps:$4 sm:$0xff]  }
 0x504   :  { %11594 = vmatpush1.bf16.msra.mxu1 %v18959_v57  ;;  %11185 = vmatprep.subr.bf16.mxu0 %v18964_v58  ;;  %v19016_v57 = vld [vmem:[#allocation5 + $0x2860] ss:$40 sps:$4 sm:$0xff]  }
 0x505   :  { %11595 = vmatprep.subr.bf16.mxu1 %v18967_v18  ;;  %v19019_v58 = vld [vmem:[#allocation5 + $0x2868] ss:$40 sps:$4 sm:$0xff]   ;;  %v19024_v18 = vld [vmem:[#allocation5 + $0x28b4] ss:$40 sps:$4 sm:$0xff]  }
 0x507   :  { %11186 = vmatpush1.bf16.msra.mxu0 %v18962_v10  ;;  %v19027_v10 = vld [vmem:[#allocation5 + $0x28bc] ss:$40 sps:$4 sm:$0xff]  }
 0x508   :  { %11596 = vmatpush1.bf16.msra.mxu1 %v18965_v11  ;;  %11187 = vmatprep.subr.bf16.mxu0 %v18970_v63  ;;  %v19022_v11 = vld [vmem:[#allocation5 + $0x28b0] ss:$40 sps:$4 sm:$0xff]  }
 0x509   :  { %11597 = vmatprep.subr.bf16.mxu1 %v18973_v0  ;;  %v19025_v63 = vld [vmem:[#allocation5 + $0x28b8] ss:$40 sps:$4 sm:$0xff]   ;;  %v19030_v0 = vld [vmem:[#allocation5 + $0x2904] ss:$40 sps:$4 sm:$0xff]  }
 0x50b   :  { %11188 = vmatpush1.bf16.msra.mxu0 %v18968_v3  ;;  %v19033_v3 = vld [vmem:[#allocation5 + $0x290c] ss:$40 sps:$4 sm:$0xff]  }
 0x50c   :  { %11598 = vmatpush1.bf16.msra.mxu1 %v18971_v22  ;;  %11189 = vmatprep.subr.bf16.mxu0 %v18976_v8  ;;  %v19028_v22 = vld [vmem:[#allocation5 + $0x2900] ss:$40 sps:$4 sm:$0xff]  }
 0x50d   :  { %11599 = vmatprep.subr.bf16.mxu1 %v18979_v40  ;;  %v19031_v8 = vld [vmem:[#allocation5 + $0x2908] ss:$40 sps:$4 sm:$0xff]   ;;  %v19036_v40 = vld [vmem:[#allocation5 + $0x2954] ss:$40 sps:$4 sm:$0xff]  }
 0x50f   :  { %11190 = vmatpush1.bf16.msra.mxu0 %v18974_v41  ;;  %v19039_v41 = vld [vmem:[#allocation5 + $0x295c] ss:$40 sps:$4 sm:$0xff]  }
 0x510   :  { %11600 = vmatpush1.bf16.msra.mxu1 %v18977_v12  ;;  %11191 = vmatprep.subr.bf16.mxu0 %v18982_v13  ;;  %v19034_v12 = vld [vmem:[#allocation5 + $0x2950] ss:$40 sps:$4 sm:$0xff]  }
 0x511   :  { %11601 = vmatprep.subr.bf16.mxu1 %v18985_v14  ;;  %v19037_v13 = vld [vmem:[#allocation5 + $0x2958] ss:$40 sps:$4 sm:$0xff]   ;;  %v19042_v14 = vld [vmem:[#allocation5 + $0x29a4] ss:$40 sps:$4 sm:$0xff]  }
 0x513   :  { %11192 = vmatpush1.bf16.msra.mxu0 %v18980_v16  ;;  %v19045_v16 = vld [vmem:[#allocation5 + $0x29ac] ss:$40 sps:$4 sm:$0xff]  }
 0x514   :  { %11602 = vmatpush1.bf16.msra.mxu1 %v18983_v17  ;;  %11193 = vmatprep.subr.bf16.mxu0 %v18988_v23  ;;  %v19040_v17 = vld [vmem:[#allocation5 + $0x29a0] ss:$40 sps:$4 sm:$0xff]  }
 0x515   :  { %11603 = vmatprep.subr.bf16.mxu1 %v18991_v44  ;;  %v19043_v23 = vld [vmem:[#allocation5 + $0x29a8] ss:$40 sps:$4 sm:$0xff]   ;;  %v19048_v44 = vld [vmem:[#allocation5 + $0x29f4] ss:$40 sps:$4 sm:$0xff]  }
 0x517   :  { %11194 = vmatpush1.bf16.msra.mxu0 %v18986_v47  ;;  %v19051_v47 = vld [vmem:[#allocation5 + $0x29fc] ss:$40 sps:$4 sm:$0xff]  }
 0x518   :  { %11604 = vmatpush1.bf16.msra.mxu1 %v18989_v25  ;;  %11195 = vmatprep.subr.bf16.mxu0 %v18994_v27  ;;  %v19046_v25 = vld [vmem:[#allocation5 + $0x29f0] ss:$40 sps:$4 sm:$0xff]  }
 0x519   :  { %11605 = vmatprep.subr.bf16.mxu1 %v18997_v28  ;;  %v19049_v27 = vld [vmem:[#allocation5 + $0x29f8] ss:$40 sps:$4 sm:$0xff]   ;;  %v19054_v28 = vld [vmem:[#allocation5 + $0x2a44] ss:$40 sps:$4 sm:$0xff]  }
 0x51b   :  { %11196 = vmatpush1.bf16.msra.mxu0 %v18992_v53  ;;  %v19057_v53 = vld [vmem:[#allocation5 + $0x2a4c] ss:$40 sps:$4 sm:$0xff]  }
 0x51c   :  { %11606 = vmatpush1.bf16.msra.mxu1 %v18995_v62  ;;  %11197 = vmatprep.subr.bf16.mxu0 %v19000_v43  ;;  %v19052_v62 = vld [vmem:[#allocation5 + $0x2a40] ss:$40 sps:$4 sm:$0xff]  }
 0x51d   :  { %11607 = vmatprep.subr.bf16.mxu1 %v19003_v48  ;;  %v19055_v43 = vld [vmem:[#allocation5 + $0x2a48] ss:$40 sps:$4 sm:$0xff]   ;;  %v19060_v48 = vld [vmem:[#allocation5 + $0x2a94] ss:$40 sps:$4 sm:$0xff]  }
 0x51f   :  { %11198 = vmatpush1.bf16.msra.mxu0 %v18998_v32  ;;  %v19063_v32 = vld [vmem:[#allocation5 + $0x2a9c] ss:$40 sps:$4 sm:$0xff]  }
 0x520   :  { %11608 = vmatpush1.bf16.msra.mxu1 %v19001_v33  ;;  %11199 = vmatprep.subr.bf16.mxu0 %v19006_v34  ;;  %v19058_v33 = vld [vmem:[#allocation5 + $0x2a90] ss:$40 sps:$4 sm:$0xff]  }
 0x521   :  { %11609 = vmatprep.subr.bf16.mxu1 %v19009_v35  ;;  %v19061_v34 = vld [vmem:[#allocation5 + $0x2a98] ss:$40 sps:$4 sm:$0xff]   ;;  %v19066_v35 = vld [vmem:[#allocation5 + $0x2ae4] ss:$40 sps:$4 sm:$0xff]  }
 0x523   :  { %11200 = vmatpush1.bf16.msra.mxu0 %v19004_v36  ;;  %v19069_v36 = vld [vmem:[#allocation5 + $0x2aec] ss:$40 sps:$4 sm:$0xff]  }
 0x524   :  { %11610 = vmatpush1.bf16.msra.mxu1 %v19007_v37  ;;  %11210 = vmatprep.subr.bf16.mxu0 %v19012_v42  ;;  %v19064_v37 = vld [vmem:[#allocation5 + $0x2ae0] ss:$40 sps:$4 sm:$0xff]  }
 0x525   :  { %11620 = vmatprep.subr.bf16.mxu1 %v19015_v49  ;;  %v19067_v42 = vld [vmem:[#allocation5 + $0x2ae8] ss:$40 sps:$4 sm:$0xff]   ;;  %v19072_v49 = vld [vmem:[#allocation5 + $0x2b34] ss:$40 sps:$4 sm:$0xff]  }
 0x526   :  { %11202 = vmatmul.mubr.bf16.vlgmr.msra.gmra.mrb[4].mxu0 %v20802_v19 }
 0x527   :  { %11612 = vmatmul.mubr.bf16.vlgmr.msra.gmra.mrb[4].mxu1 %v20802_v19  ;;  %11211 = vmatpush1.bf16.msra.mxu0 %v19010_v50  ;;  %v19075_v50 = vld [vmem:[#allocation5 + $0x2b3c] ss:$40 sps:$4 sm:$0xff]  }
 0x528   :  { %11621 = vmatpush1.bf16.msra.mxu1 %v19013_v51  ;;  %11212 = vmatprep.subr.bf16.mxu0 %v19018_v54  ;;  %v19070_v51 = vld [vmem:[#allocation5 + $0x2b30] ss:$40 sps:$4 sm:$0xff]  }
 0x529   :  { %11622 = vmatprep.subr.bf16.mxu1 %v19021_v56  ;;  %11242 = vmatprep.mubr.bf16.mxu0 %v20804_v60  ;;  %v19073_v54 = vld [vmem:[#allocation5 + $0x2b38] ss:$40 sps:$4 sm:$0xff]   ;;  %v19078_v56 = vld [vmem:[#allocation5 + $0x2b84] ss:$40 sps:$4 sm:$0xff]  }
 0x52a   :  { %11652 = vmatprep.mubr.bf16.mxu1 %v20804_v60 }
 0x52b   :  { %11213 = vmatpush1.bf16.msra.mxu0 %v19016_v57  ;;  %v19081_v57 = vld [vmem:[#allocation5 + $0x2b8c] ss:$40 sps:$4 sm:$0xff]  }
 0x52c   :  { %11623 = vmatpush1.bf16.msra.mxu1 %v19019_v58  ;;  %11214 = vmatprep.subr.bf16.mxu0 %v19024_v18  ;;  %v19076_v58 = vld [vmem:[#allocation5 + $0x2b80] ss:$40 sps:$4 sm:$0xff]  }
 0x52d   :  { %11624 = vmatprep.subr.bf16.mxu1 %v19027_v10  ;;  %v19079_v18 = vld [vmem:[#allocation5 + $0x2b88] ss:$40 sps:$4 sm:$0xff]   ;;  %v19084_v10 = vld [vmem:[#allocation5 + $0x2bd4] ss:$40 sps:$4 sm:$0xff]  }
 0x52f   :  { %11215 = vmatpush1.bf16.msra.mxu0 %v19022_v11  ;;  %v19087_v11 = vld [vmem:[#allocation5 + $0x2bdc] ss:$40 sps:$4 sm:$0xff]  }
 0x530   :  { %11625 = vmatpush1.bf16.msra.mxu1 %v19025_v63  ;;  %11216 = vmatprep.subr.bf16.mxu0 %v19030_v0  ;;  %v19082_v63 = vld [vmem:[#allocation5 + $0x2bd0] ss:$40 sps:$4 sm:$0xff]  }
 0x531   :  { %11626 = vmatprep.subr.bf16.mxu1 %v19033_v3  ;;  %v19085_v0 = vld [vmem:[#allocation5 + $0x2bd8] ss:$40 sps:$4 sm:$0xff]   ;;  %v19090_v3 = vld [vmem:[#allocation5 + $0x2c24] ss:$40 sps:$4 sm:$0xff]  }
 0x533   :  { %11217 = vmatpush1.bf16.msra.mxu0 %v19028_v22  ;;  %v19093_v22 = vld [vmem:[#allocation5 + $0x2c2c] ss:$40 sps:$4 sm:$0xff]  }
 0x534   :  { %11627 = vmatpush1.bf16.msra.mxu1 %v19031_v8  ;;  %11218 = vmatprep.subr.bf16.mxu0 %v19036_v40  ;;  %v19088_v8 = vld [vmem:[#allocation5 + $0x2c20] ss:$40 sps:$4 sm:$0xff]  }
 0x535   :  { %11628 = vmatprep.subr.bf16.mxu1 %v19039_v41  ;;  %v19091_v40 = vld [vmem:[#allocation5 + $0x2c28] ss:$40 sps:$4 sm:$0xff]   ;;  %v19096_v41 = vld [vmem:[#allocation5 + $0x2c74] ss:$40 sps:$4 sm:$0xff]  }
 0x537   :  { %11219 = vmatpush1.bf16.msra.mxu0 %v19034_v12  ;;  %v19099_v12 = vld [vmem:[#allocation5 + $0x2c7c] ss:$40 sps:$4 sm:$0xff]  }
 0x538   :  { %11629 = vmatpush1.bf16.msra.mxu1 %v19037_v13  ;;  %11220 = vmatprep.subr.bf16.mxu0 %v19042_v14  ;;  %v19094_v13 = vld [vmem:[#allocation5 + $0x2c70] ss:$40 sps:$4 sm:$0xff]  }
 0x539   :  { %11630 = vmatprep.subr.bf16.mxu1 %v19045_v16  ;;  %v19097_v14 = vld [vmem:[#allocation5 + $0x2c78] ss:$40 sps:$4 sm:$0xff]   ;;  %v19102_v16 = vld [vmem:[#allocation5 + $0x2cc4] ss:$40 sps:$4 sm:$0xff]  }
 0x53b   :  { %11221 = vmatpush1.bf16.msra.mxu0 %v19040_v17  ;;  %v19105_v17 = vld [vmem:[#allocation5 + $0x2ccc] ss:$40 sps:$4 sm:$0xff]  }
 0x53c   :  { %11631 = vmatpush1.bf16.msra.mxu1 %v19043_v23  ;;  %11222 = vmatprep.subr.bf16.mxu0 %v19048_v44  ;;  %v19100_v23 = vld [vmem:[#allocation5 + $0x2cc0] ss:$40 sps:$4 sm:$0xff]  }
 0x53d   :  { %11632 = vmatprep.subr.bf16.mxu1 %v19051_v47  ;;  %v19103_v44 = vld [vmem:[#allocation5 + $0x2cc8] ss:$40 sps:$4 sm:$0xff]   ;;  %v19108_v47 = vld [vmem:[#allocation5 + $0x2d14] ss:$40 sps:$4 sm:$0xff]  }
 0x53f   :  { %11223 = vmatpush1.bf16.msra.mxu0 %v19046_v25  ;;  %v19111_v25 = vld [vmem:[#allocation5 + $0x2d1c] ss:$40 sps:$4 sm:$0xff]  }
 0x540   :  { %11633 = vmatpush1.bf16.msra.mxu1 %v19049_v27  ;;  %11224 = vmatprep.subr.bf16.mxu0 %v19054_v28  ;;  %v19106_v27 = vld [vmem:[#allocation5 + $0x2d10] ss:$40 sps:$4 sm:$0xff]  }
 0x541   :  { %11634 = vmatprep.subr.bf16.mxu1 %v19057_v53  ;;  %v19109_v28 = vld [vmem:[#allocation5 + $0x2d18] ss:$40 sps:$4 sm:$0xff]   ;;  %v19114_v53 = vld [vmem:[#allocation5 + $0x2d64] ss:$40 sps:$4 sm:$0xff]  }
 0x543   :  { %11225 = vmatpush1.bf16.msra.mxu0 %v19052_v62  ;;  %v19117_v62 = vld [vmem:[#allocation5 + $0x2d6c] ss:$40 sps:$4 sm:$0xff]  }
 0x544   :  { %11635 = vmatpush1.bf16.msra.mxu1 %v19055_v43  ;;  %11226 = vmatprep.subr.bf16.mxu0 %v19060_v48  ;;  %v19112_v43 = vld [vmem:[#allocation5 + $0x2d60] ss:$40 sps:$4 sm:$0xff]  }
 0x545   :  { %11636 = vmatprep.subr.bf16.mxu1 %v19063_v32  ;;  %v19115_v48 = vld [vmem:[#allocation5 + $0x2d68] ss:$40 sps:$4 sm:$0xff]   ;;  %v19120_v32 = vld [vmem:[#allocation5 + $0x2db4] ss:$40 sps:$4 sm:$0xff]  }
 0x547   :  { %11227 = vmatpush1.bf16.msra.mxu0 %v19058_v33  ;;  %v19123_v33 = vld [vmem:[#allocation5 + $0x2dbc] ss:$40 sps:$4 sm:$0xff]  }
 0x548   :  { %11637 = vmatpush1.bf16.msra.mxu1 %v19061_v34  ;;  %11228 = vmatprep.subr.bf16.mxu0 %v19066_v35  ;;  %v19118_v34 = vld [vmem:[#allocation5 + $0x2db0] ss:$40 sps:$4 sm:$0xff]  }
 0x549   :  { %11638 = vmatprep.subr.bf16.mxu1 %v19069_v36  ;;  %v19121_v35 = vld [vmem:[#allocation5 + $0x2db8] ss:$40 sps:$4 sm:$0xff]   ;;  %v19126_v36 = vld [vmem:[#allocation5 + $0x2e04] ss:$40 sps:$4 sm:$0xff]  }
 0x54b   :  { %11229 = vmatpush1.bf16.msra.mxu0 %v19064_v37  ;;  %v19129_v37 = vld [vmem:[#allocation5 + $0x2e0c] ss:$40 sps:$4 sm:$0xff]  }
 0x54c   :  { %11639 = vmatpush1.bf16.msra.mxu1 %v19067_v42  ;;  %11230 = vmatprep.subr.bf16.mxu0 %v19072_v49  ;;  %v19124_v42 = vld [vmem:[#allocation5 + $0x2e00] ss:$40 sps:$4 sm:$0xff]  }
 0x54d   :  { %11640 = vmatprep.subr.bf16.mxu1 %v19075_v50  ;;  %v19127_v49 = vld [vmem:[#allocation5 + $0x2e08] ss:$40 sps:$4 sm:$0xff]   ;;  %v19132_v50 = vld [vmem:[#allocation5 + $0x2e54] ss:$40 sps:$4 sm:$0xff]  }
 0x54f   :  { %11231 = vmatpush1.bf16.msra.mxu0 %v19070_v51  ;;  %v19135_v51 = vld [vmem:[#allocation5 + $0x2e5c] ss:$40 sps:$4 sm:$0xff]  }
 0x550   :  { %11641 = vmatpush1.bf16.msra.mxu1 %v19073_v54  ;;  %11232 = vmatprep.subr.bf16.mxu0 %v19078_v56  ;;  %v19130_v54 = vld [vmem:[#allocation5 + $0x2e50] ss:$40 sps:$4 sm:$0xff]  }
 0x551   :  { %11642 = vmatprep.subr.bf16.mxu1 %v19081_v57  ;;  %v19133_v56 = vld [vmem:[#allocation5 + $0x2e58] ss:$40 sps:$4 sm:$0xff]   ;;  %v19138_v57 = vld [vmem:[#allocation5 + $0x2ea4] ss:$40 sps:$4 sm:$0xff]  }
 0x553   :  { %11233 = vmatpush1.bf16.msra.mxu0 %v19076_v58  ;;  %v19141_v58 = vld [vmem:[#allocation5 + $0x2eac] ss:$40 sps:$4 sm:$0xff]  }
 0x554   :  { %11643 = vmatpush1.bf16.msra.mxu1 %v19079_v18  ;;  %11234 = vmatprep.subr.bf16.mxu0 %v19084_v10  ;;  %v19136_v18 = vld [vmem:[#allocation5 + $0x2ea0] ss:$40 sps:$4 sm:$0xff]  }
 0x555   :  { %11644 = vmatprep.subr.bf16.mxu1 %v19087_v11  ;;  %v19139_v10 = vld [vmem:[#allocation5 + $0x2ea8] ss:$40 sps:$4 sm:$0xff]   ;;  %v19144_v11 = vld [vmem:[#allocation5 + $0x2ef4] ss:$40 sps:$4 sm:$0xff]  }
 0x557   :  { %11235 = vmatpush1.bf16.msra.mxu0 %v19082_v63  ;;  %v19147_v63 = vld [vmem:[#allocation5 + $0x2efc] ss:$40 sps:$4 sm:$0xff]  }
 0x558   :  { %11645 = vmatpush1.bf16.msra.mxu1 %v19085_v0  ;;  %11236 = vmatprep.subr.bf16.mxu0 %v19090_v3  ;;  %v19142_v0 = vld [vmem:[#allocation5 + $0x2ef0] ss:$40 sps:$4 sm:$0xff]  }
 0x559   :  { %11646 = vmatprep.subr.bf16.mxu1 %v19093_v22  ;;  %v19145_v3 = vld [vmem:[#allocation5 + $0x2ef8] ss:$40 sps:$4 sm:$0xff]   ;;  %v19150_v22 = vld [vmem:[#allocation5 + $0x2f44] ss:$40 sps:$4 sm:$0xff]  }
 0x55b   :  { %11237 = vmatpush1.bf16.msra.mxu0 %v19088_v8  ;;  %v19153_v8 = vld [vmem:[#allocation5 + $0x2f4c] ss:$40 sps:$4 sm:$0xff]  }
 0x55c   :  { %11647 = vmatpush1.bf16.msra.mxu1 %v19091_v40  ;;  %11238 = vmatprep.subr.bf16.mxu0 %v19096_v41  ;;  %v19148_v40 = vld [vmem:[#allocation5 + $0x2f40] ss:$40 sps:$4 sm:$0xff]  }
 0x55d   :  { %11648 = vmatprep.subr.bf16.mxu1 %v19099_v12  ;;  %v19151_v41 = vld [vmem:[#allocation5 + $0x2f48] ss:$40 sps:$4 sm:$0xff]   ;;  %v19156_v12 = vld [vmem:[#allocation5 + $0x2f94] ss:$40 sps:$4 sm:$0xff]  }
 0x55f   :  { %11239 = vmatpush1.bf16.msra.mxu0 %v19094_v13  ;;  %v19159_v13 = vld [vmem:[#allocation5 + $0x2f9c] ss:$40 sps:$4 sm:$0xff]  }
 0x560   :  { %11649 = vmatpush1.bf16.msra.mxu1 %v19097_v14  ;;  %11240 = vmatprep.subr.bf16.mxu0 %v19102_v16  ;;  %v19154_v14 = vld [vmem:[#allocation5 + $0x2f90] ss:$40 sps:$4 sm:$0xff]  }
 0x561   :  { %11650 = vmatprep.subr.bf16.mxu1 %v19105_v17  ;;  %v19157_v16 = vld [vmem:[#allocation5 + $0x2f98] ss:$40 sps:$4 sm:$0xff]   ;;  %v19162_v17 = vld [vmem:[#allocation5 + $0x2fe4] ss:$40 sps:$4 sm:$0xff]  }
 0x563   :  { %11241 = vmatpush1.bf16.msra.mxu0 %v19100_v23  ;;  %v19165_v23 = vld [vmem:[#allocation5 + $0x2fec] ss:$40 sps:$4 sm:$0xff]  }
 0x564   :  { %11651 = vmatpush1.bf16.msra.mxu1 %v19103_v44  ;;  %11251 = vmatprep.subr.bf16.mxu0 %v19108_v47  ;;  %v19160_v44 = vld [vmem:[#allocation5 + $0x2fe0] ss:$40 sps:$4 sm:$0xff]  }
 0x565   :  { %11661 = vmatprep.subr.bf16.mxu1 %v19111_v25  ;;  %v19163_v47 = vld [vmem:[#allocation5 + $0x2fe8] ss:$40 sps:$4 sm:$0xff]   ;;  %v19168_v25 = vld [vmem:[#allocation5 + $0x3034] ss:$40 sps:$4 sm:$0xff]  }
 0x566   :  { %11243 = vmatmul.mubr.bf16.vlgmr.msra.gmra.mrb[4].mxu0 %v20820_v61 }
 0x567   :  { %11653 = vmatmul.mubr.bf16.vlgmr.msra.gmra.mrb[4].mxu1 %v20820_v61  ;;  %11252 = vmatpush1.bf16.msra.mxu0 %v19106_v27  ;;  %v19171_v27 = vld [vmem:[#allocation5 + $0x303c] ss:$40 sps:$4 sm:$0xff]  }
 0x568   :  { %11662 = vmatpush1.bf16.msra.mxu1 %v19109_v28  ;;  %11253 = vmatprep.subr.bf16.mxu0 %v19114_v53  ;;  %v19166_v28 = vld [vmem:[#allocation5 + $0x3030] ss:$40 sps:$4 sm:$0xff]  }
 0x569   :  { %11663 = vmatprep.subr.bf16.mxu1 %v19117_v62  ;;  %11283 = vmatprep.mubr.bf16.mxu0 %v20822_v31  ;;  %v19169_v53 = vld [vmem:[#allocation5 + $0x3038] ss:$40 sps:$4 sm:$0xff]   ;;  %v19174_v62 = vld [vmem:[#allocation5 + $0x3084] ss:$40 sps:$4 sm:$0xff]  }
 0x56a   :  { %11693 = vmatprep.mubr.bf16.mxu1 %v20822_v31 }
 0x56b   :  { %11254 = vmatpush1.bf16.msra.mxu0 %v19112_v43  ;;  %v19177_v43 = vld [vmem:[#allocation5 + $0x308c] ss:$40 sps:$4 sm:$0xff]  }
 0x56c   :  { %11664 = vmatpush1.bf16.msra.mxu1 %v19115_v48  ;;  %11255 = vmatprep.subr.bf16.mxu0 %v19120_v32  ;;  %v20881_v48 = vsub.s32 1, %v20657_v46  ;;  %v20883_v32 = vld [vmem:[#allocation7] sm:$0xff] }
 0x56d   :  { %11665 = vmatprep.subr.bf16.mxu1 %v19123_v33  ;;  %v19172_v33 = vld [vmem:[#allocation5 + $0x3080] ss:$40 sps:$4 sm:$0xff]  }
 0x56f   :  { %11256 = vmatpush1.bf16.msra.mxu0 %v19118_v34  ;;  %v19175_v34 = vld [vmem:[#allocation5 + $0x3088] ss:$40 sps:$4 sm:$0xff]  }
 0x570   :  { %11666 = vmatpush1.bf16.msra.mxu1 %v19121_v35  ;;  %11257 = vmatprep.subr.bf16.mxu0 %v19126_v36  ;;  %v19180_v35 = vld [vmem:[#allocation5 + $0x30d4] ss:$40 sps:$4 sm:$0xff]  }
 0x571   :  { %11667 = vmatprep.subr.bf16.mxu1 %v19129_v37  ;;  %v19183_v36 = vld [vmem:[#allocation5 + $0x30dc] ss:$40 sps:$4 sm:$0xff]   ;;  %v2019_v37 = vrot.slane %v20883_v32, %v20881_v48 }
 0x573   :  { %11258 = vmatpush1.bf16.msra.mxu0 %v19124_v42  ;;  %v19178_v42 = vld [vmem:[#allocation5 + $0x30d0] ss:$40 sps:$4 sm:$0xff]  }
 0x574   :  { %11668 = vmatpush1.bf16.msra.mxu1 %v19127_v49  ;;  %11259 = vmatprep.subr.bf16.mxu0 %v19132_v50  ;;  %v19181_v49 = vld [vmem:[#allocation5 + $0x30d8] ss:$40 sps:$4 sm:$0xff]   ;;  %v19186_v50 = vld [vmem:[#allocation5 + $0x3124] ss:$40 sps:$4 sm:$0xff]  }
 0x575   :  { %11669 = vmatprep.subr.bf16.mxu1 %v19135_v51  ;;  %v19189_v51 = vld [vmem:[#allocation5 + $0x312c] ss:$40 sps:$4 sm:$0xff]  }
 0x577   :  { %11260 = vmatpush1.bf16.msra.mxu0 %v19130_v54  ;;  %v17006_v54 = vadd.f32 %v20852_v7, %v2019_v37  ;;  %v19196_v7 = vld [vmem:[#allocation5 + $0x31c0] ss:$40 sps:$4 sm:$0xff]  }
 0x578   :  { %11670 = vmatpush1.bf16.msra.mxu1 %v19133_v56  ;;  %11261 = vmatprep.subr.bf16.mxu0 %v19138_v57  ;;  %v19184_v56 = vld [vmem:[#allocation5 + $0x3120] ss:$40 sps:$4 sm:$0xff]  }
 0x579   :  { %11671 = vmatprep.subr.bf16.mxu1 %v19141_v58  ;;  %v19187_v57 = vld [vmem:[#allocation5 + $0x3128] ss:$40 sps:$4 sm:$0xff]   ;;  %v19192_v58 = vld [vmem:[#allocation5 + $0x3174] ss:$40 sps:$4 sm:$0xff]   ;;  %20202 = vtanh.f32 %v17006_v54 }
 0x57a   :  { %v19237_v37 = vld [vmem:[#allocation8 + $0xa4] ss:$16 sps:$4 sm:$0xff]  }
 0x57b   :  { %11262 = vmatpush1.bf16.msra.mxu0 %v19136_v18  ;;  %v19195_v18 = vld [vmem:[#allocation5 + $0x317c] ss:$40 sps:$4 sm:$0xff]   ;;  %v19238_v54 = vld [vmem:[#allocation5 + $0x200] ss:$40 sps:$4 sm:$0xff]  }
 0x57c   :  { %11672 = vmatpush1.bf16.msra.mxu1 %v19139_v10  ;;  %11263 = vmatprep.subr.bf16.mxu0 %v19144_v11  ;;  %v19190_v10 = vld [vmem:[#allocation5 + $0x3170] ss:$40 sps:$4 sm:$0xff]  }
 0x57d   :  { %11673 = vmatprep.subr.bf16.mxu1 %v19147_v63  ;;  %v19193_v11 = vld [vmem:[#allocation5 + $0x3178] ss:$40 sps:$4 sm:$0xff]   ;;  %v19198_v63 = vld [vmem:[#allocation5 + $0x31c4] ss:$40 sps:$4 sm:$0xff]  }
 0x57f   :  { %11264 = vmatpush1.bf16.msra.mxu0 %v19142_v0  ;;  %v19201_v0 = vld [vmem:[#allocation5 + $0x31cc] ss:$40 sps:$4 sm:$0xff]  }
 0x580   :  { %11674 = vmatpush1.bf16.msra.mxu1 %v19145_v3  ;;  %11265 = vmatprep.subr.bf16.mxu0 %v19150_v22  ;;  %v19199_v3 = vld [vmem:[#allocation5 + $0x31c8] ss:$40 sps:$4 sm:$0xff]   ;;  %v19204_v22 = vld [vmem:[#allocation5 + $0x24] ss:$40 sps:$4 sm:$0xff]  }
 0x581   :  { %11675 = vmatprep.subr.bf16.mxu1 %v19153_v8  ;;  %v19207_v8 = vld [vmem:[#allocation8 + $0x4] ss:$16 sps:$4 sm:$0xff]  }
 0x583   :  { %11266 = vmatpush1.bf16.msra.mxu0 %v19148_v40  ;;  %v20203_v40 = vpop.eup %20202 }
 0x584   :  { %11676 = vmatpush1.bf16.msra.mxu1 %v19151_v41  ;;  %11267 = vmatprep.subr.bf16.mxu0 %v19156_v12  ;;  %v19202_v41 = vld [vmem:[#allocation5 + $0x20] ss:$40 sps:$4 sm:$0xff]  }
 0x585   :  { %11677 = vmatprep.subr.bf16.mxu1 %v19159_v13  ;;  %v19205_v12 = vld [vmem:[#allocation8] ss:$16 sps:$4 sm:$0xff]  }
 0x586   :  { %v19210_v13 = vld [vmem:[#allocation5 + $0x74] ss:$40 sps:$4 sm:$0xff]  }
 0x587   :  { %11268 = vmatpush1.bf16.msra.mxu0 %v19154_v14  ;;  %v19213_v14 = vld [vmem:[#allocation8 + $0x24] ss:$16 sps:$4 sm:$0xff]  }
 0x588   :  { %11678 = vmatpush1.bf16.msra.mxu1 %v19157_v16  ;;  %11269 = vmatprep.subr.bf16.mxu0 %v19162_v17  ;;  %v20888_v16 = vpack.c.bf16 %v20203_v40, %v20203_v40  ;;  %v19208_v17 = vld [vmem:[#allocation5 + $0x70] ss:$40 sps:$4 sm:$0xff]  }
 0x589   :  { %11679 = vmatprep.subr.bf16.mxu1 %v19165_v23  ;;  %v19211_v23 = vld [vmem:[#allocation8 + $0x20] ss:$16 sps:$4 sm:$0xff]  }
 0x58a   :  { %v19259_v40 = vld [vmem:[#allocation8 + $0x120] ss:$16 sps:$4 sm:$0xff]  }
 0x58b   :  { %11270 = vmatpush1.bf16.msra.mxu0 %v19160_v44  ;;  %v19216_v44 = vld [vmem:[#allocation5 + $0xc4] ss:$40 sps:$4 sm:$0xff]  }
 0x58c   :  { %11680 = vmatpush1.bf16.msra.mxu1 %v19163_v47  ;;  %11271 = vmatprep.subr.bf16.mxu0 %v19168_v25  ;;  %v19219_v47 = vld [vmem:[#allocation8 + $0x44] ss:$16 sps:$4 sm:$0xff]  }
 0x58d   :  { %11681 = vmatprep.subr.bf16.mxu1 %v19171_v27  ;;  %v19214_v25 = vld [vmem:[#allocation5 + $0xc0] ss:$40 sps:$4 sm:$0xff]  }
 0x58e   :  { %v19217_v27 = vld [vmem:[#allocation8 + $0x40] ss:$16 sps:$4 sm:$0xff]  }
 0x58f   :  { %11272 = vmatpush1.bf16.msra.mxu0 %v19166_v28  ;;  %v19222_v28 = vld [vmem:[#allocation5 + $0x114] ss:$40 sps:$4 sm:$0xff]  }
 0x590   :  { %11682 = vmatpush1.bf16.msra.mxu1 %v19169_v53  ;;  %11273 = vmatprep.subr.bf16.mxu0 %v19174_v62  ;;  %v19225_v53 = vld [vmem:[#allocation8 + $0x64] ss:$16 sps:$4 sm:$0xff]  }
 0x591   :  { %11683 = vmatprep.subr.bf16.mxu1 %v19177_v43  ;;  %v19220_v62 = vld [vmem:[#allocation5 + $0x110] ss:$40 sps:$4 sm:$0xff]  }
 0x592   :  { %v19223_v43 = vld [vmem:[#allocation8 + $0x60] ss:$16 sps:$4 sm:$0xff]  }
 0x593   :  { %11274 = vmatpush1.bf16.msra.mxu0 %v19172_v33  ;;  %v19228_v33 = vld [vmem:[#allocation5 + $0x164] ss:$40 sps:$4 sm:$0xff]  }
 0x594   :  { %11684 = vmatpush1.bf16.msra.mxu1 %v19175_v34  ;;  %11275 = vmatprep.subr.bf16.mxu0 %v19180_v35  ;;  %v19231_v34 = vld [vmem:[#allocation8 + $0x84] ss:$16 sps:$4 sm:$0xff]  }
 0x595   :  { %11685 = vmatprep.subr.bf16.mxu1 %v19183_v36  ;;  %v19226_v35 = vld [vmem:[#allocation5 + $0x160] ss:$40 sps:$4 sm:$0xff]   ;;  %v19234_v36 = vld [vmem:[#allocation5 + $0x1b4] ss:$40 sps:$4 sm:$0xff]  }
 0x597   :  { %11276 = vmatpush1.bf16.msra.mxu0 %v19178_v42  ;;  %v19232_v42 = vld [vmem:[#allocation5 + $0x1b0] ss:$40 sps:$4 sm:$0xff]  }
 0x598   :  { %11686 = vmatpush1.bf16.msra.mxu1 %v19181_v49  ;;  %11277 = vmatprep.subr.bf16.mxu0 %v19186_v50  ;;  %v19235_v49 = vld [vmem:[#allocation8 + $0xa0] ss:$16 sps:$4 sm:$0xff]  }
 0x599   :  { %11687 = vmatprep.subr.bf16.mxu1 %v19189_v51  ;;  %v19240_v50 = vld [vmem:[#allocation5 + $0x204] ss:$40 sps:$4 sm:$0xff]  }
 0x59a   :  { %v19243_v51 = vld [vmem:[#allocation8 + $0xc4] ss:$16 sps:$4 sm:$0xff]  }
 0x59b   :  { %11278 = vmatpush1.bf16.msra.mxu0 %v19184_v56  ;;  %v19241_v56 = vld [vmem:[#allocation8 + $0xc0] ss:$16 sps:$4 sm:$0xff]  }
 0x59c   :  { %11688 = vmatpush1.bf16.msra.mxu1 %v19187_v57  ;;  %11279 = vmatprep.subr.bf16.mxu0 %v19192_v58  ;;  %v19246_v57 = vld [vmem:[#allocation5 + $0x254] ss:$40 sps:$4 sm:$0xff]  }
 0x59d   :  { %11689 = vmatprep.subr.bf16.mxu1 %v19195_v18  ;;  %v19249_v58 = vld [vmem:[#allocation8 + $0xe4] ss:$16 sps:$4 sm:$0xff]  }
 0x59e   :  { %v19244_v18 = vld [vmem:[#allocation5 + $0x250] ss:$40 sps:$4 sm:$0xff]  }
 0x59f   :  { %11280 = vmatpush1.bf16.msra.mxu0 %v19190_v10  ;;  %v19247_v10 = vld [vmem:[#allocation8 + $0xe0] ss:$16 sps:$4 sm:$0xff]  }
 0x5a0   :  { %11690 = vmatpush1.bf16.msra.mxu1 %v19193_v11  ;;  %11281 = vmatprep.subr.bf16.mxu0 %v19198_v63  ;;  %v19252_v11 = vld [vmem:[#allocation5 + $0x2a4] ss:$40 sps:$4 sm:$0xff]  }
 0x5a1   :  { %11691 = vmatprep.subr.bf16.mxu1 %v19201_v0  ;;  %v19255_v63 = vld [vmem:[#allocation8 + $0x104] ss:$16 sps:$4 sm:$0xff]  }
 0x5a2   :  { %v19250_v0 = vld [vmem:[#allocation5 + $0x2a0] ss:$40 sps:$4 sm:$0xff]  }
 0x5a3   :  { %11282 = vmatpush1.bf16.msra.mxu0 %v19196_v7  ;;  %v19253_v7 = vld [vmem:[#allocation8 + $0x100] ss:$16 sps:$4 sm:$0xff]  }
 0x5a4   :  { %11692 = vmatpush1.bf16.msra.mxu1 %v19199_v3  ;;  %11702 = vmatprep.subr.bf16.mxu0 %v19204_v22  ;;  %v19258_v3 = vld [vmem:[#allocation5 + $0x2f4] ss:$40 sps:$4 sm:$0xff]  }
 0x5a5   :  { %14074 = vmatprep.subr.bf16.mxu1 %v19207_v8  ;;  %v19261_v22 = vld [vmem:[#allocation8 + $0x124] ss:$16 sps:$4 sm:$0xff]  }
 0x5a6   :  { %11284 = vmatmul.mubr.bf16.vlgmr.msra.gmra.mrb[4].mxu0 %v20830_v2  ;;  %v19256_v8 = vld [vmem:[#allocation5 + $0x2f0] ss:$40 sps:$4 sm:$0xff]  }
 0x5a7   :  { %11694 = vmatmul.mubr.bf16.vlgmr.msra.gmra.mrb[4].mxu1 %v20830_v2  ;;  %11703 = vmatpush1.bf16.msra.mxu0 %v19202_v41  ;;  %v19264_v41 = vld [vmem:[#allocation5 + $0x344] ss:$40 sps:$4 sm:$0xff]  }
 0x5a8   :  { %14075 = vmatpush1.bf16.msra.mxu1 %v19205_v12  ;;  %14106 = vmatprep.mubr.bf16.mxu1 %v20888_v16  ;;  %v19267_v12 = vld [vmem:[#allocation8 + $0x144] ss:$16 sps:$4 sm:$0xff]  }
 0x5a9   :  { %11704 = vmatprep.subr.bf16.mxu0 %v19210_v13  ;;  %14076 = vmatprep.subr.bf16.mxu1 %v19213_v14  ;;  %v20895_v13 = vsub.s32 0, %v20657_v46  ;;  %v19262_v14 = vld [vmem:[#allocation5 + $0x340] ss:$40 sps:$4 sm:$0xff]  }
 0x5aa   :  { %11734 = vmatprep.mubr.bf16.mxu0 %v20664_v1  ;;  %v19229_v1 = vld [vmem:[#allocation8 + $0x80] ss:$16 sps:$4 sm:$0xff]  }
 0x5ab   :  { %11705 = vmatpush1.bf16.msra.mxu0 %v19208_v17  ;;  %v19265_v17 = vld [vmem:[#allocation8 + $0x140] ss:$16 sps:$4 sm:$0xff]  }
 0x5ac   :  { %14077 = vmatpush1.bf16.msra.mxu1 %v19211_v23  ;;  %11706 = vmatprep.subr.bf16.mxu0 %v19216_v44  ;;  %v19270_v23 = vld [vmem:[#allocation5 + $0x394] ss:$40 sps:$4 sm:$0xff]  }
 0x5ad   :  { %14078 = vmatprep.subr.bf16.mxu1 %v19219_v47  ;;  %v19273_v44 = vld [vmem:[#allocation8 + $0x164] ss:$16 sps:$4 sm:$0xff]   ;;  %v2026_v47 = vsub.s32 3, %v20657_v46 }
 0x5af   :  { %11707 = vmatpush1.bf16.msra.mxu0 %v19214_v25  ;;  %v2015_v25 = vrot.slane %v20883_v32, %v20895_v13 }
 0x5b0   :  { %14079 = vmatpush1.bf16.msra.mxu1 %v19217_v27  ;;  %11708 = vmatprep.subr.bf16.mxu0 %v19222_v28  ;;  %v19268_v27 = vld [vmem:[#allocation5 + $0x390] ss:$40 sps:$4 sm:$0xff]  }
 0x5b1   :  { %14080 = vmatprep.subr.bf16.mxu1 %v19225_v53  ;;  %v19271_v28 = vld [vmem:[#allocation8 + $0x160] ss:$16 sps:$4 sm:$0xff]  }
 0x5b2   :  { %v19276_v53 = vld [vmem:[#allocation5 + $0x3e4] ss:$40 sps:$4 sm:$0xff]  }
 0x5b3   :  { %11709 = vmatpush1.bf16.msra.mxu0 %v19220_v62  ;;  %v19279_v62 = vld [vmem:[#allocation8 + $0x184] ss:$16 sps:$4 sm:$0xff]  }
 0x5b4   :  { %14081 = vmatpush1.bf16.msra.mxu1 %v19223_v43  ;;  %11710 = vmatprep.subr.bf16.mxu0 %v19228_v33  ;;  %v2027_v43 = vrot.slane %v20883_v32, %v2026_v47  ;;  %v17005_v33 = vadd.f32 %v20848_v4, %v2015_v25  ;;  %v19286_v4 = vld [vmem:[#allocation5 + $0x480] ss:$40 sps:$4 sm:$0xff]   ;;  %v19318_v25 = vld [vmem:[#allocation5 + $0x614] ss:$40 sps:$4 sm:$0xff]  }
 0x5b5   :  { %14082 = vmatprep.subr.bf16.mxu1 %v19231_v34  ;;  %v19274_v34 = vld [vmem:[#allocation5 + $0x3e0] ss:$40 sps:$4 sm:$0xff]  }
 0x5b6   :  { %20204 = vtanh.f32 %v17005_v33  ;;  %v19330_v33 = vld [vmem:[#allocation5 + $0x6b4] ss:$40 sps:$4 sm:$0xff]  }
 0x5b7   :  { %11711 = vmatpush1.bf16.msra.mxu0 %v19226_v35  ;;  %v19277_v35 = vld [vmem:[#allocation8 + $0x180] ss:$16 sps:$4 sm:$0xff]  }
 0x5b8   :  { %14083 = vmatpush1.bf16.msra.mxu1 %v19229_v1  ;;  %11712 = vmatprep.subr.bf16.mxu0 %v19234_v36  ;;  %v19282_v1 = vld [vmem:[#allocation5 + $0x434] ss:$40 sps:$4 sm:$0xff]  }
 0x5b9   :  { %14084 = vmatprep.subr.bf16.mxu1 %v19237_v37  ;;  %v19285_v36 = vld [vmem:[#allocation8 + $0x1a4] ss:$16 sps:$4 sm:$0xff]   ;;  %v17008_v37 = vadd.f32 %v20854_v20, %v2027_v43 }
 0x5ba   :  { %v19292_v20 = vld [vmem:[#allocation5 + $0x4d0] ss:$40 sps:$4 sm:$0xff]   ;;  %v19322_v43 = vld [vmem:[#allocation5 + $0x660] ss:$40 sps:$4 sm:$0xff]  }
 0x5bb   :  { %11713 = vmatpush1.bf16.msra.mxu0 %v19232_v42  ;;  %v19280_v42 = vld [vmem:[#allocation5 + $0x430] ss:$40 sps:$4 sm:$0xff]   ;;  %20206 = vtanh.f32 %v17008_v37 }
 0x5bc   :  { %14085 = vmatpush1.bf16.msra.mxu1 %v19235_v49  ;;  %11714 = vmatprep.subr.bf16.mxu0 %v19240_v50  ;;  %v19283_v49 = vld [vmem:[#allocation8 + $0x1a0] ss:$16 sps:$4 sm:$0xff]   ;;  %v19339_v37 = vld [vmem:[#allocation8 + $0x2c4] ss:$16 sps:$4 sm:$0xff]  }
 0x5bd   :  { %14086 = vmatprep.subr.bf16.mxu1 %v19243_v51  ;;  %v19288_v50 = vld [vmem:[#allocation5 + $0x484] ss:$40 sps:$4 sm:$0xff]  }
 0x5be   :  { %v19291_v51 = vld [vmem:[#allocation8 + $0x1c4] ss:$16 sps:$4 sm:$0xff]  }
 0x5bf   :  { %11715 = vmatpush1.bf16.msra.mxu0 %v19238_v54  ;;  %v19289_v54 = vld [vmem:[#allocation8 + $0x1c0] ss:$16 sps:$4 sm:$0xff]  }
 0x5c0   :  { %14087 = vmatpush1.bf16.msra.mxu1 %v19241_v56  ;;  %11716 = vmatprep.subr.bf16.mxu0 %v19246_v57  ;;  %v19294_v56 = vld [vmem:[#allocation5 + $0x4d4] ss:$40 sps:$4 sm:$0xff]  }
 0x5c1   :  { %14088 = vmatprep.subr.bf16.mxu1 %v19249_v58  ;;  %v19297_v57 = vld [vmem:[#allocation8 + $0x1e4] ss:$16 sps:$4 sm:$0xff]   ;;  %v19295_v58 = vld [vmem:[#allocation8 + $0x1e0] ss:$16 sps:$4 sm:$0xff]  }
 0x5c3   :  { %11717 = vmatpush1.bf16.msra.mxu0 %v19244_v18  ;;  %v19300_v18 = vld [vmem:[#allocation5 + $0x524] ss:$40 sps:$4 sm:$0xff]  }
 0x5c4   :  { %14089 = vmatpush1.bf16.msra.mxu1 %v19247_v10  ;;  %11718 = vmatprep.subr.bf16.mxu0 %v19252_v11  ;;  %v19303_v10 = vld [vmem:[#allocation8 + $0x204] ss:$16 sps:$4 sm:$0xff]   ;;  %v20205_v11 = vpop.eup %20204 }
 0x5c5   :  { %14090 = vmatprep.subr.bf16.mxu1 %v19255_v63  ;;  %v20207_v63 = vpop.eup %20206 }
 0x5c7   :  { %11719 = vmatpush1.bf16.msra.mxu0 %v19250_v0  ;;  %v19298_v0 = vld [vmem:[#allocation5 + $0x520] ss:$40 sps:$4 sm:$0xff]  }
 0x5c8   :  { %14091 = vmatpush1.bf16.msra.mxu1 %v19253_v7  ;;  %11720 = vmatprep.subr.bf16.mxu0 %v19258_v3  ;;  %v19301_v7 = vld [vmem:[#allocation8 + $0x200] ss:$16 sps:$4 sm:$0xff]   ;;  %v20905_v3 = vpack.c.bf16 %v20205_v11, %v20205_v11 }
 0x5c9   :  { %14092 = vmatprep.subr.bf16.mxu1 %v19261_v22  ;;  %v19306_v22 = vld [vmem:[#allocation5 + $0x574] ss:$40 sps:$4 sm:$0xff]   ;;  %v19352_v11 = vld [vmem:[#allocation5 + $0x7f0] ss:$40 sps:$4 sm:$0xff]  }
 0x5cb   :  { %11721 = vmatpush1.bf16.msra.mxu0 %v19256_v8  ;;  %v19309_v8 = vld [vmem:[#allocation8 + $0x224] ss:$16 sps:$4 sm:$0xff]  }
 0x5cc   :  { %14093 = vmatpush1.bf16.msra.mxu1 %v19259_v40  ;;  %11722 = vmatprep.subr.bf16.mxu0 %v19264_v41  ;;  %v20907_v40 = vpack.c.bf16 %v20207_v63, %v20207_v63  ;;  %v19304_v41 = vld [vmem:[#allocation5 + $0x570] ss:$40 sps:$4 sm:$0xff]  }
 0x5cd   :  { %14094 = vmatprep.subr.bf16.mxu1 %v19267_v12  ;;  %v19307_v12 = vld [vmem:[#allocation8 + $0x220] ss:$16 sps:$4 sm:$0xff]  }
 0x5ce   :  { %v19355_v63 = vld [vmem:[#allocation8 + $0x320] ss:$16 sps:$4 sm:$0xff]  }
 0x5cf   :  { %11723 = vmatpush1.bf16.msra.mxu0 %v19262_v14  ;;  %v19312_v14 = vld [vmem:[#allocation5 + $0x5c4] ss:$40 sps:$4 sm:$0xff]  }
 0x5d0   :  { %14095 = vmatpush1.bf16.msra.mxu1 %v19265_v17  ;;  %11724 = vmatprep.subr.bf16.mxu0 %v19270_v23  ;;  %v19315_v17 = vld [vmem:[#allocation8 + $0x244] ss:$16 sps:$4 sm:$0xff]  }
 0x5d1   :  { %14096 = vmatprep.subr.bf16.mxu1 %v19273_v44  ;;  %v19310_v23 = vld [vmem:[#allocation5 + $0x5c0] ss:$40 sps:$4 sm:$0xff]  }
 0x5d2   :  { %v19313_v44 = vld [vmem:[#allocation8 + $0x240] ss:$16 sps:$4 sm:$0xff]  }
 0x5d3   :  { %11725 = vmatpush1.bf16.msra.mxu0 %v19268_v27  ;;  %v19316_v27 = vld [vmem:[#allocation5 + $0x610] ss:$40 sps:$4 sm:$0xff]  }
 0x5d4   :  { %14097 = vmatpush1.bf16.msra.mxu1 %v19271_v28  ;;  %11726 = vmatprep.subr.bf16.mxu0 %v19276_v53  ;;  %v19319_v28 = vld [vmem:[#allocation8 + $0x260] ss:$16 sps:$4 sm:$0xff]  }
 0x5d5   :  { %14098 = vmatprep.subr.bf16.mxu1 %v19279_v62  ;;  %v19324_v53 = vld [vmem:[#allocation5 + $0x664] ss:$40 sps:$4 sm:$0xff]  }
 0x5d6   :  { %v19327_v62 = vld [vmem:[#allocation8 + $0x284] ss:$16 sps:$4 sm:$0xff]  }
 0x5d7   :  { %11727 = vmatpush1.bf16.msra.mxu0 %v19274_v34  ;;  %v19333_v34 = vld [vmem:[#allocation8 + $0x2a4] ss:$16 sps:$4 sm:$0xff]  }
 0x5d8   :  { %14099 = vmatpush1.bf16.msra.mxu1 %v19277_v35  ;;  %11728 = vmatprep.subr.bf16.mxu0 %v19282_v1  ;;  %v19328_v35 = vld [vmem:[#allocation5 + $0x6b0] ss:$40 sps:$4 sm:$0xff]  }
 0x5d9   :  { %14100 = vmatprep.subr.bf16.mxu1 %v19285_v36  ;;  %v19331_v1 = vld [vmem:[#allocation8 + $0x2a0] ss:$16 sps:$4 sm:$0xff]  }
 0x5da   :  { %v19336_v36 = vld [vmem:[#allocation5 + $0x704] ss:$40 sps:$4 sm:$0xff]  }
 0x5db   :  { %11729 = vmatpush1.bf16.msra.mxu0 %v19280_v42  ;;  %v19334_v42 = vld [vmem:[#allocation5 + $0x700] ss:$40 sps:$4 sm:$0xff]  }
 0x5dc   :  { %14101 = vmatpush1.bf16.msra.mxu1 %v19283_v49  ;;  %11730 = vmatprep.subr.bf16.mxu0 %v19288_v50  ;;  %v19337_v49 = vld [vmem:[#allocation8 + $0x2c0] ss:$16 sps:$4 sm:$0xff]  }
 0x5dd   :  { %14102 = vmatprep.subr.bf16.mxu1 %v19291_v51  ;;  %v19342_v50 = vld [vmem:[#allocation5 + $0x754] ss:$40 sps:$4 sm:$0xff]  }
 0x5de   :  { %v19345_v51 = vld [vmem:[#allocation8 + $0x2e4] ss:$16 sps:$4 sm:$0xff]  }
 0x5df   :  { %11731 = vmatpush1.bf16.msra.mxu0 %v19286_v4  ;;  %v19340_v4 = vld [vmem:[#allocation5 + $0x750] ss:$40 sps:$4 sm:$0xff]  }
 0x5e0   :  { %14103 = vmatpush1.bf16.msra.mxu1 %v19289_v54  ;;  %11732 = vmatprep.subr.bf16.mxu0 %v19294_v56  ;;  %v19343_v54 = vld [vmem:[#allocation8 + $0x2e0] ss:$16 sps:$4 sm:$0xff]  }
 0x5e1   :  { %14104 = vmatprep.subr.bf16.mxu1 %v19297_v57  ;;  %v19348_v56 = vld [vmem:[#allocation5 + $0x7a4] ss:$40 sps:$4 sm:$0xff]  }
 0x5e2   :  { %v19351_v57 = vld [vmem:[#allocation8 + $0x304] ss:$16 sps:$4 sm:$0xff]  }
 0x5e3   :  { %11733 = vmatpush1.bf16.msra.mxu0 %v19292_v20  ;;  %v19346_v20 = vld [vmem:[#allocation5 + $0x7a0] ss:$40 sps:$4 sm:$0xff]  }
 0x5e4   :  { %14105 = vmatpush1.bf16.msra.mxu1 %v19295_v58  ;;  %11743 = vmatprep.subr.bf16.mxu0 %v19300_v18  ;;  %v19349_v58 = vld [vmem:[#allocation8 + $0x300] ss:$16 sps:$4 sm:$0xff]  }
 0x5e5   :  { %14115 = vmatprep.subr.bf16.mxu1 %v19303_v10  ;;  %v19354_v18 = vld [vmem:[#allocation5 + $0x7f4] ss:$40 sps:$4 sm:$0xff]  }
 0x5e6   :  { %11735 = vmatmul.mubr.bf16.vlgmr.msra.gmra.mrb[8].mxu0 %v20668_v15  ;;  %v19321_v15 = vld [vmem:[#allocation8 + $0x264] ss:$16 sps:$4 sm:$0xff]  }
 0x5e7   :  { %14107 = vmatmul.mubr.bf16.vlgmr.msra.gmra.mrb[8].mxu1 %v20905_v3  ;;  %11744 = vmatpush1.bf16.msra.mxu0 %v19298_v0  ;;  %v19357_v10 = vld [vmem:[#allocation8 + $0x324] ss:$16 sps:$4 sm:$0xff]  }
 0x5e8   :  { %14116 = vmatpush1.bf16.msra.mxu1 %v19301_v7  ;;  %14147 = vmatprep.mubr.bf16.mxu1 %v20907_v40  ;;  %v19360_v0 = vld [vmem:[#allocation5 + $0x844] ss:$40 sps:$4 sm:$0xff]  }
 0x5e9   :  { %11745 = vmatprep.subr.bf16.mxu0 %v19306_v22  ;;  %14117 = vmatprep.subr.bf16.mxu1 %v19309_v8  ;;  %v19363_v7 = vld [vmem:[#allocation8 + $0x344] ss:$16 sps:$4 sm:$0xff]   ;;  %v2022_v22 = vsub.s32 2, %v20657_v46 }
 0x5ea   :  { %11775 = vmatprep.mubr.bf16.mxu0 %v20680_v55  ;;  %v19325_v55 = vld [vmem:[#allocation8 + $0x280] ss:$16 sps:$4 sm:$0xff]  }
 0x5eb   :  { %11746 = vmatpush1.bf16.msra.mxu0 %v19304_v41  ;;  %v19358_v8 = vld [vmem:[#allocation5 + $0x840] ss:$40 sps:$4 sm:$0xff]  }
 0x5ec   :  { %14118 = vmatpush1.bf16.msra.mxu1 %v19307_v12  ;;  %11747 = vmatprep.subr.bf16.mxu0 %v19312_v14  ;;  %v19361_v41 = vld [vmem:[#allocation8 + $0x340] ss:$16 sps:$4 sm:$0xff]   ;;  %v19369_v14 = vld [vmem:[#allocation8 + $0x364] ss:$16 sps:$4 sm:$0xff]  }
 0x5ed   :  { %14119 = vmatprep.subr.bf16.mxu1 %v19315_v17  ;;  %v19366_v12 = vld [vmem:[#allocation5 + $0x894] ss:$40 sps:$4 sm:$0xff]   ;;  %v2023_v17 = vrot.slane %v20883_v32, %v2022_v22 }
 0x5ef   :  { %11748 = vmatpush1.bf16.msra.mxu0 %v19310_v23  ;;  %v19364_v23 = vld [vmem:[#allocation5 + $0x890] ss:$40 sps:$4 sm:$0xff]  }
 0x5f0   :  { %14120 = vmatpush1.bf16.msra.mxu1 %v19313_v44  ;;  %11749 = vmatprep.subr.bf16.mxu0 %v19318_v25  ;;  %v19367_v44 = vld [vmem:[#allocation8 + $0x360] ss:$16 sps:$4 sm:$0xff]  }
 0x5f1   :  { %14121 = vmatprep.subr.bf16.mxu1 %v19321_v15  ;;  %v19372_v25 = vld [vmem:[#allocation5 + $0x8e4] ss:$40 sps:$4 sm:$0xff]  }
 0x5f2   :  { %v19375_v15 = vld [vmem:[#allocation8 + $0x384] ss:$16 sps:$4 sm:$0xff]  }
 0x5f3   :  { %11750 = vmatpush1.bf16.msra.mxu0 %v19316_v27  ;;  %v17007_v27 = vadd.f32 %v20850_v5, %v2023_v17  ;;  %v19382_v5 = vld [vmem:[#allocation5 + $0x980] ss:$40 sps:$4 sm:$0xff]  }
 0x5f4   :  { %14122 = vmatpush1.bf16.msra.mxu1 %v19319_v28  ;;  %11751 = vmatprep.subr.bf16.mxu0 %v19324_v53  ;;  %v19370_v28 = vld [vmem:[#allocation5 + $0x8e0] ss:$40 sps:$4 sm:$0xff]  }
 0x5f5   :  { %14123 = vmatprep.subr.bf16.mxu1 %v19327_v62  ;;  %v19373_v53 = vld [vmem:[#allocation8 + $0x380] ss:$16 sps:$4 sm:$0xff]   ;;  %20208 = vtanh.f32 %v17007_v27  ;;  %v19450_v17 = vld [vmem:[#allocation8 + $0x484] ss:$16 sps:$4 sm:$0xff]  }
 0x5f6   :  { %v19378_v62 = vld [vmem:[#allocation5 + $0x934] ss:$40 sps:$4 sm:$0xff]  }
 0x5f7   :  { %11752 = vmatpush1.bf16.msra.mxu0 %v19322_v43  ;;  %v19381_v43 = vld [vmem:[#allocation8 + $0x3a4] ss:$16 sps:$4 sm:$0xff]   ;;  %v19454_v27 = vld [vmem:[#allocation8 + $0x4a0] ss:$16 sps:$4 sm:$0xff]  }
 0x5f8   :  { %14124 = vmatpush1.bf16.msra.mxu1 %v19325_v55  ;;  %11753 = vmatprep.subr.bf16.mxu0 %v19330_v33  ;;  %v19376_v55 = vld [vmem:[#allocation5 + $0x930] ss:$40 sps:$4 sm:$0xff]  }
 0x5f9   :  { %14125 = vmatprep.subr.bf16.mxu1 %v19333_v34  ;;  %v19379_v33 = vld [vmem:[#allocation8 + $0x3a0] ss:$16 sps:$4 sm:$0xff]  }
 0x5fa   :  { %v19384_v34 = vld [vmem:[#allocation5 + $0x984] ss:$40 sps:$4 sm:$0xff]  }
 0x5fb   :  { %11754 = vmatpush1.bf16.msra.mxu0 %v19328_v35  ;;  %v19387_v35 = vld [vmem:[#allocation8 + $0x3c4] ss:$16 sps:$4 sm:$0xff]  }
 0x5fc   :  { %14126 = vmatpush1.bf16.msra.mxu1 %v19331_v1  ;;  %11755 = vmatprep.subr.bf16.mxu0 %v19336_v36  ;;  %v19385_v1 = vld [vmem:[#allocation8 + $0x3c0] ss:$16 sps:$4 sm:$0xff]  }
 0x5fd   :  { %14127 = vmatprep.subr.bf16.mxu1 %v19339_v37  ;;  %v19390_v36 = vld [vmem:[#allocation5 + $0x9d4] ss:$40 sps:$4 sm:$0xff]  }
 0x5fe   :  { %v19393_v37 = vld [vmem:[#allocation8 + $0x3e4] ss:$16 sps:$4 sm:$0xff]  }
 0x5ff   :  { %11756 = vmatpush1.bf16.msra.mxu0 %v19334_v42  ;;  %v19388_v42 = vld [vmem:[#allocation5 + $0x9d0] ss:$40 sps:$4 sm:$0xff]  }
 0x600   :  { %14128 = vmatpush1.bf16.msra.mxu1 %v19337_v49  ;;  %11757 = vmatprep.subr.bf16.mxu0 %v19342_v50  ;;  %v19391_v49 = vld [vmem:[#allocation8 + $0x3e0] ss:$16 sps:$4 sm:$0xff]  }
 0x601   :  { %14129 = vmatprep.subr.bf16.mxu1 %v19345_v51  ;;  %v19396_v50 = vld [vmem:[#allocation5 + $0xa24] ss:$40 sps:$4 sm:$0xff]  }
 0x602   :  { %v19426_v51 = vld [vmem:[#allocation8 + $0x404] ss:$16 sps:$4 sm:$0xff]  }
 0x603   :  { %11758 = vmatpush1.bf16.msra.mxu0 %v19340_v4  ;;  %v20209_v4 = vpop.eup %20208 }
 0x604   :  { %14130 = vmatpush1.bf16.msra.mxu1 %v19343_v54  ;;  %11759 = vmatprep.subr.bf16.mxu0 %v19348_v56  ;;  %v19394_v54 = vld [vmem:[#allocation5 + $0xa20] ss:$40 sps:$4 sm:$0xff]  }
 0x605   :  { %14131 = vmatprep.subr.bf16.mxu1 %v19351_v57  ;;  %v19424_v56 = vld [vmem:[#allocation8 + $0x400] ss:$16 sps:$4 sm:$0xff]   ;;  %v20918_v57 = vpack.c.bf16 %v20209_v4, %v20209_v4 }
 0x606   :  { %v19429_v4 = vld [vmem:[#allocation5 + $0xd44] ss:$40 sps:$4 sm:$0xff]  }
 0x607   :  { %11760 = vmatpush1.bf16.msra.mxu0 %v19346_v20  ;;  %v19399_v20 = vld [vmem:[#allocation5 + $0xa74] ss:$40 sps:$4 sm:$0xff]  }
 0x608   :  { %14132 = vmatpush1.bf16.msra.mxu1 %v19349_v58  ;;  %11761 = vmatprep.subr.bf16.mxu0 %v19354_v18  ;;  %v19432_v58 = vld [vmem:[#allocation8 + $0x424] ss:$16 sps:$4 sm:$0xff]  }
 0x609   :  { %14133 = vmatprep.subr.bf16.mxu1 %v19357_v10  ;;  %v19397_v18 = vld [vmem:[#allocation5 + $0xa70] ss:$40 sps:$4 sm:$0xff]  }
 0x60a   :  { %v19430_v10 = vld [vmem:[#allocation8 + $0x420] ss:$16 sps:$4 sm:$0xff]  }
 0x60b   :  { %11762 = vmatpush1.bf16.msra.mxu0 %v19352_v11  ;;  %v19402_v11 = vld [vmem:[#allocation5 + $0xac4] ss:$40 sps:$4 sm:$0xff]  }
 0x60c   :  { %14134 = vmatpush1.bf16.msra.mxu1 %v19355_v63  ;;  %11763 = vmatprep.subr.bf16.mxu0 %v19360_v0  ;;  %v19438_v63 = vld [vmem:[#allocation8 + $0x444] ss:$16 sps:$4 sm:$0xff]  }
 0x60d   :  { %14135 = vmatprep.subr.bf16.mxu1 %v19363_v7  ;;  %v19400_v0 = vld [vmem:[#allocation5 + $0xac0] ss:$40 sps:$4 sm:$0xff]  }
 0x60e   :  { %v19436_v7 = vld [vmem:[#allocation8 + $0x440] ss:$16 sps:$4 sm:$0xff]  }
 0x60f   :  { %11764 = vmatpush1.bf16.msra.mxu0 %v19358_v8  ;;  %v19405_v8 = vld [vmem:[#allocation5 + $0xb14] ss:$40 sps:$4 sm:$0xff]  }
 0x610   :  { %14136 = vmatpush1.bf16.msra.mxu1 %v19361_v41  ;;  %11765 = vmatprep.subr.bf16.mxu0 %v19366_v12  ;;  %v19444_v41 = vld [vmem:[#allocation8 + $0x464] ss:$16 sps:$4 sm:$0xff]   ;;  %v19442_v12 = vld [vmem:[#allocation8 + $0x460] ss:$16 sps:$4 sm:$0xff]  }
 0x611   :  { %14137 = vmatprep.subr.bf16.mxu1 %v19369_v14  ;;  %v19408_v14 = vld [vmem:[#allocation5 + $0xb64] ss:$40 sps:$4 sm:$0xff]  }
 0x613   :  { %11766 = vmatpush1.bf16.msra.mxu0 %v19364_v23  ;;  %v19406_v23 = vld [vmem:[#allocation5 + $0xb60] ss:$40 sps:$4 sm:$0xff]  }
 0x614   :  { %14138 = vmatpush1.bf16.msra.mxu1 %v19367_v44  ;;  %11767 = vmatprep.subr.bf16.mxu0 %v19372_v25  ;;  %v19411_v44 = vld [vmem:[#allocation5 + $0xbb4] ss:$40 sps:$4 sm:$0xff]  }
 0x615   :  { %14139 = vmatprep.subr.bf16.mxu1 %v19375_v15  ;;  %v19456_v25 = vld [vmem:[#allocation8 + $0x4a4] ss:$16 sps:$4 sm:$0xff]  }
 0x616   :  { %v19409_v15 = vld [vmem:[#allocation5 + $0xbb0] ss:$40 sps:$4 sm:$0xff]  }
 0x617   :  { %11768 = vmatpush1.bf16.msra.mxu0 %v19370_v28  ;;  %v19414_v28 = vld [vmem:[#allocation5 + $0xc04] ss:$40 sps:$4 sm:$0xff]  }
 0x618   :  { %14140 = vmatpush1.bf16.msra.mxu1 %v19373_v53  ;;  %11769 = vmatprep.subr.bf16.mxu0 %v19378_v62  ;;  %v19462_v53 = vld [vmem:[#allocation8 + $0x4c4] ss:$16 sps:$4 sm:$0xff]  }
 0x619   :  { %14141 = vmatprep.subr.bf16.mxu1 %v19381_v43  ;;  %v19412_v62 = vld [vmem:[#allocation5 + $0xc00] ss:$40 sps:$4 sm:$0xff]  }
 0x61a   :  { %v19460_v43 = vld [vmem:[#allocation8 + $0x4c0] ss:$16 sps:$4 sm:$0xff]  }
 0x61b   :  { %11770 = vmatpush1.bf16.msra.mxu0 %v19376_v55  ;;  %v19417_v55 = vld [vmem:[#allocation5 + $0xc54] ss:$40 sps:$4 sm:$0xff]  }
 0x61c   :  { %14142 = vmatpush1.bf16.msra.mxu1 %v19379_v33  ;;  %11771 = vmatprep.subr.bf16.mxu0 %v19384_v34  ;;  %v19468_v33 = vld [vmem:[#allocation8 + $0x4e4] ss:$16 sps:$4 sm:$0xff]  }
 0x61d   :  { %14143 = vmatprep.subr.bf16.mxu1 %v19387_v35  ;;  %v19415_v34 = vld [vmem:[#allocation5 + $0xc50] ss:$40 sps:$4 sm:$0xff]  }
 0x61e   :  { %v19466_v35 = vld [vmem:[#allocation8 + $0x4e0] ss:$16 sps:$4 sm:$0xff]  }
 0x61f   :  { %11772 = vmatpush1.bf16.msra.mxu0 %v19382_v5  ;;  %v19420_v5 = vld [vmem:[#allocation5 + $0xca4] ss:$40 sps:$4 sm:$0xff]  }
 0x620   :  { %14144 = vmatpush1.bf16.msra.mxu1 %v19385_v1  ;;  %11773 = vmatprep.subr.bf16.mxu0 %v19390_v36  ;;  %v19474_v1 = vld [vmem:[#allocation8 + $0x504] ss:$16 sps:$4 sm:$0xff]  }
 0x621   :  { %14145 = vmatprep.subr.bf16.mxu1 %v19393_v37  ;;  %v19418_v36 = vld [vmem:[#allocation5 + $0xca0] ss:$40 sps:$4 sm:$0xff]  }
 0x622   :  { %v19472_v37 = vld [vmem:[#allocation8 + $0x500] ss:$16 sps:$4 sm:$0xff]  }
 0x623   :  { %11774 = vmatpush1.bf16.msra.mxu0 %v19388_v42  ;;  %v19423_v42 = vld [vmem:[#allocation5 + $0xcf4] ss:$40 sps:$4 sm:$0xff]  }
 0x624   :  { %14146 = vmatpush1.bf16.msra.mxu1 %v19391_v49  ;;  %11784 = vmatprep.subr.bf16.mxu0 %v19396_v50  ;;  %v19480_v49 = vld [vmem:[#allocation8 + $0x524] ss:$16 sps:$4 sm:$0xff]  }
 0x625   :  { %14156 = vmatprep.subr.bf16.mxu1 %v19426_v51  ;;  %v19421_v50 = vld [vmem:[#allocation5 + $0xcf0] ss:$40 sps:$4 sm:$0xff]  }
 0x626   :  { %11776 = vmatmul.mubr.bf16.vlgmr.msra.gmra.mrb[8].mxu0 %v20686_v29  ;;  %v19403_v29 = vld [vmem:[#allocation5 + $0xb10] ss:$40 sps:$4 sm:$0xff]  }
 0x627   :  { %14148 = vmatmul.mubr.bf16.vlgmr.msra.gmra.mrb[8].mxu1 %v20918_v57  ;;  %11785 = vmatpush1.bf16.msra.mxu0 %v19394_v54  ;;  %v19478_v51 = vld [vmem:[#allocation8 + $0x520] ss:$16 sps:$4 sm:$0xff]   ;;  %v19486_v54 = vld [vmem:[#allocation8 + $0x544] ss:$16 sps:$4 sm:$0xff]  }
 0x628   :  { %14157 = vmatpush1.bf16.msra.mxu1 %v19424_v56  ;;  %11786 = vmatprep.subr.bf16.mxu0 %v19399_v20  ;;  %v19427_v56 = vld [vmem:[#allocation5 + $0xd40] ss:$40 sps:$4 sm:$0xff]  }
 0x629   :  { %14158 = vmatprep.subr.bf16.mxu1 %v19432_v58  ;;  %11816 = vmatprep.mubr.bf16.mxu0 %v20698_v45  ;;  %v19448_v45 = vld [vmem:[#allocation8 + $0x480] ss:$16 sps:$4 sm:$0xff]  }
 0x62a   :  { %v19484_v20 = vld [vmem:[#allocation8 + $0x540] ss:$16 sps:$4 sm:$0xff]  }
 0x62b   :  { %11787 = vmatpush1.bf16.msra.mxu0 %v19397_v18  ;;  %v19435_v58 = vld [vmem:[#allocation5 + $0xd94] ss:$40 sps:$4 sm:$0xff]  }
 0x62c   :  { %14159 = vmatpush1.bf16.msra.mxu1 %v19430_v10  ;;  %11788 = vmatprep.subr.bf16.mxu0 %v19402_v11  ;;  %v19492_v18 = vld [vmem:[#allocation8 + $0x564] ss:$16 sps:$4 sm:$0xff]   ;;  %v19490_v11 = vld [vmem:[#allocation8 + $0x560] ss:$16 sps:$4 sm:$0xff]  }
 0x62d   :  { %14160 = vmatprep.subr.bf16.mxu1 %v19438_v63  ;;  %v19433_v10 = vld [vmem:[#allocation5 + $0xd90] ss:$40 sps:$4 sm:$0xff]   ;;  %v19441_v63 = vld [vmem:[#allocation5 + $0xde4] ss:$40 sps:$4 sm:$0xff]  }
 0x62f   :  { %11789 = vmatpush1.bf16.msra.mxu0 %v19400_v0  ;;  %v19498_v0 = vld [vmem:[#allocation8 + $0x584] ss:$16 sps:$4 sm:$0xff]  }
 0x630   :  { %14161 = vmatpush1.bf16.msra.mxu1 %v19436_v7  ;;  %11790 = vmatprep.subr.bf16.mxu0 %v19405_v8  ;;  %v19439_v7 = vld [vmem:[#allocation5 + $0xde0] ss:$40 sps:$4 sm:$0xff]  }
 0x631   :  { %14162 = vmatprep.subr.bf16.mxu1 %v19444_v41  ;;  %v19496_v8 = vld [vmem:[#allocation8 + $0x580] ss:$16 sps:$4 sm:$0xff]  }
 0x632   :  { %v19447_v41 = vld [vmem:[#allocation5 + $0xe34] ss:$40 sps:$4 sm:$0xff]  }
 0x633   :  { %11791 = vmatpush1.bf16.msra.mxu0 %v19403_v29  ;;  %v19504_v29 = vld [vmem:[#allocation8 + $0x5a4] ss:$16 sps:$4 sm:$0xff]  }
 0x634   :  { %14163 = vmatpush1.bf16.msra.mxu1 %v19442_v12  ;;  %11792 = vmatprep.subr.bf16.mxu0 %v19408_v14  ;;  %v19445_v12 = vld [vmem:[#allocation5 + $0xe30] ss:$40 sps:$4 sm:$0xff]  }
 0x635   :  { %14164 = vmatprep.subr.bf16.mxu1 %v19450_v17  ;;  %v19502_v14 = vld [vmem:[#allocation8 + $0x5a0] ss:$16 sps:$4 sm:$0xff]  }
 0x636   :  { %v19453_v17 = vld [vmem:[#allocation5 + $0xe84] ss:$40 sps:$4 sm:$0xff]  }
 0x637   :  { %11793 = vmatpush1.bf16.msra.mxu0 %v19406_v23  ;;  %v19510_v23 = vld [vmem:[#allocation8 + $0x5c4] ss:$16 sps:$4 sm:$0xff]  }
 0x638   :  { %14165 = vmatpush1.bf16.msra.mxu1 %v19448_v45  ;;  %11794 = vmatprep.subr.bf16.mxu0 %v19411_v44  ;;  %v19451_v45 = vld [vmem:[#allocation5 + $0xe80] ss:$40 sps:$4 sm:$0xff]  }
 0x639   :  { %14166 = vmatprep.subr.bf16.mxu1 %v19456_v25  ;;  %v19508_v44 = vld [vmem:[#allocation8 + $0x5c0] ss:$16 sps:$4 sm:$0xff]  }
 0x63a   :  { %v19459_v25 = vld [vmem:[#allocation5 + $0xed4] ss:$40 sps:$4 sm:$0xff]  }
 0x63b   :  { %11795 = vmatpush1.bf16.msra.mxu0 %v19409_v15  ;;  %v19516_v15 = vld [vmem:[#allocation8 + $0x5e4] ss:$16 sps:$4 sm:$0xff]  }
 0x63c   :  { %14167 = vmatpush1.bf16.msra.mxu1 %v19454_v27  ;;  %11796 = vmatprep.subr.bf16.mxu0 %v19414_v28  ;;  %v19457_v27 = vld [vmem:[#allocation5 + $0xed0] ss:$40 sps:$4 sm:$0xff]  }
 0x63d   :  { %14168 = vmatprep.subr.bf16.mxu1 %v19462_v53  ;;  %v19514_v28 = vld [vmem:[#allocation8 + $0x5e0] ss:$16 sps:$4 sm:$0xff]  }
 0x63e   :  { %v19465_v53 = vld [vmem:[#allocation5 + $0xf24] ss:$40 sps:$4 sm:$0xff]  }
 0x63f   :  { %11797 = vmatpush1.bf16.msra.mxu0 %v19412_v62  ;;  %v19522_v62 = vld [vmem:[#allocation8 + $0x604] ss:$16 sps:$4 sm:$0xff]  }
 0x640   :  { %14169 = vmatpush1.bf16.msra.mxu1 %v19460_v43  ;;  %11798 = vmatprep.subr.bf16.mxu0 %v19417_v55  ;;  %v19463_v43 = vld [vmem:[#allocation5 + $0xf20] ss:$40 sps:$4 sm:$0xff]   ;;  %v19471_v55 = vld [vmem:[#allocation5 + $0xf74] ss:$40 sps:$4 sm:$0xff]  }
 0x641   :  { %14170 = vmatprep.subr.bf16.mxu1 %v19468_v33  ;;  %v19469_v33 = vld [vmem:[#allocation5 + $0xf70] ss:$40 sps:$4 sm:$0xff]  }
 0x643   :  { %11799 = vmatpush1.bf16.msra.mxu0 %v19415_v34  ;;  %v19477_v34 = vld [vmem:[#allocation5 + $0xfc4] ss:$40 sps:$4 sm:$0xff]  }
 0x644   :  { %14171 = vmatpush1.bf16.msra.mxu1 %v19466_v35  ;;  %11800 = vmatprep.subr.bf16.mxu0 %v19420_v5  ;;  %v19475_v35 = vld [vmem:[#allocation5 + $0xfc0] ss:$40 sps:$4 sm:$0xff]   ;;  %v19483_v5 = vld [vmem:[#allocation5 + $0x1014] ss:$40 sps:$4 sm:$0xff]  }
 0x645   :  { %14172 = vmatprep.subr.bf16.mxu1 %v19474_v1  ;;  %v19481_v1 = vld [vmem:[#allocation5 + $0x1010] ss:$40 sps:$4 sm:$0xff]  }
 0x647   :  { %11801 = vmatpush1.bf16.msra.mxu0 %v19418_v36  ;;  %v19489_v36 = vld [vmem:[#allocation5 + $0x1064] ss:$40 sps:$4 sm:$0xff]  }
 0x648   :  { %14173 = vmatpush1.bf16.msra.mxu1 %v19472_v37  ;;  %11802 = vmatprep.subr.bf16.mxu0 %v19423_v42  ;;  %v2030_v37 = vsub.s32 4, %v20657_v46  ;;  %v19487_v42 = vld [vmem:[#allocation5 + $0x1060] ss:$40 sps:$4 sm:$0xff]  }
 0x649   :  { %14174 = vmatprep.subr.bf16.mxu1 %v19480_v49  ;;  %v2042_v49 = vsub.s32 7, %v20657_v46 }
 0x64b   :  { %11803 = vmatpush1.bf16.msra.mxu0 %v19421_v50  ;;  %v2031_v50 = vrot.slane %v20883_v32, %v2030_v37  ;;  %v19537_v37 = vld [vmem:[#allocation5 + $0x12e4] ss:$40 sps:$4 sm:$0xff]  }
 0x64c   :  { %14175 = vmatpush1.bf16.msra.mxu1 %v19478_v51  ;;  %11804 = vmatprep.subr.bf16.mxu0 %v19429_v4  ;;  %v2043_v4 = vrot.slane %v20883_v32, %v2042_v49  ;;  %v19535_v49 = vld [vmem:[#allocation5 + $0x12e0] ss:$40 sps:$4 sm:$0xff]  }
 0x64d   :  { %14176 = vmatprep.subr.bf16.mxu1 %v19486_v54  ;;  %v19493_v54 = vld [vmem:[#allocation5 + $0x10b0] ss:$40 sps:$4 sm:$0xff]  }
 0x64f   :  { %11805 = vmatpush1.bf16.msra.mxu0 %v19427_v56  ;;  %v19501_v56 = vld [vmem:[#allocation5 + $0x1104] ss:$40 sps:$4 sm:$0xff]  }
 0x650   :  { %14177 = vmatpush1.bf16.msra.mxu1 %v19484_v20  ;;  %11806 = vmatprep.subr.bf16.mxu0 %v19435_v58 }
 0x651   :  { %14178 = vmatprep.subr.bf16.mxu1 %v19492_v18 }
 0x653   :  { %11807 = vmatpush1.bf16.msra.mxu0 %v19433_v10 }
 0x654   :  { %14179 = vmatpush1.bf16.msra.mxu1 %v19490_v11  ;;  %11808 = vmatprep.subr.bf16.mxu0 %v19441_v63 }
 0x655   :  { %14180 = vmatprep.subr.bf16.mxu1 %v19498_v0 }
 0x657   :  { %11809 = vmatpush1.bf16.msra.mxu0 %v19439_v7 }
 0x658   :  { %14181 = vmatpush1.bf16.msra.mxu1 %v19496_v8  ;;  %11810 = vmatprep.subr.bf16.mxu0 %v19447_v41  ;;  %v19499_v41 = vld [vmem:[#allocation5 + $0x1100] ss:$40 sps:$4 sm:$0xff]  }
 0x659   :  { %14182 = vmatprep.subr.bf16.mxu1 %v19504_v29 }
 0x65b   :  { %11811 = vmatpush1.bf16.msra.mxu0 %v19445_v12 }
 0x65c   :  { %14183 = vmatpush1.bf16.msra.mxu1 %v19502_v14  ;;  %11812 = vmatprep.subr.bf16.mxu0 %v19453_v17  ;;  %v19507_v14 = vld [vmem:[#allocation5 + $0x1154] ss:$40 sps:$4 sm:$0xff]   ;;  %v19513_v17 = vld [vmem:[#allocation5 + $0x11a4] ss:$40 sps:$4 sm:$0xff]  }
 0x65d   :  { %14184 = vmatprep.subr.bf16.mxu1 %v19510_v23  ;;  %v19511_v23 = vld [vmem:[#allocation5 + $0x11a0] ss:$40 sps:$4 sm:$0xff]  }
 0x65f   :  { %11813 = vmatpush1.bf16.msra.mxu0 %v19451_v45  ;;  %v19519_v45 = vld [vmem:[#allocation5 + $0x11f4] ss:$40 sps:$4 sm:$0xff]  }
 0x660   :  { %14185 = vmatpush1.bf16.msra.mxu1 %v19508_v44  ;;  %11814 = vmatprep.subr.bf16.mxu0 %v19459_v25  ;;  %v19517_v25 = vld [vmem:[#allocation5 + $0x11f0] ss:$40 sps:$4 sm:$0xff]  }
 0x661   :  { %14186 = vmatprep.subr.bf16.mxu1 %v19516_v15 }
 0x663   :  { %11815 = vmatpush1.bf16.msra.mxu0 %v19457_v27  ;;  %v19525_v27 = vld [vmem:[#allocation5 + $0x1244] ss:$40 sps:$4 sm:$0xff]  }
 0x664   :  { %14187 = vmatpush1.bf16.msra.mxu1 %v19514_v28  ;;  %11825 = vmatprep.subr.bf16.mxu0 %v19465_v53 }
 0x665   :  { %14197 = vmatprep.subr.bf16.mxu1 %v19522_v62  ;;  %v19520_v62 = vld [vmem:[#allocation8 + $0x600] ss:$16 sps:$4 sm:$0xff]  }
 0x666   :  { %11817 = vmatmul.mubr.bf16.vlgmr.msra.gmra.mrb[8].mxu0 %v20712_v52  ;;  %v2034_v52 = vsub.s32 5, %v20657_v46 }
 0x667   :  { %11826 = vmatpush1.bf16.msra.mxu0 %v19463_v43  ;;  %11857 = vmatprep.mubr.bf16.mxu0 %v20714_v38  ;;  %v19495_v38 = vld [vmem:[#allocation5 + $0x10b4] ss:$40 sps:$4 sm:$0xff]  }
 0x668   :  { %11827 = vmatprep.subr.bf16.mxu0 %v19471_v55  ;;  %v2035_v51 = vrot.slane %v20883_v32, %v2034_v52  ;;  %v19505_v32 = vld [vmem:[#allocation5 + $0x1150] ss:$40 sps:$4 sm:$0xff]  }
 0x669   :  { %v19528_v55 = vld [vmem:[#allocation8 + $0x624] ss:$16 sps:$4 sm:$0xff]  }
 0x66a   :  { %v19540_v52 = vld [vmem:[#allocation8 + $0x664] ss:$16 sps:$4 sm:$0xff]  }
 0x66b   :  { %11828 = vmatpush1.bf16.msra.mxu0 %v19469_v33 }
 0x66c   :  { %11829 = vmatprep.subr.bf16.mxu0 %v19477_v34  ;;  %v19523_v34 = vld [vmem:[#allocation5 + $0x1240] ss:$40 sps:$4 sm:$0xff]  }
 0x66f   :  { %11830 = vmatpush1.bf16.msra.mxu0 %v19475_v35  ;;  %v19531_v35 = vld [vmem:[#allocation5 + $0x1294] ss:$40 sps:$4 sm:$0xff]  }
 0x670   :  { %11831 = vmatprep.subr.bf16.mxu0 %v19483_v5  ;;  %v19526_v5 = vld [vmem:[#allocation8 + $0x620] ss:$16 sps:$4 sm:$0xff]  }
 0x673   :  { %11832 = vmatpush1.bf16.msra.mxu0 %v19481_v1  ;;  %v19534_v1 = vld [vmem:[#allocation8 + $0x644] ss:$16 sps:$4 sm:$0xff]  }
 0x674   :  { %11833 = vmatprep.subr.bf16.mxu0 %v19489_v36  ;;  %v19529_v36 = vld [vmem:[#allocation5 + $0x1290] ss:$40 sps:$4 sm:$0xff]  }
 0x677   :  { %11834 = vmatpush1.bf16.msra.mxu0 %v19487_v42  ;;  %v19532_v42 = vld [vmem:[#allocation8 + $0x640] ss:$16 sps:$4 sm:$0xff]  }
 0x678   :  { %11835 = vmatprep.subr.bf16.mxu0 %v19495_v38  ;;  %v19543_v38 = vld [vmem:[#allocation5 + $0x1334] ss:$40 sps:$4 sm:$0xff]  }
 0x679   :  { %v11285_v20 = vpop.f32.mrb[4].mxu0 }
 0x67a   :  { %v20931_v58 = vpop.f32.mrb[4].mxu1  ;;  %v17009_v18 = vadd.f32 %v11285_v20, %v2031_v50  ;;  %v11287_v10 = vpop.f32.mrb[5].mxu0  ;;  %v19538_v50 = vld [vmem:[#allocation8 + $0x660] ss:$16 sps:$4 sm:$0xff]   ;;  %v19552_v20 = vld [vmem:[#allocation8 + $0x6a4] ss:$16 sps:$4 sm:$0xff]  }
 0x67b   :  { %v11697_v11 = vpop.f32.mrb[5].mxu1  ;;  %v17010_v63 = vadd.f32 %v11287_v10, %v2035_v51  ;;  %v11289_v7 = vpop.f32.mrb[6].mxu0  ;;  %11836 = vmatpush1.bf16.msra.mxu0 %v19493_v54  ;;  %v19546_v51 = vld [vmem:[#allocation8 + $0x684] ss:$16 sps:$4 sm:$0xff]  }
 0x67c   :  { %v17012_v0 = vadd.f32 %v11697_v11, %v2043_v4  ;;  %v11699_v8 = vpop.f32.mrb[6].mxu1  ;;  %v11290_v29 = vpop.f32.mrb[7].mxu0  ;;  %11837 = vmatprep.subr.bf16.mxu0 %v19501_v56  ;;  %20210 = vtanh.f32 %v17009_v18  ;;  %v19541_v4 = vld [vmem:[#allocation5 + $0x1330] ss:$40 sps:$4 sm:$0xff]   ;;  %v19549_v54 = vld [vmem:[#allocation5 + $0x1384] ss:$40 sps:$4 sm:$0xff]  }
 0x67d   :  { %v11700_v12 = vpop.f32.mrb[7].mxu1  ;;  %20212 = vtanh.f32 %v17010_v63  ;;  %v19544_v56 = vld [vmem:[#allocation8 + $0x680] ss:$16 sps:$4 sm:$0xff]   ;;  %v19558_v63 = vld [vmem:[#allocation8 + $0x6c4] ss:$16 sps:$4 sm:$0xff]  }
 0x67e   :  { %20214 = vtanh.f32 %v17012_v0  ;;  %v19547_v18 = vld [vmem:[#allocation5 + $0x1380] ss:$40 sps:$4 sm:$0xff]   ;;  %v19555_v10 = vld [vmem:[#allocation5 + $0x13d4] ss:$40 sps:$4 sm:$0xff]   ;;  %v19553_v0 = vld [vmem:[#allocation5 + $0x13d0] ss:$40 sps:$4 sm:$0xff]  }
 0x67f   :  { %11838 = vmatpush1.bf16.msra.mxu0 %v19499_v41  ;;  %v19550_v11 = vld [vmem:[#allocation8 + $0x6a0] ss:$16 sps:$4 sm:$0xff]   ;;  %v19564_v41 = vld [vmem:[#allocation8 + $0x6e4] ss:$16 sps:$4 sm:$0xff]  }
 0x680   :  { %11839 = vmatprep.subr.bf16.mxu0 %v19507_v14  ;;  %v19561_v7 = vld [vmem:[#allocation5 + $0x1424] ss:$40 sps:$4 sm:$0xff]   ;;  %v19559_v29 = vld [vmem:[#allocation5 + $0x1420] ss:$40 sps:$4 sm:$0xff]   ;;  %v19567_v12 = vld [vmem:[#allocation5 + $0x1474] ss:$40 sps:$4 sm:$0xff]  }
 0x681   :  { %v19556_v8 = vld [vmem:[#allocation8 + $0x6c0] ss:$16 sps:$4 sm:$0xff]  }
 0x682   :  { %v19562_v14 = vld [vmem:[#allocation8 + $0x6e0] ss:$16 sps:$4 sm:$0xff]  }
 0x683   :  { %11840 = vmatpush1.bf16.msra.mxu0 %v19505_v32  ;;  %v19570_v32 = vld [vmem:[#allocation8 + $0x704] ss:$16 sps:$4 sm:$0xff]  }
 0x684   :  { %11841 = vmatprep.subr.bf16.mxu0 %v19513_v17  ;;  %v19565_v17 = vld [vmem:[#allocation5 + $0x1470] ss:$40 sps:$4 sm:$0xff]  }
 0x686   :  { %v20211_v44 = vpop.eup %20210 }
 0x687   :  { %11842 = vmatpush1.bf16.msra.mxu0 %v19511_v23  ;;  %v20213_v15 = vpop.eup %20212  ;;  %v20935_v43 = vpack.c.bf16 %v20211_v44, %v20211_v44  ;;  %v19573_v23 = vld [vmem:[#allocation5 + $0x14c4] ss:$40 sps:$4 sm:$0xff]  }
 0x688   :  { %11843 = vmatprep.subr.bf16.mxu0 %v19519_v45  ;;  %v20215_v28 = vpop.eup %20214  ;;  %v20933_v53 = vpack.c.bf16 %v20213_v15, %v20213_v15  ;;  %v19568_v45 = vld [vmem:[#allocation8 + $0x700] ss:$16 sps:$4 sm:$0xff]   ;;  %v19576_v44 = vld [vmem:[#allocation8 + $0x724] ss:$16 sps:$4 sm:$0xff]  }
 0x689   :  { %v20937_v33 = vpack.c.bf16 %v20215_v28, %v20215_v28  ;;  %v19579_v15 = vld [vmem:[#allocation5 + $0x1514] ss:$40 sps:$4 sm:$0xff]  }
 0x68a   :  { %14188 = vmatprep.mubr.bf16.mxu1 %v20933_v53  ;;  %v19582_v28 = vld [vmem:[#allocation8 + $0x744] ss:$16 sps:$4 sm:$0xff]  }
 0x68b   :  { %11844 = vmatpush1.bf16.msra.mxu0 %v19517_v25  ;;  %14189 = vmatmul.mubr.bf16.vlgmr.msra.gmra.mrb[8].mxu1 %v20935_v43  ;;  %v19571_v25 = vld [vmem:[#allocation5 + $0x14c0] ss:$40 sps:$4 sm:$0xff]  }
 0x68c   :  { %11845 = vmatprep.subr.bf16.mxu0 %v19525_v27  ;;  %14198 = vmatpush1.bf16.msra.mxu1 %v19520_v62  ;;  %v19574_v27 = vld [vmem:[#allocation8 + $0x720] ss:$16 sps:$4 sm:$0xff]  }
 0x68d   :  { %14229 = vmatprep.mubr.bf16.mxu1 %v20937_v33  ;;  %14199 = vmatprep.subr.bf16.mxu1 %v19528_v55  ;;  %v19585_v62 = vld [vmem:[#allocation5 + $0x1564] ss:$40 sps:$4 sm:$0xff]  }
 0x68e   :  { %v19580_v55 = vld [vmem:[#allocation8 + $0x740] ss:$16 sps:$4 sm:$0xff]  }
 0x68f   :  { %11846 = vmatpush1.bf16.msra.mxu0 %v19523_v34  ;;  %v19588_v34 = vld [vmem:[#allocation8 + $0x764] ss:$16 sps:$4 sm:$0xff]  }
 0x690   :  { %11847 = vmatprep.subr.bf16.mxu0 %v19531_v35  ;;  %14200 = vmatpush1.bf16.msra.mxu1 %v19526_v5  ;;  %v19583_v35 = vld [vmem:[#allocation5 + $0x1560] ss:$40 sps:$4 sm:$0xff]   ;;  %v19591_v5 = vld [vmem:[#allocation5 + $0x15b4] ss:$40 sps:$4 sm:$0xff]  }
 0x691   :  { %14201 = vmatprep.subr.bf16.mxu1 %v19534_v1  ;;  %v20232_v1 = vld [vmem:[#allocation7] sm:$0xff] }
 0x693   :  { %11848 = vmatpush1.bf16.msra.mxu0 %v19529_v36 }
 0x694   :  { %11849 = vmatprep.subr.bf16.mxu0 %v19537_v37  ;;  %14202 = vmatpush1.bf16.msra.mxu1 %v19532_v42  ;;  %v19586_v37 = vld [vmem:[#allocation8 + $0x760] ss:$16 sps:$4 sm:$0xff]   ;;  %v19594_v42 = vld [vmem:[#allocation8 + $0x784] ss:$16 sps:$4 sm:$0xff]  }
 0x695   :  { %14203 = vmatprep.subr.bf16.mxu1 %v19540_v52  ;;  %v19589_v52 = vld [vmem:[#allocation5 + $0x15b0] ss:$40 sps:$4 sm:$0xff]  }
 0x697   :  { %11850 = vmatpush1.bf16.msra.mxu0 %v19535_v49  ;;  %v19597_v49 = vld [vmem:[#allocation5 + $0x1604] ss:$40 sps:$4 sm:$0xff]  }
 0x698   :  { %11851 = vmatprep.subr.bf16.mxu0 %v19543_v38  ;;  %14204 = vmatpush1.bf16.msra.mxu1 %v19538_v50  ;;  %v19592_v50 = vld [vmem:[#allocation8 + $0x780] ss:$16 sps:$4 sm:$0xff]  }
 0x699   :  { %14205 = vmatprep.subr.bf16.mxu1 %v19546_v51  ;;  %v19600_v51 = vld [vmem:[#allocation8 + $0x7a4] ss:$16 sps:$4 sm:$0xff]  }
 0x69b   :  { %11852 = vmatpush1.bf16.msra.mxu0 %v19541_v4  ;;  %v19595_v4 = vld [vmem:[#allocation5 + $0x1600] ss:$40 sps:$4 sm:$0xff]  }
 0x69c   :  { %11853 = vmatprep.subr.bf16.mxu0 %v19549_v54  ;;  %14206 = vmatpush1.bf16.msra.mxu1 %v19544_v56  ;;  %v19603_v54 = vld [vmem:[#allocation5 + $0x1654] ss:$40 sps:$4 sm:$0xff]  }
 0x69d   :  { %14207 = vmatprep.subr.bf16.mxu1 %v19552_v20  ;;  %v19598_v56 = vld [vmem:[#allocation8 + $0x7a0] ss:$16 sps:$4 sm:$0xff]   ;;  %v19606_v20 = vld [vmem:[#allocation8 + $0x7c4] ss:$16 sps:$4 sm:$0xff]  }
 0x69f   :  { %11854 = vmatpush1.bf16.msra.mxu0 %v19547_v18  ;;  %v19601_v18 = vld [vmem:[#allocation5 + $0x1650] ss:$40 sps:$4 sm:$0xff]  }
 0x6a0   :  { %11855 = vmatprep.subr.bf16.mxu0 %v19555_v10  ;;  %14208 = vmatpush1.bf16.msra.mxu1 %v19550_v11  ;;  %v19609_v10 = vld [vmem:[#allocation5 + $0x16a4] ss:$40 sps:$4 sm:$0xff]  }
 0x6a1   :  { %14209 = vmatprep.subr.bf16.mxu1 %v19558_v63  ;;  %v19604_v11 = vld [vmem:[#allocation8 + $0x7c0] ss:$16 sps:$4 sm:$0xff]  }
 0x6a2   :  { %v19607_v63 = vld [vmem:[#allocation5 + $0x16a0] ss:$40 sps:$4 sm:$0xff]  }
 0x6a3   :  { %11856 = vmatpush1.bf16.msra.mxu0 %v19553_v0  ;;  %v19615_v0 = vld [vmem:[#allocation5 + $0x16f4] ss:$40 sps:$4 sm:$0xff]  }
 0x6a4   :  { %11866 = vmatprep.subr.bf16.mxu0 %v19561_v7  ;;  %14210 = vmatpush1.bf16.msra.mxu1 %v19556_v8  ;;  %v19610_v7 = vld [vmem:[#allocation8 + $0x7e0] ss:$16 sps:$4 sm:$0xff]  }
 0x6a5   :  { %14211 = vmatprep.subr.bf16.mxu1 %v19564_v41  ;;  %v19613_v41 = vld [vmem:[#allocation5 + $0x16f0] ss:$40 sps:$4 sm:$0xff]  }
 0x6a6   :  { %11858 = vmatmul.mubr.bf16.vlgmr.msra.gmra.mrb[8].mxu0 %v20730_v6  ;;  %v19577_v6 = vld [vmem:[#allocation5 + $0x1510] ss:$40 sps:$4 sm:$0xff]  }
 0x6a7   :  { %11867 = vmatpush1.bf16.msra.mxu0 %v19559_v29  ;;  %11898 = vmatprep.mubr.bf16.mxu0 %v20732_v9  ;;  %v2038_v9 = vsub.s32 6, %v20657_v46  ;;  %v19618_v29 = vld [vmem:[#allocation5 + $0x1744] ss:$40 sps:$4 sm:$0xff]   ;;  %v20198_v46 = vld [vmem:[#allocation14 + $0x20] sm:$0xff]  }
 0x6a8   :  { %11868 = vmatprep.subr.bf16.mxu0 %v19567_v12  ;;  %14212 = vmatpush1.bf16.msra.mxu1 %v19562_v14  ;;  %v19616_v14 = vld [vmem:[#allocation5 + $0x1740] ss:$40 sps:$4 sm:$0xff]  }
 0x6a9   :  { %14213 = vmatprep.subr.bf16.mxu1 %v19570_v32  ;;  %v2039_v36 = vrot.slane %v20232_v1, %v2038_v9  ;;  %v19621_v32 = vld [vmem:[#allocation5 + $0x1794] ss:$40 sps:$4 sm:$0xff]   ;;  %v19634_v9 = vld [vmem:[#allocation5 + $0x1920] ss:$40 sps:$4 sm:$0xff]  }
 0x6aa   :  { %v19645_v1 = vld [vmem:[#allocation5 + $0x1a14] ss:$40 sps:$4 sm:$0xff]  }
 0x6ab   :  { %11869 = vmatpush1.bf16.msra.mxu0 %v19565_v17  ;;  %v17011_v38 = vadd.f32 %v20931_v58, %v2039_v36  ;;  %v19612_v58 = vld [vmem:[#allocation8 + $0x7e4] ss:$16 sps:$4 sm:$0xff]  }
 0x6ac   :  { %11870 = vmatprep.subr.bf16.mxu0 %v19573_v23  ;;  %14214 = vmatpush1.bf16.msra.mxu1 %v19568_v45  ;;  %v19619_v17 = vld [vmem:[#allocation5 + $0x1790] ss:$40 sps:$4 sm:$0xff]   ;;  %v19624_v23 = vld [vmem:[#allocation5 + $0x17e4] ss:$40 sps:$4 sm:$0xff]   ;;  %v19622_v45 = vld [vmem:[#allocation5 + $0x17e0] ss:$40 sps:$4 sm:$0xff]  }
 0x6ad   :  { %14215 = vmatprep.subr.bf16.mxu1 %v19576_v44  ;;  %20216 = vtanh.f32 %v17011_v38  ;;  %v19627_v44 = vld [vmem:[#allocation5 + $0x1834] ss:$40 sps:$4 sm:$0xff]   ;;  %v19643_v36 = vld [vmem:[#allocation5 + $0x1a10] ss:$40 sps:$4 sm:$0xff]  }
 0x6ae   :  { %v19657_v38 = vld [vmem:[#allocation5 + $0x1b54] ss:$40 sps:$4 sm:$0xff]  }
 0x6af   :  { %11871 = vmatpush1.bf16.msra.mxu0 %v19571_v25  ;;  %v19625_v25 = vld [vmem:[#allocation5 + $0x1830] ss:$40 sps:$4 sm:$0xff]  }
 0x6b0   :  { %11872 = vmatprep.subr.bf16.mxu0 %v19579_v15  ;;  %14216 = vmatpush1.bf16.msra.mxu1 %v19574_v27  ;;  %v19630_v15 = vld [vmem:[#allocation5 + $0x1884] ss:$40 sps:$4 sm:$0xff]   ;;  %v19628_v27 = vld [vmem:[#allocation5 + $0x1880] ss:$40 sps:$4 sm:$0xff]  }
 0x6b1   :  { %14217 = vmatprep.subr.bf16.mxu1 %v19582_v28  ;;  %v19633_v28 = vld [vmem:[#allocation5 + $0x18d4] ss:$40 sps:$4 sm:$0xff]  }
 0x6b3   :  { %11873 = vmatpush1.bf16.msra.mxu0 %v19577_v6  ;;  %v19631_v6 = vld [vmem:[#allocation5 + $0x18d0] ss:$40 sps:$4 sm:$0xff]  }
 0x6b4   :  { %11874 = vmatprep.subr.bf16.mxu0 %v19585_v62  ;;  %14218 = vmatpush1.bf16.msra.mxu1 %v19580_v55  ;;  %v19636_v62 = vld [vmem:[#allocation5 + $0x1924] ss:$40 sps:$4 sm:$0xff]   ;;  %v19639_v55 = vld [vmem:[#allocation5 + $0x1974] ss:$40 sps:$4 sm:$0xff]  }
 0x6b5   :  { %14219 = vmatprep.subr.bf16.mxu1 %v19588_v34  ;;  %v19637_v34 = vld [vmem:[#allocation5 + $0x1970] ss:$40 sps:$4 sm:$0xff]  }
 0x6b7   :  { %11875 = vmatpush1.bf16.msra.mxu0 %v19583_v35  ;;  %v20217_v8 = vpop.eup %20216  ;;  %v19642_v35 = vld [vmem:[#allocation5 + $0x19c4] ss:$40 sps:$4 sm:$0xff]  }
 0x6b8   :  { %11876 = vmatprep.subr.bf16.mxu0 %v19591_v5  ;;  %14220 = vmatpush1.bf16.msra.mxu1 %v19586_v37  ;;  %v20946_v12 = vpack.c.bf16 %v20217_v8, %v20217_v8  ;;  %v19640_v5 = vld [vmem:[#allocation5 + $0x19c0] ss:$40 sps:$4 sm:$0xff]   ;;  %v19648_v37 = vld [vmem:[#allocation5 + $0x1a64] ss:$40 sps:$4 sm:$0xff]  }
 0x6b9   :  { %14221 = vmatprep.subr.bf16.mxu1 %v19594_v42  ;;  %v19646_v42 = vld [vmem:[#allocation5 + $0x1a60] ss:$40 sps:$4 sm:$0xff]   ;;  %v19678_v8 = vld [vmem:[#allocation5 + $0x1d84] ss:$40 sps:$4 sm:$0xff]  }
 0x6bb   :  { %11877 = vmatpush1.bf16.msra.mxu0 %v19589_v52  ;;  %v19651_v52 = vld [vmem:[#allocation5 + $0x1ab4] ss:$40 sps:$4 sm:$0xff]  }
 0x6bc   :  { %11878 = vmatprep.subr.bf16.mxu0 %v19597_v49  ;;  %14222 = vmatpush1.bf16.msra.mxu1 %v19592_v50  ;;  %v19654_v49 = vld [vmem:[#allocation5 + $0x1b04] ss:$40 sps:$4 sm:$0xff]   ;;  %v19655_v50 = vld [vmem:[#allocation5 + $0x1b50] ss:$40 sps:$4 sm:$0xff]  }
 0x6bd   :  { %14223 = vmatprep.subr.bf16.mxu1 %v19600_v51  ;;  %v19660_v51 = vld [vmem:[#allocation5 + $0x1ba4] ss:$40 sps:$4 sm:$0xff]  }
 0x6bf   :  { %11879 = vmatpush1.bf16.msra.mxu0 %v19595_v4  ;;  %v19658_v4 = vld [vmem:[#allocation5 + $0x1ba0] ss:$40 sps:$4 sm:$0xff]  }
 0x6c0   :  { %11880 = vmatprep.subr.bf16.mxu0 %v19603_v54  ;;  %14224 = vmatpush1.bf16.msra.mxu1 %v19598_v56  ;;  %v19663_v54 = vld [vmem:[#allocation5 + $0x1bf4] ss:$40 sps:$4 sm:$0xff]   ;;  %v19661_v56 = vld [vmem:[#allocation5 + $0x1bf0] ss:$40 sps:$4 sm:$0xff]  }
 0x6c1   :  { %14225 = vmatprep.subr.bf16.mxu1 %v19606_v20  ;;  %v19666_v20 = vld [vmem:[#allocation5 + $0x1c44] ss:$40 sps:$4 sm:$0xff]  }
 0x6c3   :  { %11881 = vmatpush1.bf16.msra.mxu0 %v19601_v18  ;;  %v19664_v18 = vld [vmem:[#allocation5 + $0x1c40] ss:$40 sps:$4 sm:$0xff]  }
 0x6c4   :  { %11882 = vmatprep.subr.bf16.mxu0 %v19609_v10  ;;  %14226 = vmatpush1.bf16.msra.mxu1 %v19604_v11  ;;  %v19669_v10 = vld [vmem:[#allocation5 + $0x1c94] ss:$40 sps:$4 sm:$0xff]   ;;  %v19667_v11 = vld [vmem:[#allocation5 + $0x1c90] ss:$40 sps:$4 sm:$0xff]  }
 0x6c5   :  { %14227 = vmatprep.subr.bf16.mxu1 %v19612_v58  ;;  %v19672_v58 = vld [vmem:[#allocation5 + $0x1ce4] ss:$40 sps:$4 sm:$0xff]  }
 0x6c7   :  { %11883 = vmatpush1.bf16.msra.mxu0 %v19607_v63  ;;  %v19670_v63 = vld [vmem:[#allocation5 + $0x1ce0] ss:$40 sps:$4 sm:$0xff]  }
 0x6c8   :  { %11884 = vmatprep.subr.bf16.mxu0 %v19615_v0  ;;  %14228 = vmatpush1.bf16.msra.mxu1 %v19610_v7  ;;  %v19675_v0 = vld [vmem:[#allocation5 + $0x1d34] ss:$40 sps:$4 sm:$0xff]   ;;  %v19673_v7 = vld [vmem:[#allocation5 + $0x1d30] ss:$40 sps:$4 sm:$0xff]  }
 0x6cb   :  { %11885 = vmatpush1.bf16.msra.mxu0 %v19613_v41  ;;  %14230 = vmatmul.mubr.bf16.vlgmr.msra.gmra.mrb[8].mxu1 %v20946_v12  ;;  %v19676_v41 = vld [vmem:[#allocation5 + $0x1d80] ss:$40 sps:$4 sm:$0xff]  }
 0x6cc   :  { %11886 = vmatprep.subr.bf16.mxu0 %v19618_v29  ;;  %v19681_v29 = vld [vmem:[#allocation5 + $0x1dd4] ss:$40 sps:$4 sm:$0xff]  }
 0x6cf   :  { %11887 = vmatpush1.bf16.msra.mxu0 %v19616_v14  ;;  %v19679_v14 = vld [vmem:[#allocation5 + $0x1dd0] ss:$40 sps:$4 sm:$0xff]  }
 0x6d0   :  { %11888 = vmatprep.subr.bf16.mxu0 %v19621_v32  ;;  %v19684_v32 = vld [vmem:[#allocation5 + $0x1e24] ss:$40 sps:$4 sm:$0xff]  }
 0x6d3   :  { %11889 = vmatpush1.bf16.msra.mxu0 %v19619_v17  ;;  %v19682_v17 = vld [vmem:[#allocation5 + $0x1e20] ss:$40 sps:$4 sm:$0xff]  }
 0x6d4   :  { %11890 = vmatprep.subr.bf16.mxu0 %v19624_v23  ;;  %v19687_v23 = vld [vmem:[#allocation5 + $0x1e74] ss:$40 sps:$4 sm:$0xff]  }
 0x6d7   :  { %11891 = vmatpush1.bf16.msra.mxu0 %v19622_v45  ;;  %v19685_v45 = vld [vmem:[#allocation5 + $0x1e70] ss:$40 sps:$4 sm:$0xff]  }
 0x6d8   :  { %11892 = vmatprep.subr.bf16.mxu0 %v19627_v44  ;;  %v19690_v44 = vld [vmem:[#allocation5 + $0x1ec4] ss:$40 sps:$4 sm:$0xff]  }
 0x6db   :  { %11893 = vmatpush1.bf16.msra.mxu0 %v19625_v25  ;;  %v19688_v25 = vld [vmem:[#allocation5 + $0x1ec0] ss:$40 sps:$4 sm:$0xff]  }
 0x6dc   :  { %11894 = vmatprep.subr.bf16.mxu0 %v19630_v15  ;;  %v19693_v15 = vld [vmem:[#allocation5 + $0x1f14] ss:$40 sps:$4 sm:$0xff]  }
 0x6df   :  { %11895 = vmatpush1.bf16.msra.mxu0 %v19628_v27  ;;  %v19691_v27 = vld [vmem:[#allocation5 + $0x1f10] ss:$40 sps:$4 sm:$0xff]  }
 0x6e0   :  { %11896 = vmatprep.subr.bf16.mxu0 %v19633_v28  ;;  %v19696_v28 = vld [vmem:[#allocation5 + $0x1f64] ss:$40 sps:$4 sm:$0xff]  }
 0x6e3   :  { %11897 = vmatpush1.bf16.msra.mxu0 %v19631_v6  ;;  %v19694_v6 = vld [vmem:[#allocation5 + $0x1f60] ss:$40 sps:$4 sm:$0xff]  }
 0x6e4   :  { %11907 = vmatprep.subr.bf16.mxu0 %v19636_v62  ;;  %v19699_v62 = vld [vmem:[#allocation5 + $0x1fb4] ss:$40 sps:$4 sm:$0xff]  }
 0x6e6   :  { %11899 = vmatmul.mubr.bf16.vlgmr.msra.gmra.mrb[8].mxu0 %v20748_v26  ;;  %v19649_v26 = vld [vmem:[#allocation5 + $0x1ab0] ss:$40 sps:$4 sm:$0xff]  }
 0x6e7   :  { %11908 = vmatpush1.bf16.msra.mxu0 %v19634_v9  ;;  %11939 = vmatprep.mubr.bf16.mxu0 %v20750_v30  ;;  %v19652_v30 = vld [vmem:[#allocation5 + $0x1b00] ss:$40 sps:$4 sm:$0xff]   ;;  %v19702_v9 = vld [vmem:[#allocation5 + $0x2004] ss:$40 sps:$4 sm:$0xff]  }
 0x6e8   :  { %11909 = vmatprep.subr.bf16.mxu0 %v19639_v55  ;;  %v19705_v55 = vld [vmem:[#allocation5 + $0x2054] ss:$40 sps:$4 sm:$0xff]  }
 0x6eb   :  { %11910 = vmatpush1.bf16.msra.mxu0 %v19637_v34  ;;  %v19703_v34 = vld [vmem:[#allocation5 + $0x2050] ss:$40 sps:$4 sm:$0xff]  }
 0x6ec   :  { %11911 = vmatprep.subr.bf16.mxu0 %v19642_v35  ;;  %v19708_v35 = vld [vmem:[#allocation5 + $0x20a4] ss:$40 sps:$4 sm:$0xff]  }
 0x6ef   :  { %11912 = vmatpush1.bf16.msra.mxu0 %v19640_v5  ;;  %v19706_v5 = vld [vmem:[#allocation5 + $0x20a0] ss:$40 sps:$4 sm:$0xff]  }
 0x6f0   :  { %11913 = vmatprep.subr.bf16.mxu0 %v19645_v1  ;;  %v19711_v1 = vld [vmem:[#allocation5 + $0x20f4] ss:$40 sps:$4 sm:$0xff]  }
 0x6f3   :  { %11914 = vmatpush1.bf16.msra.mxu0 %v19643_v36  ;;  %v19709_v36 = vld [vmem:[#allocation5 + $0x20f0] ss:$40 sps:$4 sm:$0xff]  }
 0x6f4   :  { %11915 = vmatprep.subr.bf16.mxu0 %v19648_v37  ;;  %v19714_v37 = vld [vmem:[#allocation5 + $0x2144] ss:$40 sps:$4 sm:$0xff]  }
 0x6f7   :  { %11916 = vmatpush1.bf16.msra.mxu0 %v19646_v42  ;;  %v19712_v42 = vld [vmem:[#allocation5 + $0x2140] ss:$40 sps:$4 sm:$0xff]  }
 0x6f8   :  { %11917 = vmatprep.subr.bf16.mxu0 %v19651_v52  ;;  %v19717_v52 = vld [vmem:[#allocation5 + $0x2194] ss:$40 sps:$4 sm:$0xff]  }
 0x6fb   :  { %11918 = vmatpush1.bf16.msra.mxu0 %v19649_v26  ;;  %v19715_v26 = vld [vmem:[#allocation5 + $0x2190] ss:$40 sps:$4 sm:$0xff]  }
 0x6fc   :  { %11919 = vmatprep.subr.bf16.mxu0 %v19654_v49  ;;  %v19720_v49 = vld [vmem:[#allocation5 + $0x21e4] ss:$40 sps:$4 sm:$0xff]  }
 0x6ff   :  { %11920 = vmatpush1.bf16.msra.mxu0 %v19652_v30  ;;  %v19718_v30 = vld [vmem:[#allocation5 + $0x21e0] ss:$40 sps:$4 sm:$0xff]  }
 0x700   :  { %11921 = vmatprep.subr.bf16.mxu0 %v19657_v38  ;;  %v19723_v38 = vld [vmem:[#allocation5 + $0x2234] ss:$40 sps:$4 sm:$0xff]  }
 0x703   :  { %11922 = vmatpush1.bf16.msra.mxu0 %v19655_v50  ;;  %v19721_v50 = vld [vmem:[#allocation5 + $0x2230] ss:$40 sps:$4 sm:$0xff]  }
 0x704   :  { %11923 = vmatprep.subr.bf16.mxu0 %v19660_v51  ;;  %v19726_v51 = vld [vmem:[#allocation5 + $0x2284] ss:$40 sps:$4 sm:$0xff]  }
 0x707   :  { %11924 = vmatpush1.bf16.msra.mxu0 %v19658_v4  ;;  %v19724_v4 = vld [vmem:[#allocation5 + $0x2280] ss:$40 sps:$4 sm:$0xff]  }
 0x708   :  { %11925 = vmatprep.subr.bf16.mxu0 %v19663_v54  ;;  %v19729_v54 = vld [vmem:[#allocation5 + $0x22d4] ss:$40 sps:$4 sm:$0xff]  }
 0x70b   :  { %11926 = vmatpush1.bf16.msra.mxu0 %v19661_v56  ;;  %v19727_v56 = vld [vmem:[#allocation5 + $0x22d0] ss:$40 sps:$4 sm:$0xff]  }
 0x70c   :  { %11927 = vmatprep.subr.bf16.mxu0 %v19666_v20  ;;  %v19732_v20 = vld [vmem:[#allocation5 + $0x2324] ss:$40 sps:$4 sm:$0xff]  }
 0x70f   :  { %11928 = vmatpush1.bf16.msra.mxu0 %v19664_v18  ;;  %v19730_v18 = vld [vmem:[#allocation5 + $0x2320] ss:$40 sps:$4 sm:$0xff]  }
 0x710   :  { %11929 = vmatprep.subr.bf16.mxu0 %v19669_v10  ;;  %v19735_v10 = vld [vmem:[#allocation5 + $0x2374] ss:$40 sps:$4 sm:$0xff]  }
 0x713   :  { %11930 = vmatpush1.bf16.msra.mxu0 %v19667_v11  ;;  %v19733_v11 = vld [vmem:[#allocation5 + $0x2370] ss:$40 sps:$4 sm:$0xff]  }
 0x714   :  { %11931 = vmatprep.subr.bf16.mxu0 %v19672_v58  ;;  %v19738_v58 = vld [vmem:[#allocation5 + $0x23c4] ss:$40 sps:$4 sm:$0xff]  }
 0x717   :  { %11932 = vmatpush1.bf16.msra.mxu0 %v19670_v63  ;;  %v19736_v63 = vld [vmem:[#allocation5 + $0x23c0] ss:$40 sps:$4 sm:$0xff]  }
 0x718   :  { %11933 = vmatprep.subr.bf16.mxu0 %v19675_v0  ;;  %v19741_v0 = vld [vmem:[#allocation5 + $0x2414] ss:$40 sps:$4 sm:$0xff]  }
 0x71b   :  { %11934 = vmatpush1.bf16.msra.mxu0 %v19673_v7  ;;  %v19739_v7 = vld [vmem:[#allocation5 + $0x2410] ss:$40 sps:$4 sm:$0xff]  }
 0x71c   :  { %11935 = vmatprep.subr.bf16.mxu0 %v19678_v8  ;;  %v19744_v8 = vld [vmem:[#allocation5 + $0x2464] ss:$40 sps:$4 sm:$0xff]  }
 0x71f   :  { %11936 = vmatpush1.bf16.msra.mxu0 %v19676_v41  ;;  %v19742_v41 = vld [vmem:[#allocation5 + $0x2460] ss:$40 sps:$4 sm:$0xff]  }
 0x720   :  { %11937 = vmatprep.subr.bf16.mxu0 %v19681_v29  ;;  %v19747_v29 = vld [vmem:[#allocation5 + $0x24b4] ss:$40 sps:$4 sm:$0xff]  }
 0x723   :  { %11938 = vmatpush1.bf16.msra.mxu0 %v19679_v14  ;;  %v19750_v14 = vld [vmem:[#allocation5 + $0x2504] ss:$40 sps:$4 sm:$0xff]  }
 0x724   :  { %11948 = vmatprep.subr.bf16.mxu0 %v19684_v32  ;;  %v19753_v32 = vld [vmem:[#allocation5 + $0x2554] ss:$40 sps:$4 sm:$0xff]  }
 0x726   :  { %11940 = vmatmul.mubr.bf16.vlgmr.msra.gmra.mrb[8].mxu0 %v20766_v39  ;;  %v19697_v39 = vld [vmem:[#allocation5 + $0x1fb0] ss:$40 sps:$4 sm:$0xff]  }
 0x727   :  { %11949 = vmatpush1.bf16.msra.mxu0 %v19682_v17  ;;  %11980 = vmatprep.mubr.bf16.mxu0 %v20768_v59  ;;  %v19700_v59 = vld [vmem:[#allocation5 + $0x2000] ss:$40 sps:$4 sm:$0xff]   ;;  %v19751_v17 = vld [vmem:[#allocation5 + $0x2550] ss:$40 sps:$4 sm:$0xff]  }
 0x728   :  { %11950 = vmatprep.subr.bf16.mxu0 %v19687_v23  ;;  %v19756_v23 = vld [vmem:[#allocation5 + $0x25a4] ss:$40 sps:$4 sm:$0xff]  }
 0x72b   :  { %11951 = vmatpush1.bf16.msra.mxu0 %v19685_v45  ;;  %v19754_v45 = vld [vmem:[#allocation5 + $0x25a0] ss:$40 sps:$4 sm:$0xff]  }
 0x72c   :  { %11952 = vmatprep.subr.bf16.mxu0 %v19690_v44  ;;  %v19759_v44 = vld [vmem:[#allocation5 + $0x25f4] ss:$40 sps:$4 sm:$0xff]  }
 0x72f   :  { %11953 = vmatpush1.bf16.msra.mxu0 %v19688_v25  ;;  %v19757_v25 = vld [vmem:[#allocation5 + $0x25f0] ss:$40 sps:$4 sm:$0xff]  }
 0x730   :  { %11954 = vmatprep.subr.bf16.mxu0 %v19693_v15  ;;  %v19762_v15 = vld [vmem:[#allocation5 + $0x2644] ss:$40 sps:$4 sm:$0xff]  }
 0x733   :  { %11955 = vmatpush1.bf16.msra.mxu0 %v19691_v27  ;;  %v19760_v27 = vld [vmem:[#allocation5 + $0x2640] ss:$40 sps:$4 sm:$0xff]  }
 0x734   :  { %11956 = vmatprep.subr.bf16.mxu0 %v19696_v28  ;;  %v19765_v28 = vld [vmem:[#allocation5 + $0x2694] ss:$40 sps:$4 sm:$0xff]  }
 0x737   :  { %11957 = vmatpush1.bf16.msra.mxu0 %v19694_v6  ;;  %v19763_v6 = vld [vmem:[#allocation5 + $0x2690] ss:$40 sps:$4 sm:$0xff]  }
 0x738   :  { %11958 = vmatprep.subr.bf16.mxu0 %v19699_v62  ;;  %v19768_v62 = vld [vmem:[#allocation5 + $0x26e4] ss:$40 sps:$4 sm:$0xff]  }
 0x73b   :  { %11959 = vmatpush1.bf16.msra.mxu0 %v19697_v39  ;;  %v19766_v39 = vld [vmem:[#allocation5 + $0x26e0] ss:$40 sps:$4 sm:$0xff]  }
 0x73c   :  { %11960 = vmatprep.subr.bf16.mxu0 %v19702_v9  ;;  %v19771_v9 = vld [vmem:[#allocation5 + $0x2734] ss:$40 sps:$4 sm:$0xff]  }
 0x73f   :  { %11961 = vmatpush1.bf16.msra.mxu0 %v19700_v59  ;;  %v19769_v59 = vld [vmem:[#allocation5 + $0x2730] ss:$40 sps:$4 sm:$0xff]  }
 0x740   :  { %11962 = vmatprep.subr.bf16.mxu0 %v19705_v55  ;;  %v19774_v55 = vld [vmem:[#allocation5 + $0x2784] ss:$40 sps:$4 sm:$0xff]  }
 0x743   :  { %11963 = vmatpush1.bf16.msra.mxu0 %v19703_v34  ;;  %v19772_v34 = vld [vmem:[#allocation5 + $0x2780] ss:$40 sps:$4 sm:$0xff]  }
 0x744   :  { %11964 = vmatprep.subr.bf16.mxu0 %v19708_v35  ;;  %v19777_v35 = vld [vmem:[#allocation5 + $0x27d4] ss:$40 sps:$4 sm:$0xff]  }
 0x747   :  { %11965 = vmatpush1.bf16.msra.mxu0 %v19706_v5  ;;  %v19775_v5 = vld [vmem:[#allocation5 + $0x27d0] ss:$40 sps:$4 sm:$0xff]  }
 0x748   :  { %11966 = vmatprep.subr.bf16.mxu0 %v19711_v1  ;;  %v19780_v1 = vld [vmem:[#allocation5 + $0x2824] ss:$40 sps:$4 sm:$0xff]  }
 0x74b   :  { %11967 = vmatpush1.bf16.msra.mxu0 %v19709_v36  ;;  %v19778_v36 = vld [vmem:[#allocation5 + $0x2820] ss:$40 sps:$4 sm:$0xff]  }
 0x74c   :  { %11968 = vmatprep.subr.bf16.mxu0 %v19714_v37  ;;  %v19783_v37 = vld [vmem:[#allocation5 + $0x2874] ss:$40 sps:$4 sm:$0xff]  }
 0x74f   :  { %11969 = vmatpush1.bf16.msra.mxu0 %v19712_v42  ;;  %v19874_v42 = vld [vmem:[#allocation8 + $0x800] ss:$16 sps:$4 sm:$0xff]  }
 0x750   :  { %11970 = vmatprep.subr.bf16.mxu0 %v19717_v52  ;;  %v19876_v52 = vld [vmem:[#allocation8 + $0x804] ss:$16 sps:$4 sm:$0xff]  }
 0x751   :  { %14238 = vmatprep.subr.bf16.mxu1 %v19876_v52  ;;  %v19822_v52 = vld [vmem:[#allocation5 + $0x2c84] ss:$40 sps:$4 sm:$0xff]  }
 0x752   :  { %14239 = vmatpush1.bf16.msra.mxu1 %v19874_v42  ;;  %v19817_v42 = vld [vmem:[#allocation5 + $0x2c30] ss:$40 sps:$4 sm:$0xff]  }
 0x753   :  { %11971 = vmatpush1.bf16.msra.mxu0 %v19715_v26  ;;  %v19781_v26 = vld [vmem:[#allocation5 + $0x2870] ss:$40 sps:$4 sm:$0xff]  }
 0x754   :  { %11972 = vmatprep.subr.bf16.mxu0 %v19720_v49  ;;  %v19879_v49 = vld [vmem:[#allocation8 + $0x824] ss:$16 sps:$4 sm:$0xff]  }
 0x755   :  { %14240 = vmatprep.subr.bf16.mxu1 %v19879_v49  ;;  %v19825_v49 = vld [vmem:[#allocation5 + $0x2cd4] ss:$40 sps:$4 sm:$0xff]  }
 0x757   :  { %11973 = vmatpush1.bf16.msra.mxu0 %v19718_v30  ;;  %v19786_v30 = vld [vmem:[#allocation5 + $0x28c4] ss:$40 sps:$4 sm:$0xff]  }
 0x758   :  { %11974 = vmatprep.subr.bf16.mxu0 %v19723_v38  ;;  %v19877_v38 = vld [vmem:[#allocation8 + $0x820] ss:$16 sps:$4 sm:$0xff]  }
 0x759   :  { %14241 = vmatpush1.bf16.msra.mxu1 %v19877_v38  ;;  %v19828_v38 = vld [vmem:[#allocation5 + $0x2d24] ss:$40 sps:$4 sm:$0xff]  }
 0x75b   :  { %11975 = vmatpush1.bf16.msra.mxu0 %v19721_v50  ;;  %v19882_v50 = vld [vmem:[#allocation8 + $0x844] ss:$16 sps:$4 sm:$0xff]  }
 0x75c   :  { %11976 = vmatprep.subr.bf16.mxu0 %v19726_v51  ;;  %v19784_v51 = vld [vmem:[#allocation5 + $0x28c0] ss:$40 sps:$4 sm:$0xff]   ;;  %14242 = vmatprep.subr.bf16.mxu1 %v19882_v50 }
 0x75d   :  { %v19826_v50 = vld [vmem:[#allocation5 + $0x2d20] ss:$40 sps:$4 sm:$0xff]  }
 0x75f   :  { %11977 = vmatpush1.bf16.msra.mxu0 %v19724_v4  ;;  %v19789_v4 = vld [vmem:[#allocation5 + $0x2914] ss:$40 sps:$4 sm:$0xff]  }
 0x760   :  { %11978 = vmatprep.subr.bf16.mxu0 %v19729_v54  ;;  %v19885_v54 = vld [vmem:[#allocation8 + $0x864] ss:$16 sps:$4 sm:$0xff]  }
 0x763   :  { %11979 = vmatpush1.bf16.msra.mxu0 %v19727_v56  ;;  %v19787_v56 = vld [vmem:[#allocation5 + $0x2910] ss:$40 sps:$4 sm:$0xff]  }
 0x764   :  { %11989 = vmatprep.subr.bf16.mxu0 %v19732_v20  ;;  %v19883_v20 = vld [vmem:[#allocation8 + $0x860] ss:$16 sps:$4 sm:$0xff]  }
 0x766   :  { %11981 = vmatmul.mubr.bf16.vlgmr.msra.gmra.mrb[8].mxu0 %v20784_v21  ;;  %v19745_v21 = vld [vmem:[#allocation5 + $0x24b0] ss:$40 sps:$4 sm:$0xff]  }
 0x767   :  { %11990 = vmatpush1.bf16.msra.mxu0 %v19730_v18  ;;  %12021 = vmatprep.mubr.bf16.mxu0 %v20786_v24  ;;  %v19748_v24 = vld [vmem:[#allocation5 + $0x2500] ss:$40 sps:$4 sm:$0xff]  }
 0x768   :  { %11991 = vmatprep.subr.bf16.mxu0 %v19735_v10  ;;  %v19888_v18 = vld [vmem:[#allocation8 + $0x884] ss:$16 sps:$4 sm:$0xff]  }
 0x769   :  { %v19790_v10 = vld [vmem:[#allocation5 + $0x2960] ss:$40 sps:$4 sm:$0xff]  }
 0x76b   :  { %11992 = vmatpush1.bf16.msra.mxu0 %v19733_v11  ;;  %v19795_v11 = vld [vmem:[#allocation5 + $0x29b4] ss:$40 sps:$4 sm:$0xff]  }
 0x76c   :  { %11993 = vmatprep.subr.bf16.mxu0 %v19738_v58  ;;  %v19886_v58 = vld [vmem:[#allocation8 + $0x880] ss:$16 sps:$4 sm:$0xff]  }
 0x76f   :  { %11994 = vmatpush1.bf16.msra.mxu0 %v19736_v63  ;;  %v19891_v63 = vld [vmem:[#allocation8 + $0x8a4] ss:$16 sps:$4 sm:$0xff]  }
 0x770   :  { %11995 = vmatprep.subr.bf16.mxu0 %v19741_v0  ;;  %v19793_v0 = vld [vmem:[#allocation5 + $0x29b0] ss:$40 sps:$4 sm:$0xff]  }
 0x773   :  { %11996 = vmatpush1.bf16.msra.mxu0 %v19739_v7  ;;  %v19798_v7 = vld [vmem:[#allocation5 + $0x2a04] ss:$40 sps:$4 sm:$0xff]  }
 0x774   :  { %11997 = vmatprep.subr.bf16.mxu0 %v19744_v8  ;;  %v19889_v8 = vld [vmem:[#allocation8 + $0x8a0] ss:$16 sps:$4 sm:$0xff]  }
 0x777   :  { %11998 = vmatpush1.bf16.msra.mxu0 %v19742_v41  ;;  %v19894_v41 = vld [vmem:[#allocation8 + $0x8c4] ss:$16 sps:$4 sm:$0xff]  }
 0x778   :  { %11999 = vmatprep.subr.bf16.mxu0 %v19747_v29  ;;  %v19796_v29 = vld [vmem:[#allocation5 + $0x2a00] ss:$40 sps:$4 sm:$0xff]  }
 0x77b   :  { %12000 = vmatpush1.bf16.msra.mxu0 %v19745_v21  ;;  %v19801_v21 = vld [vmem:[#allocation5 + $0x2a54] ss:$40 sps:$4 sm:$0xff]  }
 0x77c   :  { %12001 = vmatprep.subr.bf16.mxu0 %v19750_v14  ;;  %v19892_v14 = vld [vmem:[#allocation8 + $0x8c0] ss:$16 sps:$4 sm:$0xff]  }
 0x77f   :  { %12002 = vmatpush1.bf16.msra.mxu0 %v19748_v24  ;;  %v19897_v24 = vld [vmem:[#allocation8 + $0x8e4] ss:$16 sps:$4 sm:$0xff]  }
 0x780   :  { %12003 = vmatprep.subr.bf16.mxu0 %v19753_v32  ;;  %v19799_v32 = vld [vmem:[#allocation5 + $0x2a50] ss:$40 sps:$4 sm:$0xff]  }
 0x783   :  { %12004 = vmatpush1.bf16.msra.mxu0 %v19751_v17  ;;  %v19804_v17 = vld [vmem:[#allocation5 + $0x2aa4] ss:$40 sps:$4 sm:$0xff]  }
 0x784   :  { %12005 = vmatprep.subr.bf16.mxu0 %v19756_v23  ;;  %v19895_v23 = vld [vmem:[#allocation8 + $0x8e0] ss:$16 sps:$4 sm:$0xff]  }
 0x787   :  { %12006 = vmatpush1.bf16.msra.mxu0 %v19754_v45  ;;  %v19900_v45 = vld [vmem:[#allocation8 + $0x904] ss:$16 sps:$4 sm:$0xff]  }
 0x788   :  { %12007 = vmatprep.subr.bf16.mxu0 %v19759_v44  ;;  %v19802_v44 = vld [vmem:[#allocation5 + $0x2aa0] ss:$40 sps:$4 sm:$0xff]  }
 0x78b   :  { %12008 = vmatpush1.bf16.msra.mxu0 %v19757_v25  ;;  %v19807_v25 = vld [vmem:[#allocation5 + $0x2af4] ss:$40 sps:$4 sm:$0xff]  }
 0x78c   :  { %12009 = vmatprep.subr.bf16.mxu0 %v19762_v15  ;;  %v19898_v15 = vld [vmem:[#allocation8 + $0x900] ss:$16 sps:$4 sm:$0xff]  }
 0x78f   :  { %12010 = vmatpush1.bf16.msra.mxu0 %v19760_v27  ;;  %v19903_v27 = vld [vmem:[#allocation8 + $0x924] ss:$16 sps:$4 sm:$0xff]  }
 0x790   :  { %12011 = vmatprep.subr.bf16.mxu0 %v19765_v28  ;;  %v19805_v28 = vld [vmem:[#allocation5 + $0x2af0] ss:$40 sps:$4 sm:$0xff]  }
 0x793   :  { %12012 = vmatpush1.bf16.msra.mxu0 %v19763_v6  ;;  %v19810_v6 = vld [vmem:[#allocation5 + $0x2b44] ss:$40 sps:$4 sm:$0xff]  }
 0x794   :  { %12013 = vmatprep.subr.bf16.mxu0 %v19768_v62  ;;  %v19901_v62 = vld [vmem:[#allocation8 + $0x920] ss:$16 sps:$4 sm:$0xff]  }
 0x797   :  { %12014 = vmatpush1.bf16.msra.mxu0 %v19766_v39  ;;  %v19906_v39 = vld [vmem:[#allocation8 + $0x944] ss:$16 sps:$4 sm:$0xff]  }
 0x798   :  { %12015 = vmatprep.subr.bf16.mxu0 %v19771_v9  ;;  %v19808_v9 = vld [vmem:[#allocation5 + $0x2b40] ss:$40 sps:$4 sm:$0xff]  }
 0x79b   :  { %12016 = vmatpush1.bf16.msra.mxu0 %v19769_v59  ;;  %v19813_v59 = vld [vmem:[#allocation5 + $0x2b94] ss:$40 sps:$4 sm:$0xff]  }
 0x79c   :  { %12017 = vmatprep.subr.bf16.mxu0 %v19774_v55  ;;  %v19904_v55 = vld [vmem:[#allocation8 + $0x940] ss:$16 sps:$4 sm:$0xff]  }
 0x79f   :  { %12018 = vmatpush1.bf16.msra.mxu0 %v19772_v34  ;;  %v19909_v34 = vld [vmem:[#allocation8 + $0x964] ss:$16 sps:$4 sm:$0xff]  }
 0x7a0   :  { %12019 = vmatprep.subr.bf16.mxu0 %v19777_v35  ;;  %v19811_v35 = vld [vmem:[#allocation5 + $0x2b90] ss:$40 sps:$4 sm:$0xff]  }
 0x7a3   :  { %12020 = vmatpush1.bf16.msra.mxu0 %v19775_v5  ;;  %v19816_v5 = vld [vmem:[#allocation5 + $0x2be4] ss:$40 sps:$4 sm:$0xff]  }
 0x7a4   :  { %12030 = vmatprep.subr.bf16.mxu0 %v19780_v1  ;;  %v19907_v1 = vld [vmem:[#allocation8 + $0x960] ss:$16 sps:$4 sm:$0xff]  }
 0x7a6   :  { %12022 = vmatmul.mubr.bf16.vlgmr.msra.gmra.mrb[8].mxu0 %v20802_v19  ;;  %v19880_v19 = vld [vmem:[#allocation8 + $0x840] ss:$16 sps:$4 sm:$0xff]  }
 0x7a7   :  { %12031 = vmatpush1.bf16.msra.mxu0 %v19778_v36  ;;  %12062 = vmatprep.mubr.bf16.mxu0 %v20804_v60  ;;  %v19792_v60 = vld [vmem:[#allocation5 + $0x2964] ss:$40 sps:$4 sm:$0xff]   ;;  %v19814_v36 = vld [vmem:[#allocation5 + $0x2be0] ss:$40 sps:$4 sm:$0xff]  }
 0x7a8   :  { %12032 = vmatprep.subr.bf16.mxu0 %v19783_v37  ;;  %14243 = vmatpush1.bf16.msra.mxu1 %v19880_v19  ;;  %v19819_v37 = vld [vmem:[#allocation5 + $0x2c34] ss:$40 sps:$4 sm:$0xff]   ;;  %v19834_v19 = vld [vmem:[#allocation5 + $0x2dc4] ss:$40 sps:$4 sm:$0xff]  }
 0x7a9   :  { %14244 = vmatprep.subr.bf16.mxu1 %v19885_v54  ;;  %v19832_v54 = vld [vmem:[#allocation5 + $0x2dc0] ss:$40 sps:$4 sm:$0xff]  }
 0x7ab   :  { %12033 = vmatpush1.bf16.msra.mxu0 %v19781_v26  ;;  %v19820_v26 = vld [vmem:[#allocation5 + $0x2c80] ss:$40 sps:$4 sm:$0xff]  }
 0x7ac   :  { %12034 = vmatprep.subr.bf16.mxu0 %v19786_v30  ;;  %14245 = vmatpush1.bf16.msra.mxu1 %v19883_v20  ;;  %v19823_v30 = vld [vmem:[#allocation5 + $0x2cd0] ss:$40 sps:$4 sm:$0xff]   ;;  %v19840_v20 = vld [vmem:[#allocation5 + $0x2e64] ss:$40 sps:$4 sm:$0xff]  }
 0x7ad   :  { %14246 = vmatprep.subr.bf16.mxu1 %v19888_v18  ;;  %v19838_v18 = vld [vmem:[#allocation5 + $0x2e60] ss:$40 sps:$4 sm:$0xff]  }
 0x7af   :  { %12035 = vmatpush1.bf16.msra.mxu0 %v19784_v51  ;;  %v19831_v51 = vld [vmem:[#allocation5 + $0x2d74] ss:$40 sps:$4 sm:$0xff]  }
 0x7b0   :  { %12036 = vmatprep.subr.bf16.mxu0 %v19789_v4  ;;  %14247 = vmatpush1.bf16.msra.mxu1 %v19886_v58  ;;  %v19829_v4 = vld [vmem:[#allocation5 + $0x2d70] ss:$40 sps:$4 sm:$0xff]   ;;  %v19849_v58 = vld [vmem:[#allocation5 + $0x2f54] ss:$40 sps:$4 sm:$0xff]  }
 0x7b1   :  { %14248 = vmatprep.subr.bf16.mxu1 %v19891_v63  ;;  %v19847_v63 = vld [vmem:[#allocation5 + $0x2f50] ss:$40 sps:$4 sm:$0xff]  }
 0x7b3   :  { %12037 = vmatpush1.bf16.msra.mxu0 %v19787_v56  ;;  %v19837_v56 = vld [vmem:[#allocation5 + $0x2e14] ss:$40 sps:$4 sm:$0xff]  }
 0x7b4   :  { %12038 = vmatprep.subr.bf16.mxu0 %v19792_v60  ;;  %14249 = vmatpush1.bf16.msra.mxu1 %v19889_v8  ;;  %v19835_v60 = vld [vmem:[#allocation5 + $0x2e10] ss:$40 sps:$4 sm:$0xff]   ;;  %v19855_v8 = vld [vmem:[#allocation5 + $0x2ff4] ss:$40 sps:$4 sm:$0xff]  }
 0x7b5   :  { %14250 = vmatprep.subr.bf16.mxu1 %v19894_v41  ;;  %v19853_v41 = vld [vmem:[#allocation5 + $0x2ff0] ss:$40 sps:$4 sm:$0xff]  }
 0x7b7   :  { %12039 = vmatpush1.bf16.msra.mxu0 %v19790_v10  ;;  %v19843_v10 = vld [vmem:[#allocation5 + $0x2eb4] ss:$40 sps:$4 sm:$0xff]  }
 0x7b8   :  { %12040 = vmatprep.subr.bf16.mxu0 %v19795_v11  ;;  %14251 = vmatpush1.bf16.msra.mxu1 %v19892_v14  ;;  %v19846_v11 = vld [vmem:[#allocation5 + $0x2f04] ss:$40 sps:$4 sm:$0xff]   ;;  %v19861_v14 = vld [vmem:[#allocation5 + $0x3094] ss:$40 sps:$4 sm:$0xff]  }
 0x7b9   :  { %14252 = vmatprep.subr.bf16.mxu1 %v19897_v24  ;;  %v19859_v24 = vld [vmem:[#allocation5 + $0x3090] ss:$40 sps:$4 sm:$0xff]  }
 0x7bb   :  { %12041 = vmatpush1.bf16.msra.mxu0 %v19793_v0  ;;  %v19852_v0 = vld [vmem:[#allocation5 + $0x2fa4] ss:$40 sps:$4 sm:$0xff]  }
 0x7bc   :  { %12042 = vmatprep.subr.bf16.mxu0 %v19798_v7  ;;  %14253 = vmatpush1.bf16.msra.mxu1 %v19895_v23  ;;  %v19850_v7 = vld [vmem:[#allocation5 + $0x2fa0] ss:$40 sps:$4 sm:$0xff]   ;;  %v19867_v23 = vld [vmem:[#allocation5 + $0x3134] ss:$40 sps:$4 sm:$0xff]  }
 0x7bd   :  { %14254 = vmatprep.subr.bf16.mxu1 %v19900_v45  ;;  %v19865_v45 = vld [vmem:[#allocation5 + $0x3130] ss:$40 sps:$4 sm:$0xff]  }
 0x7bf   :  { %12043 = vmatpush1.bf16.msra.mxu0 %v19796_v29  ;;  %v19858_v29 = vld [vmem:[#allocation5 + $0x3044] ss:$40 sps:$4 sm:$0xff]  }
 0x7c0   :  { %12044 = vmatprep.subr.bf16.mxu0 %v19801_v21  ;;  %14255 = vmatpush1.bf16.msra.mxu1 %v19898_v15  ;;  %v19856_v21 = vld [vmem:[#allocation5 + $0x3040] ss:$40 sps:$4 sm:$0xff]   ;;  %v19873_v15 = vld [vmem:[#allocation5 + $0x31d4] ss:$40 sps:$4 sm:$0xff]  }
 0x7c1   :  { %14256 = vmatprep.subr.bf16.mxu1 %v19903_v27  ;;  %v19871_v27 = vld [vmem:[#allocation5 + $0x31d0] ss:$40 sps:$4 sm:$0xff]  }
 0x7c3   :  { %12045 = vmatpush1.bf16.msra.mxu0 %v19799_v32  ;;  %v19864_v32 = vld [vmem:[#allocation5 + $0x30e4] ss:$40 sps:$4 sm:$0xff]  }
 0x7c4   :  { %12046 = vmatprep.subr.bf16.mxu0 %v19804_v17  ;;  %14257 = vmatpush1.bf16.msra.mxu1 %v19901_v62  ;;  %v19862_v17 = vld [vmem:[#allocation5 + $0x30e0] ss:$40 sps:$4 sm:$0xff]  }
 0x7c5   :  { %14258 = vmatprep.subr.bf16.mxu1 %v19906_v39  ;;  %v19915_v62 = vld [vmem:[#allocation8 + $0x9a4] ss:$16 sps:$4 sm:$0xff]   ;;  %v19913_v39 = vld [vmem:[#allocation8 + $0x9a0] ss:$16 sps:$4 sm:$0xff]  }
 0x7c7   :  { %12047 = vmatpush1.bf16.msra.mxu0 %v19802_v44  ;;  %v19870_v44 = vld [vmem:[#allocation5 + $0x3184] ss:$40 sps:$4 sm:$0xff]  }
 0x7c8   :  { %12048 = vmatprep.subr.bf16.mxu0 %v19807_v25  ;;  %14259 = vmatpush1.bf16.msra.mxu1 %v19904_v55  ;;  %v19868_v25 = vld [vmem:[#allocation5 + $0x3180] ss:$40 sps:$4 sm:$0xff]  }
 0x7c9   :  { %14260 = vmatprep.subr.bf16.mxu1 %v19909_v34  ;;  %v19921_v55 = vld [vmem:[#allocation8 + $0x9e4] ss:$16 sps:$4 sm:$0xff]   ;;  %v19919_v34 = vld [vmem:[#allocation8 + $0x9e0] ss:$16 sps:$4 sm:$0xff]  }
 0x7cb   :  { %12049 = vmatpush1.bf16.msra.mxu0 %v19805_v28  ;;  %v19912_v28 = vld [vmem:[#allocation8 + $0x984] ss:$16 sps:$4 sm:$0xff]  }
 0x7cc   :  { %12050 = vmatprep.subr.bf16.mxu0 %v19810_v6  ;;  %14261 = vmatpush1.bf16.msra.mxu1 %v19907_v1  ;;  %v19910_v6 = vld [vmem:[#allocation8 + $0x980] ss:$16 sps:$4 sm:$0xff]  }
 0x7cd   :  { %14262 = vmatprep.subr.bf16.mxu1 %v19912_v28  ;;  %v19967_v28 = vld [vmem:[#allocation8 + $0x1e8] ss:$16 sps:$4 sm:$0xff]  }
 0x7cf   :  { %12051 = vmatpush1.bf16.msra.mxu0 %v19808_v9  ;;  %v19918_v9 = vld [vmem:[#allocation8 + $0x9c4] ss:$16 sps:$4 sm:$0xff]  }
 0x7d0   :  { %12052 = vmatprep.subr.bf16.mxu0 %v19813_v59  ;;  %14263 = vmatpush1.bf16.msra.mxu1 %v19910_v6  ;;  %v19916_v59 = vld [vmem:[#allocation8 + $0x9c0] ss:$16 sps:$4 sm:$0xff]   ;;  %v19972_v6 = vld [vmem:[#allocation8 + $0x20c] ss:$16 sps:$4 sm:$0xff]  }
 0x7d1   :  { %14264 = vmatprep.subr.bf16.mxu1 %v19915_v62  ;;  %v19970_v62 = vld [vmem:[#allocation8 + $0x208] ss:$16 sps:$4 sm:$0xff]  }
 0x7d3   :  { %12053 = vmatpush1.bf16.msra.mxu0 %v19811_v35  ;;  %v19924_v35 = vld [vmem:[#allocation8 + $0xc] ss:$16 sps:$4 sm:$0xff]  }
 0x7d4   :  { %12054 = vmatprep.subr.bf16.mxu0 %v19816_v5  ;;  %14265 = vmatpush1.bf16.msra.mxu1 %v19913_v39  ;;  %v2009_v5 = vld [vmem:[#allocation7 + $0x8] sm:$0x3] }
 0x7d5   :  { %14266 = vmatprep.subr.bf16.mxu1 %v19918_v9  ;;  %v2051_v1 = vrot.slane %v2009_v5, %v20881_v48  ;;  %v19975_v39 = vld [vmem:[#allocation8 + $0x22c] ss:$16 sps:$4 sm:$0xff]   ;;  %v19973_v9 = vld [vmem:[#allocation8 + $0x228] ss:$16 sps:$4 sm:$0xff]  }
 0x7d7   :  { %12055 = vmatpush1.bf16.msra.mxu0 %v19814_v36 }
 0x7d8   :  { %12056 = vmatprep.subr.bf16.mxu0 %v19819_v37  ;;  %14267 = vmatpush1.bf16.msra.mxu1 %v19916_v59  ;;  %v19978_v59 = vld [vmem:[#allocation8 + $0x24c] ss:$16 sps:$4 sm:$0xff]  }
 0x7d9   :  { %14268 = vmatprep.subr.bf16.mxu1 %v19921_v55  ;;  %v19976_v55 = vld [vmem:[#allocation8 + $0x248] ss:$16 sps:$4 sm:$0xff]  }
 0x7db   :  { %12057 = vmatpush1.bf16.msra.mxu0 %v19817_v42 }
 0x7dc   :  { %12058 = vmatprep.subr.bf16.mxu0 %v19822_v52  ;;  %14269 = vmatpush1.bf16.msra.mxu1 %v19919_v34  ;;  %v20072_v34 = vld [vmem:[#allocation11 + $0x40] sm:$0xff]  }
 0x7dd   :  { %14279 = vmatprep.subr.bf16.mxu1 %v19924_v35  ;;  %v20073_v35 = vld [vmem:[#allocation11] sm:$0xff]  }
 0x7df   :  { %12059 = vmatpush1.bf16.msra.mxu0 %v19820_v26 }
 0x7e0   :  { %12060 = vmatprep.subr.bf16.mxu0 %v19825_v49 }
 0x7e3   :  { %12061 = vmatpush1.bf16.msra.mxu0 %v19823_v30 }
 0x7e4   :  { %12071 = vmatprep.subr.bf16.mxu0 %v19828_v38 }
 0x7e6   :  { %12063 = vmatmul.mubr.bf16.vlgmr.msra.gmra.mrb[8].mxu0 %v20820_v61  ;;  %v19841_v61 = vld [vmem:[#allocation5 + $0x2eb0] ss:$40 sps:$4 sm:$0xff]  }
 0x7e7   :  { %12072 = vmatpush1.bf16.msra.mxu0 %v19826_v50  ;;  %12103 = vmatprep.mubr.bf16.mxu0 %v20822_v31  ;;  %v19844_v31 = vld [vmem:[#allocation5 + $0x2f00] ss:$40 sps:$4 sm:$0xff]  }
 0x7e8   :  { %12073 = vmatprep.subr.bf16.mxu0 %v19831_v51  ;;  %v19922_v51 = vld [vmem:[#allocation8 + $0x8] ss:$16 sps:$4 sm:$0xff]  }
 0x7eb   :  { %12074 = vmatpush1.bf16.msra.mxu0 %v19829_v4 }
 0x7ec   :  { %12075 = vmatprep.subr.bf16.mxu0 %v19834_v19  ;;  %v19927_v19 = vld [vmem:[#allocation8 + $0x2c] ss:$16 sps:$4 sm:$0xff]  }
 0x7ef   :  { %12076 = vmatpush1.bf16.msra.mxu0 %v19832_v54  ;;  %v19925_v54 = vld [vmem:[#allocation8 + $0x28] ss:$16 sps:$4 sm:$0xff]  }
 0x7f0   :  { %12077 = vmatprep.subr.bf16.mxu0 %v19837_v56  ;;  %v19930_v56 = vld [vmem:[#allocation8 + $0x4c] ss:$16 sps:$4 sm:$0xff]  }
 0x7f3   :  { %12078 = vmatpush1.bf16.msra.mxu0 %v19835_v60  ;;  %v19928_v60 = vld [vmem:[#allocation8 + $0x48] ss:$16 sps:$4 sm:$0xff]  }
 0x7f4   :  { %12079 = vmatprep.subr.bf16.mxu0 %v19840_v20  ;;  %v19933_v20 = vld [vmem:[#allocation8 + $0x6c] ss:$16 sps:$4 sm:$0xff]  }
 0x7f7   :  { %12080 = vmatpush1.bf16.msra.mxu0 %v19838_v18  ;;  %v19931_v18 = vld [vmem:[#allocation8 + $0x68] ss:$16 sps:$4 sm:$0xff]  }
 0x7f8   :  { %12081 = vmatprep.subr.bf16.mxu0 %v19843_v10  ;;  %v19936_v10 = vld [vmem:[#allocation8 + $0x8c] ss:$16 sps:$4 sm:$0xff]  }
 0x7fb   :  { %12082 = vmatpush1.bf16.msra.mxu0 %v19841_v61  ;;  %v19934_v61 = vld [vmem:[#allocation8 + $0x88] ss:$16 sps:$4 sm:$0xff]  }
 0x7fc   :  { %12083 = vmatprep.subr.bf16.mxu0 %v19846_v11  ;;  %v19939_v11 = vld [vmem:[#allocation8 + $0xac] ss:$16 sps:$4 sm:$0xff]  }
 0x7ff   :  { %12084 = vmatpush1.bf16.msra.mxu0 %v19844_v31  ;;  %v19937_v31 = vld [vmem:[#allocation8 + $0xa8] ss:$16 sps:$4 sm:$0xff]  }
 0x800   :  { %12085 = vmatprep.subr.bf16.mxu0 %v19849_v58  ;;  %v19942_v58 = vld [vmem:[#allocation8 + $0xcc] ss:$16 sps:$4 sm:$0xff]  }
 0x803   :  { %12086 = vmatpush1.bf16.msra.mxu0 %v19847_v63  ;;  %v19945_v63 = vld [vmem:[#allocation8 + $0xec] ss:$16 sps:$4 sm:$0xff]  }
 0x804   :  { %12087 = vmatprep.subr.bf16.mxu0 %v19852_v0  ;;  %v19943_v0 = vld [vmem:[#allocation8 + $0xe8] ss:$16 sps:$4 sm:$0xff]  }
 0x807   :  { %12088 = vmatpush1.bf16.msra.mxu0 %v19850_v7  ;;  %v19948_v7 = vld [vmem:[#allocation8 + $0x10c] ss:$16 sps:$4 sm:$0xff]  }
 0x808   :  { %12089 = vmatprep.subr.bf16.mxu0 %v19855_v8  ;;  %v19946_v8 = vld [vmem:[#allocation8 + $0x108] ss:$16 sps:$4 sm:$0xff]  }
 0x80b   :  { %12090 = vmatpush1.bf16.msra.mxu0 %v19853_v41  ;;  %v19951_v41 = vld [vmem:[#allocation8 + $0x12c] ss:$16 sps:$4 sm:$0xff]  }
 0x80c   :  { %12091 = vmatprep.subr.bf16.mxu0 %v19858_v29  ;;  %v19949_v29 = vld [vmem:[#allocation8 + $0x128] ss:$16 sps:$4 sm:$0xff]  }
 0x80f   :  { %12092 = vmatpush1.bf16.msra.mxu0 %v19856_v21  ;;  %v19954_v21 = vld [vmem:[#allocation8 + $0x14c] ss:$16 sps:$4 sm:$0xff]  }
 0x810   :  { %12093 = vmatprep.subr.bf16.mxu0 %v19861_v14  ;;  %v19952_v14 = vld [vmem:[#allocation8 + $0x148] ss:$16 sps:$4 sm:$0xff]  }
 0x813   :  { %12094 = vmatpush1.bf16.msra.mxu0 %v19859_v24  ;;  %v19957_v24 = vld [vmem:[#allocation8 + $0x16c] ss:$16 sps:$4 sm:$0xff]  }
 0x814   :  { %12095 = vmatprep.subr.bf16.mxu0 %v19864_v32  ;;  %v19955_v32 = vld [vmem:[#allocation8 + $0x168] ss:$16 sps:$4 sm:$0xff]  }
 0x817   :  { %12096 = vmatpush1.bf16.msra.mxu0 %v19862_v17  ;;  %v19960_v17 = vld [vmem:[#allocation8 + $0x18c] ss:$16 sps:$4 sm:$0xff]  }
 0x818   :  { %12097 = vmatprep.subr.bf16.mxu0 %v19867_v23  ;;  %v19958_v23 = vld [vmem:[#allocation8 + $0x188] ss:$16 sps:$4 sm:$0xff]  }
 0x81b   :  { %12098 = vmatpush1.bf16.msra.mxu0 %v19865_v45  ;;  %v19963_v45 = vld [vmem:[#allocation8 + $0x1ac] ss:$16 sps:$4 sm:$0xff]  }
 0x81c   :  { %12099 = vmatprep.subr.bf16.mxu0 %v19870_v44  ;;  %v19961_v44 = vld [vmem:[#allocation8 + $0x1a8] ss:$16 sps:$4 sm:$0xff]  }
 0x81f   :  { %12100 = vmatpush1.bf16.msra.mxu0 %v19868_v25  ;;  %v19966_v25 = vld [vmem:[#allocation8 + $0x1cc] ss:$16 sps:$4 sm:$0xff]  }
 0x820   :  { %12101 = vmatprep.subr.bf16.mxu0 %v19873_v15  ;;  %v19964_v15 = vld [vmem:[#allocation8 + $0x1c8] ss:$16 sps:$4 sm:$0xff]  }
 0x823   :  { %12102 = vmatpush1.bf16.msra.mxu0 %v19871_v27  ;;  %v19969_v27 = vld [vmem:[#allocation8 + $0x1ec] ss:$16 sps:$4 sm:$0xff]  }
 0x824   :  { %16932 = vmatprep.subr.bf16.mxu0 %v20072_v34  ;;  %v20035_v34 = vld [vmem:[#allocation8 + $0x4ac] ss:$16 sps:$4 sm:$0xff]  }
 0x826   :  { %12104 = vmatmul.mubr.bf16.vlgmr.msra.gmra.mrb[8].mxu0 %v20830_v2  ;;  %v2047_v2 = vrot.slane %v2009_v5, %v20895_v13  ;;  %v19981_v5 = vld [vmem:[#allocation8 + $0x26c] ss:$16 sps:$4 sm:$0xff]  }
 0x827   :  { %16933 = vmatpush3.bf16.msra.mxu0 %v20073_v35  ;;  %v20038_v35 = vld [vmem:[#allocation8 + $0x4cc] ss:$16 sps:$4 sm:$0xff]  }
 0x8f9   :  { %v12105_v36 = vpop.f32.mrb[8].mxu0 }
 0x8fa   :  { %v17013_v37 = vadd.f32 %v12105_v36, %v2047_v2  ;;  %v12107_v42 = vpop.f32.mrb[9].mxu0  ;;  %v19979_v2 = vld [vmem:[#allocation8 + $0x268] ss:$16 sps:$4 sm:$0xff]   ;;  %v20078_v36 = vld [vmem:[#allocation11 + $0x8] sm:$0xff]  }
 0x8fb   :  { %v17014_v52 = vadd.f32 %v12107_v42, %v2051_v1  ;;  %v12109_v26 = vpop.f32.mrb[10].mxu0  ;;  %v20077_v1 = vld [vmem:[#allocation11 + $0x48] sm:$0xff]   ;;  %v20083_v42 = vld [vmem:[#allocation11 + $0x10] sm:$0xff]  }
 0x8fc   :  { %20218 = vtanh.f32 %v17013_v37  ;;  %v12110_v49 = vpop.f32.mrb[11].mxu0  ;;  %16934 = vmatprep.subr.bf16.mxu0 %v20077_v1  ;;  %v20082_v37 = vld [vmem:[#allocation11 + $0x50] sm:$0xff]   ;;  %v20044_v1 = vld [vmem:[#allocation8 + $0x50c] ss:$16 sps:$4 sm:$0xff]  }
 0x8fd   :  { %20220 = vtanh.f32 %v17014_v52  ;;  %16935 = vmatpush3.bf16.msra.mxu0 %v20078_v36  ;;  %v19987_v52 = vld [vmem:[#allocation8 + $0x2ac] ss:$16 sps:$4 sm:$0xff]   ;;  %v19985_v26 = vld [vmem:[#allocation8 + $0x2a8] ss:$16 sps:$4 sm:$0xff]  }
 0x8fe   :  { %16936 = vmatprep.subr.bf16.mxu0 %v20082_v37  ;;  %v20087_v49 = vld [vmem:[#allocation11 + $0x58] sm:$0xff]   ;;  %v20042_v36 = vld [vmem:[#allocation8 + $0x508] ss:$16 sps:$4 sm:$0xff]  }
 0x8ff   :  { %v20050_v37 = vld [vmem:[#allocation8 + $0x54c] ss:$16 sps:$4 sm:$0xff]  }
 0x901   :  { %16937 = vmatpush3.bf16.msra.mxu0 %v20083_v42  ;;  %v20048_v42 = vld [vmem:[#allocation8 + $0x548] ss:$16 sps:$4 sm:$0xff]  }
 0x902   :  { %16938 = vmatprep.subr.bf16.mxu0 %v20087_v49  ;;  %v20056_v49 = vld [vmem:[#allocation8 + $0x58c] ss:$16 sps:$4 sm:$0xff]  }
 0x906   :  { %v20219_v30 = vpop.eup %20218 }
 0x907   :  { %v20221_v38 = vpop.eup %20220  ;;  %v20964_v4 = vpack.c.bf16 %v20219_v30, %v20219_v30  ;;  %v20088_v30 = vld [vmem:[#allocation11 + $0x18] sm:$0xff]  }
 0x908   :  { %v20962_v50 = vpack.c.bf16 %v20221_v38, %v20221_v38  ;;  %v19990_v38 = vld [vmem:[#allocation8 + $0x2cc] ss:$16 sps:$4 sm:$0xff]   ;;  %16939 = vmatpush3.bf16.msra.mxu0 %v20088_v30  ;;  %v20054_v30 = vld [vmem:[#allocation8 + $0x588] ss:$16 sps:$4 sm:$0xff]  }
 0x90a   :  { %14270 = vmatprep.mubr.bf16.mxu1 %v20962_v50 }
 0x90b   :  { %14271 = vmatmul.mubr.bf16.vlgmr.msra.gmra.mrb[8].mxu1 %v20964_v4 }
 0x90c   :  { %14280 = vmatpush1.bf16.msra.mxu1 %v19922_v51  ;;  %14311 = vmatprep.mubr.bf16.mxu1 %v20888_v16  ;;  %v19940_v16 = vld [vmem:[#allocation8 + $0xc8] ss:$16 sps:$4 sm:$0xff]  }
 0x90d   :  { %14281 = vmatprep.subr.bf16.mxu1 %v19927_v19  ;;  %v19988_v51 = vld [vmem:[#allocation8 + $0x2c8] ss:$16 sps:$4 sm:$0xff]  }
 0x90e   :  { %v20092_v19 = vld [vmem:[#allocation11 + $0x60] sm:$0xff]  }
 0x90f   :  { %16940 = vmatprep.subr.bf16.mxu0 %v20092_v19  ;;  %v20062_v19 = vld [vmem:[#allocation8 + $0x5cc] ss:$16 sps:$4 sm:$0xff]  }
 0x910   :  { %14282 = vmatpush1.bf16.msra.mxu1 %v19925_v54  ;;  %v19993_v54 = vld [vmem:[#allocation8 + $0x2ec] ss:$16 sps:$4 sm:$0xff]  }
 0x911   :  { %14283 = vmatprep.subr.bf16.mxu1 %v19930_v56  ;;  %v20093_v56 = vld [vmem:[#allocation11 + $0x20] sm:$0xff]  }
 0x912   :  { %16941 = vmatpush3.bf16.msra.mxu0 %v20093_v56  ;;  %v20065_v56 = vld [vmem:[#allocation8 + $0x5ec] ss:$16 sps:$4 sm:$0xff]  }
 0x914   :  { %14284 = vmatpush1.bf16.msra.mxu1 %v19928_v60  ;;  %v19991_v60 = vld [vmem:[#allocation8 + $0x2e8] ss:$16 sps:$4 sm:$0xff]  }
 0x915   :  { %14285 = vmatprep.subr.bf16.mxu1 %v19933_v20  ;;  %v20097_v20 = vld [vmem:[#allocation11 + $0x68] sm:$0xff]  }
 0x916   :  { %16942 = vmatprep.subr.bf16.mxu0 %v20097_v20  ;;  %v20068_v20 = vld [vmem:[#allocation8 + $0x60c] ss:$16 sps:$4 sm:$0xff]  }
 0x918   :  { %14286 = vmatpush1.bf16.msra.mxu1 %v19931_v18  ;;  %v19996_v18 = vld [vmem:[#allocation8 + $0x30c] ss:$16 sps:$4 sm:$0xff]  }
 0x919   :  { %14287 = vmatprep.subr.bf16.mxu1 %v19936_v10  ;;  %v20098_v10 = vld [vmem:[#allocation11 + $0x28] sm:$0xff]  }
 0x91a   :  { %16943 = vmatpush3.bf16.msra.mxu0 %v20098_v10  ;;  %v20071_v10 = vld [vmem:[#allocation8 + $0x62c] ss:$16 sps:$4 sm:$0xff]  }
 0x91c   :  { %14288 = vmatpush1.bf16.msra.mxu1 %v19934_v61  ;;  %v19994_v61 = vld [vmem:[#allocation8 + $0x308] ss:$16 sps:$4 sm:$0xff]  }
 0x91d   :  { %14289 = vmatprep.subr.bf16.mxu1 %v19939_v11  ;;  %v20102_v11 = vld [vmem:[#allocation11 + $0x70] sm:$0xff]  }
 0x91e   :  { %16944 = vmatprep.subr.bf16.mxu0 %v20102_v11  ;;  %v20076_v11 = vld [vmem:[#allocation8 + $0x64c] ss:$16 sps:$4 sm:$0xff]  }
 0x920   :  { %14290 = vmatpush1.bf16.msra.mxu1 %v19937_v31  ;;  %v19999_v31 = vld [vmem:[#allocation8 + $0x32c] ss:$16 sps:$4 sm:$0xff]  }
 0x921   :  { %14291 = vmatprep.subr.bf16.mxu1 %v19942_v58  ;;  %v20103_v58 = vld [vmem:[#allocation11 + $0x30] sm:$0xff]  }
 0x922   :  { %16945 = vmatpush3.bf16.msra.mxu0 %v20103_v58  ;;  %v20081_v58 = vld [vmem:[#allocation8 + $0x66c] ss:$16 sps:$4 sm:$0xff]  }
 0x924   :  { %14292 = vmatpush1.bf16.msra.mxu1 %v19940_v16  ;;  %v19997_v16 = vld [vmem:[#allocation8 + $0x328] ss:$16 sps:$4 sm:$0xff]  }
 0x925   :  { %14293 = vmatprep.subr.bf16.mxu1 %v19945_v63  ;;  %v20107_v63 = vld [vmem:[#allocation11 + $0x78] sm:$0xff]  }
 0x926   :  { %16946 = vmatprep.subr.bf16.mxu0 %v20107_v63  ;;  %v20086_v63 = vld [vmem:[#allocation8 + $0x68c] ss:$16 sps:$4 sm:$0xff]  }
 0x928   :  { %14294 = vmatpush1.bf16.msra.mxu1 %v19943_v0  ;;  %v20002_v0 = vld [vmem:[#allocation8 + $0x34c] ss:$16 sps:$4 sm:$0xff]  }
 0x929   :  { %14295 = vmatprep.subr.bf16.mxu1 %v19948_v7  ;;  %v20108_v7 = vld [vmem:[#allocation11 + $0x38] sm:$0xff]  }
 0x92a   :  { %16947 = vmatpush3.bf16.msra.mxu0 %v20108_v7  ;;  %v20975_v7 = vld [vmem:[#allocation10] sm:$0xf] }
 0x92c   :  { %14296 = vmatpush1.bf16.msra.mxu1 %v19946_v8  ;;  %v20000_v8 = vld [vmem:[#allocation8 + $0x348] ss:$16 sps:$4 sm:$0xff]  }
 0x92d   :  { %14297 = vmatprep.subr.bf16.mxu1 %v19951_v41  ;;  %v20005_v41 = vld [vmem:[#allocation8 + $0x36c] ss:$16 sps:$4 sm:$0xff]  }
 0x930   :  { %14298 = vmatpush1.bf16.msra.mxu1 %v19949_v29  ;;  %v20003_v29 = vld [vmem:[#allocation8 + $0x368] ss:$16 sps:$4 sm:$0xff]  }
 0x931   :  { %14299 = vmatprep.subr.bf16.mxu1 %v19954_v21  ;;  %v20008_v21 = vld [vmem:[#allocation8 + $0x38c] ss:$16 sps:$4 sm:$0xff]  }
 0x934   :  { %14300 = vmatpush1.bf16.msra.mxu1 %v19952_v14  ;;  %v20006_v14 = vld [vmem:[#allocation8 + $0x388] ss:$16 sps:$4 sm:$0xff]  }
 0x935   :  { %14301 = vmatprep.subr.bf16.mxu1 %v19957_v24  ;;  %v20011_v24 = vld [vmem:[#allocation8 + $0x3ac] ss:$16 sps:$4 sm:$0xff]  }
 0x938   :  { %14302 = vmatpush1.bf16.msra.mxu1 %v19955_v32  ;;  %v20009_v32 = vld [vmem:[#allocation8 + $0x3a8] ss:$16 sps:$4 sm:$0xff]  }
 0x939   :  { %14303 = vmatprep.subr.bf16.mxu1 %v19960_v17  ;;  %v20014_v17 = vld [vmem:[#allocation8 + $0x3cc] ss:$16 sps:$4 sm:$0xff]  }
 0x93c   :  { %14304 = vmatpush1.bf16.msra.mxu1 %v19958_v23  ;;  %v20012_v23 = vld [vmem:[#allocation8 + $0x3c8] ss:$16 sps:$4 sm:$0xff]  }
 0x93d   :  { %14305 = vmatprep.subr.bf16.mxu1 %v19963_v45  ;;  %v20017_v45 = vld [vmem:[#allocation8 + $0x3ec] ss:$16 sps:$4 sm:$0xff]  }
 0x940   :  { %14306 = vmatpush1.bf16.msra.mxu1 %v19961_v44  ;;  %v20015_v44 = vld [vmem:[#allocation8 + $0x3e8] ss:$16 sps:$4 sm:$0xff]  }
 0x941   :  { %14307 = vmatprep.subr.bf16.mxu1 %v19966_v25  ;;  %v20020_v25 = vld [vmem:[#allocation8 + $0x40c] ss:$16 sps:$4 sm:$0xff]  }
 0x944   :  { %14308 = vmatpush1.bf16.msra.mxu1 %v19964_v15  ;;  %v20018_v15 = vld [vmem:[#allocation8 + $0x408] ss:$16 sps:$4 sm:$0xff]  }
 0x945   :  { %14309 = vmatprep.subr.bf16.mxu1 %v19969_v27  ;;  %v20023_v27 = vld [vmem:[#allocation8 + $0x42c] ss:$16 sps:$4 sm:$0xff]  }
 0x948   :  { %14310 = vmatpush1.bf16.msra.mxu1 %v19967_v28  ;;  %v20021_v28 = vld [vmem:[#allocation8 + $0x428] ss:$16 sps:$4 sm:$0xff]  }
 0x949   :  { %14320 = vmatprep.subr.bf16.mxu1 %v19972_v6  ;;  %v20026_v6 = vld [vmem:[#allocation8 + $0x44c] ss:$16 sps:$4 sm:$0xff]  }
 0x94b   :  { %14312 = vmatmul.mubr.bf16.vlgmr.msra.gmra.mrb[12].mxu1 %v20905_v3  ;;  %v19984_v3 = vld [vmem:[#allocation8 + $0x28c] ss:$16 sps:$4 sm:$0xff]  }
 0x94c   :  { %14321 = vmatpush1.bf16.msra.mxu1 %v19970_v62  ;;  %14352 = vmatprep.mubr.bf16.mxu1 %v20907_v40  ;;  %v19982_v40 = vld [vmem:[#allocation8 + $0x288] ss:$16 sps:$4 sm:$0xff]  }
 0x94d   :  { %14322 = vmatprep.subr.bf16.mxu1 %v19975_v39  ;;  %v20024_v62 = vld [vmem:[#allocation8 + $0x448] ss:$16 sps:$4 sm:$0xff]   ;;  %v20029_v39 = vld [vmem:[#allocation8 + $0x46c] ss:$16 sps:$4 sm:$0xff]  }
 0x950   :  { %14323 = vmatpush1.bf16.msra.mxu1 %v19973_v9  ;;  %v20027_v9 = vld [vmem:[#allocation8 + $0x468] ss:$16 sps:$4 sm:$0xff]  }
 0x951   :  { %14324 = vmatprep.subr.bf16.mxu1 %v19978_v59  ;;  %v20032_v59 = vld [vmem:[#allocation8 + $0x48c] ss:$16 sps:$4 sm:$0xff]  }
 0x954   :  { %14325 = vmatpush1.bf16.msra.mxu1 %v19976_v55  ;;  %v20030_v55 = vld [vmem:[#allocation8 + $0x488] ss:$16 sps:$4 sm:$0xff]  }
 0x955   :  { %14326 = vmatprep.subr.bf16.mxu1 %v19981_v5  ;;  %v20041_v5 = vld [vmem:[#allocation8 + $0x4ec] ss:$16 sps:$4 sm:$0xff]  }
 0x958   :  { %14327 = vmatpush1.bf16.msra.mxu1 %v19979_v2  ;;  %v20039_v2 = vld [vmem:[#allocation8 + $0x4e8] ss:$16 sps:$4 sm:$0xff]  }
 0x959   :  { %14328 = vmatprep.subr.bf16.mxu1 %v19984_v3  ;;  %v20047_v3 = vld [vmem:[#allocation8 + $0x52c] ss:$16 sps:$4 sm:$0xff]  }
 0x95c   :  { %14329 = vmatpush1.bf16.msra.mxu1 %v19982_v40  ;;  %v20045_v40 = vld [vmem:[#allocation8 + $0x528] ss:$16 sps:$4 sm:$0xff]  }
 0x95d   :  { %14330 = vmatprep.subr.bf16.mxu1 %v19987_v52  ;;  %v20053_v52 = vld [vmem:[#allocation8 + $0x56c] ss:$16 sps:$4 sm:$0xff]  }
 0x960   :  { %14331 = vmatpush1.bf16.msra.mxu1 %v19985_v26  ;;  %v20051_v26 = vld [vmem:[#allocation8 + $0x568] ss:$16 sps:$4 sm:$0xff]  }
 0x961   :  { %14332 = vmatprep.subr.bf16.mxu1 %v19990_v38  ;;  %v20059_v38 = vld [vmem:[#allocation8 + $0x5ac] ss:$16 sps:$4 sm:$0xff]  }
 0x964   :  { %14333 = vmatpush1.bf16.msra.mxu1 %v19988_v51  ;;  %v20057_v51 = vld [vmem:[#allocation8 + $0x5a8] ss:$16 sps:$4 sm:$0xff]  }
 0x965   :  { %14334 = vmatprep.subr.bf16.mxu1 %v19993_v54  ;;  %v20060_v54 = vld [vmem:[#allocation8 + $0x5c8] ss:$16 sps:$4 sm:$0xff]  }
 0x968   :  { %14335 = vmatpush1.bf16.msra.mxu1 %v19991_v60  ;;  %v20063_v60 = vld [vmem:[#allocation8 + $0x5e8] ss:$16 sps:$4 sm:$0xff]  }
 0x969   :  { %14336 = vmatprep.subr.bf16.mxu1 %v19996_v18  ;;  %v20066_v18 = vld [vmem:[#allocation8 + $0x608] ss:$16 sps:$4 sm:$0xff]  }
 0x96c   :  { %14337 = vmatpush1.bf16.msra.mxu1 %v19994_v61  ;;  %v20069_v61 = vld [vmem:[#allocation8 + $0x628] ss:$16 sps:$4 sm:$0xff]  }
 0x96d   :  { %14338 = vmatprep.subr.bf16.mxu1 %v19999_v31  ;;  %v20074_v31 = vld [vmem:[#allocation8 + $0x648] ss:$16 sps:$4 sm:$0xff]  }
 0x970   :  { %14339 = vmatpush1.bf16.msra.mxu1 %v19997_v16  ;;  %v20079_v16 = vld [vmem:[#allocation8 + $0x668] ss:$16 sps:$4 sm:$0xff]  }
 0x971   :  { %14340 = vmatprep.subr.bf16.mxu1 %v20002_v0  ;;  %v20084_v0 = vld [vmem:[#allocation8 + $0x688] ss:$16 sps:$4 sm:$0xff]  }
 0x974   :  { %14341 = vmatpush1.bf16.msra.mxu1 %v20000_v8  ;;  %v20089_v8 = vld [vmem:[#allocation8 + $0x6a8] ss:$16 sps:$4 sm:$0xff]  }
 0x975   :  { %14342 = vmatprep.subr.bf16.mxu1 %v20005_v41  ;;  %v12461_v41 = vrot.slane %v20975_v7, %v20881_v48  ;;  %v20104_v48 = vld [vmem:[#allocation8 + $0x708] ss:$16 sps:$4 sm:$0xff]  }
 0x978   :  { %14343 = vmatpush1.bf16.msra.mxu1 %v20003_v29  ;;  %v20096_v29 = vld [vmem:[#allocation8 + $0x6cc] ss:$16 sps:$4 sm:$0xff]  }
 0x979   :  { %14344 = vmatprep.subr.bf16.mxu1 %v20008_v21 }
 0x97c   :  { %14345 = vmatpush1.bf16.msra.mxu1 %v20006_v14 }
 0x97d   :  { %14346 = vmatprep.subr.bf16.mxu1 %v20011_v24 }
 0x980   :  { %14347 = vmatpush1.bf16.msra.mxu1 %v20009_v32 }
 0x981   :  { %14348 = vmatprep.subr.bf16.mxu1 %v20014_v17 }
 0x984   :  { %14349 = vmatpush1.bf16.msra.mxu1 %v20012_v23  ;;  %v20094_v23 = vld [vmem:[#allocation8 + $0x6c8] ss:$16 sps:$4 sm:$0xff]  }
 0x985   :  { %14350 = vmatprep.subr.bf16.mxu1 %v20017_v45 }
 0x988   :  { %14351 = vmatpush1.bf16.msra.mxu1 %v20015_v44  ;;  %v20101_v44 = vld [vmem:[#allocation8 + $0x6ec] ss:$16 sps:$4 sm:$0xff]  }
 0x989   :  { %14361 = vmatprep.subr.bf16.mxu1 %v20020_v25  ;;  %v20106_v25 = vld [vmem:[#allocation8 + $0x70c] ss:$16 sps:$4 sm:$0xff]  }
 0x98b   :  { %14353 = vmatmul.mubr.bf16.vlgmr.msra.gmra.mrb[12].mxu1 %v20918_v57  ;;  %v20033_v57 = vld [vmem:[#allocation8 + $0x4a8] ss:$16 sps:$4 sm:$0xff]  }
 0x98c   :  { %14362 = vmatpush1.bf16.msra.mxu1 %v20018_v15  ;;  %14393 = vmatprep.mubr.bf16.mxu1 %v20933_v53  ;;  %v20036_v53 = vld [vmem:[#allocation8 + $0x4c8] ss:$16 sps:$4 sm:$0xff]   ;;  %v20111_v15 = vld [vmem:[#allocation8 + $0x72c] ss:$16 sps:$4 sm:$0xff]  }
 0x98d   :  { %14363 = vmatprep.subr.bf16.mxu1 %v20023_v27 }
 0x990   :  { %14364 = vmatpush1.bf16.msra.mxu1 %v20021_v28 }
 0x991   :  { %14365 = vmatprep.subr.bf16.mxu1 %v20026_v6  ;;  %v20109_v6 = vld [vmem:[#allocation8 + $0x728] ss:$16 sps:$4 sm:$0xff]  }
 0x994   :  { %14366 = vmatpush1.bf16.msra.mxu1 %v20024_v62 }
 0x995   :  { %14367 = vmatprep.subr.bf16.mxu1 %v20029_v39  ;;  %v20114_v39 = vld [vmem:[#allocation8 + $0x74c] ss:$16 sps:$4 sm:$0xff]  }
 0x998   :  { %14368 = vmatpush1.bf16.msra.mxu1 %v20027_v9 }
 0x999   :  { %14369 = vmatprep.subr.bf16.mxu1 %v20032_v59  ;;  %v20112_v59 = vld [vmem:[#allocation8 + $0x748] ss:$16 sps:$4 sm:$0xff]  }
 0x99c   :  { %14370 = vmatpush1.bf16.msra.mxu1 %v20030_v55  ;;  %v20117_v55 = vld [vmem:[#allocation8 + $0x76c] ss:$16 sps:$4 sm:$0xff]  }
 0x99d   :  { %14371 = vmatprep.subr.bf16.mxu1 %v20035_v34  ;;  %v20115_v34 = vld [vmem:[#allocation8 + $0x768] ss:$16 sps:$4 sm:$0xff]  }
 0x9a0   :  { %14372 = vmatpush1.bf16.msra.mxu1 %v20033_v57  ;;  %v20120_v57 = vld [vmem:[#allocation8 + $0x78c] ss:$16 sps:$4 sm:$0xff]  }
 0x9a1   :  { %14373 = vmatprep.subr.bf16.mxu1 %v20038_v35  ;;  %v20118_v35 = vld [vmem:[#allocation8 + $0x788] ss:$16 sps:$4 sm:$0xff]  }
 0x9a4   :  { %14374 = vmatpush1.bf16.msra.mxu1 %v20036_v53  ;;  %v20123_v53 = vld [vmem:[#allocation8 + $0x7ac] ss:$16 sps:$4 sm:$0xff]  }
 0x9a5   :  { %14375 = vmatprep.subr.bf16.mxu1 %v20041_v5  ;;  %v20121_v5 = vld [vmem:[#allocation8 + $0x7a8] ss:$16 sps:$4 sm:$0xff]  }
 0x9a8   :  { %14376 = vmatpush1.bf16.msra.mxu1 %v20039_v2  ;;  %v20126_v2 = vld [vmem:[#allocation8 + $0x7cc] ss:$16 sps:$4 sm:$0xff]  }
 0x9a9   :  { %14377 = vmatprep.subr.bf16.mxu1 %v20044_v1  ;;  %v20124_v1 = vld [vmem:[#allocation8 + $0x7c8] ss:$16 sps:$4 sm:$0xff]  }
 0x9ac   :  { %14378 = vmatpush1.bf16.msra.mxu1 %v20042_v36  ;;  %v20129_v36 = vld [vmem:[#allocation8 + $0x7ec] ss:$16 sps:$4 sm:$0xff]  }
 0x9ad   :  { %14379 = vmatprep.subr.bf16.mxu1 %v20047_v3  ;;  %v20127_v3 = vld [vmem:[#allocation8 + $0x7e8] ss:$16 sps:$4 sm:$0xff]  }
 0x9b0   :  { %14380 = vmatpush1.bf16.msra.mxu1 %v20045_v40  ;;  %v20132_v40 = vld [vmem:[#allocation8 + $0x80c] ss:$16 sps:$4 sm:$0xff]  }
 0x9b1   :  { %14381 = vmatprep.subr.bf16.mxu1 %v20050_v37  ;;  %v20130_v37 = vld [vmem:[#allocation8 + $0x808] ss:$16 sps:$4 sm:$0xff]  }
 0x9b4   :  { %14382 = vmatpush1.bf16.msra.mxu1 %v20048_v42  ;;  %v20135_v42 = vld [vmem:[#allocation8 + $0x82c] ss:$16 sps:$4 sm:$0xff]  }
 0x9b5   :  { %14383 = vmatprep.subr.bf16.mxu1 %v20053_v52  ;;  %v20133_v52 = vld [vmem:[#allocation8 + $0x828] ss:$16 sps:$4 sm:$0xff]  }
 0x9b8   :  { %14384 = vmatpush1.bf16.msra.mxu1 %v20051_v26  ;;  %v20138_v26 = vld [vmem:[#allocation8 + $0x84c] ss:$16 sps:$4 sm:$0xff]  }
 0x9b9   :  { %14385 = vmatprep.subr.bf16.mxu1 %v20056_v49  ;;  %v20136_v49 = vld [vmem:[#allocation8 + $0x848] ss:$16 sps:$4 sm:$0xff]  }
 0x9bc   :  { %14386 = vmatpush1.bf16.msra.mxu1 %v20054_v30  ;;  %v20141_v30 = vld [vmem:[#allocation8 + $0x86c] ss:$16 sps:$4 sm:$0xff]  }
 0x9bd   :  { %14387 = vmatprep.subr.bf16.mxu1 %v20059_v38  ;;  %v20139_v38 = vld [vmem:[#allocation8 + $0x868] ss:$16 sps:$4 sm:$0xff]  }
 0x9c0   :  { %14388 = vmatpush1.bf16.msra.mxu1 %v20057_v51  ;;  %v20144_v51 = vld [vmem:[#allocation8 + $0x88c] ss:$16 sps:$4 sm:$0xff]  }
 0x9c1   :  { %14389 = vmatprep.subr.bf16.mxu1 %v20062_v19  ;;  %v20142_v19 = vld [vmem:[#allocation8 + $0x888] ss:$16 sps:$4 sm:$0xff]  }
 0x9c4   :  { %14390 = vmatpush1.bf16.msra.mxu1 %v20060_v54  ;;  %v20147_v54 = vld [vmem:[#allocation8 + $0x8ac] ss:$16 sps:$4 sm:$0xff]  }
 0x9c5   :  { %14391 = vmatprep.subr.bf16.mxu1 %v20065_v56  ;;  %v20150_v56 = vld [vmem:[#allocation8 + $0x8cc] ss:$16 sps:$4 sm:$0xff]  }
 0x9c8   :  { %14392 = vmatpush1.bf16.msra.mxu1 %v20063_v60  ;;  %v20153_v60 = vld [vmem:[#allocation8 + $0x8ec] ss:$16 sps:$4 sm:$0xff]  }
 0x9c9   :  { %14402 = vmatprep.subr.bf16.mxu1 %v20068_v20  ;;  %v20151_v20 = vld [vmem:[#allocation8 + $0x8e8] ss:$16 sps:$4 sm:$0xff]  }
 0x9cb   :  { %14394 = vmatmul.mubr.bf16.vlgmr.msra.gmra.mrb[12].mxu1 %v20935_v43  ;;  %v20091_v43 = vld [vmem:[#allocation8 + $0x6ac] ss:$16 sps:$4 sm:$0xff]  }
 0x9cc   :  { %14403 = vmatpush1.bf16.msra.mxu1 %v20066_v18  ;;  %14434 = vmatprep.mubr.bf16.mxu1 %v20937_v33  ;;  %v12457_v33 = vrot.slane %v20975_v7, %v20895_v13  ;;  %v20099_v13 = vld [vmem:[#allocation8 + $0x6e8] ss:$16 sps:$4 sm:$0xff]   ;;  %v20156_v18 = vld [vmem:[#allocation8 + $0x90c] ss:$16 sps:$4 sm:$0xff]  }
 0x9cd   :  { %14404 = vmatprep.subr.bf16.mxu1 %v20071_v10  ;;  %v20154_v10 = vld [vmem:[#allocation8 + $0x908] ss:$16 sps:$4 sm:$0xff]  }
 0x9d0   :  { %14405 = vmatpush1.bf16.msra.mxu1 %v20069_v61  ;;  %v20159_v61 = vld [vmem:[#allocation8 + $0x92c] ss:$16 sps:$4 sm:$0xff]  }
 0x9d1   :  { %14406 = vmatprep.subr.bf16.mxu1 %v20076_v11  ;;  %v20157_v11 = vld [vmem:[#allocation8 + $0x928] ss:$16 sps:$4 sm:$0xff]  }
 0x9d4   :  { %14407 = vmatpush1.bf16.msra.mxu1 %v20074_v31  ;;  %v20162_v31 = vld [vmem:[#allocation8 + $0x94c] ss:$16 sps:$4 sm:$0xff]  }
 0x9d5   :  { %14408 = vmatprep.subr.bf16.mxu1 %v20081_v58  ;;  %v20160_v58 = vld [vmem:[#allocation8 + $0x948] ss:$16 sps:$4 sm:$0xff]  }
 0x9d8   :  { %14409 = vmatpush1.bf16.msra.mxu1 %v20079_v16  ;;  %v20165_v16 = vld [vmem:[#allocation8 + $0x96c] ss:$16 sps:$4 sm:$0xff]  }
 0x9d9   :  { %14410 = vmatprep.subr.bf16.mxu1 %v20086_v63  ;;  %v20163_v63 = vld [vmem:[#allocation8 + $0x968] ss:$16 sps:$4 sm:$0xff]  }
 0x9dc   :  { %14411 = vmatpush1.bf16.msra.mxu1 %v20084_v0  ;;  %v20168_v0 = vld [vmem:[#allocation8 + $0x98c] ss:$16 sps:$4 sm:$0xff]  }
 0x9dd   :  { %14412 = vmatprep.subr.bf16.mxu1 %v20091_v43  ;;  %v20166_v43 = vld [vmem:[#allocation8 + $0x988] ss:$16 sps:$4 sm:$0xff]  }
 0x9de   :  { %v14272_v21 = vpop.f32.mrb[8].mxu1 }
 0x9df   :  { %v17015_v14 = vadd.f32 %v14272_v21, %v12457_v33  ;;  %v14274_v24 = vpop.f32.mrb[9].mxu1  ;;  %v20171_v33 = vld [vmem:[#allocation8 + $0x9ac] ss:$16 sps:$4 sm:$0xff]  }
 0x9e0   :  { %v17016_v32 = vadd.f32 %v14274_v24, %v12461_v41  ;;  %14413 = vmatpush1.bf16.msra.mxu1 %v20089_v8  ;;  %v14276_v17 = vpop.f32.mrb[10].mxu1  ;;  %v20169_v8 = vld [vmem:[#allocation8 + $0x9a8] ss:$16 sps:$4 sm:$0xff]   ;;  %v20174_v41 = vld [vmem:[#allocation8 + $0x9cc] ss:$16 sps:$4 sm:$0xff]  }
 0x9e1   :  { %20222 = vtanh.f32 %v17015_v14  ;;  %v14277_v45 = vpop.f32.mrb[11].mxu1  ;;  %14414 = vmatprep.subr.bf16.mxu1 %v20096_v29  ;;  %v20172_v29 = vld [vmem:[#allocation8 + $0x9c8] ss:$16 sps:$4 sm:$0xff]   ;;  %v20177_v21 = vld [vmem:[#allocation8 + $0x9ec] ss:$16 sps:$4 sm:$0xff]  }
 0x9e2   :  { %20224 = vtanh.f32 %v17016_v32  ;;  %v20175_v14 = vld [vmem:[#allocation8 + $0x9e8] ss:$16 sps:$4 sm:$0xff]   ;;  %v20180_v17 = vld [vmem:[#allocation11 + $0xc8] sm:$0xff]  }
 0x9e3   :  { %v20178_v24 = vld [vmem:[#allocation11 + $0xc0] sm:$0xff]   ;;  %v20182_v45 = vld [vmem:[#allocation11 + $0xd0] sm:$0xff]  }
 0x9e4   :  { %14415 = vmatpush1.bf16.msra.mxu1 %v20094_v23  ;;  %v20179_v32 = vld [vmem:[#allocation11 + $0x80] sm:$0xff]   ;;  %v20181_v23 = vld [vmem:[#allocation11 + $0x88] sm:$0xff]  }
 0x9e5   :  { %14416 = vmatprep.subr.bf16.mxu1 %v20101_v44  ;;  %v20183_v44 = vld [vmem:[#allocation11 + $0x90] sm:$0xff]  }
 0x9e8   :  { %14417 = vmatpush1.bf16.msra.mxu1 %v20099_v13  ;;  %v20184_v13 = vld [vmem:[#allocation11 + $0xd8] sm:$0xff]  }
 0x9e9   :  { %14418 = vmatprep.subr.bf16.mxu1 %v20106_v25  ;;  %v20185_v25 = vld [vmem:[#allocation11 + $0x98] sm:$0xff]  }
 0x9eb   :  { %v20223_v27 = vpop.eup %20222 }
 0x9ec   :  { %v20225_v28 = vpop.eup %20224  ;;  %14419 = vmatpush1.bf16.msra.mxu1 %v20104_v48  ;;  %v14488_v9 = vpack.c.bf16 %v20223_v27, %v20223_v27  ;;  %v20186_v48 = vld [vmem:[#allocation11 + $0xe0] sm:$0xff]   ;;  %v20188_v27 = vld [vmem:[#allocation11 + $0xe8] sm:$0xff]  }
 0x9ed   :  { %v14489_v62 = vpack.c.bf16 %v20225_v28, %v20225_v28  ;;  %14420 = vmatprep.subr.bf16.mxu1 %v20111_v15  ;;  %v20187_v15 = vld [vmem:[#allocation11 + $0xa0] sm:$0xff]   ;;  %v20189_v28 = vld [vmem:[#allocation11 + $0xa8] sm:$0xff]  }
 0x9ef   :  { %14787 = vmatprep.mubr.bf16.mxu0 %v14489_v62  ;;  %v20192_v62 = vld [vmem:[#allocation11 + $0xf8] sm:$0xff]  }
 0x9f0   :  { %14421 = vmatpush1.bf16.msra.mxu1 %v20109_v6  ;;  %14788 = vmatmul.mubr.bf16.vlgmr.msra.gmra.mrb[12].mxu0 %v14488_v9  ;;  %v20191_v6 = vld [vmem:[#allocation11 + $0xb0] sm:$0xff]   ;;  %v20194_v9 = vld [vmem:[#allocation14] sm:$0xff]  }
 0x9f1   :  { %14422 = vmatprep.subr.bf16.mxu1 %v20114_v39  ;;  %v20193_v39 = vld [vmem:[#allocation11 + $0xb8] sm:$0xff]  }
 0x9f4   :  { %14423 = vmatpush1.bf16.msra.mxu1 %v20112_v59  ;;  %v20481_v59 = vmov 0.0  }
 0x9f5   :  { %14424 = vmatprep.subr.bf16.mxu1 %v20117_v55  ;;  %16985 = vmatprep.subr.bf16.mxu0 %v20481_v59  ;;  %v20195_v55 = vld [vmem:[#allocation14 + $0x8] sm:$0xff]  }
 0x9f6   :  { %16986 = vmatpush3.bf16.msra.mxu0 %v20194_v9  ;;  %17001 = vmatprep.mubr.msk.bf16.mxu0 %vm20482_vm0, %v20481_v59 }
 0x9f7   :  { %16987 = vmatprep.subr.bf16.mxu0 %v20481_v59 }
 0x9f8   :  { %14425 = vmatpush1.bf16.msra.mxu1 %v20115_v34  ;;  %v20196_v34 = vld [vmem:[#allocation14 + $0x10] sm:$0xff]  }
 0x9f9   :  { %14426 = vmatprep.subr.bf16.mxu1 %v20120_v57 }
 0x9fa   :  { %16988 = vmatpush3.bf16.msra.mxu0 %v20195_v55 }
 0x9fb   :  { %16989 = vmatprep.subr.bf16.mxu0 %v20481_v59 }
 0x9fc   :  { %14427 = vmatpush1.bf16.msra.mxu1 %v20118_v35 }
 0x9fd   :  { %14428 = vmatprep.subr.bf16.mxu1 %v20123_v53 }
 0x9fe   :  { %16990 = vmatpush3.bf16.msra.mxu0 %v20196_v34 }
 0x9ff   :  { %16991 = vmatprep.subr.bf16.mxu0 %v20481_v59 }
 0xa00   :  { %14429 = vmatpush1.bf16.msra.mxu1 %v20121_v5 }
 0xa01   :  { %14430 = vmatprep.subr.bf16.mxu1 %v20126_v2 }
 0xa04   :  { %14431 = vmatpush1.bf16.msra.mxu1 %v20124_v1  ;;  %v12465_v1 = vrot.slane %v20975_v7, %v2022_v22  ;;  %v20200_v22 = vld [vmem:[#allocation14 + $0x30] sm:$0xff]  }
 0xa05   :  { %14432 = vmatprep.subr.bf16.mxu1 %v20129_v36  ;;  %v12469_v36 = vrot.slane %v20975_v7, %v2026_v47  ;;  %v20199_v47 = vld [vmem:[#allocation14 + $0x28] sm:$0xff]   ;;  %v20201_v7 = vld [vmem:[#allocation14 + $0x38] sm:$0xff]  }
 0xa08   :  { %14433 = vmatpush1.bf16.msra.mxu1 %v20127_v3 }
 0xa09   :  { %14443 = vmatprep.subr.bf16.mxu1 %v20132_v40 }
 0xa0b   :  { %14435 = vmatmul.mubr.bf16.vlgmr.msra.gmra.mrb[12].mxu1 %v20946_v12  ;;  %v20145_v12 = vld [vmem:[#allocation8 + $0x8a8] ss:$16 sps:$4 sm:$0xff]  }
 0xa0c   :  { %14444 = vmatpush1.bf16.msra.mxu1 %v20130_v37  ;;  %14475 = vmatprep.mubr.bf16.mxu1 %v20962_v50  ;;  %v20148_v50 = vld [vmem:[#allocation8 + $0x8c8] ss:$16 sps:$4 sm:$0xff]  }
 0xa0d   :  { %14445 = vmatprep.subr.bf16.mxu1 %v20135_v42 }
 0xa10   :  { %14446 = vmatpush1.bf16.msra.mxu1 %v20133_v52 }
 0xa11   :  { %14447 = vmatprep.subr.bf16.mxu1 %v20138_v26 }
 0xa14   :  { %14448 = vmatpush1.bf16.msra.mxu1 %v20136_v49 }
 0xa15   :  { %14449 = vmatprep.subr.bf16.mxu1 %v20141_v30 }
 0xa18   :  { %14450 = vmatpush1.bf16.msra.mxu1 %v20139_v38 }
 0xa19   :  { %14451 = vmatprep.subr.bf16.mxu1 %v20144_v51 }
 0xa1c   :  { %14452 = vmatpush1.bf16.msra.mxu1 %v20142_v19  ;;  %v20197_v19 = vld [vmem:[#allocation14 + $0x18] sm:$0xff]  }
 0xa1d   :  { %14453 = vmatprep.subr.bf16.mxu1 %v20147_v54  ;;  %16992 = vmatpush3.bf16.msra.mxu0 %v20197_v19  ;;  %v16890_v54 = vld [vmem:[#allocation13] ss:$0 sm:$0xff] }
 0xa1e   :  { %16993 = vmatprep.subr.bf16.mxu0 %v20481_v59 }
 0xa20   :  { %14454 = vmatpush1.bf16.msra.mxu1 %v20145_v12 }
 0xa21   :  { %14455 = vmatprep.subr.bf16.mxu1 %v20150_v56  ;;  %16994 = vmatpush3.bf16.msra.mxu0 %v20198_v46 }
 0xa22   :  { %16995 = vmatprep.subr.bf16.mxu0 %v20481_v59 }
 0xa24   :  { %14456 = vmatpush1.bf16.msra.mxu1 %v20148_v50 }
 0xa25   :  { %14457 = vmatprep.subr.bf16.mxu1 %v20153_v60  ;;  %16996 = vmatpush3.bf16.msra.mxu0 %v20199_v47 }
 0xa26   :  { %16997 = vmatprep.subr.bf16.mxu0 %v20481_v59 }
 0xa28   :  { %14458 = vmatpush1.bf16.msra.mxu1 %v20151_v20 }
 0xa29   :  { %14459 = vmatprep.subr.bf16.mxu1 %v20156_v18  ;;  %16998 = vmatpush3.bf16.msra.mxu0 %v20200_v22 }
 0xa2a   :  { %16999 = vmatprep.subr.bf16.mxu0 %v20481_v59 }
 0xa2c   :  { %14460 = vmatpush1.bf16.msra.mxu1 %v20154_v10 }
 0xa2d   :  { %14461 = vmatprep.subr.bf16.mxu1 %v20159_v61  ;;  %17000 = vmatpush3.bf16.msra.mxu0 %v20201_v7 }
 0xa30   :  { %14462 = vmatpush1.bf16.msra.mxu1 %v20157_v11 }
 0xa31   :  { %14463 = vmatprep.subr.bf16.mxu1 %v20162_v31  ;;  %v16923_v31 = vld [vmem:[#allocation16] ss:$0 sm:$0xff] }
 0xa34   :  { %14464 = vmatpush1.bf16.msra.mxu1 %v20160_v58 }
 0xa35   :  { %14465 = vmatprep.subr.bf16.mxu1 %v20165_v16 }
 0xa38   :  { %14466 = vmatpush1.bf16.msra.mxu1 %v20163_v63 }
 0xa39   :  { %14467 = vmatprep.subr.bf16.mxu1 %v20168_v0 }
 0xa3c   :  { %14468 = vmatpush1.bf16.msra.mxu1 %v20166_v43 }
 0xa3d   :  { %14469 = vmatprep.subr.bf16.mxu1 %v20171_v33 }
 0xa40   :  { %14470 = vmatpush1.bf16.msra.mxu1 %v20169_v8 }
 0xa41   :  { %14471 = vmatprep.subr.bf16.mxu1 %v20174_v41 }
 0xa44   :  { %14472 = vmatpush1.bf16.msra.mxu1 %v20172_v29 }
 0xa45   :  { %14473 = vmatprep.subr.bf16.mxu1 %v20177_v21 }
 0xa48   :  { %14474 = vmatpush1.bf16.msra.mxu1 %v20175_v14 }
 0xa49   :  { %16954 = vmatprep.subr.bf16.mxu1 %v20178_v24 }
 0xa4b   :  { %14476 = vmatmul.mubr.bf16.vlgmr.msra.gmra.mrb[12].mxu1 %v20964_v4  ;;  %v20190_v4 = vld [vmem:[#allocation11 + $0xf0] sm:$0xff]  }
 0xa4c   :  { %16955 = vmatpush3.bf16.msra.mxu1 %v20179_v32 }
 0xa4d   :  { %16956 = vmatprep.subr.bf16.mxu1 %v20180_v17 }
 0xa50   :  { %16957 = vmatpush3.bf16.msra.mxu1 %v20181_v23 }
 0xa51   :  { %16958 = vmatprep.subr.bf16.mxu1 %v20182_v45 }
 0xa54   :  { %16959 = vmatpush3.bf16.msra.mxu1 %v20183_v44 }
 0xa55   :  { %16960 = vmatprep.subr.bf16.mxu1 %v20184_v13 }
 0xa58   :  { %16961 = vmatpush3.bf16.msra.mxu1 %v20185_v25 }
 0xa59   :  { %16962 = vmatprep.subr.bf16.mxu1 %v20186_v48 }
 0xa5c   :  { %16963 = vmatpush3.bf16.msra.mxu1 %v20187_v15 }
 0xa5d   :  { %16964 = vmatprep.subr.bf16.mxu1 %v20188_v27 }
 0xa60   :  { %16965 = vmatpush3.bf16.msra.mxu1 %v20189_v28 }
 0xa61   :  { %16966 = vmatprep.subr.bf16.mxu1 %v20190_v4 }
 0xa64   :  { %16967 = vmatpush3.bf16.msra.mxu1 %v20191_v6 }
 0xa65   :  { %16968 = vmatprep.subr.bf16.mxu1 %v20192_v62 }
 0xa68   :  { %16969 = vmatpush3.bf16.msra.mxu1 %v20193_v39 }
 0xac3   :  { %v16948_v57 = vpop.f32.mrb[12].mxu0 }
 0xac4   :  { %v16949_v35 = vpop.f32.mrb[13].mxu0 }
 0xac5   :  { %v16950_v53 = vadd.f32 %v16949_v35, %v16948_v57  ;;  %v16951_v5 = vpop.f32.mrb[14].mxu0 }
 0xac6   :  { %v16952_v2 = vpop.f32.mrb[15].mxu0 }
 0xac7   :  { %v14790_v50 = vadd.f32 %v16950_v53, %v16890_v54 }
 0xb1e   :  { %v14477_v3 = vpop.f32.mrb[12].mxu1 }
 0xb1f   :  { %v17017_v40 = vadd.f32 %v14477_v3, %v12465_v1  ;;  %v14479_v37 = vpop.f32.mrb[13].mxu1 }
 0xb20   :  { %v17018_v42 = vadd.f32 %v14479_v37, %v12469_v36  ;;  %v14481_v52 = vpop.f32.mrb[14].mxu1 }
 0xb21   :  { %20226 = vtanh.f32 %v17017_v40  ;;  %v14482_v26 = vpop.f32.mrb[15].mxu1 }
 0xb22   :  { %20228 = vtanh.f32 %v17018_v42 }
 0xb2b   :  { %v20227_v49 = vpop.eup %20226 }
 0xb2c   :  { %v20229_v30 = vpop.eup %20228  ;;  %v14490_v51 = vpack.c.bf16 %v20227_v49, %v20227_v49 }
 0xb2d   :  { %v14491_v38 = vpack.c.bf16 %v20229_v30, %v20229_v30 }
 0xb2f   :  { %14827 = vmatprep.mubr.bf16.mxu1 %v14491_v38 }
 0xb30   :  { %14828 = vmatmul.mubr.bf16.vlgmr.msra.gmra.mrb[16].mxu1 %v14490_v51 }
 0xc03   :  { %v16970_v12 = vpop.f32.mrb[16].mxu1 }
 0xc04   :  { %v16971_v56 = vpop.f32.mrb[17].mxu1 }
 0xc05   :  { %v16972_v60 = vadd.f32 %v16971_v56, %v16970_v12  ;;  %v16973_v20 = vpop.f32.mrb[18].mxu1 }
 0xc06   :  { %v16974_v18 = vpop.f32.mrb[19].mxu1 }
 0xc07   :  { %v14830_v10 = vadd.f32 %v16972_v60, %v14790_v50 }
 0xc09   :  { %20230 = vtanh.f32 %v14830_v10 }
 0xc13   :  { %v20231_v61 = vpop.eup %20230 }
 0xc14   :  { %v14836_v11 = vpack.c.bf16 %v20231_v61, %v20231_v61 }
 0xc16   :  { %17002 = vmatmul.mubr.bf16.vlgmr.msra.gmra.mrb[16].mxu0 %v14836_v11 }
 0xce9   :  { %v14942_v58 = vpop.f32.mrb[16].mxu0 }
 0xcea   :  { %v14943_v16 = vadd.f32 %v16923_v31, %v14942_v58  ;;  %v17003_v63 = vpop.f32.mrb[17].mxu0 }
 0xceb   :  { %v14945_v0 = vpop.f32.mrb[18].mxu0 }
 0xcec   :  { %14948 = vst [vmem:[#allocation17] sm:$0xff] %v14943_v16  ;;  %v17004_v43 = vpop.f32.mrb[19].mxu0 }
 0xced   :  { %14953 = vsyncadd [#allocation4], 96  ;;  %s20483_s8 = smov [#allocation17]  }
 0xcee   :  { %s14954_s30 = sshll.u32 %s20483_s8, 4  ;;  %s14955_s30 = int_to_ptr.vmem [resolvable:$true] %s14954_s30 }
 0xcef   :  { %s20431_s2 = scalar_lea.vmem %s14955_s30, 32  ;;  %s20435_s13 = scalar_lea.vmem %s14955_s30, 128 }
 0xcf0   :  { %p20432_p2 = scmp.ne.s32.totalorder %s14955_s30, %s20431_s2  ;;  %p20436_p3 = scmp.lt.s32.totalorder %s14955_s30, %s14955_s30 }
 0xcf1   :  { %p20437_p4 = scmp.lt.s32.totalorder %s20435_s13, %s20431_s2 }
 0xcf3   :  { %p20438_p5 = por %p20437_p4, %p20436_p3 }
 0xcf5   :  { %p20439_p6 = pnand %p20438_p5, %p20432_p2 }
 0xcf7   :  { %20442 = shalt.err (!%p20439_p6)
}
 0xcf8   :  { %s20443_s3 = scalar_lea.hbm %s21011_s9, 32 }
 0xcf9   :  { %p20444_p7 = scmp.ne.s32.totalorder %s21011_s9, %s20443_s3  ;;  %p20447_p8 = scmp.lt.u32.totalorder %s20443_s3, %s21011_s9 }
 0xcfb   :  { %p20449_p9 = pnand %p20447_p8, %p20444_p7 }
 0xcfd   :  { %20452 = shalt.err (!%p20449_p9)
}
 0xcfe   :  { %s20484_s18 = smov 32   ;;  %s20485_s19 = smov 2  }
 0xcff   :  { %14960 = dma.vmem_to_hbm [thread:$0]  %s14955_s30, 32, %s21011_s9, [#allocation4], %s20484_s18, %s20484_s18, %s20485_s19  }
 0xd00   :  { %20463 = dma.done.wait [#allocation4], 128  }
 0xd01   :  { %20464 = vsyncadd [#allocation4], 4294967168 }
 0xd02   :  { %14964 = vsyncpa [#allocation3], 1 }
 0xd03   :  { %14965 = vsyncpa [#allocation6], 1 }
 0xd04   :  { %14966 = vsyncpa [#allocation9], 1 }
 0xd05   :  { %14967 = vsyncpa [#allocation12], 1 }
 0xd06   :  { %14968 = vsyncpa [#allocation15], 1 }
 0xd07   :  { %14969 = vsyncpa [#allocation4], 1 }

</bundles_post_ra>
